<compile_context>
chip_gen: v7x
topology: tpu7x:2x2x1
jax: 0.10.0
libtpu: 0.0.40
codegen_flags: <defaults>
</compile_context>

<pallas_src>
import numpy as np
import jax
import jax.numpy as jnp
from jax.experimental import pallas as pl
from jax.experimental.pallas import tpu as pltpu

# ----------------------- scaled-down configuration -----------------------
BATCH = 2
N_SAMPLES = 2048            # exp.n_samples            (orig 32768)
STFT_WIN = 128              # stft window              (orig 2048)
STFT_HOP = 64               # stft hop                 (orig 256)
N_FRAMES = N_SAMPLES // STFT_HOP        # 32           (orig 128)
SPEC_CH = STFT_WIN // 2     # 64 spectrogram channels  (orig 1024)
UNET_CH = SPEC_CH           # UNet channels            (orig 1024)
ENC_CH = 256                # encoder projection chans (orig 4096)
LATENT = 32                 # event embedding dim      (orig 256)
MICRO_CH = 32               # MicroEvent channels      (orig 256)
CONTEXT_DIM = 16            # context_dim              (orig 16)
N_EVENTS = 4                # n_events                 (orig 16)
RES_SAMPLES = N_SAMPLES     # resonance / res2 size    (orig 32768)
IMPULSE = 512               # impulse_size             (orig 8192)
N_RES1 = 64                 # n_res1                   (orig 2048)
N_RES2 = 16                 # n_res2                   (orig 64)
REFRACTORY = 8              # refractory_period        (orig 8)
NF_IMP = 8                  # impulse frames
INSTR_NF = 32               # InstrumentModel frames   (orig 128)
INSTR_WIN = RES_SAMPLES // INSTR_NF     # 64           (orig 512 window)
N_ROOMS = 4                 # ReverbGenerator rooms

assert LATENT == MICRO_CH   # packing below relies on this

# packed "micro heads" output layout (lane-dense, padded to 128 columns)
OFF_RES1 = 0
OFF_RES2 = OFF_RES1 + N_RES1          # 64
OFF_MIX = OFF_RES2 + N_RES2           # 80  (stored post-softmax * amp)
OFF_SHIFT = OFF_MIX + 3               # 83  (stored post-sigmoid * 0.01)
OFF_AMP = OFF_SHIFT + 1               # 84  (raw amp, already folded into mix)
OFF_ENV = OFF_AMP + 1                 # 85  (stored post-sigmoid^2)
HEADS_USED = OFF_ENV + NF_IMP         # 93
HEADS_PAD = 128

VMEM_BUDGET = 24 << 20      # conservative per-call working-set budget


def _round_up(x, m):
    return ((x + m - 1) // m) * m


# ----------------------------- Pallas kernels -----------------------------
def _stft_mag_kernel(fr_ref, dft_ref, o_ref):
    # fused pre-windowed [cos | sin] DFT: one matmul, re/im split at lane 128
    fr = fr_ref[...].astype(jnp.bfloat16)
    ri = jnp.dot(fr, dft_ref[...], preferred_element_type=jnp.float32)
    re = ri[:, :128]
    im = ri[:, 128:]
    o_ref[...] = jnp.sqrt(re * re + im * im + 1e-12)


def _res2_kernel(sel_ref, bank_ref, o_ref):
    # fused: relu(selection) @ bank + unit_norm epilogue (one HBM pass)
    sel = jnp.maximum(sel_ref[...], 0.0).astype(jnp.bfloat16)
    r = jnp.dot(sel, bank_ref[...], preferred_element_type=jnp.float32)
    nrm = jnp.sqrt(jnp.sum(r * r, axis=-1, keepdims=True))
    o_ref[...] = r / (nrm + 1e-8)


def _micro_heads_kernel(lat_ref, w0_ref, b0_ref, wl_ref, bl_ref, lg_ref,
                        lb_ref, seg_ref, ws_ref, wlo_ref, bo_ref, o_ref):
    # fused: three LinearOutputStacks packed block-diagonally in 96 lanes
    # (one matmul / layer, per-stack LayerNorm via a constant segment-average
    # matmul) + to_shift + to_amp + impulse-envelope projection, with the
    # softmax(mix)*amp / sigmoid(shift)*0.01 / sigmoid(env)^2 epilogues fused
    # on the packed 128-lane output via lane masks.
    lat = lat_ref[...]
    latb = lat.astype(jnp.bfloat16)
    seg = seg_ref[...]                                              # (96,96)
    h = jnp.dot(latb, w0_ref[...], preferred_element_type=jnp.float32) + b0_ref[...]
    for l in range(3):
        h = jnp.dot(h.astype(jnp.bfloat16), wl_ref[l, :, :],
                    preferred_element_type=jnp.float32) + bl_ref[l, :, :]
        h = jnp.where(h >= 0, h, 0.2 * h)
        m = jnp.dot(h, seg, preferred_element_type=jnp.float32)     # seg means
        c = h - m
        v = jnp.dot(c * c, seg, preferred_element_type=jnp.float32)
        h = c * jax.lax.rsqrt(v + 1e-5) * lg_ref[l, :, :] + lb_ref[l, :, :]
    acc = (jnp.dot(h.astype(jnp.bfloat16), ws_ref[...],
                   preferred_element_type=jnp.float32)
           + jnp.dot(latb, wlo_ref[...], preferred_element_type=jnp.float32)
           + bo_ref[...])
    # fused epilogues on the packed lanes
    lane = jax.lax.broadcasted_iota(jnp.int32, acc.shape, 1)
    out = jnp.where(lane < OFF_MIX, jnp.maximum(acc, 0.0), acc)     # relu res1|res2
    mmask = (lane >= OFF_MIX) & (lane < OFF_MIX + 3)
    mmax = jnp.max(jnp.where(mmask, acc, -1e30), axis=-1, keepdims=True)
    e = jnp.where(mmask, jnp.exp(jnp.minimum(acc - mmax, 0.0)), 0.0)
    s = jnp.sum(e, axis=-1, keepdims=True)
    amp = jnp.sum(jnp.where(lane == OFF_AMP, acc, 0.0), axis=-1, keepdims=True)
    out = jnp.where(mmask, e * (amp / s), out)                      # softmax(mix)*amp
    out = jnp.where(lane == OFF_SHIFT, jax.nn.sigmoid(acc) * 0.01, out)
    emask = (lane >= OFF_ENV) & (lane < OFF_ENV + NF_IMP)
    out = jnp.where(emask, jax.nn.sigmoid(acc) ** 2, out)           # impulse env
    o_ref[...] = out


def _instr_kernel(fr_ref, lat_ref, we_ref, be_ref, wu_ref, bu_ref, o_ref):
    # fused InstrumentModel: [frames|latent] -> one embed matmul -> upsample+tanh
    x = jnp.concatenate([fr_ref[...], lat_ref[...]], axis=-1).astype(jnp.bfloat16)
    e = jnp.dot(x, we_ref[...], preferred_element_type=jnp.float32) + be_ref[...]
    o_ref[...] = jnp.tanh(jnp.dot(e.astype(jnp.bfloat16), wu_ref[...],
                                  preferred_element_type=jnp.float32) + bu_ref[...])


def _unet_kernel(x_ref, dsel_ref, dw_ref, db_ref, dg_ref, dbe_ref,
                 usel_ref, uw_ref, ub_ref, ug_ref, ube_ref,
                 pw_ref, pb_ref, o_ref):
    # Whole UNet for one batch element.  Feature maps are (32, C) with only the
    # first T rows valid; stride-2 conv / conv-transpose are constant 0/1
    # selection matmuls (exact in bf16).  Per layer the 3/4 tap contributions
    # are lane-concatenated into one K=192/256 matmul with row-stacked weights.
    # TODO(synk): Dropout(0.1) omitted; BatchNorm1d uses eval-mode identity
    # running stats with gamma/beta affine (Conv -> bias -> LeakyReLU -> BN).
    x = x_ref[...]                                                  # (32, C) f32
    context = {}
    t = N_FRAMES
    for l in range(5):                                              # down path
        t //= 2
        xb = x.astype(jnp.bfloat16)
        sx = jnp.concatenate(
            [jnp.dot(dsel_ref[l, j, :, :], xb, preferred_element_type=jnp.float32)
             for j in range(3)], axis=-1).astype(jnp.bfloat16)      # (32, 3C)
        y = jnp.dot(sx, dw_ref[l, :, :],
                    preferred_element_type=jnp.float32) + db_ref[l, :, :]
        y = jnp.where(y >= 0, y, 0.2 * y)
        x = y * dg_ref[l, :, :] + dbe_ref[l, :, :]
        context[t] = x
    for l in range(5):                                              # up path
        t *= 2
        xb = x.astype(jnp.bfloat16)
        sx = jnp.concatenate(
            [jnp.dot(usel_ref[l, j, :, :], xb, preferred_element_type=jnp.float32)
             for j in range(4)], axis=-1).astype(jnp.bfloat16)      # (32, 4C)
        y = jnp.dot(sx, uw_ref[l, :, :],
                    preferred_element_type=jnp.float32) + ub_ref[l, :, :]
        y = jnp.where(y >= 0, y, 0.2 * y)
        x = y * ug_ref[l, :, :] + ube_ref[l, :, :]
        if t in context:
            x = x + context[t]
    o_ref[...] = (jnp.dot(x.astype(jnp.bfloat16), pw_ref[...],
                          preferred_element_type=jnp.float32) + pb_ref[...])


# ----------------------------- Pallas wrappers -----------------------------
def _pick_tm(m, bytes_per_row, budget, max_tm=128):
    if m % 8 != 0:
        tm = m if m <= max_tm else 8
    else:
        half = m // 2
        tm = half if (half % 8 == 0 and half <= max_tm) else min(m, max_tm)
    # VMEM-aware cap: double-buffered row-tiled blocks must fit the budget
    while tm > 8 and 2 * tm * bytes_per_row > budget:
        tm = max(((tm // 2) // 8) * 8, 8)
    return max(tm, 1)


def _row_call(kernel, rows, mats, n_cols, max_tm=128):
    """Row-tiled pallas_call: `rows` are (M, K_i) tiled inputs, `mats` broadcast."""
    M = rows[0].shape[0]
    bytes_per_row = sum(r.shape[1] * r.dtype.itemsize for r in rows) + n_cols * 4
    const_bytes = sum(int(np.prod(m.shape)) * m.dtype.itemsize for m in mats)
    budget = max(VMEM_BUDGET - 2 * const_bytes, 1 << 20)
    tm = _pick_tm(M, bytes_per_row, budget, max_tm)
    Mp = _round_up(M, tm)
    if Mp != M:
        rows = [jnp.pad(r, ((0, Mp - M), (0, 0))) for r in rows]
    in_specs = [pl.BlockSpec((tm, r.shape[1]), lambda i: (i, 0)) for r in rows]
    in_specs += [pl.BlockSpec(m.shape, lambda i, nd=m.ndim: (0,) * nd)
                 for m in mats]
    out = pl.pallas_call(
        kernel,
        out_shape=jax.ShapeDtypeStruct((Mp, n_cols), jnp.float32),
        grid=(Mp // tm,),
        in_specs=in_specs,
        out_specs=pl.BlockSpec((tm, n_cols), lambda i: (i, 0)),
        compiler_params=pltpu.CompilerParams(
            dimension_semantics=("parallel",),
            vmem_limit_bytes=32 * 1024 * 1024),
    )(*rows, *mats)
    return out[:M] if Mp != M else out


_UNET_KEYS = ('dsel', 'dw', 'db', 'dg', 'dbe',
              'usel', 'uw', 'ub', 'ug', 'ube', 'proj_w', 'proj_b')


def pallas_unet(spec, p):
    # grid=(B,) "parallel": one block per v7x TensorCore; on single-TC v5e/v6e
    # this is a 2-step loop (batch-into-rows fold would trade that for bigger
    # matmuls, but would lose the v7x 2-core split).
    B = spec.shape[0]
    in_specs = [pl.BlockSpec((None, N_FRAMES, UNET_CH), lambda b: (b, 0, 0))]
    in_specs += [pl.BlockSpec(p[k].shape, lambda b, nd=p[k].ndim: (0,) * nd)
                 for k in _UNET_KEYS]
    return pl.pallas_call(
        _unet_kernel,
        out_shape=jax.ShapeDtypeStruct((B, N_FRAMES, ENC_CH), jnp.float32),
        grid=(B,),
        in_specs=in_specs,
        out_specs=pl.BlockSpec((None, N_FRAMES, ENC_CH), lambda b: (b, 0, 0)),
        compiler_params=pltpu.CompilerParams(
            dimension_semantics=("parallel",),
            vmem_limit_bytes=32 * 1024 * 1024),
    )(spec, *(p[k] for k in _UNET_KEYS))


# ------------------------------ glue helpers ------------------------------
def fft_convolve(a, b):
    n = a.shape[-1]
    pad_a = [(0, 0)] * (a.ndim - 1) + [(0, a.shape[-1])]
    pad_b = [(0, 0)] * (b.ndim - 1) + [(0, b.shape[-1])]
    sa = jnp.fft.rfft(jnp.pad(a, pad_a), axis=-1)
    sb = jnp.fft.rfft(jnp.pad(b, pad_b), axis=-1)
    return jnp.fft.irfft(sa * sb, axis=-1)[..., :n]


def fft_conv_with_padding(a, b):
    diff = b.shape[-1] - a.shape[-1]
    a = jnp.pad(a, [(0, 0)] * (a.ndim - 1) + [(0, diff)])
    return fft_convolve(a, b)[..., :b.shape[-1]]


def fft_shift(a, shift):
    n = a.shape[-1]
    spec = jnp.fft.rfft(a, axis=-1)
    k = jnp.arange(spec.shape[-1])[None, None, :]
    phase = jnp.exp(-2j * jnp.pi * k * (shift * n) / n)
    return jnp.fft.irfft(spec * phase, axis=-1, n=n)


def unit_norm(x, axis=-1):
    return x / (jnp.linalg.norm(x, axis=axis, keepdims=True) + 1e-8)


def layer_norm(x, g, b, eps=1e-5):
    m = x.mean(-1, keepdims=True)
    v = x.var(-1, keepdims=True)
    return (x - m) / jnp.sqrt(v + eps) * g + b


def sparsify2(encoded, n_to_keep):
    # TODO(synk): exact sparsify2 impl is upstream-undefined; top-k over
    # (channel, time) with dirac packing + channel one-hots is used here.
    B, C, T = encoded.shape
    flat = encoded.reshape(B, C * T)
    vals, idx = jax.lax.top_k(flat, n_to_keep)
    ch, t = idx // T, idx % T
    one_hot = jax.nn.one_hot(ch, C, dtype=jnp.float32)               # (B,n,C)
    packed = jax.nn.one_hot(t, T, dtype=jnp.float32) * vals[..., None]
    bidx = jnp.arange(B)[:, None]
    sparse = jnp.zeros_like(flat).at[bidx, idx].set(vals).reshape(B, C, T)
    return sparse, packed, one_hot


# ------------------------------- sub-modules -------------------------------
def stft_mag(x, p):
    B = x.shape[0]
    xp = jnp.pad(x, ((0, 0), (0, STFT_WIN - STFT_HOP)))
    idx = (jnp.arange(N_FRAMES)[:, None] * STFT_HOP +
           jnp.arange(STFT_WIN)[None, :])
    frames = xp[:, idx]                                              # (B,F,W)
    mag = _row_call(_stft_mag_kernel, [frames.reshape(-1, STFT_WIN)],
                    [p['dft']], 128)
    # keep first SPEC_CH bins (nyquist bin discarded as in the original)
    return mag.reshape(B, N_FRAMES, 128)[..., :SPEC_CH]              # (B,T,C)


def instrument_model(p, latent, impulse):
    B, E, _ = latent.shape
    imp = jnp.pad(impulse, ((0, 0), (0, 0), (0, RES_SAMPLES - IMPULSE)))
    frames = imp.reshape(B * E * INSTR_NF, INSTR_WIN)
    lat_rows = jnp.repeat(latent.reshape(B * E, LATENT), INSTR_NF, axis=0)
    # TODO(synk): PosEncodedUpsample is upstream-undefined; approximated with a
    # per-frame linear projection to samples-per-frame + tanh (fused kernel).
    s = _row_call(_instr_kernel, [frames, lat_rows],
                  [p['w_embed'], p['b_embed'], p['w_up'], p['b_up']], 128)
    return s[:, :INSTR_WIN].reshape(B, E, RES_SAMPLES)


def micro_event(p, latent):
    B, E, _ = latent.shape
    heads = _row_call(_micro_heads_kernel, [latent.reshape(-1, LATENT)],
                      [p['w0'], p['b0'], p['wl'], p['bl'], p['lg'], p['lb'],
                       p['seg'], p['ws_out'], p['wl_out'], p['bo']],
                      HEADS_PAD)                                     # (B*E,128)
    # lanes 0:64 hold relu(res1_sel); unused downstream, as in the original.
    res2_sel = heads[:, OFF_RES2:OFF_RES2 + N_RES2]                  # relu'd
    wmix = heads[:, OFF_MIX:OFF_MIX + 3]                             # softmax*amp
    shift = heads[:, OFF_SHIFT:OFF_SHIFT + 1]                        # sigmoid*0.01
    env_fr = heads[:, OFF_ENV:OFF_ENV + NF_IMP]                      # sigmoid^2

    # TODO(synk): ConvUpsample + NoiseModel are upstream-undefined; approximated
    # as a learned per-frame sigmoid^2 envelope applied to a fixed noise buffer
    # (channel sum folded into the projection weight).
    env_up = jnp.repeat(env_fr, IMPULSE // NF_IMP, axis=-1)
    imp = (env_up * p['noise'][None, :]).reshape(B, E, IMPULSE)

    instr = instrument_model(p['instr'], latent, imp)
    imp = unit_norm(imp)

    # TODO(synk): fft_frequency_decompose/recompose round-trip omitted; the res2
    # bank is stored densely; relu + matmul + unit_norm fused in one kernel.
    res2 = _row_call(_res2_kernel, [res2_sel], [p['res2_bank']], RES_SAMPLES)
    res2 = res2.reshape(B, E, RES_SAMPLES)

    conv1 = instr
    conv2 = fft_conv_with_padding(conv1, res2)
    imp_p = jnp.pad(imp, ((0, 0), (0, 0), (0, RES_SAMPLES - IMPULSE)))

    # amps commute with the linear fft_shift and are already folded into wmix;
    # the 3-way mix is a tiny elementwise op -> plain XLA (fuses for free).
    w = wmix.reshape(B, E, 3)
    final = (imp_p * w[..., 0:1] + conv1 * w[..., 1:2] + conv2 * w[..., 2:3])
    env = res2
    final = fft_shift(final, shift.reshape(B, E, 1))
    return final, env


def reverb(p, dense, signal):
    # TODO(synk): ReverbGenerator is upstream-undefined; simplified as softmax
    # room selection over a fixed decaying-noise IR bank with wet/dry mix.
    d = layer_norm(dense, p['ln_g'], p['ln_b'])
    h = d @ p['heads_w'] + p['heads_b']                              # (B, 6)
    rooms = jax.nn.softmax(h[:, :N_ROOMS], axis=-1)
    mix = jax.nn.softmax(h[:, N_ROOMS:N_ROOMS + 2], axis=-1)
    dry = jnp.sum(signal, axis=1, keepdims=True)                     # (B,1,N)
    ir = (rooms @ p['ir_bank'])[:, None, :]
    wet = fft_convolve(dry, ir)[..., :N_SAMPLES]
    return dry * mix[:, 0:1, None] + wet * mix[:, 1:2, None]


# --------------------------------- Model ---------------------------------
def generate(params, encoded, one_hot, packed, _dense_in):
    B = encoded.shape[0]
    ctxt = jnp.sum(encoded, axis=-1)                                 # (B,ENC_CH)
    # 2-row linears are below custom-call overhead -> plain XLA dots
    ch = ctxt @ params['ctxt_heads_w'] + params['ctxt_heads_b']
    dense = ch[:, :CONTEXT_DIM]                                      # embed_memory_context
    ce = ch[:, CONTEXT_DIM:CONTEXT_DIM + LATENT]                     # embed_context
    oh = (one_hot.reshape(-1, ENC_CH) @ params['embed_one_hot_w']
          + params['embed_one_hot_b'])
    embeddings = ce[:, None, :] + oh.reshape(B, N_EVENTS, LATENT)
    mixed, env = micro_event(params['micro'], embeddings)            # amps fused inside
    final = mixed                                                    # RES_SAMPLES == N_SAMPLES
    up = jnp.zeros((B, N_EVENTS, N_SAMPLES),
                   jnp.float32).at[:, :, ::STFT_HOP].set(packed)
    final = fft_convolve(final, up)[..., :N_SAMPLES]
    final = reverb(params['verb'], dense, final)
    return final, env


def model_forward(params, x, noise_key):
    # encode
    spec = stft_mag(x, params)                                       # (B,32,64)
    encoded = pallas_unet(spec, params['unet']).transpose(0, 2, 1)   # (B,256,32)
    # TODO(synk): F.dropout(0.05) omitted (eval mode).
    # TODO(synk): exact make_refractory_filter form unknown; decaying ramp used.
    ref = jnp.pad(params['refractory'],
                  ((0, 0), (0, 0), (0, N_FRAMES - REFRACTORY)))
    encoded = fft_convolve(encoded, ref)[..., :N_FRAMES]
    # forward
    non_sparse = jnp.mean(encoded, axis=-1)
    stats = non_sparse @ params['ctx_stats_w'] + params['ctx_stats_b']
    ns_mean = stats[:, :CONTEXT_DIM]
    ns_std = stats[:, CONTEXT_DIM:2 * CONTEXT_DIM]
    noise = jax.random.normal(noise_key, ns_mean.shape, jnp.float32)
    non_sparse = ns_mean + noise * ns_std
    encoded, packed, one_hot = sparsify2(encoded, N_EVENTS)
    final, env = generate(params, encoded, one_hot, packed, non_sparse)
    return final, encoded, env, non_sparse


# ----------------------------- parameter init -----------------------------
class _KeyGen:
    def __init__(self, key):
        self.key = key

    def __call__(self):
        self.key, sub = jax.random.split(self.key)
        return sub


def _u(k, shape, scale=0.1):
    return jax.random.uniform(k, shape, jnp.float32, -scale, scale)


def _down_sel_np(t_in):
    # Conv1d(k=3, s=2, p=1): out[t] uses in[2t + j - 1], j = 0..2
    s = np.zeros((3, N_FRAMES, N_FRAMES), np.float32)
    for j in range(3):
        for t in range(t_in // 2):
            src = 2 * t + j - 1
            if 0 <= src < t_in:
                s[j, t, src] = 1.0
    return s


def _up_sel_np(t_in):
    # ConvTranspose1d(k=4, s=2, p=1): out[o] += in[i] * w[..,j], o = 2i - 1 + j
    s = np.zeros((4, N_FRAMES, N_FRAMES), np.float32)
    for j in range(4):
        for o in range(t_in * 2):
            num = o + 1 - j
            if num % 2 == 0 and 0 <= num // 2 < t_in:
                s[j, o, num // 2] = 1.0
    return s


def init_params(key):
    kg = _KeyGen(key)
    C = UNET_CH
    bf = jnp.bfloat16

    # fused, pre-windowed DFT: [cos | 0 | sin | 0] -> (STFT_WIN, 256)
    window = 0.5 - 0.5 * jnp.cos(2 * jnp.pi * jnp.arange(STFT_WIN) / STFT_WIN)
    n = jnp.arange(STFT_WIN)[:, None].astype(jnp.float32)
    k = jnp.arange(SPEC_CH)[None, :].astype(jnp.float32)
    dft_cos = window[:, None] * jnp.cos(2 * jnp.pi * n * k / STFT_WIN)
    dft_sin = window[:, None] * (-jnp.sin(2 * jnp.pi * n * k / STFT_WIN))
    dft = (jnp.zeros((STFT_WIN, 256), jnp.float32)
           .at[:, :SPEC_CH].set(dft_cos)
           .at[:, 128:128 + SPEC_CH].set(dft_sin))

    # micro heads: 3 stacks packed block-diagonally in 96 lanes
    PK = 3 * MICRO_CH
    wl = jnp.zeros((3, PK, PK), jnp.float32)
    for l in range(3):
        for s in range(3):
            wl = wl.at[l, s * MICRO_CH:(s + 1) * MICRO_CH,
                       s * MICRO_CH:(s + 1) * MICRO_CH].set(
                _u(kg(), (MICRO_CH, MICRO_CH)))
    seg = jnp.zeros((PK, PK), jnp.float32)
    for s in range(3):
        seg = seg.at[s * MICRO_CH:(s + 1) * MICRO_CH,
                     s * MICRO_CH:(s + 1) * MICRO_CH].set(1.0 / MICRO_CH)
    ws_out = jnp.zeros((PK, HEADS_PAD), jnp.float32)
    ws_out = ws_out.at[0:MICRO_CH, OFF_RES1:OFF_RES1 + N_RES1].set(
        _u(kg(), (MICRO_CH, N_RES1)))
    ws_out = ws_out.at[MICRO_CH:2 * MICRO_CH, OFF_RES2:OFF_RES2 + N_RES2].set(
        _u(kg(), (MICRO_CH, N_RES2)))
    ws_out = ws_out.at[2 * MICRO_CH:PK, OFF_MIX:OFF_MIX + 3].set(
        _u(kg(), (MICRO_CH, 3)))
    wl_out = jnp.zeros((LATENT, HEADS_PAD), jnp.float32)
    wl_out = wl_out.at[:, OFF_SHIFT].set(_u(kg(), (LATENT,)))
    wl_out = wl_out.at[:, OFF_AMP].set(_u(kg(), (LATENT,)))
    wl_out = wl_out.at[:, OFF_ENV:OFF_ENV + NF_IMP].set(_u(kg(), (LATENT, NF_IMP)))

    params = {
        'dft': dft.astype(bf),
        'refractory': (jnp.linspace(1.0, 0.0, REFRACTORY) ** 10
                       ).reshape(1, 1, REFRACTORY),
        'unet': {
            'dsel': jnp.asarray(np.stack([_down_sel_np(t) for t in (32, 16, 8, 4, 2)]), bf),
            'dw': _u(kg(), (5, 3 * C, C)).astype(bf),
            'db': jnp.zeros((5, 1, C)), 'dg': jnp.ones((5, 1, C)),
            'dbe': jnp.zeros((5, 1, C)),
            'usel': jnp.asarray(np.stack([_up_sel_np(t) for t in (1, 2, 4, 8, 16)]), bf),
            'uw': _u(kg(), (5, 4 * C, C)).astype(bf),
            'ub': jnp.zeros((5, 1, C)), 'ug': jnp.ones((5, 1, C)),
            'ube': jnp.zeros((5, 1, C)),
            'proj_w': _u(kg(), (C, ENC_CH)).astype(bf),
            'proj_b': jnp.zeros((1, ENC_CH)),
        },
        # packed: [embed_memory_context(16) | embed_context(32)] (plain XLA dot)
        'ctxt_heads_w': jnp.concatenate([_u(kg(), (ENC_CH, CONTEXT_DIM)),
                                         _u(kg(), (ENC_CH, LATENT))], axis=1),
        'ctxt_heads_b': jnp.zeros((CONTEXT_DIM + LATENT,)),
        'embed_one_hot_w': _u(kg(), (ENC_CH, LATENT)),
        'embed_one_hot_b': jnp.zeros((LATENT,)),
        # packed: [to_context_mean(16) | to_context_std(16)] (plain XLA dot)
        'ctx_stats_w': jnp.concatenate([_u(kg(), (ENC_CH, CONTEXT_DIM)),
                                        _u(kg(), (ENC_CH, CONTEXT_DIM))], axis=1),
        'ctx_stats_b': jnp.zeros((2 * CONTEXT_DIM,)),
        'verb': {
            'ln_g': jnp.ones((CONTEXT_DIM,)), 'ln_b': jnp.zeros((CONTEXT_DIM,)),
            'heads_w': jnp.concatenate([_u(kg(), (CONTEXT_DIM, N_ROOMS)),
                                        _u(kg(), (CONTEXT_DIM, 2))], axis=1),
            'heads_b': jnp.zeros((N_ROOMS + 2,)),
            'ir_bank': _u(kg(), (N_ROOMS, N_SAMPLES), 1.0) *
                       (jnp.linspace(1.0, 0.0, N_SAMPLES) ** 6)[None, :],
        },
        'micro': {
            'w0': jnp.concatenate([_u(kg(), (LATENT, MICRO_CH))
                                   for _ in range(3)], axis=1).astype(bf),
            'b0': jnp.zeros((1, PK)),
            'wl': wl.astype(bf), 'bl': jnp.zeros((3, 1, PK)),
            'lg': jnp.ones((3, 1, PK)), 'lb': jnp.zeros((3, 1, PK)),
            'seg': seg,
            'ws_out': ws_out.astype(bf), 'wl_out': wl_out.astype(bf),
            'bo': jnp.zeros((1, HEADS_PAD)),
            'noise': _u(kg(), (IMPULSE,), 1.0),
            'res2_bank': (_u(kg(), (N_RES2, RES_SAMPLES), 1.0) *
                          (jnp.linspace(1.0, 0.0, RES_SAMPLES) ** 14)[None, :]
                          ).astype(bf),
            'instr': {
                'w_embed': _u(kg(), (INSTR_WIN + LATENT, MICRO_CH)).astype(bf),
                'b_embed': jnp.zeros((1, MICRO_CH)),
                'w_up': jnp.pad(_u(kg(), (MICRO_CH, INSTR_WIN)),
                                ((0, 0), (0, 128 - INSTR_WIN))).astype(bf),
                'b_up': jnp.zeros((1, 128)),
            },
        },
    }
    return params


# ----------------------------------- main -----------------------------------
if __name__ == "__main__":
    root = jax.random.PRNGKey(0)
    pkey, xkey, nkey = jax.random.split(root, 3)
    params = init_params(pkey)
    x = jax.random.normal(xkey, (BATCH, N_SAMPLES), jnp.float32)

    fwd = jax.jit(model_forward)
    final, encoded, env, non_sparse = fwd(params, x, nkey)
    jax.block_until_ready((final, encoded, env, non_sparse))

    assert final.shape == (BATCH, 1, N_SAMPLES)
    assert encoded.shape == (BATCH, ENC_CH, N_FRAMES)
    assert env.shape == (BATCH, N_EVENTS, RES_SAMPLES)
    assert non_sparse.shape == (BATCH, CONTEXT_DIM)
    print("KERNEL_OK")
</pallas_src>

<mosaic_0001>
module attributes {stable_mosaic.version = 11 : i64} {
  func.func private @main(%arg0: i32) attributes {dimension_semantics = [#tpu.dimension_semantics<core_parallel>], iteration_bounds = array<i64: 2>, tpu.core_type = #tpu.core_type<sc_scalar_subcore>, window_params = []} {
    return
  }
}

module attributes {stable_mosaic.version = 11 : i64} {
  func.func private @main(%arg0: i32) attributes {dimension_semantics = [#tpu.dimension_semantics<core_parallel>], iteration_bounds = array<i64: 2>, tpu.core_type = #tpu.core_type<sc_scalar_subcore>, window_params = []} {
    return
  }
}

module attributes {stable_mosaic.version = 11 : i64} {
  func.func @_stft_mag_kernel(%arg0: i32, %arg1: memref<32x128xf32, #tpu.memory_space<vmem>>, %arg2: memref<128x256xbf16, #tpu.memory_space<vmem>>, %arg3: memref<32x128xf32, #tpu.memory_space<vmem>>) attributes {dimension_semantics = [#tpu.dimension_semantics<parallel>], iteration_bounds = array<i64: 2>, scalar_prefetch = 0 : i64, scratch_operands = 0 : i64, tpu.core_type = #tpu.core_type<tc>, window_params = [{transform_indices = @transform_0, window_bounds = array<i64: 32, 128>}, {pipeline_mode = #tpu.pipeline_mode<synchronous>, transform_indices = @transform_1, window_bounds = array<i64: 128, 256>}, {transform_indices = @transform_2, window_bounds = array<i64: 32, 128>}]} {
    %c0 = arith.constant 0 : index
    %c0_0 = arith.constant 0 : index
    %0 = vector.load %arg1[%c0, %c0_0] : memref<32x128xf32, #tpu.memory_space<vmem>>, vector<32x128xf32>
    %1 = arith.truncf %0 : vector<32x128xf32> to vector<32x128xbf16>
    %c0_1 = arith.constant 0 : index
    %c0_2 = arith.constant 0 : index
    %2 = vector.load %arg2[%c0_1, %c0_2] : memref<128x256xbf16, #tpu.memory_space<vmem>>, vector<128x256xbf16>
    %cst = arith.constant dense<0.000000e+00> : vector<32x256xf32>
    %3 = tpu.matmul %1, %2, %cst {dimension_numbers = #tpu.dot_dimension_numbers<[1], [0], [0], [1], [0, 0, 1, 1], [], []>} : vector<32x128xbf16>, vector<128x256xbf16>, vector<32x256xf32> -> vector<32x256xf32>
    %4 = vector.extract_strided_slice %3 {offsets = [0, 0], sizes = [32, 128], strides = [1, 1]} : vector<32x256xf32> to vector<32x128xf32>
    %5 = vector.extract_strided_slice %3 {offsets = [0, 128], sizes = [32, 128], strides = [1, 1]} : vector<32x256xf32> to vector<32x128xf32>
    %6 = arith.mulf %4, %4 : vector<32x128xf32>
    %7 = arith.mulf %5, %5 : vector<32x128xf32>
    %8 = arith.addf %6, %7 : vector<32x128xf32>
    %cst_3 = arith.constant 9.99999996E-13 : f32
    %9 = vector.broadcast %cst_3 : f32 to vector<32x128xf32>
    %10 = arith.addf %8, %9 : vector<32x128xf32>
    %11 = math.sqrt %10 : vector<32x128xf32>
    %c0_4 = arith.constant 0 : index
    %c0_5 = arith.constant 0 : index
    %12 = vector.load %arg3[%c0_4, %c0_5] : memref<32x128xf32, #tpu.memory_space<vmem>>, vector<32x128xf32>
    tpu.vector_store %arg3[%c0_4, %c0_5], %11 {strides = array<i32>} : memref<32x128xf32, #tpu.memory_space<vmem>>, vector<32x128xf32>,
    return
  }
  func.func @transform_0(%arg0: i32) -> (i32, i32) {
    %c0_i32 = arith.constant 0 : i32
    %c0_i32_0 = arith.constant 0 : i32
    return %arg0, %c0_i32 : i32, i32
  }
  func.func @transform_1(%arg0: i32) -> (i32, i32) {
    %c0_i32 = arith.constant 0 : i32
    %c0_i32_0 = arith.constant 0 : i32
    %c0_i32_1 = arith.constant 0 : i32
    return %c0_i32, %c0_i32_0 : i32, i32
  }
  func.func @transform_2(%arg0: i32) -> (i32, i32) {
    %c0_i32 = arith.constant 0 : i32
    %c0_i32_0 = arith.constant 0 : i32
    return %arg0, %c0_i32 : i32, i32
  }
}

module attributes {stable_mosaic.version = 11 : i64} {
  func.func @_unet_kernel(%arg0: i32, %arg1: memref<1x32x64xf32, #tpu.memory_space<vmem>>, %arg2: memref<5x3x32x32xbf16, #tpu.memory_space<vmem>>, %arg3: memref<5x192x64xbf16, #tpu.memory_space<vmem>>, %arg4: memref<5x1x64xf32, #tpu.memory_space<vmem>>, %arg5: memref<5x1x64xf32, #tpu.memory_space<vmem>>, %arg6: memref<5x1x64xf32, #tpu.memory_space<vmem>>, %arg7: memref<5x4x32x32xbf16, #tpu.memory_space<vmem>>, %arg8: memref<5x256x64xbf16, #tpu.memory_space<vmem>>, %arg9: memref<5x1x64xf32, #tpu.memory_space<vmem>>, %arg10: memref<5x1x64xf32, #tpu.memory_space<vmem>>, %arg11: memref<5x1x64xf32, #tpu.memory_space<vmem>>, %arg12: memref<64x256xbf16, #tpu.memory_space<vmem>>, %arg13: memref<1x256xf32, #tpu.memory_space<vmem>>, %arg14: memref<1x32x256xf32, #tpu.memory_space<vmem>>) attributes {dimension_semantics = [#tpu.dimension_semantics<parallel>], iteration_bounds = array<i64: 2>, scalar_prefetch = 0 : i64, scratch_operands = 0 : i64, tpu.core_type = #tpu.core_type<tc>, window_params = [{transform_indices = @transform_0, window_bounds = array<i64: 1, 32, 64>}, {pipeline_mode = #tpu.pipeline_mode<synchronous>, transform_indices = @transform_1, window_bounds = array<i64: 5, 3, 32, 32>}, {pipeline_mode = #tpu.pipeline_mode<synchronous>, transform_indices = @transform_2, window_bounds = array<i64: 5, 192, 64>}, {pipeline_mode = #tpu.pipeline_mode<synchronous>, transform_indices = @transform_3, window_bounds = array<i64: 5, 1, 64>}, {pipeline_mode = #tpu.pipeline_mode<synchronous>, transform_indices = @transform_4, window_bounds = array<i64: 5, 1, 64>}, {pipeline_mode = #tpu.pipeline_mode<synchronous>, transform_indices = @transform_5, window_bounds = array<i64: 5, 1, 64>}, {pipeline_mode = #tpu.pipeline_mode<synchronous>, transform_indices = @transform_6, window_bounds = array<i64: 5, 4, 32, 32>}, {pipeline_mode = #tpu.pipeline_mode<synchronous>, transform_indices = @transform_7, window_bounds = array<i64: 5, 256, 64>}, {pipeline_mode = #tpu.pipeline_mode<synchronous>, transform_indices = @transform_8, window_bounds = array<i64: 5, 1, 64>}, {pipeline_mode = #tpu.pipeline_mode<synchronous>, transform_indices = @transform_9, window_bounds = array<i64: 5, 1, 64>}, {pipeline_mode = #tpu.pipeline_mode<synchronous>, transform_indices = @transform_10, window_bounds = array<i64: 5, 1, 64>}, {pipeline_mode = #tpu.pipeline_mode<synchronous>, transform_indices = @transform_11, window_bounds = array<i64: 64, 256>}, {pipeline_mode = #tpu.pipeline_mode<synchronous>, transform_indices = @transform_12, window_bounds = array<i64: 1, 256>}, {transform_indices = @transform_13, window_bounds = array<i64: 1, 32, 256>}]} {
    %c0 = arith.constant 0 : index
    %c0_0 = arith.constant 0 : index
    %c0_1 = arith.constant 0 : index
    %0 = vector.load %arg1[%c0, %c0_0, %c0_1] : memref<1x32x64xf32, #tpu.memory_space<vmem>>, vector<1x32x64xf32>
    %1 = vector.shape_cast %0 : vector<1x32x64xf32> to vector<32x64xf32>
    %2 = arith.truncf %1 : vector<32x64xf32> to vector<32x64xbf16>
    %c0_2 = arith.constant 0 : index
    %c0_3 = arith.constant 0 : index
    %c0_4 = arith.constant 0 : index
    %c0_5 = arith.constant 0 : index
    %3 = vector.load %arg2[%c0_2, %c0_3, %c0_4, %c0_5] : memref<5x3x32x32xbf16, #tpu.memory_space<vmem>>, vector<1x1x32x32xbf16>
    %4 = vector.shape_cast %3 : vector<1x1x32x32xbf16> to vector<32x32xbf16>
    %cst = arith.constant dense<0.000000e+00> : vector<32x64xf32>
    %5 = tpu.matmul %4, %2, %cst {dimension_numbers = #tpu.dot_dimension_numbers<[1], [0], [0], [1], [0, 0, 1, 1], [], []>} : vector<32x32xbf16>, vector<32x64xbf16>, vector<32x64xf32> -> vector<32x64xf32>
    %c0_6 = arith.constant 0 : index
    %c1 = arith.constant 1 : index
    %c0_7 = arith.constant 0 : index
    %c0_8 = arith.constant 0 : index
    %6 = vector.load %arg2[%c0_6, %c1, %c0_7, %c0_8] : memref<5x3x32x32xbf16, #tpu.memory_space<vmem>>, vector<1x1x32x32xbf16>
    %7 = vector.shape_cast %6 : vector<1x1x32x32xbf16> to vector<32x32xbf16>
    %cst_9 = arith.constant dense<0.000000e+00> : vector<32x64xf32>
    %8 = tpu.matmul %7, %2, %cst_9 {dimension_numbers = #tpu.dot_dimension_numbers<[1], [0], [0], [1], [0, 0, 1, 1], [], []>} : vector<32x32xbf16>, vector<32x64xbf16>, vector<32x64xf32> -> vector<32x64xf32>
    %c0_10 = arith.constant 0 : index
    %c2 = arith.constant 2 : index
    %c0_11 = arith.constant 0 : index
    %c0_12 = arith.constant 0 : index
    %9 = vector.load %arg2[%c0_10, %c2, %c0_11, %c0_12] : memref<5x3x32x32xbf16, #tpu.memory_space<vmem>>, vector<1x1x32x32xbf16>
    %10 = vector.shape_cast %9 : vector<1x1x32x32xbf16> to vector<32x32xbf16>
    %cst_13 = arith.constant dense<0.000000e+00> : vector<32x64xf32>
    %11 = tpu.matmul %10, %2, %cst_13 {dimension_numbers = #tpu.dot_dimension_numbers<[1], [0], [0], [1], [0, 0, 1, 1], [], []>} : vector<32x32xbf16>, vector<32x64xbf16>, vector<32x64xf32> -> vector<32x64xf32>
    %12 = tpu.concatenate %5, %8, %11 in 1 : vector<32x64xf32>, vector<32x64xf32>, vector<32x64xf32> -> vector<32x192xf32>
    %13 = arith.truncf %12 : vector<32x192xf32> to vector<32x192xbf16>
    %c0_14 = arith.constant 0 : index
    %c0_15 = arith.constant 0 : index
    %c0_16 = arith.constant 0 : index
    %14 = vector.load %arg3[%c0_14, %c0_15, %c0_16] : memref<5x192x64xbf16, #tpu.memory_space<vmem>>, vector<1x192x64xbf16>
    %15 = vector.shape_cast %14 : vector<1x192x64xbf16> to vector<192x64xbf16>
    %cst_17 = arith.constant dense<0.000000e+00> : vector<32x64xf32>
    %16 = tpu.matmul %13, %15, %cst_17 {dimension_numbers = #tpu.dot_dimension_numbers<[1], [0], [0], [1], [0, 0, 1, 1], [], []>} : vector<32x192xbf16>, vector<192x64xbf16>, vector<32x64xf32> -> vector<32x64xf32>
    %c0_18 = arith.constant 0 : index
    %c0_19 = arith.constant 0 : index
    %c0_20 = arith.constant 0 : index
    %17 = vector.load %arg4[%c0_18, %c0_19, %c0_20] : memref<5x1x64xf32, #tpu.memory_space<vmem>>, vector<1x1x64xf32>
    %18 = vector.shape_cast %17 : vector<1x1x64xf32> to vector<1x64xf32>
    %19 = vector.broadcast %18 : vector<1x64xf32> to vector<32x64xf32>
    %20 = arith.addf %16, %19 : vector<32x64xf32>
    %cst_21 = arith.constant 0.000000e+00 : f32
    %21 = vector.broadcast %cst_21 : f32 to vector<32x64xf32>
    %22 = arith.cmpf oge, %20, %21 : vector<32x64xf32>
    %cst_22 = arith.constant 2.000000e-01 : f32
    %23 = vector.broadcast %cst_22 : f32 to vector<32x64xf32>
    %24 = arith.mulf %23, %20 : vector<32x64xf32>
    %25 = arith.select %22, %20, %24 : vector<32x64xi1>, vector<32x64xf32>
    %c0_23 = arith.constant 0 : index
    %c0_24 = arith.constant 0 : index
    %c0_25 = arith.constant 0 : index
    %26 = vector.load %arg5[%c0_23, %c0_24, %c0_25] : memref<5x1x64xf32, #tpu.memory_space<vmem>>, vector<1x1x64xf32>
    %27 = vector.shape_cast %26 : vector<1x1x64xf32> to vector<1x64xf32>
    %28 = vector.broadcast %27 : vector<1x64xf32> to vector<32x64xf32>
    %29 = arith.mulf %25, %28 : vector<32x64xf32>
    %c0_26 = arith.constant 0 : index
    %c0_27 = arith.constant 0 : index
    %c0_28 = arith.constant 0 : index
    %30 = vector.load %arg6[%c0_26, %c0_27, %c0_28] : memref<5x1x64xf32, #tpu.memory_space<vmem>>, vector<1x1x64xf32>
    %31 = vector.shape_cast %30 : vector<1x1x64xf32> to vector<1x64xf32>
    %32 = vector.broadcast %31 : vector<1x64xf32> to vector<32x64xf32>
    %33 = arith.addf %29, %32 : vector<32x64xf32>
    %34 = arith.truncf %33 : vector<32x64xf32> to vector<32x64xbf16>
    %c1_29 = arith.constant 1 : index
    %c0_30 = arith.constant 0 : index
    %c0_31 = arith.constant 0 : index
    %c0_32 = arith.constant 0 : index
    %35 = vector.load %arg2[%c1_29, %c0_30, %c0_31, %c0_32] : memref<5x3x32x32xbf16, #tpu.memory_space<vmem>>, vector<1x1x32x32xbf16>
    %36 = vector.shape_cast %35 : vector<1x1x32x32xbf16> to vector<32x32xbf16>
    %cst_33 = arith.constant dense<0.000000e+00> : vector<32x64xf32>
    %37 = tpu.matmul %36, %34, %cst_33 {dimension_numbers = #tpu.dot_dimension_numbers<[1], [0], [0], [1], [0, 0, 1, 1], [], []>} : vector<32x32xbf16>, vector<32x64xbf16>, vector<32x64xf32> -> vector<32x64xf32>
    %c1_34 = arith.constant 1 : index
    %c1_35 = arith.constant 1 : index
    %c0_36 = arith.constant 0 : index
    %c0_37 = arith.constant 0 : index
    %38 = vector.load %arg2[%c1_34, %c1_35, %c0_36, %c0_37] : memref<5x3x32x32xbf16, #tpu.memory_space<vmem>>, vector<1x1x32x32xbf16>
    %39 = vector.shape_cast %38 : vector<1x1x32x32xbf16> to vector<32x32xbf16>
    %cst_38 = arith.constant dense<0.000000e+00> : vector<32x64xf32>
    %40 = tpu.matmul %39, %34, %cst_38 {dimension_numbers = #tpu.dot_dimension_numbers<[1], [0], [0], [1], [0, 0, 1, 1], [], []>} : vector<32x32xbf16>, vector<32x64xbf16>, vector<32x64xf32> -> vector<32x64xf32>
    %c1_39 = arith.constant 1 : index
    %c2_40 = arith.constant 2 : index
    %c0_41 = arith.constant 0 : index
    %c0_42 = arith.constant 0 : index
    %41 = vector.load %arg2[%c1_39, %c2_40, %c0_41, %c0_42] : memref<5x3x32x32xbf16, #tpu.memory_space<vmem>>, vector<1x1x32x32xbf16>
    %42 = vector.shape_cast %41 : vector<1x1x32x32xbf16> to vector<32x32xbf16>
    %cst_43 = arith.constant dense<0.000000e+00> : vector<32x64xf32>
    %43 = tpu.matmul %42, %34, %cst_43 {dimension_numbers = #tpu.dot_dimension_numbers<[1], [0], [0], [1], [0, 0, 1, 1], [], []>} : vector<32x32xbf16>, vector<32x64xbf16>, vector<32x64xf32> -> vector<32x64xf32>
    %44 = tpu.concatenate %37, %40, %43 in 1 : vector<32x64xf32>, vector<32x64xf32>, vector<32x64xf32> -> vector<32x192xf32>
    %45 = arith.truncf %44 : vector<32x192xf32> to vector<32x192xbf16>
    %c1_44 = arith.constant 1 : index
    %c0_45 = arith.constant 0 : index
    %c0_46 = arith.constant 0 : index
    %46 = vector.load %arg3[%c1_44, %c0_45, %c0_46] : memref<5x192x64xbf16, #tpu.memory_space<vmem>>, vector<1x192x64xbf16>
    %47 = vector.shape_cast %46 : vector<1x192x64xbf16> to vector<192x64xbf16>
    %cst_47 = arith.constant dense<0.000000e+00> : vector<32x64xf32>
    %48 = tpu.matmul %45, %47, %cst_47 {dimension_numbers = #tpu.dot_dimension_numbers<[1], [0], [0], [1], [0, 0, 1, 1], [], []>} : vector<32x192xbf16>, vector<192x64xbf16>, vector<32x64xf32> -> vector<32x64xf32>
    %c1_48 = arith.constant 1 : index
    %c0_49 = arith.constant 0 : index
    %c0_50 = arith.constant 0 : index
    %49 = vector.load %arg4[%c1_48, %c0_49, %c0_50] : memref<5x1x64xf32, #tpu.memory_space<vmem>>, vector<1x1x64xf32>
    %50 = vector.shape_cast %49 : vector<1x1x64xf32> to vector<1x64xf32>
    %51 = vector.broadcast %50 : vector<1x64xf32> to vector<32x64xf32>
    %52 = arith.addf %48, %51 : vector<32x64xf32>
    %cst_51 = arith.constant 0.000000e+00 : f32
    %53 = vector.broadcast %cst_51 : f32 to vector<32x64xf32>
    %54 = arith.cmpf oge, %52, %53 : vector<32x64xf32>
    %cst_52 = arith.constant 2.000000e-01 : f32
    %55 = vector.broadcast %cst_52 : f32 to vector<32x64xf32>
    %56 = arith.mulf %55, %52 : vector<32x64xf32>
    %57 = arith.select %54, %52, %56 : vector<32x64xi1>, vector<32x64xf32>
    %c1_53 = arith.constant 1 : index
    %c0_54 = arith.constant 0 : index
    %c0_55 = arith.constant 0 : index
    %58 = vector.load %arg5[%c1_53, %c0_54, %c0_55] : memref<5x1x64xf32, #tpu.memory_space<vmem>>, vector<1x1x64xf32>
    %59 = vector.shape_cast %58 : vector<1x1x64xf32> to vector<1x64xf32>
    %60 = vector.broadcast %59 : vector<1x64xf32> to vector<32x64xf32>
    %61 = arith.mulf %57, %60 : vector<32x64xf32>
    %c1_56 = arith.constant 1 : index
    %c0_57 = arith.constant 0 : index
    %c0_58 = arith.constant 0 : index
    %62 = vector.load %arg6[%c1_56, %c0_57, %c0_58] : memref<5x1x64xf32, #tpu.memory_space<vmem>>, vector<1x1x64xf32>
    %63 = vector.shape_cast %62 : vector<1x1x64xf32> to vector<1x64xf32>
    %64 = vector.broadcast %63 : vector<1x64xf32> to vector<32x64xf32>
    %65 = arith.addf %61, %64 : vector<32x64xf32>
    %66 = arith.truncf %65 : vector<32x64xf32> to vector<32x64xbf16>
    %c2_59 = arith.constant 2 : index
    %c0_60 = arith.constant 0 : index
    %c0_61 = arith.constant 0 : index
    %c0_62 = arith.constant 0 : index
    %67 = vector.load %arg2[%c2_59, %c0_60, %c0_61, %c0_62] : memref<5x3x32x32xbf16, #tpu.memory_space<vmem>>, vector<1x1x32x32xbf16>
    %68 = vector.shape_cast %67 : vector<1x1x32x32xbf16> to vector<32x32xbf16>
    %cst_63 = arith.constant dense<0.000000e+00> : vector<32x64xf32>
    %69 = tpu.matmul %68, %66, %cst_63 {dimension_numbers = #tpu.dot_dimension_numbers<[1], [0], [0], [1], [0, 0, 1, 1], [], []>} : vector<32x32xbf16>, vector<32x64xbf16>, vector<32x64xf32> -> vector<32x64xf32>
    %c2_64 = arith.constant 2 : index
    %c1_65 = arith.constant 1 : index
    %c0_66 = arith.constant 0 : index
    %c0_67 = arith.constant 0 : index
    %70 = vector.load %arg2[%c2_64, %c1_65, %c0_66, %c0_67] : memref<5x3x32x32xbf16, #tpu.memory_space<vmem>>, vector<1x1x32x32xbf16>
    %71 = vector.shape_cast %70 : vector<1x1x32x32xbf16> to vector<32x32xbf16>
    %cst_68 = arith.constant dense<0.000000e+00> : vector<32x64xf32>
    %72 = tpu.matmul %71, %66, %cst_68 {dimension_numbers = #tpu.dot_dimension_numbers<[1], [0], [0], [1], [0, 0, 1, 1], [], []>} : vector<32x32xbf16>, vector<32x64xbf16>, vector<32x64xf32> -> vector<32x64xf32>
    %c2_69 = arith.constant 2 : index
    %c2_70 = arith.constant 2 : index
    %c0_71 = arith.constant 0 : index
    %c0_72 = arith.constant 0 : index
    %73 = vector.load %arg2[%c2_69, %c2_70, %c0_71, %c0_72] : memref<5x3x32x32xbf16, #tpu.memory_space<vmem>>, vector<1x1x32x32xbf16>
    %74 = vector.shape_cast %73 : vector<1x1x32x32xbf16> to vector<32x32xbf16>
    %cst_73 = arith.constant dense<0.000000e+00> : vector<32x64xf32>
    %75 = tpu.matmul %74, %66, %cst_73 {dimension_numbers = #tpu.dot_dimension_numbers<[1], [0], [0], [1], [0, 0, 1, 1], [], []>} : vector<32x32xbf16>, vector<32x64xbf16>, vector<32x64xf32> -> vector<32x64xf32>
    %76 = tpu.concatenate %69, %72, %75 in 1 : vector<32x64xf32>, vector<32x64xf32>, vector<32x64xf32> -> vector<32x192xf32>
    %77 = arith.truncf %76 : vector<32x192xf32> to vector<32x192xbf16>
    %c2_74 = arith.constant 2 : index
    %c0_75 = arith.constant 0 : index
    %c0_76 = arith.constant 0 : index
    %78 = vector.load %arg3[%c2_74, %c0_75, %c0_76] : memref<5x192x64xbf16, #tpu.memory_space<vmem>>, vector<1x192x64xbf16>
    %79 = vector.shape_cast %78 : vector<1x192x64xbf16> to vector<192x64xbf16>
    %cst_77 = arith.constant dense<0.000000e+00> : vector<32x64xf32>
    %80 = tpu.matmul %77, %79, %cst_77 {dimension_numbers = #tpu.dot_dimension_numbers<[1], [0], [0], [1], [0, 0, 1, 1], [], []>} : vector<32x192xbf16>, vector<192x64xbf16>, vector<32x64xf32> -> vector<32x64xf32>
    %c2_78 = arith.constant 2 : index
    %c0_79 = arith.constant 0 : index
    %c0_80 = arith.constant 0 : index
    %81 = vector.load %arg4[%c2_78, %c0_79, %c0_80] : memref<5x1x64xf32, #tpu.memory_space<vmem>>, vector<1x1x64xf32>
    %82 = vector.shape_cast %81 : vector<1x1x64xf32> to vector<1x64xf32>
    %83 = vector.broadcast %82 : vector<1x64xf32> to vector<32x64xf32>
    %84 = arith.addf %80, %83 : vector<32x64xf32>
    %cst_81 = arith.constant 0.000000e+00 : f32
    %85 = vector.broadcast %cst_81 : f32 to vector<32x64xf32>
    %86 = arith.cmpf oge, %84, %85 : vector<32x64xf32>
    %cst_82 = arith.constant 2.000000e-01 : f32
    %87 = vector.broadcast %cst_82 : f32 to vector<32x64xf32>
    %88 = arith.mulf %87, %84 : vector<32x64xf32>
    %89 = arith.select %86, %84, %88 : vector<32x64xi1>, vector<32x64xf32>
    %c2_83 = arith.constant 2 : index
    %c0_84 = arith.constant 0 : index
    %c0_85 = arith.constant 0 : index
    %90 = vector.load %arg5[%c2_83, %c0_84, %c0_85] : memref<5x1x64xf32, #tpu.memory_space<vmem>>, vector<1x1x64xf32>
    %91 = vector.shape_cast %90 : vector<1x1x64xf32> to vector<1x64xf32>
    %92 = vector.broadcast %91 : vector<1x64xf32> to vector<32x64xf32>
    %93 = arith.mulf %89, %92 : vector<32x64xf32>
    %c2_86 = arith.constant 2 : index
    %c0_87 = arith.constant 0 : index
    %c0_88 = arith.constant 0 : index
    %94 = vector.load %arg6[%c2_86, %c0_87, %c0_88] : memref<5x1x64xf32, #tpu.memory_space<vmem>>, vector<1x1x64xf32>
    %95 = vector.shape_cast %94 : vector<1x1x64xf32> to vector<1x64xf32>
    %96 = vector.broadcast %95 : vector<1x64xf32> to vector<32x64xf32>
    %97 = arith.addf %93, %96 : vector<32x64xf32>
    %98 = arith.truncf %97 : vector<32x64xf32> to vector<32x64xbf16>
    %c3 = arith.constant 3 : index
    %c0_89 = arith.constant 0 : index
    %c0_90 = arith.constant 0 : index
    %c0_91 = arith.constant 0 : index
    %99 = vector.load %arg2[%c3, %c0_89, %c0_90, %c0_91] : memref<5x3x32x32xbf16, #tpu.memory_space<vmem>>, vector<1x1x32x32xbf16>
    %100 = vector.shape_cast %99 : vector<1x1x32x32xbf16> to vector<32x32xbf16>
    %cst_92 = arith.constant dense<0.000000e+00> : vector<32x64xf32>
    %101 = tpu.matmul %100, %98, %cst_92 {dimension_numbers = #tpu.dot_dimension_numbers<[1], [0], [0], [1], [0, 0, 1, 1], [], []>} : vector<32x32xbf16>, vector<32x64xbf16>, vector<32x64xf32> -> vector<32x64xf32>
    %c3_93 = arith.constant 3 : index
    %c1_94 = arith.constant 1 : index
    %c0_95 = arith.constant 0 : index
    %c0_96 = arith.constant 0 : index
    %102 = vector.load %arg2[%c3_93, %c1_94, %c0_95, %c0_96] : memref<5x3x32x32xbf16, #tpu.memory_space<vmem>>, vector<1x1x32x32xbf16>
    %103 = vector.shape_cast %102 : vector<1x1x32x32xbf16> to vector<32x32xbf16>
    %cst_97 = arith.constant dense<0.000000e+00> : vector<32x64xf32>
    %104 = tpu.matmul %103, %98, %cst_97 {dimension_numbers = #tpu.dot_dimension_numbers<[1], [0], [0], [1], [0, 0, 1, 1], [], []>} : vector<32x32xbf16>, vector<32x64xbf16>, vector<32x64xf32> -> vector<32x64xf32>
    %c3_98 = arith.constant 3 : index
    %c2_99 = arith.constant 2 : index
    %c0_100 = arith.constant 0 : index
    %c0_101 = arith.constant 0 : index
    %105 = vector.load %arg2[%c3_98, %c2_99, %c0_100, %c0_101] : memref<5x3x32x32xbf16, #tpu.memory_space<vmem>>, vector<1x1x32x32xbf16>
    %106 = vector.shape_cast %105 : vector<1x1x32x32xbf16> to vector<32x32xbf16>
    %cst_102 = arith.constant dense<0.000000e+00> : vector<32x64xf32>
    %107 = tpu.matmul %106, %98, %cst_102 {dimension_numbers = #tpu.dot_dimension_numbers<[1], [0], [0], [1], [0, 0, 1, 1], [], []>} : vector<32x32xbf16>, vector<32x64xbf16>, vector<32x64xf32> -> vector<32x64xf32>
    %108 = tpu.concatenate %101, %104, %107 in 1 : vector<32x64xf32>, vector<32x64xf32>, vector<32x64xf32> -> vector<32x192xf32>
    %109 = arith.truncf %108 : vector<32x192xf32> to vector<32x192xbf16>
    %c3_103 = arith.constant 3 : index
    %c0_104 = arith.constant 0 : index
    %c0_105 = arith.constant 0 : index
    %110 = vector.load %arg3[%c3_103, %c0_104, %c0_105] : memref<5x192x64xbf16, #tpu.memory_space<vmem>>, vector<1x192x64xbf16>
    %111 = vector.shape_cast %110 : vector<1x192x64xbf16> to vector<192x64xbf16>
    %cst_106 = arith.constant dense<0.000000e+00> : vector<32x64xf32>
    %112 = tpu.matmul %109, %111, %cst_106 {dimension_numbers = #tpu.dot_dimension_numbers<[1], [0], [0], [1], [0, 0, 1, 1], [], []>} : vector<32x192xbf16>, vector<192x64xbf16>, vector<32x64xf32> -> vector<32x64xf32>
    %c3_107 = arith.constant 3 : index
    %c0_108 = arith.constant 0 : index
    %c0_109 = arith.constant 0 : index
    %113 = vector.load %arg4[%c3_107, %c0_108, %c0_109] : memref<5x1x64xf32, #tpu.memory_space<vmem>>, vector<1x1x64xf32>
    %114 = vector.shape_cast %113 : vector<1x1x64xf32> to vector<1x64xf32>
    %115 = vector.broadcast %114 : vector<1x64xf32> to vector<32x64xf32>
    %116 = arith.addf %112, %115 : vector<32x64xf32>
    %cst_110 = arith.constant 0.000000e+00 : f32
    %117 = vector.broadcast %cst_110 : f32 to vector<32x64xf32>
    %118 = arith.cmpf oge, %116, %117 : vector<32x64xf32>
    %cst_111 = arith.constant 2.000000e-01 : f32
    %119 = vector.broadcast %cst_111 : f32 to vector<32x64xf32>
    %120 = arith.mulf %119, %116 : vector<32x64xf32>
    %121 = arith.select %118, %116, %120 : vector<32x64xi1>, vector<32x64xf32>
    %c3_112 = arith.constant 3 : index
    %c0_113 = arith.constant 0 : index
    %c0_114 = arith.constant 0 : index
    %122 = vector.load %arg5[%c3_112, %c0_113, %c0_114] : memref<5x1x64xf32, #tpu.memory_space<vmem>>, vector<1x1x64xf32>
    %123 = vector.shape_cast %122 : vector<1x1x64xf32> to vector<1x64xf32>
    %124 = vector.broadcast %123 : vector<1x64xf32> to vector<32x64xf32>
    %125 = arith.mulf %121, %124 : vector<32x64xf32>
    %c3_115 = arith.constant 3 : index
    %c0_116 = arith.constant 0 : index
    %c0_117 = arith.constant 0 : index
    %126 = vector.load %arg6[%c3_115, %c0_116, %c0_117] : memref<5x1x64xf32, #tpu.memory_space<vmem>>, vector<1x1x64xf32>
    %127 = vector.shape_cast %126 : vector<1x1x64xf32> to vector<1x64xf32>
    %128 = vector.broadcast %127 : vector<1x64xf32> to vector<32x64xf32>
    %129 = arith.addf %125, %128 : vector<32x64xf32>
    %130 = arith.truncf %129 : vector<32x64xf32> to vector<32x64xbf16>
    %c4 = arith.constant 4 : index
    %c0_118 = arith.constant 0 : index
    %c0_119 = arith.constant 0 : index
    %c0_120 = arith.constant 0 : index
    %131 = vector.load %arg2[%c4, %c0_118, %c0_119, %c0_120] : memref<5x3x32x32xbf16, #tpu.memory_space<vmem>>, vector<1x1x32x32xbf16>
    %132 = vector.shape_cast %131 : vector<1x1x32x32xbf16> to vector<32x32xbf16>
    %cst_121 = arith.constant dense<0.000000e+00> : vector<32x64xf32>
    %133 = tpu.matmul %132, %130, %cst_121 {dimension_numbers = #tpu.dot_dimension_numbers<[1], [0], [0], [1], [0, 0, 1, 1], [], []>} : vector<32x32xbf16>, vector<32x64xbf16>, vector<32x64xf32> -> vector<32x64xf32>
    %c4_122 = arith.constant 4 : index
    %c1_123 = arith.constant 1 : index
    %c0_124 = arith.constant 0 : index
    %c0_125 = arith.constant 0 : index
    %134 = vector.load %arg2[%c4_122, %c1_123, %c0_124, %c0_125] : memref<5x3x32x32xbf16, #tpu.memory_space<vmem>>, vector<1x1x32x32xbf16>
    %135 = vector.shape_cast %134 : vector<1x1x32x32xbf16> to vector<32x32xbf16>
    %cst_126 = arith.constant dense<0.000000e+00> : vector<32x64xf32>
    %136 = tpu.matmul %135, %130, %cst_126 {dimension_numbers = #tpu.dot_dimension_numbers<[1], [0], [0], [1], [0, 0, 1, 1], [], []>} : vector<32x32xbf16>, vector<32x64xbf16>, vector<32x64xf32> -> vector<32x64xf32>
    %c4_127 = arith.constant 4 : index
    %c2_128 = arith.constant 2 : index
    %c0_129 = arith.constant 0 : index
    %c0_130 = arith.constant 0 : index
    %137 = vector.load %arg2[%c4_127, %c2_128, %c0_129, %c0_130] : memref<5x3x32x32xbf16, #tpu.memory_space<vmem>>, vector<1x1x32x32xbf16>
    %138 = vector.shape_cast %137 : vector<1x1x32x32xbf16> to vector<32x32xbf16>
    %cst_131 = arith.constant dense<0.000000e+00> : vector<32x64xf32>
    %139 = tpu.matmul %138, %130, %cst_131 {dimension_numbers = #tpu.dot_dimension_numbers<[1], [0], [0], [1], [0, 0, 1, 1], [], []>} : vector<32x32xbf16>, vector<32x64xbf16>, vector<32x64xf32> -> vector<32x64xf32>
    %140 = tpu.concatenate %133, %136, %139 in 1 : vector<32x64xf32>, vector<32x64xf32>, vector<32x64xf32> -> vector<32x192xf32>
    %141 = arith.truncf %140 : vector<32x192xf32> to vector<32x192xbf16>
    %c4_132 = arith.constant 4 : index
    %c0_133 = arith.constant 0 : index
    %c0_134 = arith.constant 0 : index
    %142 = vector.load %arg3[%c4_132, %c0_133, %c0_134] : memref<5x192x64xbf16, #tpu.memory_space<vmem>>, vector<1x192x64xbf16>
    %143 = vector.shape_cast %142 : vector<1x192x64xbf16> to vector<192x64xbf16>
    %cst_135 = arith.constant dense<0.000000e+00> : vector<32x64xf32>
    %144 = tpu.matmul %141, %143, %cst_135 {dimension_numbers = #tpu.dot_dimension_numbers<[1], [0], [0], [1], [0, 0, 1, 1], [], []>} : vector<32x192xbf16>, vector<192x64xbf16>, vector<32x64xf32> -> vector<32x64xf32>
    %c4_136 = arith.constant 4 : index
    %c0_137 = arith.constant 0 : index
    %c0_138 = arith.constant 0 : index
    %145 = vector.load %arg4[%c4_136, %c0_137, %c0_138] : memref<5x1x64xf32, #tpu.memory_space<vmem>>, vector<1x1x64xf32>
    %146 = vector.shape_cast %145 : vector<1x1x64xf32> to vector<1x64xf32>
    %147 = vector.broadcast %146 : vector<1x64xf32> to vector<32x64xf32>
    %148 = arith.addf %144, %147 : vector<32x64xf32>
    %cst_139 = arith.constant 0.000000e+00 : f32
    %149 = vector.broadcast %cst_139 : f32 to vector<32x64xf32>
    %150 = arith.cmpf oge, %148, %149 : vector<32x64xf32>
    %cst_140 = arith.constant 2.000000e-01 : f32
    %151 = vector.broadcast %cst_140 : f32 to vector<32x64xf32>
    %152 = arith.mulf %151, %148 : vector<32x64xf32>
    %153 = arith.select %150, %148, %152 : vector<32x64xi1>, vector<32x64xf32>
    %c4_141 = arith.constant 4 : index
    %c0_142 = arith.constant 0 : index
    %c0_143 = arith.constant 0 : index
    %154 = vector.load %arg5[%c4_141, %c0_142, %c0_143] : memref<5x1x64xf32, #tpu.memory_space<vmem>>, vector<1x1x64xf32>
    %155 = vector.shape_cast %154 : vector<1x1x64xf32> to vector<1x64xf32>
    %156 = vector.broadcast %155 : vector<1x64xf32> to vector<32x64xf32>
    %157 = arith.mulf %153, %156 : vector<32x64xf32>
    %c4_144 = arith.constant 4 : index
    %c0_145 = arith.constant 0 : index
    %c0_146 = arith.constant 0 : index
    %158 = vector.load %arg6[%c4_144, %c0_145, %c0_146] : memref<5x1x64xf32, #tpu.memory_space<vmem>>, vector<1x1x64xf32>
    %159 = vector.shape_cast %158 : vector<1x1x64xf32> to vector<1x64xf32>
    %160 = vector.broadcast %159 : vector<1x64xf32> to vector<32x64xf32>
    %161 = arith.addf %157, %160 : vector<32x64xf32>
    %162 = arith.truncf %161 : vector<32x64xf32> to vector<32x64xbf16>
    %c0_147 = arith.constant 0 : index
    %c0_148 = arith.constant 0 : index
    %c0_149 = arith.constant 0 : index
    %c0_150 = arith.constant 0 : index
    %163 = vector.load %arg7[%c0_147, %c0_148, %c0_149, %c0_150] : memref<5x4x32x32xbf16, #tpu.memory_space<vmem>>, vector<1x1x32x32xbf16>
    %164 = vector.shape_cast %163 : vector<1x1x32x32xbf16> to vector<32x32xbf16>
    %cst_151 = arith.constant dense<0.000000e+00> : vector<32x64xf32>
    %165 = tpu.matmul %164, %162, %cst_151 {dimension_numbers = #tpu.dot_dimension_numbers<[1], [0], [0], [1], [0, 0, 1, 1], [], []>} : vector<32x32xbf16>, vector<32x64xbf16>, vector<32x64xf32> -> vector<32x64xf32>
    %c0_152 = arith.constant 0 : index
    %c1_153 = arith.constant 1 : index
    %c0_154 = arith.constant 0 : index
    %c0_155 = arith.constant 0 : index
    %166 = vector.load %arg7[%c0_152, %c1_153, %c0_154, %c0_155] : memref<5x4x32x32xbf16, #tpu.memory_space<vmem>>, vector<1x1x32x32xbf16>
    %167 = vector.shape_cast %166 : vector<1x1x32x32xbf16> to vector<32x32xbf16>
    %cst_156 = arith.constant dense<0.000000e+00> : vector<32x64xf32>
    %168 = tpu.matmul %167, %162, %cst_156 {dimension_numbers = #tpu.dot_dimension_numbers<[1], [0], [0], [1], [0, 0, 1, 1], [], []>} : vector<32x32xbf16>, vector<32x64xbf16>, vector<32x64xf32> -> vector<32x64xf32>
    %c0_157 = arith.constant 0 : index
    %c2_158 = arith.constant 2 : index
    %c0_159 = arith.constant 0 : index
    %c0_160 = arith.constant 0 : index
    %169 = vector.load %arg7[%c0_157, %c2_158, %c0_159, %c0_160] : memref<5x4x32x32xbf16, #tpu.memory_space<vmem>>, vector<1x1x32x32xbf16>
    %170 = vector.shape_cast %169 : vector<1x1x32x32xbf16> to vector<32x32xbf16>
    %cst_161 = arith.constant dense<0.000000e+00> : vector<32x64xf32>
    %171 = tpu.matmul %170, %162, %cst_161 {dimension_numbers = #tpu.dot_dimension_numbers<[1], [0], [0], [1], [0, 0, 1, 1], [], []>} : vector<32x32xbf16>, vector<32x64xbf16>, vector<32x64xf32> -> vector<32x64xf32>
    %c0_162 = arith.constant 0 : index
    %c3_163 = arith.constant 3 : index
    %c0_164 = arith.constant 0 : index
    %c0_165 = arith.constant 0 : index
    %172 = vector.load %arg7[%c0_162, %c3_163, %c0_164, %c0_165] : memref<5x4x32x32xbf16, #tpu.memory_space<vmem>>, vector<1x1x32x32xbf16>
    %173 = vector.shape_cast %172 : vector<1x1x32x32xbf16> to vector<32x32xbf16>
    %cst_166 = arith.constant dense<0.000000e+00> : vector<32x64xf32>
    %174 = tpu.matmul %173, %162, %cst_166 {dimension_numbers = #tpu.dot_dimension_numbers<[1], [0], [0], [1], [0, 0, 1, 1], [], []>} : vector<32x32xbf16>, vector<32x64xbf16>, vector<32x64xf32> -> vector<32x64xf32>
    %175 = tpu.concatenate %165, %168, %171, %174 in 1 : vector<32x64xf32>, vector<32x64xf32>, vector<32x64xf32>, vector<32x64xf32> -> vector<32x256xf32>
    %176 = arith.truncf %175 : vector<32x256xf32> to vector<32x256xbf16>
    %c0_167 = arith.constant 0 : index
    %c0_168 = arith.constant 0 : index
    %c0_169 = arith.constant 0 : index
    %177 = vector.load %arg8[%c0_167, %c0_168, %c0_169] : memref<5x256x64xbf16, #tpu.memory_space<vmem>>, vector<1x256x64xbf16>
    %178 = vector.shape_cast %177 : vector<1x256x64xbf16> to vector<256x64xbf16>
    %cst_170 = arith.constant dense<0.000000e+00> : vector<32x64xf32>
    %179 = tpu.matmul %176, %178, %cst_170 {dimension_numbers = #tpu.dot_dimension_numbers<[1], [0], [0], [1], [0, 0, 1, 1], [], []>} : vector<32x256xbf16>, vector<256x64xbf16>, vector<32x64xf32> -> vector<32x64xf32>
    %c0_171 = arith.constant 0 : index
    %c0_172 = arith.constant 0 : index
    %c0_173 = arith.constant 0 : index
    %180 = vector.load %arg9[%c0_171, %c0_172, %c0_173] : memref<5x1x64xf32, #tpu.memory_space<vmem>>, vector<1x1x64xf32>
    %181 = vector.shape_cast %180 : vector<1x1x64xf32> to vector<1x64xf32>
    %182 = vector.broadcast %181 : vector<1x64xf32> to vector<32x64xf32>
    %183 = arith.addf %179, %182 : vector<32x64xf32>
    %cst_174 = arith.constant 0.000000e+00 : f32
    %184 = vector.broadcast %cst_174 : f32 to vector<32x64xf32>
    %185 = arith.cmpf oge, %183, %184 : vector<32x64xf32>
    %cst_175 = arith.constant 2.000000e-01 : f32
    %186 = vector.broadcast %cst_175 : f32 to vector<32x64xf32>
    %187 = arith.mulf %186, %183 : vector<32x64xf32>
    %188 = arith.select %185, %183, %187 : vector<32x64xi1>, vector<32x64xf32>
    %c0_176 = arith.constant 0 : index
    %c0_177 = arith.constant 0 : index
    %c0_178 = arith.constant 0 : index
    %189 = vector.load %arg10[%c0_176, %c0_177, %c0_178] : memref<5x1x64xf32, #tpu.memory_space<vmem>>, vector<1x1x64xf32>
    %190 = vector.shape_cast %189 : vector<1x1x64xf32> to vector<1x64xf32>
    %191 = vector.broadcast %190 : vector<1x64xf32> to vector<32x64xf32>
    %192 = arith.mulf %188, %191 : vector<32x64xf32>
    %c0_179 = arith.constant 0 : index
    %c0_180 = arith.constant 0 : index
    %c0_181 = arith.constant 0 : index
    %193 = vector.load %arg11[%c0_179, %c0_180, %c0_181] : memref<5x1x64xf32, #tpu.memory_space<vmem>>, vector<1x1x64xf32>
    %194 = vector.shape_cast %193 : vector<1x1x64xf32> to vector<1x64xf32>
    %195 = vector.broadcast %194 : vector<1x64xf32> to vector<32x64xf32>
    %196 = arith.addf %192, %195 : vector<32x64xf32>
    %197 = arith.addf %196, %129 : vector<32x64xf32>
    %198 = arith.truncf %197 : vector<32x64xf32> to vector<32x64xbf16>
    %c1_182 = arith.constant 1 : index
    %c0_183 = arith.constant 0 : index
    %c0_184 = arith.constant 0 : index
    %c0_185 = arith.constant 0 : index
    %199 = vector.load %arg7[%c1_182, %c0_183, %c0_184, %c0_185] : memref<5x4x32x32xbf16, #tpu.memory_space<vmem>>, vector<1x1x32x32xbf16>
    %200 = vector.shape_cast %199 : vector<1x1x32x32xbf16> to vector<32x32xbf16>
    %cst_186 = arith.constant dense<0.000000e+00> : vector<32x64xf32>
    %201 = tpu.matmul %200, %198, %cst_186 {dimension_numbers = #tpu.dot_dimension_numbers<[1], [0], [0], [1], [0, 0, 1, 1], [], []>} : vector<32x32xbf16>, vector<32x64xbf16>, vector<32x64xf32> -> vector<32x64xf32>
    %c1_187 = arith.constant 1 : index
    %c1_188 = arith.constant 1 : index
    %c0_189 = arith.constant 0 : index
    %c0_190 = arith.constant 0 : index
    %202 = vector.load %arg7[%c1_187, %c1_188, %c0_189, %c0_190] : memref<5x4x32x32xbf16, #tpu.memory_space<vmem>>, vector<1x1x32x32xbf16>
    %203 = vector.shape_cast %202 : vector<1x1x32x32xbf16> to vector<32x32xbf16>
    %cst_191 = arith.constant dense<0.000000e+00> : vector<32x64xf32>
    %204 = tpu.matmul %203, %198, %cst_191 {dimension_numbers = #tpu.dot_dimension_numbers<[1], [0], [0], [1], [0, 0, 1, 1], [], []>} : vector<32x32xbf16>, vector<32x64xbf16>, vector<32x64xf32> -> vector<32x64xf32>
    %c1_192 = arith.constant 1 : index
    %c2_193 = arith.constant 2 : index
    %c0_194 = arith.constant 0 : index
    %c0_195 = arith.constant 0 : index
    %205 = vector.load %arg7[%c1_192, %c2_193, %c0_194, %c0_195] : memref<5x4x32x32xbf16, #tpu.memory_space<vmem>>, vector<1x1x32x32xbf16>
    %206 = vector.shape_cast %205 : vector<1x1x32x32xbf16> to vector<32x32xbf16>
    %cst_196 = arith.constant dense<0.000000e+00> : vector<32x64xf32>
    %207 = tpu.matmul %206, %198, %cst_196 {dimension_numbers = #tpu.dot_dimension_numbers<[1], [0], [0], [1], [0, 0, 1, 1], [], []>} : vector<32x32xbf16>, vector<32x64xbf16>, vector<32x64xf32> -> vector<32x64xf32>
    %c1_197 = arith.constant 1 : index
    %c3_198 = arith.constant 3 : index
    %c0_199 = arith.constant 0 : index
    %c0_200 = arith.constant 0 : index
    %208 = vector.load %arg7[%c1_197, %c3_198, %c0_199, %c0_200] : memref<5x4x32x32xbf16, #tpu.memory_space<vmem>>, vector<1x1x32x32xbf16>
    %209 = vector.shape_cast %208 : vector<1x1x32x32xbf16> to vector<32x32xbf16>
    %cst_201 = arith.constant dense<0.000000e+00> : vector<32x64xf32>
    %210 = tpu.matmul %209, %198, %cst_201 {dimension_numbers = #tpu.dot_dimension_numbers<[1], [0], [0], [1], [0, 0, 1, 1], [], []>} : vector<32x32xbf16>, vector<32x64xbf16>, vector<32x64xf32> -> vector<32x64xf32>
    %211 = tpu.concatenate %201, %204, %207, %210 in 1 : vector<32x64xf32>, vector<32x64xf32>, vector<32x64xf32>, vector<32x64xf32> -> vector<32x256xf32>
    %212 = arith.truncf %211 : vector<32x256xf32> to vector<32x256xbf16>
    %c1_202 = arith.constant 1 : index
    %c0_203 = arith.constant 0 : index
    %c0_204 = arith.constant 0 : index
    %213 = vector.load %arg8[%c1_202, %c0_203, %c0_204] : memref<5x256x64xbf16, #tpu.memory_space<vmem>>, vector<1x256x64xbf16>
    %214 = vector.shape_cast %213 : vector<1x256x64xbf16> to vector<256x64xbf16>
    %cst_205 = arith.constant dense<0.000000e+00> : vector<32x64xf32>
    %215 = tpu.matmul %212, %214, %cst_205 {dimension_numbers = #tpu.dot_dimension_numbers<[1], [0], [0], [1], [0, 0, 1, 1], [], []>} : vector<32x256xbf16>, vector<256x64xbf16>, vector<32x64xf32> -> vector<32x64xf32>
    %c1_206 = arith.constant 1 : index
    %c0_207 = arith.constant 0 : index
    %c0_208 = arith.constant 0 : index
    %216 = vector.load %arg9[%c1_206, %c0_207, %c0_208] : memref<5x1x64xf32, #tpu.memory_space<vmem>>, vector<1x1x64xf32>
    %217 = vector.shape_cast %216 : vector<1x1x64xf32> to vector<1x64xf32>
    %218 = vector.broadcast %217 : vector<1x64xf32> to vector<32x64xf32>
    %219 = arith.addf %215, %218 : vector<32x64xf32>
    %cst_209 = arith.constant 0.000000e+00 : f32
    %220 = vector.broadcast %cst_209 : f32 to vector<32x64xf32>
    %221 = arith.cmpf oge, %219, %220 : vector<32x64xf32>
    %cst_210 = arith.constant 2.000000e-01 : f32
    %222 = vector.broadcast %cst_210 : f32 to vector<32x64xf32>
    %223 = arith.mulf %222, %219 : vector<32x64xf32>
    %224 = arith.select %221, %219, %223 : vector<32x64xi1>, vector<32x64xf32>
    %c1_211 = arith.constant 1 : index
    %c0_212 = arith.constant 0 : index
    %c0_213 = arith.constant 0 : index
    %225 = vector.load %arg10[%c1_211, %c0_212, %c0_213] : memref<5x1x64xf32, #tpu.memory_space<vmem>>, vector<1x1x64xf32>
    %226 = vector.shape_cast %225 : vector<1x1x64xf32> to vector<1x64xf32>
    %227 = vector.broadcast %226 : vector<1x64xf32> to vector<32x64xf32>
    %228 = arith.mulf %224, %227 : vector<32x64xf32>
    %c1_214 = arith.constant 1 : index
    %c0_215 = arith.constant 0 : index
    %c0_216 = arith.constant 0 : index
    %229 = vector.load %arg11[%c1_214, %c0_215, %c0_216] : memref<5x1x64xf32, #tpu.memory_space<vmem>>, vector<1x1x64xf32>
    %230 = vector.shape_cast %229 : vector<1x1x64xf32> to vector<1x64xf32>
    %231 = vector.broadcast %230 : vector<1x64xf32> to vector<32x64xf32>
    %232 = arith.addf %228, %231 : vector<32x64xf32>
    %233 = arith.addf %232, %97 : vector<32x64xf32>
    %234 = arith.truncf %233 : vector<32x64xf32> to vector<32x64xbf16>
    %c2_217 = arith.constant 2 : index
    %c0_218 = arith.constant 0 : index
    %c0_219 = arith.constant 0 : index
    %c0_220 = arith.constant 0 : index
    %235 = vector.load %arg7[%c2_217, %c0_218, %c0_219, %c0_220] : memref<5x4x32x32xbf16, #tpu.memory_space<vmem>>, vector<1x1x32x32xbf16>
    %236 = vector.shape_cast %235 : vector<1x1x32x32xbf16> to vector<32x32xbf16>
    %cst_221 = arith.constant dense<0.000000e+00> : vector<32x64xf32>
    %237 = tpu.matmul %236, %234, %cst_221 {dimension_numbers = #tpu.dot_dimension_numbers<[1], [0], [0], [1], [0, 0, 1, 1], [], []>} : vector<32x32xbf16>, vector<32x64xbf16>, vector<32x64xf32> -> vector<32x64xf32>
    %c2_222 = arith.constant 2 : index
    %c1_223 = arith.constant 1 : index
    %c0_224 = arith.constant 0 : index
    %c0_225 = arith.constant 0 : index
    %238 = vector.load %arg7[%c2_222, %c1_223, %c0_224, %c0_225] : memref<5x4x32x32xbf16, #tpu.memory_space<vmem>>, vector<1x1x32x32xbf16>
    %239 = vector.shape_cast %238 : vector<1x1x32x32xbf16> to vector<32x32xbf16>
    %cst_226 = arith.constant dense<0.000000e+00> : vector<32x64xf32>
    %240 = tpu.matmul %239, %234, %cst_226 {dimension_numbers = #tpu.dot_dimension_numbers<[1], [0], [0], [1], [0, 0, 1, 1], [], []>} : vector<32x32xbf16>, vector<32x64xbf16>, vector<32x64xf32> -> vector<32x64xf32>
    %c2_227 = arith.constant 2 : index
    %c2_228 = arith.constant 2 : index
    %c0_229 = arith.constant 0 : index
    %c0_230 = arith.constant 0 : index
    %241 = vector.load %arg7[%c2_227, %c2_228, %c0_229, %c0_230] : memref<5x4x32x32xbf16, #tpu.memory_space<vmem>>, vector<1x1x32x32xbf16>
    %242 = vector.shape_cast %241 : vector<1x1x32x32xbf16> to vector<32x32xbf16>
    %cst_231 = arith.constant dense<0.000000e+00> : vector<32x64xf32>
    %243 = tpu.matmul %242, %234, %cst_231 {dimension_numbers = #tpu.dot_dimension_numbers<[1], [0], [0], [1], [0, 0, 1, 1], [], []>} : vector<32x32xbf16>, vector<32x64xbf16>, vector<32x64xf32> -> vector<32x64xf32>
    %c2_232 = arith.constant 2 : index
    %c3_233 = arith.constant 3 : index
    %c0_234 = arith.constant 0 : index
    %c0_235 = arith.constant 0 : index
    %244 = vector.load %arg7[%c2_232, %c3_233, %c0_234, %c0_235] : memref<5x4x32x32xbf16, #tpu.memory_space<vmem>>, vector<1x1x32x32xbf16>
    %245 = vector.shape_cast %244 : vector<1x1x32x32xbf16> to vector<32x32xbf16>
    %cst_236 = arith.constant dense<0.000000e+00> : vector<32x64xf32>
    %246 = tpu.matmul %245, %234, %cst_236 {dimension_numbers = #tpu.dot_dimension_numbers<[1], [0], [0], [1], [0, 0, 1, 1], [], []>} : vector<32x32xbf16>, vector<32x64xbf16>, vector<32x64xf32> -> vector<32x64xf32>
    %247 = tpu.concatenate %237, %240, %243, %246 in 1 : vector<32x64xf32>, vector<32x64xf32>, vector<32x64xf32>, vector<32x64xf32> -> vector<32x256xf32>
    %248 = arith.truncf %247 : vector<32x256xf32> to vector<32x256xbf16>
    %c2_237 = arith.constant 2 : index
    %c0_238 = arith.constant 0 : index
    %c0_239 = arith.constant 0 : index
    %249 = vector.load %arg8[%c2_237, %c0_238, %c0_239] : memref<5x256x64xbf16, #tpu.memory_space<vmem>>, vector<1x256x64xbf16>
    %250 = vector.shape_cast %249 : vector<1x256x64xbf16> to vector<256x64xbf16>
    %cst_240 = arith.constant dense<0.000000e+00> : vector<32x64xf32>
    %251 = tpu.matmul %248, %250, %cst_240 {dimension_numbers = #tpu.dot_dimension_numbers<[1], [0], [0], [1], [0, 0, 1, 1], [], []>} : vector<32x256xbf16>, vector<256x64xbf16>, vector<32x64xf32> -> vector<32x64xf32>
    %c2_241 = arith.constant 2 : index
    %c0_242 = arith.constant 0 : index
    %c0_243 = arith.constant 0 : index
    %252 = vector.load %arg9[%c2_241, %c0_242, %c0_243] : memref<5x1x64xf32, #tpu.memory_space<vmem>>, vector<1x1x64xf32>
    %253 = vector.shape_cast %252 : vector<1x1x64xf32> to vector<1x64xf32>
    %254 = vector.broadcast %253 : vector<1x64xf32> to vector<32x64xf32>
    %255 = arith.addf %251, %254 : vector<32x64xf32>
    %cst_244 = arith.constant 0.000000e+00 : f32
    %256 = vector.broadcast %cst_244 : f32 to vector<32x64xf32>
    %257 = arith.cmpf oge, %255, %256 : vector<32x64xf32>
    %cst_245 = arith.constant 2.000000e-01 : f32
    %258 = vector.broadcast %cst_245 : f32 to vector<32x64xf32>
    %259 = arith.mulf %258, %255 : vector<32x64xf32>
    %260 = arith.select %257, %255, %259 : vector<32x64xi1>, vector<32x64xf32>
    %c2_246 = arith.constant 2 : index
    %c0_247 = arith.constant 0 : index
    %c0_248 = arith.constant 0 : index
    %261 = vector.load %arg10[%c2_246, %c0_247, %c0_248] : memref<5x1x64xf32, #tpu.memory_space<vmem>>, vector<1x1x64xf32>
    %262 = vector.shape_cast %261 : vector<1x1x64xf32> to vector<1x64xf32>
    %263 = vector.broadcast %262 : vector<1x64xf32> to vector<32x64xf32>
    %264 = arith.mulf %260, %263 : vector<32x64xf32>
    %c2_249 = arith.constant 2 : index
    %c0_250 = arith.constant 0 : index
    %c0_251 = arith.constant 0 : index
    %265 = vector.load %arg11[%c2_249, %c0_250, %c0_251] : memref<5x1x64xf32, #tpu.memory_space<vmem>>, vector<1x1x64xf32>
    %266 = vector.shape_cast %265 : vector<1x1x64xf32> to vector<1x64xf32>
    %267 = vector.broadcast %266 : vector<1x64xf32> to vector<32x64xf32>
    %268 = arith.addf %264, %267 : vector<32x64xf32>
    %269 = arith.addf %268, %65 : vector<32x64xf32>
    %270 = arith.truncf %269 : vector<32x64xf32> to vector<32x64xbf16>
    %c3_252 = arith.constant 3 : index
    %c0_253 = arith.constant 0 : index
    %c0_254 = arith.constant 0 : index
    %c0_255 = arith.constant 0 : index
    %271 = vector.load %arg7[%c3_252, %c0_253, %c0_254, %c0_255] : memref<5x4x32x32xbf16, #tpu.memory_space<vmem>>, vector<1x1x32x32xbf16>
    %272 = vector.shape_cast %271 : vector<1x1x32x32xbf16> to vector<32x32xbf16>
    %cst_256 = arith.constant dense<0.000000e+00> : vector<32x64xf32>
    %273 = tpu.matmul %272, %270, %cst_256 {dimension_numbers = #tpu.dot_dimension_numbers<[1], [0], [0], [1], [0, 0, 1, 1], [], []>} : vector<32x32xbf16>, vector<32x64xbf16>, vector<32x64xf32> -> vector<32x64xf32>
    %c3_257 = arith.constant 3 : index
    %c1_258 = arith.constant 1 : index
    %c0_259 = arith.constant 0 : index
    %c0_260 = arith.constant 0 : index
    %274 = vector.load %arg7[%c3_257, %c1_258, %c0_259, %c0_260] : memref<5x4x32x32xbf16, #tpu.memory_space<vmem>>, vector<1x1x32x32xbf16>
    %275 = vector.shape_cast %274 : vector<1x1x32x32xbf16> to vector<32x32xbf16>
    %cst_261 = arith.constant dense<0.000000e+00> : vector<32x64xf32>
    %276 = tpu.matmul %275, %270, %cst_261 {dimension_numbers = #tpu.dot_dimension_numbers<[1], [0], [0], [1], [0, 0, 1, 1], [], []>} : vector<32x32xbf16>, vector<32x64xbf16>, vector<32x64xf32> -> vector<32x64xf32>
    %c3_262 = arith.constant 3 : index
    %c2_263 = arith.constant 2 : index
    %c0_264 = arith.constant 0 : index
    %c0_265 = arith.constant 0 : index
    %277 = vector.load %arg7[%c3_262, %c2_263, %c0_264, %c0_265] : memref<5x4x32x32xbf16, #tpu.memory_space<vmem>>, vector<1x1x32x32xbf16>
    %278 = vector.shape_cast %277 : vector<1x1x32x32xbf16> to vector<32x32xbf16>
    %cst_266 = arith.constant dense<0.000000e+00> : vector<32x64xf32>
    %279 = tpu.matmul %278, %270, %cst_266 {dimension_numbers = #tpu.dot_dimension_numbers<[1], [0], [0], [1], [0, 0, 1, 1], [], []>} : vector<32x32xbf16>, vector<32x64xbf16>, vector<32x64xf32> -> vector<32x64xf32>
    %c3_267 = arith.constant 3 : index
    %c3_268 = arith.constant 3 : index
    %c0_269 = arith.constant 0 : index
    %c0_270 = arith.constant 0 : index
    %280 = vector.load %arg7[%c3_267, %c3_268, %c0_269, %c0_270] : memref<5x4x32x32xbf16, #tpu.memory_space<vmem>>, vector<1x1x32x32xbf16>
    %281 = vector.shape_cast %280 : vector<1x1x32x32xbf16> to vector<32x32xbf16>
    %cst_271 = arith.constant dense<0.000000e+00> : vector<32x64xf32>
    %282 = tpu.matmul %281, %270, %cst_271 {dimension_numbers = #tpu.dot_dimension_numbers<[1], [0], [0], [1], [0, 0, 1, 1], [], []>} : vector<32x32xbf16>, vector<32x64xbf16>, vector<32x64xf32> -> vector<32x64xf32>
    %283 = tpu.concatenate %273, %276, %279, %282 in 1 : vector<32x64xf32>, vector<32x64xf32>, vector<32x64xf32>, vector<32x64xf32> -> vector<32x256xf32>
    %284 = arith.truncf %283 : vector<32x256xf32> to vector<32x256xbf16>
    %c3_272 = arith.constant 3 : index
    %c0_273 = arith.constant 0 : index
    %c0_274 = arith.constant 0 : index
    %285 = vector.load %arg8[%c3_272, %c0_273, %c0_274] : memref<5x256x64xbf16, #tpu.memory_space<vmem>>, vector<1x256x64xbf16>
    %286 = vector.shape_cast %285 : vector<1x256x64xbf16> to vector<256x64xbf16>
    %cst_275 = arith.constant dense<0.000000e+00> : vector<32x64xf32>
    %287 = tpu.matmul %284, %286, %cst_275 {dimension_numbers = #tpu.dot_dimension_numbers<[1], [0], [0], [1], [0, 0, 1, 1], [], []>} : vector<32x256xbf16>, vector<256x64xbf16>, vector<32x64xf32> -> vector<32x64xf32>
    %c3_276 = arith.constant 3 : index
    %c0_277 = arith.constant 0 : index
    %c0_278 = arith.constant 0 : index
    %288 = vector.load %arg9[%c3_276, %c0_277, %c0_278] : memref<5x1x64xf32, #tpu.memory_space<vmem>>, vector<1x1x64xf32>
    %289 = vector.shape_cast %288 : vector<1x1x64xf32> to vector<1x64xf32>
    %290 = vector.broadcast %289 : vector<1x64xf32> to vector<32x64xf32>
    %291 = arith.addf %287, %290 : vector<32x64xf32>
    %cst_279 = arith.constant 0.000000e+00 : f32
    %292 = vector.broadcast %cst_279 : f32 to vector<32x64xf32>
    %293 = arith.cmpf oge, %291, %292 : vector<32x64xf32>
    %cst_280 = arith.constant 2.000000e-01 : f32
    %294 = vector.broadcast %cst_280 : f32 to vector<32x64xf32>
    %295 = arith.mulf %294, %291 : vector<32x64xf32>
    %296 = arith.select %293, %291, %295 : vector<32x64xi1>, vector<32x64xf32>
    %c3_281 = arith.constant 3 : index
    %c0_282 = arith.constant 0 : index
    %c0_283 = arith.constant 0 : index
    %297 = vector.load %arg10[%c3_281, %c0_282, %c0_283] : memref<5x1x64xf32, #tpu.memory_space<vmem>>, vector<1x1x64xf32>
    %298 = vector.shape_cast %297 : vector<1x1x64xf32> to vector<1x64xf32>
    %299 = vector.broadcast %298 : vector<1x64xf32> to vector<32x64xf32>
    %300 = arith.mulf %296, %299 : vector<32x64xf32>
    %c3_284 = arith.constant 3 : index
    %c0_285 = arith.constant 0 : index
    %c0_286 = arith.constant 0 : index
    %301 = vector.load %arg11[%c3_284, %c0_285, %c0_286] : memref<5x1x64xf32, #tpu.memory_space<vmem>>, vector<1x1x64xf32>
    %302 = vector.shape_cast %301 : vector<1x1x64xf32> to vector<1x64xf32>
    %303 = vector.broadcast %302 : vector<1x64xf32> to vector<32x64xf32>
    %304 = arith.addf %300, %303 : vector<32x64xf32>
    %305 = arith.addf %304, %33 : vector<32x64xf32>
    %306 = arith.truncf %305 : vector<32x64xf32> to vector<32x64xbf16>
    %c4_287 = arith.constant 4 : index
    %c0_288 = arith.constant 0 : index
    %c0_289 = arith.constant 0 : index
    %c0_290 = arith.constant 0 : index
    %307 = vector.load %arg7[%c4_287, %c0_288, %c0_289, %c0_290] : memref<5x4x32x32xbf16, #tpu.memory_space<vmem>>, vector<1x1x32x32xbf16>
    %308 = vector.shape_cast %307 : vector<1x1x32x32xbf16> to vector<32x32xbf16>
    %cst_291 = arith.constant dense<0.000000e+00> : vector<32x64xf32>
    %309 = tpu.matmul %308, %306, %cst_291 {dimension_numbers = #tpu.dot_dimension_numbers<[1], [0], [0], [1], [0, 0, 1, 1], [], []>} : vector<32x32xbf16>, vector<32x64xbf16>, vector<32x64xf32> -> vector<32x64xf32>
    %c4_292 = arith.constant 4 : index
    %c1_293 = arith.constant 1 : index
    %c0_294 = arith.constant 0 : index
    %c0_295 = arith.constant 0 : index
    %310 = vector.load %arg7[%c4_292, %c1_293, %c0_294, %c0_295] : memref<5x4x32x32xbf16, #tpu.memory_space<vmem>>, vector<1x1x32x32xbf16>
    %311 = vector.shape_cast %310 : vector<1x1x32x32xbf16> to vector<32x32xbf16>
    %cst_296 = arith.constant dense<0.000000e+00> : vector<32x64xf32>
    %312 = tpu.matmul %311, %306, %cst_296 {dimension_numbers = #tpu.dot_dimension_numbers<[1], [0], [0], [1], [0, 0, 1, 1], [], []>} : vector<32x32xbf16>, vector<32x64xbf16>, vector<32x64xf32> -> vector<32x64xf32>
    %c4_297 = arith.constant 4 : index
    %c2_298 = arith.constant 2 : index
    %c0_299 = arith.constant 0 : index
    %c0_300 = arith.constant 0 : index
    %313 = vector.load %arg7[%c4_297, %c2_298, %c0_299, %c0_300] : memref<5x4x32x32xbf16, #tpu.memory_space<vmem>>, vector<1x1x32x32xbf16>
    %314 = vector.shape_cast %313 : vector<1x1x32x32xbf16> to vector<32x32xbf16>
    %cst_301 = arith.constant dense<0.000000e+00> : vector<32x64xf32>
    %315 = tpu.matmul %314, %306, %cst_301 {dimension_numbers = #tpu.dot_dimension_numbers<[1], [0], [0], [1], [0, 0, 1, 1], [], []>} : vector<32x32xbf16>, vector<32x64xbf16>, vector<32x64xf32> -> vector<32x64xf32>
    %c4_302 = arith.constant 4 : index
    %c3_303 = arith.constant 3 : index
    %c0_304 = arith.constant 0 : index
    %c0_305 = arith.constant 0 : index
    %316 = vector.load %arg7[%c4_302, %c3_303, %c0_304, %c0_305] : memref<5x4x32x32xbf16, #tpu.memory_space<vmem>>, vector<1x1x32x32xbf16>
    %317 = vector.shape_cast %316 : vector<1x1x32x32xbf16> to vector<32x32xbf16>
    %cst_306 = arith.constant dense<0.000000e+00> : vector<32x64xf32>
    %318 = tpu.matmul %317, %306, %cst_306 {dimension_numbers = #tpu.dot_dimension_numbers<[1], [0], [0], [1], [0, 0, 1, 1], [], []>} : vector<32x32xbf16>, vector<32x64xbf16>, vector<32x64xf32> -> vector<32x64xf32>
    %319 = tpu.concatenate %309, %312, %315, %318 in 1 : vector<32x64xf32>, vector<32x64xf32>, vector<32x64xf32>, vector<32x64xf32> -> vector<32x256xf32>
    %320 = arith.truncf %319 : vector<32x256xf32> to vector<32x256xbf16>
    %c4_307 = arith.constant 4 : index
    %c0_308 = arith.constant 0 : index
    %c0_309 = arith.constant 0 : index
    %321 = vector.load %arg8[%c4_307, %c0_308, %c0_309] : memref<5x256x64xbf16, #tpu.memory_space<vmem>>, vector<1x256x64xbf16>
    %322 = vector.shape_cast %321 : vector<1x256x64xbf16> to vector<256x64xbf16>
    %cst_310 = arith.constant dense<0.000000e+00> : vector<32x64xf32>
    %323 = tpu.matmul %320, %322, %cst_310 {dimension_numbers = #tpu.dot_dimension_numbers<[1], [0], [0], [1], [0, 0, 1, 1], [], []>} : vector<32x256xbf16>, vector<256x64xbf16>, vector<32x64xf32> -> vector<32x64xf32>
    %c4_311 = arith.constant 4 : index
    %c0_312 = arith.constant 0 : index
    %c0_313 = arith.constant 0 : index
    %324 = vector.load %arg9[%c4_311, %c0_312, %c0_313] : memref<5x1x64xf32, #tpu.memory_space<vmem>>, vector<1x1x64xf32>
    %325 = vector.shape_cast %324 : vector<1x1x64xf32> to vector<1x64xf32>
    %326 = vector.broadcast %325 : vector<1x64xf32> to vector<32x64xf32>
    %327 = arith.addf %323, %326 : vector<32x64xf32>
    %cst_314 = arith.constant 0.000000e+00 : f32
    %328 = vector.broadcast %cst_314 : f32 to vector<32x64xf32>
    %329 = arith.cmpf oge, %327, %328 : vector<32x64xf32>
    %cst_315 = arith.constant 2.000000e-01 : f32
    %330 = vector.broadcast %cst_315 : f32 to vector<32x64xf32>
    %331 = arith.mulf %330, %327 : vector<32x64xf32>
    %332 = arith.select %329, %327, %331 : vector<32x64xi1>, vector<32x64xf32>
    %c4_316 = arith.constant 4 : index
    %c0_317 = arith.constant 0 : index
    %c0_318 = arith.constant 0 : index
    %333 = vector.load %arg10[%c4_316, %c0_317, %c0_318] : memref<5x1x64xf32, #tpu.memory_space<vmem>>, vector<1x1x64xf32>
    %334 = vector.shape_cast %333 : vector<1x1x64xf32> to vector<1x64xf32>
    %335 = vector.broadcast %334 : vector<1x64xf32> to vector<32x64xf32>
    %336 = arith.mulf %332, %335 : vector<32x64xf32>
    %c4_319 = arith.constant 4 : index
    %c0_320 = arith.constant 0 : index
    %c0_321 = arith.constant 0 : index
    %337 = vector.load %arg11[%c4_319, %c0_320, %c0_321] : memref<5x1x64xf32, #tpu.memory_space<vmem>>, vector<1x1x64xf32>
    %338 = vector.shape_cast %337 : vector<1x1x64xf32> to vector<1x64xf32>
    %339 = vector.broadcast %338 : vector<1x64xf32> to vector<32x64xf32>
    %340 = arith.addf %336, %339 : vector<32x64xf32>
    %341 = arith.truncf %340 : vector<32x64xf32> to vector<32x64xbf16>
    %c0_322 = arith.constant 0 : index
    %c0_323 = arith.constant 0 : index
    %342 = vector.load %arg12[%c0_322, %c0_323] : memref<64x256xbf16, #tpu.memory_space<vmem>>, vector<64x256xbf16>
    %cst_324 = arith.constant dense<0.000000e+00> : vector<32x256xf32>
    %343 = tpu.matmul %341, %342, %cst_324 {dimension_numbers = #tpu.dot_dimension_numbers<[1], [0], [0], [1], [0, 0, 1, 1], [], []>} : vector<32x64xbf16>, vector<64x256xbf16>, vector<32x256xf32> -> vector<32x256xf32>
    %c0_325 = arith.constant 0 : index
    %c0_326 = arith.constant 0 : index
    %344 = vector.load %arg13[%c0_325, %c0_326] : memref<1x256xf32, #tpu.memory_space<vmem>>, vector<1x256xf32>
    %345 = vector.broadcast %344 : vector<1x256xf32> to vector<32x256xf32>
    %346 = arith.addf %343, %345 : vector<32x256xf32>
    %c0_327 = arith.constant 0 : index
    %c0_328 = arith.constant 0 : index
    %c0_329 = arith.constant 0 : index
    %347 = vector.load %arg14[%c0_327, %c0_328, %c0_329] : memref<1x32x256xf32, #tpu.memory_space<vmem>>, vector<1x32x256xf32>
    %348 = vector.shape_cast %347 : vector<1x32x256xf32> to vector<32x256xf32>
    %349 = vector.shape_cast %346 : vector<32x256xf32> to vector<1x32x256xf32>
    tpu.vector_store %arg14[%c0_327, %c0_328, %c0_329], %349 {strides = array<i32>} : memref<1x32x256xf32, #tpu.memory_space<vmem>>, vector<1x32x256xf32>,
    return
  }
  func.func @transform_0(%arg0: i32) -> (i32, i32, i32) {
    %c0_i32 = arith.constant 0 : i32
    %c0_i32_0 = arith.constant 0 : i32
    %c0_i32_1 = arith.constant 0 : i32
    return %arg0, %c0_i32, %c0_i32_0 : i32, i32, i32
  }
  func.func @transform_1(%arg0: i32) -> (i32, i32, i32, i32) {
    %c0_i32 = arith.constant 0 : i32
    %c0_i32_0 = arith.constant 0 : i32
    %c0_i32_1 = arith.constant 0 : i32
    %c0_i32_2 = arith.constant 0 : i32
    %c0_i32_3 = arith.constant 0 : i32
    return %c0_i32, %c0_i32_0, %c0_i32_1, %c0_i32_2 : i32, i32, i32, i32
  }
  func.func @transform_2(%arg0: i32) -> (i32, i32, i32) {
    %c0_i32 = arith.constant 0 : i32
    %c0_i32_0 = arith.constant 0 : i32
    %c0_i32_1 = arith.constant 0 : i32
    %c0_i32_2 = arith.constant 0 : i32
    return %c0_i32, %c0_i32_0, %c0_i32_1 : i32, i32, i32
  }
  func.func @transform_3(%arg0: i32) -> (i32, i32, i32) {
    %c0_i32 = arith.constant 0 : i32
    %c0_i32_0 = arith.constant 0 : i32
    %c0_i32_1 = arith.constant 0 : i32
    %c0_i32_2 = arith.constant 0 : i32
    return %c0_i32, %c0_i32_0, %c0_i32_1 : i32, i32, i32
  }
  func.func @transform_4(%arg0: i32) -> (i32, i32, i32) {
    %c0_i32 = arith.constant 0 : i32
    %c0_i32_0 = arith.constant 0 : i32
    %c0_i32_1 = arith.constant 0 : i32
    %c0_i32_2 = arith.constant 0 : i32
    return %c0_i32, %c0_i32_0, %c0_i32_1 : i32, i32, i32
  }
  func.func @transform_5(%arg0: i32) -> (i32, i32, i32) {
    %c0_i32 = arith.constant 0 : i32
    %c0_i32_0 = arith.constant 0 : i32
    %c0_i32_1 = arith.constant 0 : i32
    %c0_i32_2 = arith.constant 0 : i32
    return %c0_i32, %c0_i32_0, %c0_i32_1 : i32, i32, i32
  }
  func.func @transform_6(%arg0: i32) -> (i32, i32, i32, i32) {
    %c0_i32 = arith.constant 0 : i32
    %c0_i32_0 = arith.constant 0 : i32
    %c0_i32_1 = arith.constant 0 : i32
    %c0_i32_2 = arith.constant 0 : i32
    %c0_i32_3 = arith.constant 0 : i32
    return %c0_i32, %c0_i32_0, %c0_i32_1, %c0_i32_2 : i32, i32, i32, i32
  }
  func.func @transform_7(%arg0: i32) -> (i32, i32, i32) {
    %c0_i32 = arith.constant 0 : i32
    %c0_i32_0 = arith.constant 0 : i32
    %c0_i32_1 = arith.constant 0 : i32
    %c0_i32_2 = arith.constant 0 : i32
    return %c0_i32, %c0_i32_0, %c0_i32_1 : i32, i32, i32
  }
  func.func @transform_8(%arg0: i32) -> (i32, i32, i32) {
    %c0_i32 = arith.constant 0 : i32
    %c0_i32_0 = arith.constant 0 : i32
    %c0_i32_1 = arith.constant 0 : i32
    %c0_i32_2 = arith.constant 0 : i32
    return %c0_i32, %c0_i32_0, %c0_i32_1 : i32, i32, i32
  }
  func.func @transform_9(%arg0: i32) -> (i32, i32, i32) {
    %c0_i32 = arith.constant 0 : i32
    %c0_i32_0 = arith.constant 0 : i32
    %c0_i32_1 = arith.constant 0 : i32
    %c0_i32_2 = arith.constant 0 : i32
    return %c0_i32, %c0_i32_0, %c0_i32_1 : i32, i32, i32
  }
  func.func @transform_10(%arg0: i32) -> (i32, i32, i32) {
    %c0_i32 = arith.constant 0 : i32
    %c0_i32_0 = arith.constant 0 : i32
    %c0_i32_1 = arith.constant 0 : i32
    %c0_i32_2 = arith.constant 0 : i32
    return %c0_i32, %c0_i32_0, %c0_i32_1 : i32, i32, i32
  }
  func.func @transform_11(%arg0: i32) -> (i32, i32) {
    %c0_i32 = arith.constant 0 : i32
    %c0_i32_0 = arith.constant 0 : i32
    %c0_i32_1 = arith.constant 0 : i32
    return %c0_i32, %c0_i32_0 : i32, i32
  }
  func.func @transform_12(%arg0: i32) -> (i32, i32) {
    %c0_i32 = arith.constant 0 : i32
    %c0_i32_0 = arith.constant 0 : i32
    %c0_i32_1 = arith.constant 0 : i32
    return %c0_i32, %c0_i32_0 : i32, i32
  }
  func.func @transform_13(%arg0: i32) -> (i32, i32, i32) {
    %c0_i32 = arith.constant 0 : i32
    %c0_i32_0 = arith.constant 0 : i32
    %c0_i32_1 = arith.constant 0 : i32
    return %arg0, %c0_i32, %c0_i32_0 : i32, i32, i32
  }
}

module attributes {stable_mosaic.version = 11 : i64} {
  func.func @_micro_heads_kernel(%arg0: i32, %arg1: memref<8x32xf32, #tpu.memory_space<vmem>>, %arg2: memref<32x96xbf16, #tpu.memory_space<vmem>>, %arg3: memref<1x96xf32, #tpu.memory_space<vmem>>, %arg4: memref<3x96x96xbf16, #tpu.memory_space<vmem>>, %arg5: memref<3x1x96xf32, #tpu.memory_space<vmem>>, %arg6: memref<3x1x96xf32, #tpu.memory_space<vmem>>, %arg7: memref<3x1x96xf32, #tpu.memory_space<vmem>>, %arg8: memref<96x96xf32, #tpu.memory_space<vmem>>, %arg9: memref<96x128xbf16, #tpu.memory_space<vmem>>, %arg10: memref<32x128xbf16, #tpu.memory_space<vmem>>, %arg11: memref<1x128xf32, #tpu.memory_space<vmem>>, %arg12: memref<8x128xf32, #tpu.memory_space<vmem>>) attributes {dimension_semantics = [#tpu.dimension_semantics<parallel>], iteration_bounds = array<i64: 1>, scalar_prefetch = 0 : i64, scratch_operands = 0 : i64, tpu.core_type = #tpu.core_type<tc>, window_params = [{transform_indices = @transform_0, window_bounds = array<i64: 8, 32>}, {pipeline_mode = #tpu.pipeline_mode<synchronous>, transform_indices = @transform_1, window_bounds = array<i64: 32, 96>}, {pipeline_mode = #tpu.pipeline_mode<synchronous>, transform_indices = @transform_2, window_bounds = array<i64: 1, 96>}, {pipeline_mode = #tpu.pipeline_mode<synchronous>, transform_indices = @transform_3, window_bounds = array<i64: 3, 96, 96>}, {pipeline_mode = #tpu.pipeline_mode<synchronous>, transform_indices = @transform_4, window_bounds = array<i64: 3, 1, 96>}, {pipeline_mode = #tpu.pipeline_mode<synchronous>, transform_indices = @transform_5, window_bounds = array<i64: 3, 1, 96>}, {pipeline_mode = #tpu.pipeline_mode<synchronous>, transform_indices = @transform_6, window_bounds = array<i64: 3, 1, 96>}, {pipeline_mode = #tpu.pipeline_mode<synchronous>, transform_indices = @transform_7, window_bounds = array<i64: 96, 96>}, {pipeline_mode = #tpu.pipeline_mode<synchronous>, transform_indices = @transform_8, window_bounds = array<i64: 96, 128>}, {pipeline_mode = #tpu.pipeline_mode<synchronous>, transform_indices = @transform_9, window_bounds = array<i64: 32, 128>}, {pipeline_mode = #tpu.pipeline_mode<synchronous>, transform_indices = @transform_10, window_bounds = array<i64: 1, 128>}, {transform_indices = @transform_11, window_bounds = array<i64: 8, 128>}]} {
    %c0 = arith.constant 0 : index
    %c0_0 = arith.constant 0 : index
    %0 = vector.load %arg1[%c0, %c0_0] : memref<8x32xf32, #tpu.memory_space<vmem>>, vector<8x32xf32>
    %1 = arith.truncf %0 : vector<8x32xf32> to vector<8x32xbf16>
    %c0_1 = arith.constant 0 : index
    %c0_2 = arith.constant 0 : index
    %2 = vector.load %arg8[%c0_1, %c0_2] : memref<96x96xf32, #tpu.memory_space<vmem>>, vector<96x96xf32>
    %c0_3 = arith.constant 0 : index
    %c0_4 = arith.constant 0 : index
    %3 = vector.load %arg2[%c0_3, %c0_4] : memref<32x96xbf16, #tpu.memory_space<vmem>>, vector<32x96xbf16>
    %cst = arith.constant dense<0.000000e+00> : vector<8x96xf32>
    %4 = tpu.matmul %1, %3, %cst {dimension_numbers = #tpu.dot_dimension_numbers<[1], [0], [0], [1], [0, 0, 1, 1], [], []>} : vector<8x32xbf16>, vector<32x96xbf16>, vector<8x96xf32> -> vector<8x96xf32>
    %c0_5 = arith.constant 0 : index
    %c0_6 = arith.constant 0 : index
    %5 = vector.load %arg3[%c0_5, %c0_6] : memref<1x96xf32, #tpu.memory_space<vmem>>, vector<1x96xf32>
    %6 = vector.broadcast %5 : vector<1x96xf32> to vector<8x96xf32>
    %7 = arith.addf %4, %6 : vector<8x96xf32>
    %8 = arith.truncf %7 : vector<8x96xf32> to vector<8x96xbf16>
    %c0_7 = arith.constant 0 : index
    %c0_8 = arith.constant 0 : index
    %c0_9 = arith.constant 0 : index
    %9 = vector.load %arg4[%c0_7, %c0_8, %c0_9] : memref<3x96x96xbf16, #tpu.memory_space<vmem>>, vector<1x96x96xbf16>
    %10 = vector.shape_cast %9 : vector<1x96x96xbf16> to vector<96x96xbf16>
    %cst_10 = arith.constant dense<0.000000e+00> : vector<8x96xf32>
    %11 = tpu.matmul %8, %10, %cst_10 {dimension_numbers = #tpu.dot_dimension_numbers<[1], [0], [0], [1], [0, 0, 1, 1], [], []>} : vector<8x96xbf16>, vector<96x96xbf16>, vector<8x96xf32> -> vector<8x96xf32>
    %c0_11 = arith.constant 0 : index
    %c0_12 = arith.constant 0 : index
    %c0_13 = arith.constant 0 : index
    %12 = vector.load %arg5[%c0_11, %c0_12, %c0_13] : memref<3x1x96xf32, #tpu.memory_space<vmem>>, vector<1x1x96xf32>
    %13 = vector.shape_cast %12 : vector<1x1x96xf32> to vector<1x96xf32>
    %14 = vector.broadcast %13 : vector<1x96xf32> to vector<8x96xf32>
    %15 = arith.addf %11, %14 : vector<8x96xf32>
    %cst_14 = arith.constant 0.000000e+00 : f32
    %16 = vector.broadcast %cst_14 : f32 to vector<8x96xf32>
    %17 = arith.cmpf oge, %15, %16 : vector<8x96xf32>
    %cst_15 = arith.constant 2.000000e-01 : f32
    %18 = vector.broadcast %cst_15 : f32 to vector<8x96xf32>
    %19 = arith.mulf %18, %15 : vector<8x96xf32>
    %20 = arith.select %17, %15, %19 : vector<8x96xi1>, vector<8x96xf32>
    %cst_16 = arith.constant dense<0.000000e+00> : vector<8x96xf32>
    %21 = tpu.matmul %20, %2, %cst_16 {dimension_numbers = #tpu.dot_dimension_numbers<[1], [0], [0], [1], [0, 0, 1, 1], [], []>} : vector<8x96xf32>, vector<96x96xf32>, vector<8x96xf32> -> vector<8x96xf32>
    %22 = arith.subf %20, %21 : vector<8x96xf32>
    %23 = arith.mulf %22, %22 : vector<8x96xf32>
    %cst_17 = arith.constant dense<0.000000e+00> : vector<8x96xf32>
    %24 = tpu.matmul %23, %2, %cst_17 {dimension_numbers = #tpu.dot_dimension_numbers<[1], [0], [0], [1], [0, 0, 1, 1], [], []>} : vector<8x96xf32>, vector<96x96xf32>, vector<8x96xf32> -> vector<8x96xf32>
    %cst_18 = arith.constant 9.99999974E-6 : f32
    %25 = vector.broadcast %cst_18 : f32 to vector<8x96xf32>
    %26 = arith.addf %24, %25 : vector<8x96xf32>
    %27 = math.rsqrt %26 : vector<8x96xf32>
    %28 = arith.mulf %22, %27 : vector<8x96xf32>
    %c0_19 = arith.constant 0 : index
    %c0_20 = arith.constant 0 : index
    %c0_21 = arith.constant 0 : index
    %29 = vector.load %arg6[%c0_19, %c0_20, %c0_21] : memref<3x1x96xf32, #tpu.memory_space<vmem>>, vector<1x1x96xf32>
    %30 = vector.shape_cast %29 : vector<1x1x96xf32> to vector<1x96xf32>
    %31 = vector.broadcast %30 : vector<1x96xf32> to vector<8x96xf32>
    %32 = arith.mulf %28, %31 : vector<8x96xf32>
    %c0_22 = arith.constant 0 : index
    %c0_23 = arith.constant 0 : index
    %c0_24 = arith.constant 0 : index
    %33 = vector.load %arg7[%c0_22, %c0_23, %c0_24] : memref<3x1x96xf32, #tpu.memory_space<vmem>>, vector<1x1x96xf32>
    %34 = vector.shape_cast %33 : vector<1x1x96xf32> to vector<1x96xf32>
    %35 = vector.broadcast %34 : vector<1x96xf32> to vector<8x96xf32>
    %36 = arith.addf %32, %35 : vector<8x96xf32>
    %37 = arith.truncf %36 : vector<8x96xf32> to vector<8x96xbf16>
    %c1 = arith.constant 1 : index
    %c0_25 = arith.constant 0 : index
    %c0_26 = arith.constant 0 : index
    %38 = vector.load %arg4[%c1, %c0_25, %c0_26] : memref<3x96x96xbf16, #tpu.memory_space<vmem>>, vector<1x96x96xbf16>
    %39 = vector.shape_cast %38 : vector<1x96x96xbf16> to vector<96x96xbf16>
    %cst_27 = arith.constant dense<0.000000e+00> : vector<8x96xf32>
    %40 = tpu.matmul %37, %39, %cst_27 {dimension_numbers = #tpu.dot_dimension_numbers<[1], [0], [0], [1], [0, 0, 1, 1], [], []>} : vector<8x96xbf16>, vector<96x96xbf16>, vector<8x96xf32> -> vector<8x96xf32>
    %c1_28 = arith.constant 1 : index
    %c0_29 = arith.constant 0 : index
    %c0_30 = arith.constant 0 : index
    %41 = vector.load %arg5[%c1_28, %c0_29, %c0_30] : memref<3x1x96xf32, #tpu.memory_space<vmem>>, vector<1x1x96xf32>
    %42 = vector.shape_cast %41 : vector<1x1x96xf32> to vector<1x96xf32>
    %43 = vector.broadcast %42 : vector<1x96xf32> to vector<8x96xf32>
    %44 = arith.addf %40, %43 : vector<8x96xf32>
    %cst_31 = arith.constant 0.000000e+00 : f32
    %45 = vector.broadcast %cst_31 : f32 to vector<8x96xf32>
    %46 = arith.cmpf oge, %44, %45 : vector<8x96xf32>
    %cst_32 = arith.constant 2.000000e-01 : f32
    %47 = vector.broadcast %cst_32 : f32 to vector<8x96xf32>
    %48 = arith.mulf %47, %44 : vector<8x96xf32>
    %49 = arith.select %46, %44, %48 : vector<8x96xi1>, vector<8x96xf32>
    %cst_33 = arith.constant dense<0.000000e+00> : vector<8x96xf32>
    %50 = tpu.matmul %49, %2, %cst_33 {dimension_numbers = #tpu.dot_dimension_numbers<[1], [0], [0], [1], [0, 0, 1, 1], [], []>} : vector<8x96xf32>, vector<96x96xf32>, vector<8x96xf32> -> vector<8x96xf32>
    %51 = arith.subf %49, %50 : vector<8x96xf32>
    %52 = arith.mulf %51, %51 : vector<8x96xf32>
    %cst_34 = arith.constant dense<0.000000e+00> : vector<8x96xf32>
    %53 = tpu.matmul %52, %2, %cst_34 {dimension_numbers = #tpu.dot_dimension_numbers<[1], [0], [0], [1], [0, 0, 1, 1], [], []>} : vector<8x96xf32>, vector<96x96xf32>, vector<8x96xf32> -> vector<8x96xf32>
    %cst_35 = arith.constant 9.99999974E-6 : f32
    %54 = vector.broadcast %cst_35 : f32 to vector<8x96xf32>
    %55 = arith.addf %53, %54 : vector<8x96xf32>
    %56 = math.rsqrt %55 : vector<8x96xf32>
    %57 = arith.mulf %51, %56 : vector<8x96xf32>
    %c1_36 = arith.constant 1 : index
    %c0_37 = arith.constant 0 : index
    %c0_38 = arith.constant 0 : index
    %58 = vector.load %arg6[%c1_36, %c0_37, %c0_38] : memref<3x1x96xf32, #tpu.memory_space<vmem>>, vector<1x1x96xf32>
    %59 = vector.shape_cast %58 : vector<1x1x96xf32> to vector<1x96xf32>
    %60 = vector.broadcast %59 : vector<1x96xf32> to vector<8x96xf32>
    %61 = arith.mulf %57, %60 : vector<8x96xf32>
    %c1_39 = arith.constant 1 : index
    %c0_40 = arith.constant 0 : index
    %c0_41 = arith.constant 0 : index
    %62 = vector.load %arg7[%c1_39, %c0_40, %c0_41] : memref<3x1x96xf32, #tpu.memory_space<vmem>>, vector<1x1x96xf32>
    %63 = vector.shape_cast %62 : vector<1x1x96xf32> to vector<1x96xf32>
    %64 = vector.broadcast %63 : vector<1x96xf32> to vector<8x96xf32>
    %65 = arith.addf %61, %64 : vector<8x96xf32>
    %66 = arith.truncf %65 : vector<8x96xf32> to vector<8x96xbf16>
    %c2 = arith.constant 2 : index
    %c0_42 = arith.constant 0 : index
    %c0_43 = arith.constant 0 : index
    %67 = vector.load %arg4[%c2, %c0_42, %c0_43] : memref<3x96x96xbf16, #tpu.memory_space<vmem>>, vector<1x96x96xbf16>
    %68 = vector.shape_cast %67 : vector<1x96x96xbf16> to vector<96x96xbf16>
    %cst_44 = arith.constant dense<0.000000e+00> : vector<8x96xf32>
    %69 = tpu.matmul %66, %68, %cst_44 {dimension_numbers = #tpu.dot_dimension_numbers<[1], [0], [0], [1], [0, 0, 1, 1], [], []>} : vector<8x96xbf16>, vector<96x96xbf16>, vector<8x96xf32> -> vector<8x96xf32>
    %c2_45 = arith.constant 2 : index
    %c0_46 = arith.constant 0 : index
    %c0_47 = arith.constant 0 : index
    %70 = vector.load %arg5[%c2_45, %c0_46, %c0_47] : memref<3x1x96xf32, #tpu.memory_space<vmem>>, vector<1x1x96xf32>
    %71 = vector.shape_cast %70 : vector<1x1x96xf32> to vector<1x96xf32>
    %72 = vector.broadcast %71 : vector<1x96xf32> to vector<8x96xf32>
    %73 = arith.addf %69, %72 : vector<8x96xf32>
    %cst_48 = arith.constant 0.000000e+00 : f32
    %74 = vector.broadcast %cst_48 : f32 to vector<8x96xf32>
    %75 = arith.cmpf oge, %73, %74 : vector<8x96xf32>
    %cst_49 = arith.constant 2.000000e-01 : f32
    %76 = vector.broadcast %cst_49 : f32 to vector<8x96xf32>
    %77 = arith.mulf %76, %73 : vector<8x96xf32>
    %78 = arith.select %75, %73, %77 : vector<8x96xi1>, vector<8x96xf32>
    %cst_50 = arith.constant dense<0.000000e+00> : vector<8x96xf32>
    %79 = tpu.matmul %78, %2, %cst_50 {dimension_numbers = #tpu.dot_dimension_numbers<[1], [0], [0], [1], [0, 0, 1, 1], [], []>} : vector<8x96xf32>, vector<96x96xf32>, vector<8x96xf32> -> vector<8x96xf32>
    %80 = arith.subf %78, %79 : vector<8x96xf32>
    %81 = arith.mulf %80, %80 : vector<8x96xf32>
    %cst_51 = arith.constant dense<0.000000e+00> : vector<8x96xf32>
    %82 = tpu.matmul %81, %2, %cst_51 {dimension_numbers = #tpu.dot_dimension_numbers<[1], [0], [0], [1], [0, 0, 1, 1], [], []>} : vector<8x96xf32>, vector<96x96xf32>, vector<8x96xf32> -> vector<8x96xf32>
    %cst_52 = arith.constant 9.99999974E-6 : f32
    %83 = vector.broadcast %cst_52 : f32 to vector<8x96xf32>
    %84 = arith.addf %82, %83 : vector<8x96xf32>
    %85 = math.rsqrt %84 : vector<8x96xf32>
    %86 = arith.mulf %80, %85 : vector<8x96xf32>
    %c2_53 = arith.constant 2 : index
    %c0_54 = arith.constant 0 : index
    %c0_55 = arith.constant 0 : index
    %87 = vector.load %arg6[%c2_53, %c0_54, %c0_55] : memref<3x1x96xf32, #tpu.memory_space<vmem>>, vector<1x1x96xf32>
    %88 = vector.shape_cast %87 : vector<1x1x96xf32> to vector<1x96xf32>
    %89 = vector.broadcast %88 : vector<1x96xf32> to vector<8x96xf32>
    %90 = arith.mulf %86, %89 : vector<8x96xf32>
    %c2_56 = arith.constant 2 : index
    %c0_57 = arith.constant 0 : index
    %c0_58 = arith.constant 0 : index
    %91 = vector.load %arg7[%c2_56, %c0_57, %c0_58] : memref<3x1x96xf32, #tpu.memory_space<vmem>>, vector<1x1x96xf32>
    %92 = vector.shape_cast %91 : vector<1x1x96xf32> to vector<1x96xf32>
    %93 = vector.broadcast %92 : vector<1x96xf32> to vector<8x96xf32>
    %94 = arith.addf %90, %93 : vector<8x96xf32>
    %95 = arith.truncf %94 : vector<8x96xf32> to vector<8x96xbf16>
    %c0_59 = arith.constant 0 : index
    %c0_60 = arith.constant 0 : index
    %96 = vector.load %arg9[%c0_59, %c0_60] : memref<96x128xbf16, #tpu.memory_space<vmem>>, vector<96x128xbf16>
    %cst_61 = arith.constant dense<0.000000e+00> : vector<8x128xf32>
    %97 = tpu.matmul %95, %96, %cst_61 {dimension_numbers = #tpu.dot_dimension_numbers<[1], [0], [0], [1], [0, 0, 1, 1], [], []>} : vector<8x96xbf16>, vector<96x128xbf16>, vector<8x128xf32> -> vector<8x128xf32>
    %c0_62 = arith.constant 0 : index
    %c0_63 = arith.constant 0 : index
    %98 = vector.load %arg10[%c0_62, %c0_63] : memref<32x128xbf16, #tpu.memory_space<vmem>>, vector<32x128xbf16>
    %cst_64 = arith.constant dense<0.000000e+00> : vector<8x128xf32>
    %99 = tpu.matmul %1, %98, %cst_64 {dimension_numbers = #tpu.dot_dimension_numbers<[1], [0], [0], [1], [0, 0, 1, 1], [], []>} : vector<8x32xbf16>, vector<32x128xbf16>, vector<8x128xf32> -> vector<8x128xf32>
    %100 = arith.addf %97, %99 : vector<8x128xf32>
    %c0_65 = arith.constant 0 : index
    %c0_66 = arith.constant 0 : index
    %101 = vector.load %arg11[%c0_65, %c0_66] : memref<1x128xf32, #tpu.memory_space<vmem>>, vector<1x128xf32>
    %102 = vector.broadcast %101 : vector<1x128xf32> to vector<8x128xf32>
    %103 = arith.addf %100, %102 : vector<8x128xf32>
    %104 = tpu.iota {dimensions = array<i32: 1>} : vector<8x128xi32>
    %c80_i32 = arith.constant 80 : i32
    %105 = vector.broadcast %c80_i32 : i32 to vector<8x128xi32>
    %106 = arith.cmpi slt, %104, %105 : vector<8x128xi32>
    %cst_67 = arith.constant 0.000000e+00 : f32
    %107 = vector.broadcast %cst_67 : f32 to vector<8x128xf32>
    %108 = arith.maximumf %103, %107 : vector<8x128xf32>
    %109 = arith.select %106, %108, %103 : vector<8x128xi1>, vector<8x128xf32>
    %c80_i32_68 = arith.constant 80 : i32
    %110 = vector.broadcast %c80_i32_68 : i32 to vector<8x128xi32>
    %111 = arith.cmpi sge, %104, %110 : vector<8x128xi32>
    %c83_i32 = arith.constant 83 : i32
    %112 = vector.broadcast %c83_i32 : i32 to vector<8x128xi32>
    %113 = arith.cmpi slt, %104, %112 : vector<8x128xi32>
    %114 = arith.andi %111, %113 : vector<8x128xi1>
    %cst_69 = arith.constant -1.000000e+30 : f32
    %115 = vector.broadcast %cst_69 : f32 to vector<8x128xf32>
    %116 = arith.select %114, %103, %115 : vector<8x128xi1>, vector<8x128xf32>
    %cst_70 = arith.constant dense<0xFF800000> : vector<8xf32>
    %117 = vector.multi_reduction <maximumf>, %116, %cst_70 [1] : vector<8x128xf32> to vector<8xf32>
    %118 = vector.shape_cast %117 : vector<8xf32> to vector<8x1xf32>
    %119 = vector.broadcast %118 : vector<8x1xf32> to vector<8x128xf32>
    %120 = arith.subf %103, %119 : vector<8x128xf32>
    %cst_71 = arith.constant 0.000000e+00 : f32
    %121 = vector.broadcast %cst_71 : f32 to vector<8x128xf32>
    %122 = arith.minimumf %120, %121 : vector<8x128xf32>
    %123 = math.exp %122 : vector<8x128xf32>
    %cst_72 = arith.constant 0.000000e+00 : f32
    %124 = vector.broadcast %cst_72 : f32 to vector<8x128xf32>
    %125 = arith.select %114, %123, %124 : vector<8x128xi1>, vector<8x128xf32>
    %cst_73 = arith.constant dense<0.000000e+00> : vector<8xf32>
    %126 = vector.multi_reduction <add>, %125, %cst_73 [1] : vector<8x128xf32> to vector<8xf32>
    %127 = vector.shape_cast %126 : vector<8xf32> to vector<8x1xf32>
    %c84_i32 = arith.constant 84 : i32
    %128 = vector.broadcast %c84_i32 : i32 to vector<8x128xi32>
    %129 = arith.cmpi eq, %104, %128 : vector<8x128xi32>
    %cst_74 = arith.constant 0.000000e+00 : f32
    %130 = vector.broadcast %cst_74 : f32 to vector<8x128xf32>
    %131 = arith.select %129, %103, %130 : vector<8x128xi1>, vector<8x128xf32>
    %cst_75 = arith.constant dense<0.000000e+00> : vector<8xf32>
    %132 = vector.multi_reduction <add>, %131, %cst_75 [1] : vector<8x128xf32> to vector<8xf32>
    %133 = vector.shape_cast %132 : vector<8xf32> to vector<8x1xf32>
    %134 = arith.divf %133, %127 : vector<8x1xf32>
    %135 = vector.broadcast %134 : vector<8x1xf32> to vector<8x128xf32>
    %136 = arith.mulf %125, %135 : vector<8x128xf32>
    %137 = arith.select %114, %136, %109 : vector<8x128xi1>, vector<8x128xf32>
    %c83_i32_76 = arith.constant 83 : i32
    %138 = vector.broadcast %c83_i32_76 : i32 to vector<8x128xi32>
    %139 = arith.cmpi eq, %104, %138 : vector<8x128xi32>
    %140 = arith.negf %103 : vector<8x128xf32>
    %141 = math.exp %140 : vector<8x128xf32>
    %cst_77 = arith.constant 1.000000e+00 : f32
    %142 = vector.broadcast %cst_77 : f32 to vector<8x128xf32>
    %143 = arith.addf %142, %141 : vector<8x128xf32>
    %144 = arith.divf %142, %143 : vector<8x128xf32>
    %cst_78 = arith.constant 0.00999999977 : f32
    %145 = vector.broadcast %cst_78 : f32 to vector<8x128xf32>
    %146 = arith.mulf %144, %145 : vector<8x128xf32>
    %147 = arith.select %139, %146, %137 : vector<8x128xi1>, vector<8x128xf32>
    %c85_i32 = arith.constant 85 : i32
    %148 = vector.broadcast %c85_i32 : i32 to vector<8x128xi32>
    %149 = arith.cmpi sge, %104, %148 : vector<8x128xi32>
    %c93_i32 = arith.constant 93 : i32
    %150 = vector.broadcast %c93_i32 : i32 to vector<8x128xi32>
    %151 = arith.cmpi slt, %104, %150 : vector<8x128xi32>
    %152 = arith.andi %149, %151 : vector<8x128xi1>
    %153 = arith.negf %103 : vector<8x128xf32>
    %154 = math.exp %153 : vector<8x128xf32>
    %cst_79 = arith.constant 1.000000e+00 : f32
    %155 = vector.broadcast %cst_79 : f32 to vector<8x128xf32>
    %156 = arith.addf %155, %154 : vector<8x128xf32>
    %157 = arith.divf %155, %156 : vector<8x128xf32>
    %158 = arith.mulf %157, %157 : vector<8x128xf32>
    %159 = arith.select %152, %158, %147 : vector<8x128xi1>, vector<8x128xf32>
    %c0_80 = arith.constant 0 : index
    %c0_81 = arith.constant 0 : index
    %160 = vector.load %arg12[%c0_80, %c0_81] : memref<8x128xf32, #tpu.memory_space<vmem>>, vector<8x128xf32>
    tpu.vector_store %arg12[%c0_80, %c0_81], %159 {strides = array<i32>} : memref<8x128xf32, #tpu.memory_space<vmem>>, vector<8x128xf32>,
    return
  }
  func.func @transform_0(%arg0: i32) -> (i32, i32) {
    %c0_i32 = arith.constant 0 : i32
    %c0_i32_0 = arith.constant 0 : i32
    return %arg0, %c0_i32 : i32, i32
  }
  func.func @transform_1(%arg0: i32) -> (i32, i32) {
    %c0_i32 = arith.constant 0 : i32
    %c0_i32_0 = arith.constant 0 : i32
    %c0_i32_1 = arith.constant 0 : i32
    return %c0_i32, %c0_i32_0 : i32, i32
  }
  func.func @transform_2(%arg0: i32) -> (i32, i32) {
    %c0_i32 = arith.constant 0 : i32
    %c0_i32_0 = arith.constant 0 : i32
    %c0_i32_1 = arith.constant 0 : i32
    return %c0_i32, %c0_i32_0 : i32, i32
  }
  func.func @transform_3(%arg0: i32) -> (i32, i32, i32) {
    %c0_i32 = arith.constant 0 : i32
    %c0_i32_0 = arith.constant 0 : i32
    %c0_i32_1 = arith.constant 0 : i32
    %c0_i32_2 = arith.constant 0 : i32
    return %c0_i32, %c0_i32_0, %c0_i32_1 : i32, i32, i32
  }
  func.func @transform_4(%arg0: i32) -> (i32, i32, i32) {
    %c0_i32 = arith.constant 0 : i32
    %c0_i32_0 = arith.constant 0 : i32
    %c0_i32_1 = arith.constant 0 : i32
    %c0_i32_2 = arith.constant 0 : i32
    return %c0_i32, %c0_i32_0, %c0_i32_1 : i32, i32, i32
  }
  func.func @transform_5(%arg0: i32) -> (i32, i32, i32) {
    %c0_i32 = arith.constant 0 : i32
    %c0_i32_0 = arith.constant 0 : i32
    %c0_i32_1 = arith.constant 0 : i32
    %c0_i32_2 = arith.constant 0 : i32
    return %c0_i32, %c0_i32_0, %c0_i32_1 : i32, i32, i32
  }
  func.func @transform_6(%arg0: i32) -> (i32, i32, i32) {
    %c0_i32 = arith.constant 0 : i32
    %c0_i32_0 = arith.constant 0 : i32
    %c0_i32_1 = arith.constant 0 : i32
    %c0_i32_2 = arith.constant 0 : i32
    return %c0_i32, %c0_i32_0, %c0_i32_1 : i32, i32, i32
  }
  func.func @transform_7(%arg0: i32) -> (i32, i32) {
    %c0_i32 = arith.constant 0 : i32
    %c0_i32_0 = arith.constant 0 : i32
    %c0_i32_1 = arith.constant 0 : i32
    return %c0_i32, %c0_i32_0 : i32, i32
  }
  func.func @transform_8(%arg0: i32) -> (i32, i32) {
    %c0_i32 = arith.constant 0 : i32
    %c0_i32_0 = arith.constant 0 : i32
    %c0_i32_1 = arith.constant 0 : i32
    return %c0_i32, %c0_i32_0 : i32, i32
  }
  func.func @transform_9(%arg0: i32) -> (i32, i32) {
    %c0_i32 = arith.constant 0 : i32
    %c0_i32_0 = arith.constant 0 : i32
    %c0_i32_1 = arith.constant 0 : i32
    return %c0_i32, %c0_i32_0 : i32, i32
  }
  func.func @transform_10(%arg0: i32) -> (i32, i32) {
    %c0_i32 = arith.constant 0 : i32
    %c0_i32_0 = arith.constant 0 : i32
    %c0_i32_1 = arith.constant 0 : i32
    return %c0_i32, %c0_i32_0 : i32, i32
  }
  func.func @transform_11(%arg0: i32) -> (i32, i32) {
    %c0_i32 = arith.constant 0 : i32
    %c0_i32_0 = arith.constant 0 : i32
    return %arg0, %c0_i32 : i32, i32
  }
}

module attributes {stable_mosaic.version = 11 : i64} {
  func.func @_res2_kernel(%arg0: i32, %arg1: memref<8x16xf32, #tpu.memory_space<vmem>>, %arg2: memref<16x2048xbf16, #tpu.memory_space<vmem>>, %arg3: memref<8x2048xf32, #tpu.memory_space<vmem>>) attributes {dimension_semantics = [#tpu.dimension_semantics<parallel>], iteration_bounds = array<i64: 1>, scalar_prefetch = 0 : i64, scratch_operands = 0 : i64, tpu.core_type = #tpu.core_type<tc>, window_params = [{transform_indices = @transform_0, window_bounds = array<i64: 8, 16>}, {pipeline_mode = #tpu.pipeline_mode<synchronous>, transform_indices = @transform_1, window_bounds = array<i64: 16, 2048>}, {transform_indices = @transform_2, window_bounds = array<i64: 8, 2048>}]} {
    %c0 = arith.constant 0 : index
    %c0_0 = arith.constant 0 : index
    %0 = vector.load %arg1[%c0, %c0_0] : memref<8x16xf32, #tpu.memory_space<vmem>>, vector<8x16xf32>
    %cst = arith.constant 0.000000e+00 : f32
    %1 = vector.broadcast %cst : f32 to vector<8x16xf32>
    %2 = arith.maximumf %0, %1 : vector<8x16xf32>
    %3 = arith.truncf %2 : vector<8x16xf32> to vector<8x16xbf16>
    %c0_1 = arith.constant 0 : index
    %c0_2 = arith.constant 0 : index
    %4 = vector.load %arg2[%c0_1, %c0_2] : memref<16x2048xbf16, #tpu.memory_space<vmem>>, vector<16x2048xbf16>
    %cst_3 = arith.constant dense<0.000000e+00> : vector<8x2048xf32>
    %5 = tpu.matmul %3, %4, %cst_3 {dimension_numbers = #tpu.dot_dimension_numbers<[1], [0], [0], [1], [0, 0, 1, 1], [], []>} : vector<8x16xbf16>, vector<16x2048xbf16>, vector<8x2048xf32> -> vector<8x2048xf32>
    %6 = arith.mulf %5, %5 : vector<8x2048xf32>
    %cst_4 = arith.constant dense<0.000000e+00> : vector<8xf32>
    %7 = vector.multi_reduction <add>, %6, %cst_4 [1] : vector<8x2048xf32> to vector<8xf32>
    %8 = vector.shape_cast %7 : vector<8xf32> to vector<8x1xf32>
    %9 = math.sqrt %8 : vector<8x1xf32>
    %cst_5 = arith.constant 9.99999993E-9 : f32
    %10 = vector.broadcast %cst_5 : f32 to vector<8x1xf32>
    %11 = arith.addf %9, %10 : vector<8x1xf32>
    %12 = vector.broadcast %11 : vector<8x1xf32> to vector<8x2048xf32>
    %13 = arith.divf %5, %12 : vector<8x2048xf32>
    %c0_6 = arith.constant 0 : index
    %c0_7 = arith.constant 0 : index
    %14 = vector.load %arg3[%c0_6, %c0_7] : memref<8x2048xf32, #tpu.memory_space<vmem>>, vector<8x2048xf32>
    tpu.vector_store %arg3[%c0_6, %c0_7], %13 {strides = array<i32>} : memref<8x2048xf32, #tpu.memory_space<vmem>>, vector<8x2048xf32>,
    return
  }
  func.func @transform_0(%arg0: i32) -> (i32, i32) {
    %c0_i32 = arith.constant 0 : i32
    %c0_i32_0 = arith.constant 0 : i32
    return %arg0, %c0_i32 : i32, i32
  }
  func.func @transform_1(%arg0: i32) -> (i32, i32) {
    %c0_i32 = arith.constant 0 : i32
    %c0_i32_0 = arith.constant 0 : i32
    %c0_i32_1 = arith.constant 0 : i32
    return %c0_i32, %c0_i32_0 : i32, i32
  }
  func.func @transform_2(%arg0: i32) -> (i32, i32) {
    %c0_i32 = arith.constant 0 : i32
    %c0_i32_0 = arith.constant 0 : i32
    return %arg0, %c0_i32 : i32, i32
  }
}

module attributes {stable_mosaic.version = 11 : i64} {
  func.func @_instr_kernel(%arg0: i32, %arg1: memref<128x64xf32, #tpu.memory_space<vmem>>, %arg2: memref<128x32xf32, #tpu.memory_space<vmem>>, %arg3: memref<96x32xbf16, #tpu.memory_space<vmem>>, %arg4: memref<1x32xf32, #tpu.memory_space<vmem>>, %arg5: memref<32x128xbf16, #tpu.memory_space<vmem>>, %arg6: memref<1x128xf32, #tpu.memory_space<vmem>>, %arg7: memref<128x128xf32, #tpu.memory_space<vmem>>) attributes {dimension_semantics = [#tpu.dimension_semantics<parallel>], iteration_bounds = array<i64: 2>, scalar_prefetch = 0 : i64, scratch_operands = 0 : i64, tpu.core_type = #tpu.core_type<tc>, window_params = [{transform_indices = @transform_0, window_bounds = array<i64: 128, 64>}, {transform_indices = @transform_1, window_bounds = array<i64: 128, 32>}, {pipeline_mode = #tpu.pipeline_mode<synchronous>, transform_indices = @transform_2, window_bounds = array<i64: 96, 32>}, {pipeline_mode = #tpu.pipeline_mode<synchronous>, transform_indices = @transform_3, window_bounds = array<i64: 1, 32>}, {pipeline_mode = #tpu.pipeline_mode<synchronous>, transform_indices = @transform_4, window_bounds = array<i64: 32, 128>}, {pipeline_mode = #tpu.pipeline_mode<synchronous>, transform_indices = @transform_5, window_bounds = array<i64: 1, 128>}, {transform_indices = @transform_6, window_bounds = array<i64: 128, 128>}]} {
    %c0 = arith.constant 0 : index
    %c0_0 = arith.constant 0 : index
    %0 = vector.load %arg1[%c0, %c0_0] : memref<128x64xf32, #tpu.memory_space<vmem>>, vector<128x64xf32>
    %c0_1 = arith.constant 0 : index
    %c0_2 = arith.constant 0 : index
    %1 = vector.load %arg2[%c0_1, %c0_2] : memref<128x32xf32, #tpu.memory_space<vmem>>, vector<128x32xf32>
    %2 = tpu.concatenate %0, %1 in 1 : vector<128x64xf32>, vector<128x32xf32> -> vector<128x96xf32>
    %3 = arith.truncf %2 : vector<128x96xf32> to vector<128x96xbf16>
    %c0_3 = arith.constant 0 : index
    %c0_4 = arith.constant 0 : index
    %4 = vector.load %arg3[%c0_3, %c0_4] : memref<96x32xbf16, #tpu.memory_space<vmem>>, vector<96x32xbf16>
    %cst = arith.constant dense<0.000000e+00> : vector<128x32xf32>
    %5 = tpu.matmul %3, %4, %cst {dimension_numbers = #tpu.dot_dimension_numbers<[1], [0], [0], [1], [0, 0, 1, 1], [], []>} : vector<128x96xbf16>, vector<96x32xbf16>, vector<128x32xf32> -> vector<128x32xf32>
    %c0_5 = arith.constant 0 : index
    %c0_6 = arith.constant 0 : index
    %6 = vector.load %arg4[%c0_5, %c0_6] : memref<1x32xf32, #tpu.memory_space<vmem>>, vector<1x32xf32>
    %7 = vector.broadcast %6 : vector<1x32xf32> to vector<128x32xf32>
    %8 = arith.addf %5, %7 : vector<128x32xf32>
    %9 = arith.truncf %8 : vector<128x32xf32> to vector<128x32xbf16>
    %c0_7 = arith.constant 0 : index
    %c0_8 = arith.constant 0 : index
    %10 = vector.load %arg5[%c0_7, %c0_8] : memref<32x128xbf16, #tpu.memory_space<vmem>>, vector<32x128xbf16>
    %cst_9 = arith.constant dense<0.000000e+00> : vector<128x128xf32>
    %11 = tpu.matmul %9, %10, %cst_9 {dimension_numbers = #tpu.dot_dimension_numbers<[1], [0], [0], [1], [0, 0, 1, 1], [], []>} : vector<128x32xbf16>, vector<32x128xbf16>, vector<128x128xf32> -> vector<128x128xf32>
    %c0_10 = arith.constant 0 : index
    %c0_11 = arith.constant 0 : index
    %12 = vector.load %arg6[%c0_10, %c0_11] : memref<1x128xf32, #tpu.memory_space<vmem>>, vector<1x128xf32>
    %13 = vector.broadcast %12 : vector<1x128xf32> to vector<128x128xf32>
    %14 = arith.addf %11, %13 : vector<128x128xf32>
    %15 = math.tanh %14 : vector<128x128xf32>
    %c0_12 = arith.constant 0 : index
    %c0_13 = arith.constant 0 : index
    %16 = vector.load %arg7[%c0_12, %c0_13] : memref<128x128xf32, #tpu.memory_space<vmem>>, vector<128x128xf32>
    tpu.vector_store %arg7[%c0_12, %c0_13], %15 {strides = array<i32>} : memref<128x128xf32, #tpu.memory_space<vmem>>, vector<128x128xf32>,
    return
  }
  func.func @transform_0(%arg0: i32) -> (i32, i32) {
    %c0_i32 = arith.constant 0 : i32
    %c0_i32_0 = arith.constant 0 : i32
    return %arg0, %c0_i32 : i32, i32
  }
  func.func @transform_1(%arg0: i32) -> (i32, i32) {
    %c0_i32 = arith.constant 0 : i32
    %c0_i32_0 = arith.constant 0 : i32
    return %arg0, %c0_i32 : i32, i32
  }
  func.func @transform_2(%arg0: i32) -> (i32, i32) {
    %c0_i32 = arith.constant 0 : i32
    %c0_i32_0 = arith.constant 0 : i32
    %c0_i32_1 = arith.constant 0 : i32
    return %c0_i32, %c0_i32_0 : i32, i32
  }
  func.func @transform_3(%arg0: i32) -> (i32, i32) {
    %c0_i32 = arith.constant 0 : i32
    %c0_i32_0 = arith.constant 0 : i32
    %c0_i32_1 = arith.constant 0 : i32
    return %c0_i32, %c0_i32_0 : i32, i32
  }
  func.func @transform_4(%arg0: i32) -> (i32, i32) {
    %c0_i32 = arith.constant 0 : i32
    %c0_i32_0 = arith.constant 0 : i32
    %c0_i32_1 = arith.constant 0 : i32
    return %c0_i32, %c0_i32_0 : i32, i32
  }
  func.func @transform_5(%arg0: i32) -> (i32, i32) {
    %c0_i32 = arith.constant 0 : i32
    %c0_i32_0 = arith.constant 0 : i32
    %c0_i32_1 = arith.constant 0 : i32
    return %c0_i32, %c0_i32_0 : i32, i32
  }
  func.func @transform_6(%arg0: i32) -> (i32, i32) {
    %c0_i32 = arith.constant 0 : i32
    %c0_i32_0 = arith.constant 0 : i32
    return %arg0, %c0_i32 : i32, i32
  }
}

</mosaic_0001>

<bundles_post_ra>
// kernel: model_forward.5
= control target key start
LH: loop header
LB: loop body
LE: loop exit
PB: predicated region body
PF: predicated region fallthrough
CT: control target
= control target key end

     0   :  { %s515_s9 = smov 0   ;;  %s587_s0 = inlined_call_operand.vmem [shape: f32[64,128], index: 0, kind: input, shape index: {}]   ;;  %s588_s1 = inlined_call_operand.vmem [shape: bf16[128,256], index: 1, kind: input, shape index: {}]   ;;  %s589_s2 = inlined_call_operand.vmem [shape: f32[64,128], index: 2, kind: output, shape index: {}]  }
   0x1 LB: > { %s407_s10 = sadd.s32 4294967295, %s497_s9   ;;  %p411_p0 = scmp.ge.s32.totalorder %s497_s9, 1  ;;  %s497_s9 = sphi %s515_s9, %s12_s9  }
   0x2   : > { %p113_p1 = scmp.lt.s32.totalorder %s497_s9, 3 }
   0x4   : > { %p114_p2 = pnand %p411_p0, %p113_p1 }
   0x5   : > { %v459_v0 = vld [vmem:[%s588_s1 + $0x4] ss:$8 sps:$4 sm:$0xff] (!%p114_p2)   ;;  %v461_v1 = vld [vmem:[%s588_s1] ss:$8 sps:$4 sm:$0xff] (!%p114_p2)   ;;  %v499_v2 = vmov (!%p114_p2), 0   ;;  %s412_s25 = sshll.u32 (!%p114_p2), %s407_s10, 2 }
   0x6   : > { %117 = sbr.rel (%p114_p2) target bundleno = 277 (0x115), region = 28  ;;  %282 = vmatprep.mubr.bf16.mxu0 (!%p114_p2), %v499_v2  ;;  %292 = vmatprep.mubr.bf16.mxu1 (!%p114_p2), %v499_v2  ;;  %v462_v3 = vld [vmem:[%s588_s1 + $0x14] ss:$8 sps:$4 sm:$0xff] (!%p114_p2)   ;;  %v464_v4 = vld [vmem:[%s588_s1 + $0x10] ss:$8 sps:$4 sm:$0xff] (!%p114_p2)   ;;  %p136_p3 = scmp.lt.s32.totalorder (!%p114_p2), %s412_s25, 7 }
   0x7   : > { %250 = vmatprep.subr.bf16.mxu0 (!%p114_p2), %v459_v0  ;;  %434 = vmatprep.subr.bf16.mxu1 (!%p114_p2), %v459_v0  ;;  %v465_v5 = vld [vmem:[%s588_s1 + $0x24] ss:$8 sps:$4 sm:$0xff] (!%p114_p2)   ;;  %v467_v6 = vld [vmem:[%s588_s1 + $0x20] ss:$8 sps:$4 sm:$0xff] (!%p114_p2)   ;;  %v468_v7 = vld [vmem:[%s588_s1 + $0x34] ss:$8 sps:$4 sm:$0xff] (!%p114_p2)  }
   0x8   : > { %251 = vmatpush1.bf16.msra.mxu0 (!%p114_p2), %v461_v1  ;;  %442 = vmatpush1.bf16.msra.mxu1 (!%p114_p2), %v461_v1  ;;  %v470_v8 = vld [vmem:[%s588_s1 + $0x30] ss:$8 sps:$4 sm:$0xff] (!%p114_p2)   ;;  %v471_v9 = vld [vmem:[%s588_s1 + $0x44] ss:$8 sps:$4 sm:$0xff] (!%p114_p2)   ;;  %v473_v10 = vld [vmem:[%s588_s1 + $0x40] ss:$8 sps:$4 sm:$0xff] (!%p114_p2)  }
   0x9   : > { %252 = vmatprep.subr.bf16.mxu0 (!%p114_p2), %v462_v3  ;;  %435 = vmatprep.subr.bf16.mxu1 (!%p114_p2), %v462_v3  ;;  %v474_v11 = vld [vmem:[%s588_s1 + $0x54] ss:$8 sps:$4 sm:$0xff] (!%p114_p2)   ;;  %v476_v12 = vld [vmem:[%s588_s1 + $0x50] ss:$8 sps:$4 sm:$0xff] (!%p114_p2)   ;;  %v477_v13 = vld [vmem:[%s588_s1 + $0x64] ss:$8 sps:$4 sm:$0xff] (!%p114_p2)  }
   0xa   : > { %v479_v14 = vld [vmem:[%s588_s1 + $0x60] ss:$8 sps:$4 sm:$0xff] (!%p114_p2)   ;;  %v480_v15 = vld [vmem:[%s588_s1 + $0x74] ss:$8 sps:$4 sm:$0xff] (!%p114_p2)   ;;  %v482_v16 = vld [vmem:[%s588_s1 + $0x70] ss:$8 sps:$4 sm:$0xff] (!%p114_p2)  }
   0xc   : > { %253 = vmatpush1.bf16.msra.mxu0 (!%p114_p2), %v464_v4  ;;  %443 = vmatpush1.bf16.msra.mxu1 (!%p114_p2), %v464_v4 }
   0xd   : > { %254 = vmatprep.subr.bf16.mxu0 %v465_v5  ;;  %436 = vmatprep.subr.bf16.mxu1 %v465_v5  ;;  %s591_s25 = smov (!%p136_p3, %s412_s25), 7 }
   0xe   : > { %s413_s11 = sshll.u32 %s591_s25, 3 }
   0xf   : > { %s139_s16 = scalar_lea.vmem %s587_s0, %s413_s11  ;;  %s145_s23 = scalar_lea.vmem %s589_s2, %s413_s11 }
  0x10   : > { %255 = vmatpush1.bf16.msra.mxu0 %v467_v6  ;;  %444 = vmatpush1.bf16.msra.mxu1 %v467_v6  ;;  %v148_v17 = vld [vmem:[%s139_s16] sm:$0xff]  ;;  %v149_v18 = vld [vmem:[%s139_s16 + $0x8] sm:$0xff]  ;;  %v150_v19 = vld [vmem:[%s139_s16 + $0x10] sm:$0xff] }
  0x11   : > { %256 = vmatprep.subr.bf16.mxu0 %v468_v7  ;;  %437 = vmatprep.subr.bf16.mxu1 %v468_v7  ;;  %v151_v20 = vld [vmem:[%s139_s16 + $0x18] sm:$0xff]  ;;  %v152_v21 = vpack.c.bf16 %v149_v18, %v148_v17 }
  0x12   : > { %v153_v22 = vpack.c.bf16 %v151_v20, %v150_v19 }
  0x14   : > { %257 = vmatpush1.bf16.msra.mxu0 %v470_v8  ;;  %445 = vmatpush1.bf16.msra.mxu1 %v470_v8 }
  0x15   : > { %258 = vmatprep.subr.bf16.mxu0 %v471_v9  ;;  %438 = vmatprep.subr.bf16.mxu1 %v471_v9 }
  0x18   : > { %259 = vmatpush1.bf16.msra.mxu0 %v473_v10  ;;  %446 = vmatpush1.bf16.msra.mxu1 %v473_v10 }
  0x19   : > { %260 = vmatprep.subr.bf16.mxu0 %v474_v11  ;;  %439 = vmatprep.subr.bf16.mxu1 %v474_v11 }
  0x1c   : > { %261 = vmatpush1.bf16.msra.mxu0 %v476_v12  ;;  %447 = vmatpush1.bf16.msra.mxu1 %v476_v12 }
  0x1d   : > { %262 = vmatprep.subr.bf16.mxu0 %v477_v13  ;;  %440 = vmatprep.subr.bf16.mxu1 %v477_v13 }
  0x20   : > { %263 = vmatpush1.bf16.msra.mxu0 %v479_v14  ;;  %448 = vmatpush1.bf16.msra.mxu1 %v479_v14 }
  0x21   : > { %264 = vmatprep.subr.bf16.mxu0 %v480_v15  ;;  %441 = vmatprep.subr.bf16.mxu1 %v480_v15 }
  0x24   : > { %265 = vmatpush1.bf16.msra.mxu0 %v482_v16  ;;  %449 = vmatpush1.bf16.msra.mxu1 %v482_v16 }
  0x27   : > { %283 = vmatmul.mubr.bf16.vlgmr.msra.gmra.mrb[0].mxu0 %v152_v21  ;;  %293 = vmatmul.mubr.bf16.vlgmr.msra.gmra.mrb[0].mxu1 %v153_v22 }
  0xfa   : > { %v284_v23 = vpop.f32.mrb[0].mxu0  ;;  %v294_v24 = vpop.f32.mrb[0].mxu1 }
  0xfb   : > { %v303_v25 = vmul.f32 %v284_v23, %v284_v23  ;;  %v305_v26 = vmul.f32 %v294_v24, %v294_v24  ;;  %v286_v27 = vpop.f32.mrb[1].mxu0  ;;  %v296_v28 = vpop.f32.mrb[1].mxu1 }
  0xfc   : > { %v307_v29 = vmul.f32 %v286_v27, %v286_v27  ;;  %v309_v30 = vmul.f32 %v296_v28, %v296_v28  ;;  %v288_v31 = vpop.f32.mrb[2].mxu0  ;;  %v298_v32 = vpop.f32.mrb[2].mxu1 }
  0xfd   : > { %v304_v33 = vmul.f32 %v288_v31, %v288_v31  ;;  %v306_v34 = vmul.f32 %v298_v32, %v298_v32  ;;  %v290_v35 = vpop.f32.mrb[3].mxu0  ;;  %v300_v36 = vpop.f32.mrb[3].mxu1 }
  0xfe   : > { %v311_v37 = vadd.f32 %v307_v29, %v303_v25  ;;  %v313_v38 = vadd.f32 %v309_v30, %v305_v26  ;;  %v308_v39 = vmul.f32 %v290_v35, %v290_v35  ;;  %v310_v40 = vmul.f32 %v300_v36, %v300_v36 }
 0x100   : > { %v315_v41 = vadd.f32 1e-12, %v311_v37  ;;  %v317_v42 = vadd.f32 1e-12, %v313_v38  ;;  %v312_v43 = vadd.f32 %v308_v39, %v304_v33  ;;  %v314_v44 = vadd.f32 %v310_v40, %v306_v34 }
 0x102   : > { %483 = vrsqrt.f32 %v315_v41  ;;  %v316_v45 = vadd.f32 1e-12, %v312_v43  ;;  %v318_v46 = vadd.f32 1e-12, %v314_v44  ;;  %vm321_vm0 = vcmp.eq.f32.partialorder %v315_v41, inf }
 0x103   : > { %485 = vrsqrt.f32 %v317_v42  ;;  %v324_v50 = vand.u32 2147483648, %v315_v41  ;;  %vm323_vm1 = vcmp.eq.f32.partialorder %v315_v41, 0.0  ;;  %vm335_vm2 = vcmp.eq.f32.partialorder %v317_v42, inf }
 0x104   : > { %487 = vrsqrt.f32 %v316_v45  ;;  %vm328_vm3 = vcmp.eq.f32.partialorder %v316_v45, inf  ;;  %v331_v58 = vand.u32 2147483648, %v316_v45  ;;  %v338_v60 = vand.u32 2147483648, %v317_v42 }
 0x105   : > { %489 = vrsqrt.f32 %v318_v46  ;;  %vm330_vm4 = vcmp.eq.f32.partialorder %v316_v45, 0.0  ;;  %vm342_vm5 = vcmp.eq.f32.partialorder %v318_v46, inf  ;;  %vm337_vm6 = vcmp.eq.f32.partialorder %v317_v42, 0.0 }
 0x106   : > { %v345_v0 = vand.u32 2147483648, %v318_v46  ;;  %vm344_vm7 = vcmp.eq.f32.partialorder %v318_v46, 0.0 }
 0x10c   : > { %v484_v47 = vpop.eup %483 }
 0x10d   : > { %v486_v48 = vpop.eup %485  ;;  %v320_v49 = vmul.f32 %v484_v47, %v315_v41 }
 0x10e   : > { %v334_v51 = vmul.f32 %v486_v48, %v317_v42  ;;  %v488_v53 = vpop.eup %487 }
 0x10f   : > { %v322_v52 = vsel %vm321_vm0, %v315_v41, %v320_v49  ;;  %v490_v55 = vpop.eup %489  ;;  %v327_v56 = vmul.f32 %v488_v53, %v316_v45 }
 0x110   : > { %v325_v54 = vsel %vm323_vm1, %v324_v50, %v322_v52  ;;  %v336_v57 = vsel %vm335_vm2, %v317_v42, %v334_v51  ;;  %v341_v59 = vmul.f32 %v490_v55, %v318_v46 }
 0x111   : > { %347 = vst [vmem:[%s145_s23] sm:$0xff] %v325_v54  ;;  %v329_v61 = vsel %vm328_vm3, %v316_v45, %v327_v56  ;;  %v339_v1 = vsel %vm337_vm6, %v338_v60, %v336_v57 }
 0x112   : > { %v332_v62 = vsel %vm330_vm4, %v331_v58, %v329_v61  ;;  %v343_v63 = vsel %vm342_vm5, %v318_v46, %v341_v59  ;;  %349 = vst [vmem:[%s145_s23 + $0x10] sm:$0xff] %v339_v1 }
 0x113   : > { %348 = vst [vmem:[%s145_s23 + $0x8] sm:$0xff] %v332_v62  ;;  %v346_v2 = vsel %vm344_vm7, %v345_v0, %v343_v63 }
 0x114   : > { %350 = vst [vmem:[%s145_s23 + $0x18] sm:$0xff] %v346_v2 }
 0x115 PF: > { %s12_s9 = sadd.s32 1, %s497_s9  }
 0x116   : > { %p9_p4 = scmp.ge.s32.totalorder %s12_s9, 4  }
 0x118   :  { %11 = sbr.rel (!%p9_p4) target bundleno = 1 (0x1), region = 58 }

// kernel: reverse.2
= control target key start
LH: loop header
LB: loop body
LE: loop exit
PB: predicated region body
PF: predicated region fallthrough
CT: control target
= control target key end

     0   :  { %s705_s6 = smov 0   ;;  %s707_s7 = smov 0   ;;  %s801_s0 = inlined_call_operand.vmem [shape: f32[2,256,31], index: 0, kind: input, shape index: {}]   ;;  %s802_s1 = inlined_call_operand.vmem [shape: f32[2,256,31], index: 1, kind: output, shape index: {}]  }
   0x1   :  { %s709_s8 = smov 0  }
   0x2 LB: > { %s538_s9 = sadd.s32 4294967295, %s685_s8   ;;  %s19_s10 = sadd.s32 1, %s681_s7  ;;  %s685_s8 = sphi %s709_s8, %s7_s8   ;;  %s681_s7 = sphi %s707_s7, %s804_s7   ;;  %s677_s6 = sphi %s705_s6, %s803_s6  }
   0x3   : > { %p20_p0 = scmp.ge.s32.totalorder %s19_s10, 2  ;;  %p540_p1 = scmp.ge.s32.totalorder %s685_s8, 2 }
   0x4   : > { %s42_s11 = sand.u32 (!%p540_p1), 1, %s685_s8   ;;  %s541_s12 = sshll.u32 (!%p540_p1), %s681_s7, 3 }
   0x5   : > { %s806_s10 = smov (%p20_p0, %s19_s10), 0  ;;  %40 = sbr.rel (%p540_p1) target bundleno = 22 (0x16), region = 16 }
   0x6   : > { %s589_s13 = smul.u32 (!%p540_p1), 80, %s42_s11  ;;  %s59_s16 = scalar_lea.vmem (!%p540_p1), %s801_s0, %s541_s12  }
   0x7   : > { %s691_s20 = smov (!%p540_p1), 0  }
   0x8   : > { %s44_s17 = scalar_lea.vmem (!%p540_p1), [#allocation0], %s589_s13 }
   0x9   : > { %s61_s18 = scalar_lea.vmem (!%p540_p1), %s44_s17, 8 [#allocation0]  }
   0xa   : > { %s687_s19 = smov (!%p540_p1), %s61_s18  }
   0xc LB: >> { %v143_v0 = vld [vmem:[%s59_s16] sm:$0xff]  ;;  %v145_v1 = vld [vmem:[%s59_s16 + $0x10] sm:$0xff]  ;;  %s137_s20 = sadd.s32 1, %s693_s20   ;;  %s693_s20 = sphi %s691_s20, %s137_s20   ;;  %s689_s19 = sphi %s687_s19, %s688_s19  }
   0xd   : >> { %v147_v2 = vld [vmem:[%s59_s16 + $0x20] sm:$0xff]  ;;  %144 = vst [vmem:[%s689_s19] sm:$0xff] %v143_v0  ;;  %146 = vst [vmem:[%s689_s19 + $0x8] sm:$0xff] %v145_v1  ;;  %v149_v3 = vld [vmem:[%s59_s16 + $0x30] sm:$0xff]  ;;  %p136_p2 = scmp.ge.s32.totalorder %s137_s20, 1 }
   0xe   : >> { %148 = vst [vmem:[%s689_s19 + $0x10] sm:$0xff] %v147_v2  ;;  %v151_v4 = vld [vmem:[%s59_s16 + $0x40] sm:$0xff]  ;;  %v153_v5 = vld [vmem:[%s59_s16 + $0x50] sm:$0xff]  ;;  %150 = vst [vmem:[%s689_s19 + $0x18] sm:$0xff] %v149_v3 }
   0xf   : >> { %152 = vst [vmem:[%s689_s19 + $0x28] sm:$0xff] %v151_v4  ;;  %154 = vst [vmem:[%s689_s19 + $0x30] sm:$0xff] %v153_v5  ;;  %v155_v6 = vld [vmem:[%s59_s16 + $0x60] sm:$0xff]  ;;  %v157_v7 = vld [vmem:[%s59_s16 + $0x70] sm:$0xff]  ;;  %139 = sbr.rel (!%p136_p2) target bundleno = 12 (0xc), region = 179 }
  0x10   : >> { %156 = vst [vmem:[%s689_s19 + $0x38] sm:$0xff] %v155_v6  ;;  %158 = vst [vmem:[%s689_s19 + $0x40] sm:$0xff] %v157_v7  ;;  %s688_s19 = smov %s61_s18  }
  0x16 PF: > { %p553_p3 = scmp.ge.s32.totalorder %s685_s8, 1  ;;  %p197_p4 = scmp.lt.s32.totalorder %s685_s8, 3 }
  0x18   : > { %p198_p5 = pnand %p553_p3, %p197_p4 }
  0x19   : > { %s204_s21 = sand.u32 (!%p198_p5), 1, %s538_s9   ;;  %v232_v8 = vlaneseq (!%p198_p5)  ;;  %s586_s24 = sshll.u32 (!%p198_p5), %s677_s6, 3 }
  0x1a   : > { %201 = sbr.rel (%p198_p5) target bundleno = 51 (0x33), region = 68  ;;  %s554_s23 = sshll.u32 (!%p198_p5), %s204_s21, 6 }
  0x1b   : > { %s590_s22 = smul.u32 (!%p198_p5), 80, %s204_s21  ;;  %v233_v9 = vshrl.u32 (!%p198_p5), %v232_v8, 7  ;;  %s743_s26 = scalar_lea.vmem (!%p198_p5), [#allocation1], %s554_s23 }
  0x1c   : > { %s344_s29 = scalar_lea.vmem (!%p198_p5), %s802_s1, %s586_s24 }
  0x1d   : > { %s735_s25 = scalar_lea.vmem (!%p198_p5), [#allocation0], %s590_s22  ;;  %vm234_vm0 = vcmp.lt.s32.totalorder (!%p198_p5), %v233_v9, 7 }
  0x1e   : > { %v555_v10 = vld [vmem:[%s735_s25 + $0x1f] ss:$-1 sm:$0xff] (!%p198_p5)  ;;  %v556_v11 = vld [vmem:[%s735_s25 + $0x27] ss:$-1 sm:$0xff] (!%p198_p5)  ;;  %v557_v14 = vld [vmem:[%s735_s25 + $0x17] ss:$-1 sm:$0xff] (!%p198_p5) }
  0x1f   : > { %v226_v12 = vrot.slane (!%p198_p5), %v555_v10, 1  ;;  %v231_v13 = vrot.slane (!%p198_p5), %v556_v11, 1  ;;  %v559_v15 = vld [vmem:[%s735_s25 + $0x1f] ss:$-1 sm:$0xff] (!%p198_p5)  ;;  %v240_v16 = vrot.slane (!%p198_p5), %v557_v14, 1 }
  0x20   : > { %v245_v17 = vrot.slane (!%p198_p5), %v559_v15, 1  ;;  %v561_v18 = vld [vmem:[%s735_s25 + $0xf] ss:$-1 sm:$0xff] (!%p198_p5)  ;;  %v563_v19 = vld [vmem:[%s735_s25 + $0x17] ss:$-1 sm:$0xff] (!%p198_p5) }
  0x21   : > { %227 = vst [vmem:[%s743_s26] sm:$0xff] %v226_v12  ;;  %v254_v20 = vrot.slane %v561_v18, 1  ;;  %v259_v21 = vrot.slane %v563_v19, 1  ;;  %v565_v22 = vld [vmem:[%s735_s25 + $0x7] ss:$-1 sm:$0xff]  ;;  %v567_v23 = vld [vmem:[%s735_s25 + $0xf] ss:$-1 sm:$0xff] }
  0x22   : > { %235 = vst.msk [vmem:[%s743_s26] sm:$0xff] %vm234_vm0, %v231_v13  ;;  %558 = vst [vmem:[%s743_s26 + $0x8] sm:$0xff] %v240_v16  ;;  %v267_v24 = vrot.slane %v565_v22, 1  ;;  %v272_v25 = vrot.slane %v567_v23, 1  ;;  %v569_v26 = vld [vmem:[%s735_s25 + $0x47] ss:$-1 sm:$0xff] }
  0x23   : > { %v571_v27 = vld [vmem:[%s735_s25 + $0x4f] ss:$-1 sm:$0xff]  ;;  %560 = vst.msk [vmem:[%s743_s26 + $0x8] sm:$0xff] %vm234_vm0, %v245_v17  ;;  %562 = vst [vmem:[%s743_s26 + $0x10] sm:$0xff] %v254_v20  ;;  %v282_v28 = vrot.slane %v569_v26, 1 }
  0x24   : > { %v287_v29 = vrot.slane %v571_v27, 1  ;;  %v573_v30 = vld [vmem:[%s735_s25 + $0x3f] ss:$-1 sm:$0xff]  ;;  %v575_v31 = vld [vmem:[%s735_s25 + $0x47] ss:$-1 sm:$0xff]  ;;  %564 = vst.msk [vmem:[%s743_s26 + $0x10] sm:$0xff] %vm234_vm0, %v259_v21 }
  0x25   : > { %566 = vst [vmem:[%s743_s26 + $0x18] sm:$0xff] %v267_v24  ;;  %v296_v32 = vrot.slane %v573_v30, 1  ;;  %v301_v33 = vrot.slane %v575_v31, 1  ;;  %v577_v34 = vld [vmem:[%s735_s25 + $0x37] ss:$-1 sm:$0xff]  ;;  %570 = vst [vmem:[%s743_s26 + $0x20] sm:$0xff] %v282_v28 }
  0x26   : > { %v579_v35 = vld [vmem:[%s735_s25 + $0x3f] ss:$-1 sm:$0xff]  ;;  %568 = vst.msk [vmem:[%s743_s26 + $0x18] sm:$0xff] %vm234_vm0, %v272_v25  ;;  %v310_v36 = vrot.slane %v577_v34, 1  ;;  %v581_v38 = vld [vmem:[%s735_s25 + $0x2f] ss:$-1 sm:$0xff] }
  0x27   : > { %v315_v37 = vrot.slane %v579_v35, 1  ;;  %v583_v39 = vld [vmem:[%s735_s25 + $0x37] ss:$-1 sm:$0xff]  ;;  %572 = vst.msk [vmem:[%s743_s26 + $0x20] sm:$0xff] %vm234_vm0, %v287_v29  ;;  %574 = vst [vmem:[%s743_s26 + $0x28] sm:$0xff] %v296_v32  ;;  %v323_v40 = vrot.slane %v581_v38, 1 }
  0x28   : > { %v328_v41 = vrot.slane %v583_v39, 1  ;;  %576 = vst.msk [vmem:[%s743_s26 + $0x28] sm:$0xff] %vm234_vm0, %v301_v33  ;;  %578 = vst [vmem:[%s743_s26 + $0x30] sm:$0xff] %v310_v36 }
  0x29   : > { %580 = vst.msk [vmem:[%s743_s26 + $0x30] sm:$0xff] %vm234_vm0, %v315_v37  ;;  %582 = vst [vmem:[%s743_s26 + $0x38] sm:$0xff] %v323_v40  ;;  %v386_v42 = vld [vmem:[%s743_s26] sm:$0xff] }
  0x2a   : > { %584 = vst.msk [vmem:[%s743_s26 + $0x38] sm:$0xff] %vm234_vm0, %v328_v41  ;;  %387 = vst [vmem:[%s344_s29] sm:$0xff] %v386_v42  ;;  %v388_v43 = vld [vmem:[%s743_s26 + $0x8] sm:$0xff] }
  0x2b   : > { %389 = vst [vmem:[%s344_s29 + $0x10] sm:$0xff] %v388_v43  ;;  %v390_v44 = vld [vmem:[%s743_s26 + $0x10] sm:$0xff] }
  0x2c   : > { %391 = vst [vmem:[%s344_s29 + $0x20] sm:$0xff] %v390_v44 }
  0x2d   : > { %v392_v45 = vld [vmem:[%s743_s26 + $0x18] sm:$0xff] }
  0x2e   : > { %393 = vst [vmem:[%s344_s29 + $0x30] sm:$0xff] %v392_v45  ;;  %v394_v46 = vld [vmem:[%s743_s26 + $0x20] sm:$0xff] }
  0x2f   : > { %395 = vst [vmem:[%s344_s29 + $0x40] sm:$0xff] %v394_v46  ;;  %v396_v47 = vld [vmem:[%s743_s26 + $0x28] sm:$0xff] }
  0x30   : > { %397 = vst [vmem:[%s344_s29 + $0x50] sm:$0xff] %v396_v47  ;;  %v398_v48 = vld [vmem:[%s743_s26 + $0x30] sm:$0xff] }
  0x31   : > { %399 = vst [vmem:[%s344_s29 + $0x60] sm:$0xff] %v398_v48  ;;  %v400_v49 = vld [vmem:[%s743_s26 + $0x38] sm:$0xff] }
  0x32   : > { %401 = vst [vmem:[%s344_s29 + $0x70] sm:$0xff] %v400_v49 }
  0x33 PF: > { %s7_s8 = sadd.s32 1, %s685_s8   ;;  %s803_s6 = smov %s681_s7 }
  0x34   : > { %p4_p6 = scmp.ge.s32.totalorder %s7_s8, 4   ;;  %s804_s7 = smov %s806_s10 }
  0x36   :  { %6 = sbr.rel (!%p4_p6) target bundleno = 2 (0x2), region = 201 }

// kernel: custom-call
= control target key start
LH: loop header
LB: loop body
LE: loop exit
PB: predicated region body
PF: predicated region fallthrough
CT: control target
= control target key end

     0   :  { %v1449_v0 = vmov 2147483648   ;;  %v1450_v1 = vmov 2147483647   ;;  %s1638_s0 = inlined_call_operand.vmem [shape: f32[2,8192], index: 0, kind: input, shape index: {}]   ;;  %s1639_s1 = inlined_call_operand.vmem [shape: f32[2,4], index: 1, kind: output, shape index: {0}]   ;;  %s1640_s2 = inlined_call_operand.vmem [shape: s32[2,4], index: 2, kind: output, shape index: {1}]  }
   0x1   :  { %6 = vst [vmem:[#allocation11] sm:$0xff] %v1449_v0  ;;  %7 = vst [vmem:[#allocation13] sm:$0xff] %v1450_v1 }
   0x2   :  { %v24_v2 = vld [vmem:[%s1638_s0] sm:$0xff]  ;;  %v26_v3 = vld [vmem:[%s1638_s0 + $0x8] sm:$0xff]  ;;  %v28_v4 = vld [vmem:[%s1638_s0 + $0x10] sm:$0xff]  ;;  %v61_v5 = vlaneseq  ;;  %v1451_v7 = vmov 2147483648   ;;  %v1452_v8 = vmov 2147483647  }
   0x3   :  { %vm71_vm0 = vcmp.lt.s32.totalorder %v24_v2, 0  ;;  %v72_v6 = vsub.s32 2147483647, %v24_v2  ;;  %270 = vst [vmem:[#allocation12] sm:$0xff] %v1451_v7  ;;  %271 = vst [vmem:[#allocation14] sm:$0xff] %v1452_v8  ;;  %v30_v9 = vld [vmem:[%s1638_s0 + $0x18] sm:$0xff] }
   0x4   :  { %v32_v10 = vld [vmem:[%s1638_s0 + $0x20] sm:$0xff]  ;;  %v1489_v11 = vshrl.u32 %v61_v5, 7  ;;  %vm80_vm1 = vcmp.lt.s32.totalorder %v26_v3, 0  ;;  %v34_v12 = vld [vmem:[%s1638_s0 + $0x28] sm:$0xff]  ;;  %v81_v13 = vsub.s32 2147483647, %v26_v3 }
   0x5   :  { %vm89_vm2 = vcmp.lt.s32.totalorder %v28_v4, 0  ;;  %v36_v14 = vld [vmem:[%s1638_s0 + $0x30] sm:$0xff]  ;;  %v62_v15 = vand.u32 127, %v61_v5  ;;  %v73_v17 = vsel %vm71_vm0, %v72_v6, %v24_v2  ;;  %v90_v18 = vsub.s32 2147483647, %v28_v4  ;;  %v38_v19 = vld [vmem:[%s1638_s0 + $0x38] sm:$0xff] }
   0x6   :  { %v65_v16 = vshrl.u32 %v1489_v11, 1  ;;  %v82_v20 = vsel %vm80_vm1, %v81_v13, %v26_v3  ;;  %vm98_vm3 = vcmp.lt.s32.totalorder %v30_v9, 0  ;;  %v99_v21 = vsub.s32 2147483647, %v30_v9  ;;  %v40_v22 = vld [vmem:[%s1638_s0 + $0x40] sm:$0xff]  ;;  %v42_v43 = vld [vmem:[%s1638_s0 + $0x48] sm:$0xff] }
   0x7   :  { %vm107_vm4 = vcmp.lt.s32.totalorder %v32_v10, 0  ;;  %v91_v24 = vsel %vm89_vm2, %v90_v18, %v28_v4  ;;  %v108_v25 = vsub.s32 2147483647, %v32_v10  ;;  %vm116_vm5 = vcmp.lt.s32.totalorder %v34_v12, 0  ;;  %v44_v47 = vld [vmem:[%s1638_s0 + $0x50] sm:$0xff]  ;;  %v46_v54 = vld [vmem:[%s1638_s0 + $0x58] sm:$0xff] }
   0x8   :  { %v67_v23 = vmul.u32 128, %v65_v16  ;;  %v100_v26 = vsel %vm98_vm3, %v99_v21, %v30_v9  ;;  %v117_v27 = vsub.s32 2147483647, %v34_v12  ;;  %vm125_vm6 = vcmp.lt.s32.totalorder %v36_v14, 0  ;;  %v48_v57 = vld [vmem:[%s1638_s0 + $0x60] sm:$0xff]  ;;  %v50_v60 = vld [vmem:[%s1638_s0 + $0x68] sm:$0xff] }
   0x9   :  { %v126_v28 = vsub.s32 2147483647, %v36_v14  ;;  %v109_v30 = vsel %vm107_vm4, %v108_v25, %v32_v10  ;;  %vm134_vm7 = vcmp.lt.s32.totalorder %v38_v19, 0  ;;  %v135_v31 = vsub.s32 2147483647, %v38_v19  ;;  %v52_v3 = vld [vmem:[%s1638_s0 + $0x70] sm:$0xff] }
   0xa   :  { %v1506_v29 = vadd.s32 %v67_v23, %v62_v15  ;;  %v118_v32 = vsel %vm116_vm5, %v117_v27, %v34_v12  ;;  %vm143_vm8 = vcmp.lt.s32.totalorder %v40_v22, 0  ;;  %v144_v34 = vsub.s32 2147483647, %v40_v22  ;;  %v54_v10 = vld [vmem:[%s1638_s0 + $0x78] sm:$0xff]  ;;  %s1548_s0 = smov 0  }
   0xb   :  { %v127_v33 = vsel %vm125_vm6, %v126_v28, %v36_v14  ;;  %v136_v42 = vsel %vm134_vm7, %v135_v31, %v38_v19  ;;  %vm152_vm1 = vcmp.lt.s32.totalorder %v42_v43, 0  ;;  %v153_v55 = vsub.s32 2147483647, %v42_v43 }
   0xc   :  { %vm75_vm9 = vcmp.lt.s32.totalorder %v1506_v29, 8192  ;;  %v83_v35 = vadd.s32 512, %v1506_v29  ;;  %v92_v36 = vadd.s32 1024, %v1506_v29  ;;  %v101_v37 = vadd.s32 1536, %v1506_v29  ;;  %223 = vst [vmem:[#allocation16] sm:$0xff] %v1506_v29 }
   0xd   :  { %v76_v38 = vsel %vm75_vm9, %v73_v17, 2147483648  ;;  %v110_v39 = vadd.s32 2048, %v1506_v29  ;;  %v119_v40 = vadd.s32 2560, %v1506_v29  ;;  %v128_v41 = vadd.s32 3072, %v1506_v29 }
   0xe   :  { %77 = vst [vmem:[#allocation15] sm:$0xff] %v76_v38  ;;  %vm84_vm10 = vcmp.lt.s32.totalorder %v83_v35, 8192  ;;  %vm93_vm11 = vcmp.lt.s32.totalorder %v92_v36, 8192  ;;  %vm102_vm12 = vcmp.lt.s32.totalorder %v101_v37, 8192  ;;  %226 = vst [vmem:[#allocation16 + $0x8] sm:$0xff] %v83_v35  ;;  %v137_v49 = vadd.s32 3584, %v1506_v29 }
   0xf   :  { %229 = vst [vmem:[#allocation16 + $0x10] sm:$0xff] %v92_v36  ;;  %232 = vst [vmem:[#allocation16 + $0x18] sm:$0xff] %v101_v37  ;;  %v85_v44 = vsel %vm84_vm10, %v82_v20, 2147483648  ;;  %v94_v45 = vsel %vm93_vm11, %v91_v24, 2147483648  ;;  %v103_v46 = vsel %vm102_vm12, %v100_v26, 2147483648  ;;  %vm111_vm13 = vcmp.lt.s32.totalorder %v110_v39, 8192 }
  0x10   :  { %235 = vst [vmem:[#allocation16 + $0x20] sm:$0xff] %v110_v39  ;;  %238 = vst [vmem:[#allocation16 + $0x28] sm:$0xff] %v119_v40  ;;  %v112_v48 = vsel %vm111_vm13, %v109_v30, 2147483648  ;;  %vm120_vm14 = vcmp.lt.s32.totalorder %v119_v40, 8192  ;;  %vm129_vm15 = vcmp.lt.s32.totalorder %v128_v41, 8192  ;;  %v145_v52 = vsel %vm143_vm8, %v144_v34, %v40_v22 }
  0x11   :  { %241 = vst [vmem:[#allocation16 + $0x30] sm:$0xff] %v128_v41  ;;  %86 = vst [vmem:[#allocation15 + $0x8] sm:$0xff] %v85_v44  ;;  %v121_v50 = vsel %vm120_vm14, %v118_v32, 2147483648  ;;  %v130_v51 = vsel %vm129_vm15, %v127_v33, 2147483648  ;;  %v146_v53 = vadd.s32 4096, %v1506_v29  ;;  %vm138_vm0 = vcmp.lt.s32.totalorder %v137_v49, 8192 }
  0x12   :  { %95 = vst [vmem:[#allocation15 + $0x10] sm:$0xff] %v94_v45  ;;  %104 = vst [vmem:[#allocation15 + $0x18] sm:$0xff] %v103_v46  ;;  %v155_v56 = vadd.s32 4608, %v1506_v29  ;;  %v139_v58 = vsel %vm138_vm0, %v136_v42, 2147483648  ;;  %vm161_vm3 = vcmp.lt.s32.totalorder %v44_v47, 0  ;;  %v154_v62 = vsel %vm152_vm1, %v153_v55, %v42_v43 }
  0x13   :  { %113 = vst [vmem:[#allocation15 + $0x20] sm:$0xff] %v112_v48  ;;  %122 = vst [vmem:[#allocation15 + $0x28] sm:$0xff] %v121_v50  ;;  %vm147_vm2 = vcmp.lt.s32.totalorder %v146_v53, 8192  ;;  %v162_v59 = vsub.s32 2147483647, %v44_v47  ;;  %v164_v63 = vadd.s32 5120, %v1506_v29 }
  0x14   :  { %131 = vst [vmem:[#allocation15 + $0x30] sm:$0xff] %v130_v51  ;;  %244 = vst [vmem:[#allocation16 + $0x38] sm:$0xff] %v137_v49  ;;  %v148_v61 = vsel %vm147_vm2, %v145_v52, 2147483648  ;;  %vm156_vm4 = vcmp.lt.s32.totalorder %v155_v56, 8192  ;;  %vm170_vm5 = vcmp.lt.s32.totalorder %v46_v54, 0  ;;  %v173_v4 = vadd.s32 5632, %v1506_v29 }
  0x15   :  { %247 = vst [vmem:[#allocation16 + $0x40] sm:$0xff] %v146_v53  ;;  %140 = vst [vmem:[#allocation15 + $0x38] sm:$0xff] %v139_v58  ;;  %v157_v0 = vsel %vm156_vm4, %v154_v62, 2147483648  ;;  %v163_v1 = vsel %vm161_vm3, %v162_v59, %v44_v47  ;;  %v171_v2 = vsub.s32 2147483647, %v46_v54  ;;  %vm165_vm6 = vcmp.lt.s32.totalorder %v164_v63, 8192 }
  0x16   :  { %250 = vst [vmem:[#allocation16 + $0x48] sm:$0xff] %v155_v56  ;;  %149 = vst [vmem:[#allocation15 + $0x40] sm:$0xff] %v148_v61  ;;  %vm179_vm7 = vcmp.lt.s32.totalorder %v48_v57, 0  ;;  %v180_v6 = vsub.s32 2147483647, %v48_v57  ;;  %v166_v7 = vsel %vm165_vm6, %v163_v1, 2147483648 }
  0x17   :  { %158 = vst [vmem:[#allocation15 + $0x48] sm:$0xff] %v157_v0  ;;  %253 = vst [vmem:[#allocation16 + $0x50] sm:$0xff] %v164_v63  ;;  %v172_v8 = vsel %vm170_vm5, %v171_v2, %v46_v54  ;;  %v182_v9 = vadd.s32 6144, %v1506_v29  ;;  %vm188_vm8 = vcmp.lt.s32.totalorder %v50_v60, 0  ;;  %vm174_vm9 = vcmp.lt.s32.totalorder %v173_v4, 8192 }
  0x18   :  { %167 = vst [vmem:[#allocation15 + $0x50] sm:$0xff] %v166_v7  ;;  %v181_v12 = vsel %vm179_vm7, %v180_v6, %v48_v57  ;;  %v189_v13 = vsub.s32 2147483647, %v50_v60  ;;  %v191_v14 = vadd.s32 6656, %v1506_v29  ;;  %256 = vst [vmem:[#allocation16 + $0x58] sm:$0xff] %v173_v4  ;;  %v175_v15 = vsel %vm174_vm9, %v172_v8, 2147483648 }
  0x19   :  { %vm183_vm10 = vcmp.lt.s32.totalorder %v182_v9, 8192  ;;  %vm197_vm11 = vcmp.lt.s32.totalorder %v52_v3, 0  ;;  %v198_v16 = vsub.s32 2147483647, %v52_v3  ;;  %259 = vst [vmem:[#allocation16 + $0x60] sm:$0xff] %v182_v9  ;;  %176 = vst [vmem:[#allocation15 + $0x58] sm:$0xff] %v175_v15 }
  0x1a   :  { %v184_v17 = vsel %vm183_vm10, %v181_v12, 2147483648  ;;  %v190_v18 = vsel %vm188_vm8, %v189_v13, %v50_v60  ;;  %vm192_vm12 = vcmp.lt.s32.totalorder %v191_v14, 8192  ;;  %v200_v19 = vadd.s32 7168, %v1506_v29  ;;  %262 = vst [vmem:[#allocation16 + $0x68] sm:$0xff] %v191_v14 }
  0x1b   :  { %185 = vst [vmem:[#allocation15 + $0x60] sm:$0xff] %v184_v17  ;;  %v193_v20 = vsel %vm192_vm12, %v190_v18, 2147483648  ;;  %v199_v21 = vsel %vm197_vm11, %v198_v16, %v52_v3  ;;  %vm206_vm13 = vcmp.lt.s32.totalorder %v54_v10, 0  ;;  %v207_v22 = vsub.s32 2147483647, %v54_v10 }
  0x1c   :  { %194 = vst [vmem:[#allocation15 + $0x68] sm:$0xff] %v193_v20  ;;  %vm201_vm14 = vcmp.lt.s32.totalorder %v200_v19, 8192  ;;  %v209_v23 = vadd.s32 7680, %v1506_v29  ;;  %265 = vst [vmem:[#allocation16 + $0x70] sm:$0xff] %v200_v19 }
  0x1d   :  { %v202_v24 = vsel %vm201_vm14, %v199_v21, 2147483648  ;;  %v208_v25 = vsel %vm206_vm13, %v207_v22, %v54_v10 }
  0x1e   :  { %203 = vst [vmem:[#allocation15 + $0x70] sm:$0xff] %v202_v24  ;;  %vm210_vm15 = vcmp.lt.s32.totalorder %v209_v23, 8192  ;;  %268 = vst [vmem:[#allocation16 + $0x78] sm:$0xff] %v209_v23 }
  0x1f   :  { %v211_v26 = vsel %vm210_vm15, %v208_v25, 2147483648 }
  0x20   :  { %212 = vst [vmem:[#allocation15 + $0x78] sm:$0xff] %v211_v26 }
  0x21 LB: > { %v279_v27 = vld [vmem:[#allocation15] sm:$0xff]  ;;  %v283_v30 = vld [vmem:[#allocation15 + $0x8] sm:$0xff]  ;;  %v296_v29 = vld [vmem:[#allocation15 + $0x10] sm:$0xff]  ;;  %s787_s13 = scalar_lea.vmem [#allocation12], %s1447_s0  ;;  %s789_s14 = scalar_lea.vmem [#allocation14], %s1447_s0  ;;  %s1447_s0 = sphi %s1548_s0, %s278_s0  }
  0x22   : > { %v280_v28 = vld [vmem:[#allocation16] sm:$0xff]  ;;  %v285_v31 = vld [vmem:[#allocation16 + $0x8] sm:$0xff]  ;;  %vm287_vm0 = vcmp.gt.s32.totalorder %v283_v30, %v279_v27  ;;  %vm288_vm1 = vcmp.eq.s32.totalorder %v283_v30, %v279_v27  ;;  %v298_v32 = vld [vmem:[#allocation16 + $0x10] sm:$0xff]  ;;  %s278_s0 = sadd.s32 1, %s1447_s0  }
  0x23   : > { %vm289_vm2 = vcmp.lt.s32.totalorder %v285_v31, %v280_v28  ;;  %v309_v35 = vld [vmem:[#allocation15 + $0x18] sm:$0xff]  ;;  %v322_v39 = vld [vmem:[#allocation15 + $0x20] sm:$0xff]  ;;  %v335_v43 = vld [vmem:[#allocation15 + $0x28] sm:$0xff]  ;;  %p275_p2 = scmp.ge.s32.totalorder %s278_s0, 4  }
  0x24   : > { %vm290_vm3 = vmand %vm288_vm1, %vm289_vm2  ;;  %v311_v36 = vld [vmem:[#allocation16 + $0x18] sm:$0xff]  ;;  %v324_v40 = vld [vmem:[#allocation16 + $0x20] sm:$0xff] }
  0x25   : > { %vm291_vm4 = vmor %vm287_vm0, %vm290_vm3  ;;  %v337_v44 = vld [vmem:[#allocation16 + $0x28] sm:$0xff]  ;;  %v348_v47 = vld [vmem:[#allocation15 + $0x30] sm:$0xff] }
  0x26   : > { %v292_v33 = vsel %vm291_vm4, %v283_v30, %v279_v27  ;;  %v293_v34 = vsel %vm291_vm4, %v285_v31, %v280_v28  ;;  %v350_v48 = vld [vmem:[#allocation16 + $0x30] sm:$0xff]  ;;  %v361_v51 = vld [vmem:[#allocation15 + $0x38] sm:$0xff]  ;;  %v374_v55 = vld [vmem:[#allocation15 + $0x40] sm:$0xff] }
  0x27   : > { %vm300_vm5 = vcmp.gt.s32.totalorder %v296_v29, %v292_v33  ;;  %vm301_vm6 = vcmp.eq.s32.totalorder %v296_v29, %v292_v33  ;;  %vm302_vm7 = vcmp.lt.s32.totalorder %v298_v32, %v293_v34  ;;  %v363_v52 = vld [vmem:[#allocation16 + $0x38] sm:$0xff]  ;;  %v376_v56 = vld [vmem:[#allocation16 + $0x40] sm:$0xff]  ;;  %v387_v59 = vld [vmem:[#allocation15 + $0x48] sm:$0xff] }
  0x28   : > { %vm303_vm8 = vmand %vm301_vm6, %vm302_vm7  ;;  %v389_v60 = vld [vmem:[#allocation16 + $0x48] sm:$0xff]  ;;  %v400_v63 = vld [vmem:[#allocation15 + $0x50] sm:$0xff] }
  0x29   : > { %vm304_vm9 = vmor %vm300_vm5, %vm303_vm8  ;;  %v402_v0 = vld [vmem:[#allocation16 + $0x50] sm:$0xff]  ;;  %v413_v3 = vld [vmem:[#allocation15 + $0x58] sm:$0xff] }
  0x2a   : > { %v305_v37 = vsel %vm304_vm9, %v296_v29, %v292_v33  ;;  %v306_v38 = vsel %vm304_vm9, %v298_v32, %v293_v34  ;;  %v415_v4 = vld [vmem:[#allocation16 + $0x58] sm:$0xff]  ;;  %v426_v8 = vld [vmem:[#allocation15 + $0x60] sm:$0xff]  ;;  %v439_v13 = vld [vmem:[#allocation15 + $0x68] sm:$0xff] }
  0x2b   : > { %vm313_vm10 = vcmp.gt.s32.totalorder %v309_v35, %v305_v37  ;;  %vm314_vm11 = vcmp.eq.s32.totalorder %v309_v35, %v305_v37  ;;  %vm315_vm12 = vcmp.lt.s32.totalorder %v311_v36, %v306_v38  ;;  %v428_v9 = vld [vmem:[#allocation16 + $0x60] sm:$0xff]  ;;  %v441_v14 = vld [vmem:[#allocation16 + $0x68] sm:$0xff]  ;;  %v452_v17 = vld [vmem:[#allocation15 + $0x70] sm:$0xff] }
  0x2c   : > { %vm316_vm13 = vmand %vm314_vm11, %vm315_vm12  ;;  %v454_v18 = vld [vmem:[#allocation16 + $0x70] sm:$0xff]  ;;  %v465_v21 = vld [vmem:[#allocation15 + $0x78] sm:$0xff] }
  0x2d   : > { %vm317_vm14 = vmor %vm313_vm10, %vm316_vm13  ;;  %v467_v22 = vld [vmem:[#allocation16 + $0x78] sm:$0xff] }
  0x2e   : > { %v318_v41 = vsel %vm317_vm14, %v309_v35, %v305_v37  ;;  %v319_v42 = vsel %vm317_vm14, %v311_v36, %v306_v38 }
  0x2f   : > { %vm326_vm15 = vcmp.gt.s32.totalorder %v322_v39, %v318_v41  ;;  %vm327_vm0 = vcmp.eq.s32.totalorder %v322_v39, %v318_v41  ;;  %vm328_vm1 = vcmp.lt.s32.totalorder %v324_v40, %v319_v42 }
  0x30   : > { %vm329_vm2 = vmand %vm327_vm0, %vm328_vm1 }
  0x31   : > { %vm330_vm3 = vmor %vm326_vm15, %vm329_vm2 }
  0x32   : > { %v331_v45 = vsel %vm330_vm3, %v322_v39, %v318_v41  ;;  %v332_v46 = vsel %vm330_vm3, %v324_v40, %v319_v42 }
  0x33   : > { %vm339_vm4 = vcmp.gt.s32.totalorder %v335_v43, %v331_v45  ;;  %vm340_vm5 = vcmp.eq.s32.totalorder %v335_v43, %v331_v45  ;;  %vm341_vm6 = vcmp.lt.s32.totalorder %v337_v44, %v332_v46 }
  0x34   : > { %vm342_vm7 = vmand %vm340_vm5, %vm341_vm6 }
  0x35   : > { %vm343_vm8 = vmor %vm339_vm4, %vm342_vm7 }
  0x36   : > { %v344_v49 = vsel %vm343_vm8, %v335_v43, %v331_v45  ;;  %v345_v50 = vsel %vm343_vm8, %v337_v44, %v332_v46 }
  0x37   : > { %vm352_vm9 = vcmp.gt.s32.totalorder %v348_v47, %v344_v49  ;;  %vm353_vm10 = vcmp.eq.s32.totalorder %v348_v47, %v344_v49  ;;  %vm354_vm11 = vcmp.lt.s32.totalorder %v350_v48, %v345_v50 }
  0x38   : > { %vm355_vm12 = vmand %vm353_vm10, %vm354_vm11 }
  0x39   : > { %vm356_vm13 = vmor %vm352_vm9, %vm355_vm12 }
  0x3a   : > { %v357_v53 = vsel %vm356_vm13, %v348_v47, %v344_v49  ;;  %v358_v54 = vsel %vm356_vm13, %v350_v48, %v345_v50 }
  0x3b   : > { %vm365_vm14 = vcmp.gt.s32.totalorder %v361_v51, %v357_v53  ;;  %vm366_vm15 = vcmp.eq.s32.totalorder %v361_v51, %v357_v53  ;;  %vm367_vm0 = vcmp.lt.s32.totalorder %v363_v52, %v358_v54 }
  0x3c   : > { %vm368_vm1 = vmand %vm366_vm15, %vm367_vm0 }
  0x3d   : > { %vm369_vm2 = vmor %vm365_vm14, %vm368_vm1 }
  0x3e   : > { %v370_v57 = vsel %vm369_vm2, %v361_v51, %v357_v53  ;;  %v371_v58 = vsel %vm369_vm2, %v363_v52, %v358_v54 }
  0x3f   : > { %vm378_vm3 = vcmp.gt.s32.totalorder %v374_v55, %v370_v57  ;;  %vm379_vm4 = vcmp.eq.s32.totalorder %v374_v55, %v370_v57  ;;  %vm380_vm5 = vcmp.lt.s32.totalorder %v376_v56, %v371_v58 }
  0x40   : > { %vm381_vm6 = vmand %vm379_vm4, %vm380_vm5 }
  0x41   : > { %vm382_vm7 = vmor %vm378_vm3, %vm381_vm6 }
  0x42   : > { %v383_v61 = vsel %vm382_vm7, %v374_v55, %v370_v57  ;;  %v384_v62 = vsel %vm382_vm7, %v376_v56, %v371_v58 }
  0x43   : > { %vm391_vm8 = vcmp.gt.s32.totalorder %v387_v59, %v383_v61  ;;  %vm392_vm9 = vcmp.eq.s32.totalorder %v387_v59, %v383_v61  ;;  %vm393_vm10 = vcmp.lt.s32.totalorder %v389_v60, %v384_v62 }
  0x44   : > { %vm394_vm11 = vmand %vm392_vm9, %vm393_vm10 }
  0x45   : > { %vm395_vm12 = vmor %vm391_vm8, %vm394_vm11 }
  0x46   : > { %v396_v1 = vsel %vm395_vm12, %v387_v59, %v383_v61  ;;  %v397_v2 = vsel %vm395_vm12, %v389_v60, %v384_v62 }
  0x47   : > { %vm404_vm13 = vcmp.gt.s32.totalorder %v400_v63, %v396_v1  ;;  %vm405_vm14 = vcmp.eq.s32.totalorder %v400_v63, %v396_v1  ;;  %vm406_vm15 = vcmp.lt.s32.totalorder %v402_v0, %v397_v2 }
  0x48   : > { %vm407_vm0 = vmand %vm405_vm14, %vm406_vm15 }
  0x49   : > { %vm408_vm1 = vmor %vm404_vm13, %vm407_vm0 }
  0x4a   : > { %v409_v6 = vsel %vm408_vm1, %v400_v63, %v396_v1  ;;  %v410_v7 = vsel %vm408_vm1, %v402_v0, %v397_v2 }
  0x4b   : > { %vm417_vm2 = vcmp.gt.s32.totalorder %v413_v3, %v409_v6  ;;  %vm418_vm3 = vcmp.eq.s32.totalorder %v413_v3, %v409_v6  ;;  %vm419_vm4 = vcmp.lt.s32.totalorder %v415_v4, %v410_v7 }
  0x4c   : > { %vm420_vm5 = vmand %vm418_vm3, %vm419_vm4 }
  0x4d   : > { %vm421_vm6 = vmor %vm417_vm2, %vm420_vm5 }
  0x4e   : > { %v422_v10 = vsel %vm421_vm6, %v413_v3, %v409_v6  ;;  %v423_v12 = vsel %vm421_vm6, %v415_v4, %v410_v7 }
  0x4f   : > { %vm430_vm7 = vcmp.gt.s32.totalorder %v426_v8, %v422_v10  ;;  %vm431_vm8 = vcmp.eq.s32.totalorder %v426_v8, %v422_v10  ;;  %vm432_vm9 = vcmp.lt.s32.totalorder %v428_v9, %v423_v12 }
  0x50   : > { %vm433_vm10 = vmand %vm431_vm8, %vm432_vm9 }
  0x51   : > { %vm434_vm11 = vmor %vm430_vm7, %vm433_vm10 }
  0x52   : > { %v435_v15 = vsel %vm434_vm11, %v426_v8, %v422_v10  ;;  %v436_v16 = vsel %vm434_vm11, %v428_v9, %v423_v12 }
  0x53   : > { %vm443_vm12 = vcmp.gt.s32.totalorder %v439_v13, %v435_v15  ;;  %vm444_vm13 = vcmp.eq.s32.totalorder %v439_v13, %v435_v15  ;;  %vm445_vm14 = vcmp.lt.s32.totalorder %v441_v14, %v436_v16 }
  0x54   : > { %vm446_vm15 = vmand %vm444_vm13, %vm445_vm14 }
  0x55   : > { %vm447_vm0 = vmor %vm443_vm12, %vm446_vm15 }
  0x56   : > { %v448_v19 = vsel %vm447_vm0, %v439_v13, %v435_v15  ;;  %v449_v20 = vsel %vm447_vm0, %v441_v14, %v436_v16 }
  0x57   : > { %vm456_vm1 = vcmp.gt.s32.totalorder %v452_v17, %v448_v19  ;;  %vm457_vm2 = vcmp.eq.s32.totalorder %v452_v17, %v448_v19  ;;  %vm458_vm3 = vcmp.lt.s32.totalorder %v454_v18, %v449_v20 }
  0x58   : > { %vm459_vm4 = vmand %vm457_vm2, %vm458_vm3 }
  0x59   : > { %vm460_vm5 = vmor %vm456_vm1, %vm459_vm4 }
  0x5a   : > { %v461_v23 = vsel %vm460_vm5, %v452_v17, %v448_v19  ;;  %v462_v24 = vsel %vm460_vm5, %v454_v18, %v449_v20 }
  0x5b   : > { %vm469_vm6 = vcmp.gt.s32.totalorder %v465_v21, %v461_v23  ;;  %vm470_vm7 = vcmp.eq.s32.totalorder %v465_v21, %v461_v23  ;;  %vm471_vm8 = vcmp.lt.s32.totalorder %v467_v22, %v462_v24 }
  0x5c   : > { %vm472_vm9 = vmand %vm470_vm7, %vm471_vm8 }
  0x5d   : > { %vm473_vm10 = vmor %vm469_vm6, %vm472_vm9 }
  0x5e   : > { %v474_v25 = vsel %vm473_vm10, %v465_v21, %v461_v23  ;;  %v475_v26 = vsel %vm473_vm10, %v467_v22, %v462_v24 }
  0x5f   : > { %v477_v27 = vrot.slane %v474_v25, 2  ;;  %v478_v28 = vrot.slane %v475_v26, 2 }
  0x61   : > { %vm480_vm11 = vcmp.gt.s32.totalorder %v477_v27, %v474_v25  ;;  %vm481_vm12 = vcmp.eq.s32.totalorder %v477_v27, %v474_v25  ;;  %vm482_vm13 = vcmp.lt.s32.totalorder %v478_v28, %v475_v26 }
  0x62   : > { %vm483_vm14 = vmand %vm481_vm12, %vm482_vm13 }
  0x63   : > { %vm484_vm15 = vmor %vm480_vm11, %vm483_vm14 }
  0x64   : > { %v485_v30 = vsel %vm484_vm15, %v477_v27, %v474_v25  ;;  %v486_v31 = vsel %vm484_vm15, %v478_v28, %v475_v26 }
  0x65   : > { %v488_v29 = vrot.slane %v485_v30, 2  ;;  %v489_v32 = vrot.slane %v486_v31, 2 }
  0x67   : > { %vm491_vm0 = vcmp.gt.s32.totalorder %v488_v29, %v485_v30  ;;  %vm492_vm1 = vcmp.eq.s32.totalorder %v488_v29, %v485_v30  ;;  %vm493_vm2 = vcmp.lt.s32.totalorder %v489_v32, %v486_v31 }
  0x68   : > { %vm494_vm3 = vmand %vm492_vm1, %vm493_vm2 }
  0x69   : > { %vm495_vm4 = vmor %vm491_vm0, %vm494_vm3 }
  0x6a   : > { %v496_v33 = vsel %vm495_vm4, %v488_v29, %v485_v30  ;;  %v497_v34 = vsel %vm495_vm4, %v489_v32, %v486_v31 }
  0x6b   : > { %v499_v35 = vrot.slane %v496_v33, 2  ;;  %v500_v36 = vrot.slane %v497_v34, 2 }
  0x6d   : > { %vm502_vm5 = vcmp.gt.s32.totalorder %v499_v35, %v496_v33  ;;  %vm503_vm6 = vcmp.eq.s32.totalorder %v499_v35, %v496_v33  ;;  %vm504_vm7 = vcmp.lt.s32.totalorder %v500_v36, %v497_v34 }
  0x6e   : > { %vm505_vm8 = vmand %vm503_vm6, %vm504_vm7 }
  0x6f   : > { %vm506_vm9 = vmor %vm502_vm5, %vm505_vm8 }
  0x70   : > { %v508_v37 = vsel %vm506_vm9, %v500_v36, %v497_v34  ;;  %v507_v38 = vsel %vm506_vm9, %v499_v35, %v496_v33 }
  0x71   : > { %542 = vxpose.xlu1.b32.start [1/16] %v508_v37, 128  ;;  %510 = vxpose.xlu0.b32.start [1/16] %v507_v38, 128 }
  0x75   : > { %543 = vxpose.xlu1.b32.cont [2/16] %v508_v37, 128  ;;  %511 = vxpose.xlu0.b32.cont [2/16] %v507_v38, 128 }
  0x79   : > { %544 = vxpose.xlu1.b32.cont [3/16] %v508_v37, 128  ;;  %512 = vxpose.xlu0.b32.cont [3/16] %v507_v38, 128 }
  0x7d   : > { %545 = vxpose.xlu1.b32.cont [4/16] %v508_v37, 128  ;;  %513 = vxpose.xlu0.b32.cont [4/16] %v507_v38, 128 }
  0x81   : > { %546 = vxpose.xlu1.b32.cont [5/16] %v508_v37, 128  ;;  %514 = vxpose.xlu0.b32.cont [5/16] %v507_v38, 128 }
  0x85   : > { %547 = vxpose.xlu1.b32.cont [6/16] %v508_v37, 128  ;;  %515 = vxpose.xlu0.b32.cont [6/16] %v507_v38, 128 }
  0x89   : > { %548 = vxpose.xlu1.b32.cont [7/16] %v508_v37, 128  ;;  %516 = vxpose.xlu0.b32.cont [7/16] %v507_v38, 128 }
  0x8d   : > { %549 = vxpose.xlu1.b32.cont [8/16] %v508_v37, 128  ;;  %517 = vxpose.xlu0.b32.cont [8/16] %v507_v38, 128 }
  0x91   : > { %550 = vxpose.xlu1.b32.cont [9/16] %v508_v37, 128  ;;  %518 = vxpose.xlu0.b32.cont [9/16] %v507_v38, 128 }
  0x95   : > { %551 = vxpose.xlu1.b32.cont [10/16] %v508_v37, 128  ;;  %519 = vxpose.xlu0.b32.cont [10/16] %v507_v38, 128 }
  0x99   : > { %552 = vxpose.xlu1.b32.cont [11/16] %v508_v37, 128  ;;  %520 = vxpose.xlu0.b32.cont [11/16] %v507_v38, 128 }
  0x9d   : > { %553 = vxpose.xlu1.b32.cont [12/16] %v508_v37, 128  ;;  %521 = vxpose.xlu0.b32.cont [12/16] %v507_v38, 128 }
  0xa1   : > { %554 = vxpose.xlu1.b32.cont [13/16] %v508_v37, 128  ;;  %522 = vxpose.xlu0.b32.cont [13/16] %v507_v38, 128 }
  0xa5   : > { %555 = vxpose.xlu1.b32.cont [14/16] %v508_v37, 128  ;;  %523 = vxpose.xlu0.b32.cont [14/16] %v507_v38, 128 }
  0xa9   : > { %556 = vxpose.xlu1.b32.cont [15/16] %v508_v37, 128  ;;  %524 = vxpose.xlu0.b32.cont [15/16] %v507_v38, 128 }
  0xad   : > { %557 = vxpose.xlu1.b32.end [16/16] %v508_v37, 128  ;;  %525 = vxpose.xlu0.b32.end [16/16] %v507_v38, 128 }
  0xf1   : > { %v558_v39 = vpop.trf.xlu1  ;;  %v526_v40 = vpop.trf.xlu0 }
  0xf5   : > { %v559_v41 = vpop.trf.xlu1  ;;  %v527_v42 = vpop.trf.xlu0 }
  0xf6   : > { %vm578_vm10 = vcmp.lt.s32.totalorder %v559_v41, %v558_v39  ;;  %vm576_vm11 = vcmp.gt.s32.totalorder %v527_v42, %v526_v40  ;;  %vm577_vm12 = vcmp.eq.s32.totalorder %v527_v42, %v526_v40 }
  0xf7   : > { %vm579_vm13 = vmand %vm577_vm12, %vm578_vm10 }
  0xf8   : > { %vm580_vm14 = vmor %vm576_vm11, %vm579_vm13 }
  0xf9   : > { %v581_v43 = vsel %vm580_vm14, %v527_v42, %v526_v40  ;;  %v560_v44 = vpop.trf.xlu1  ;;  %v582_v45 = vsel %vm580_vm14, %v559_v41, %v558_v39  ;;  %v528_v46 = vpop.trf.xlu0 }
  0xfa   : > { %vm587_vm15 = vcmp.lt.s32.totalorder %v560_v44, %v582_v45  ;;  %vm585_vm0 = vcmp.gt.s32.totalorder %v528_v46, %v581_v43  ;;  %vm586_vm1 = vcmp.eq.s32.totalorder %v528_v46, %v581_v43 }
  0xfb   : > { %vm588_vm2 = vmand %vm586_vm1, %vm587_vm15 }
  0xfc   : > { %vm589_vm3 = vmor %vm585_vm0, %vm588_vm2 }
  0xfd   : > { %v590_v47 = vsel %vm589_vm3, %v528_v46, %v581_v43  ;;  %v561_v48 = vpop.trf.xlu1  ;;  %v591_v49 = vsel %vm589_vm3, %v560_v44, %v582_v45  ;;  %v529_v50 = vpop.trf.xlu0 }
  0xfe   : > { %vm596_vm4 = vcmp.lt.s32.totalorder %v561_v48, %v591_v49  ;;  %vm594_vm5 = vcmp.gt.s32.totalorder %v529_v50, %v590_v47  ;;  %vm595_vm6 = vcmp.eq.s32.totalorder %v529_v50, %v590_v47 }
  0xff   : > { %vm597_vm7 = vmand %vm595_vm6, %vm596_vm4 }
 0x100   : > { %vm598_vm8 = vmor %vm594_vm5, %vm597_vm7 }
 0x101   : > { %v599_v51 = vsel %vm598_vm8, %v529_v50, %v590_v47  ;;  %v562_v52 = vpop.trf.xlu1  ;;  %v600_v53 = vsel %vm598_vm8, %v561_v48, %v591_v49  ;;  %v530_v54 = vpop.trf.xlu0 }
 0x102   : > { %vm605_vm9 = vcmp.lt.s32.totalorder %v562_v52, %v600_v53  ;;  %vm603_vm10 = vcmp.gt.s32.totalorder %v530_v54, %v599_v51  ;;  %vm604_vm11 = vcmp.eq.s32.totalorder %v530_v54, %v599_v51 }
 0x103   : > { %vm606_vm12 = vmand %vm604_vm11, %vm605_vm9 }
 0x104   : > { %vm607_vm13 = vmor %vm603_vm10, %vm606_vm12 }
 0x105   : > { %v608_v55 = vsel %vm607_vm13, %v530_v54, %v599_v51  ;;  %v563_v56 = vpop.trf.xlu1  ;;  %v609_v57 = vsel %vm607_vm13, %v562_v52, %v600_v53  ;;  %v531_v58 = vpop.trf.xlu0 }
 0x106   : > { %vm614_vm14 = vcmp.lt.s32.totalorder %v563_v56, %v609_v57  ;;  %vm612_vm15 = vcmp.gt.s32.totalorder %v531_v58, %v608_v55  ;;  %vm613_vm0 = vcmp.eq.s32.totalorder %v531_v58, %v608_v55 }
 0x107   : > { %vm615_vm1 = vmand %vm613_vm0, %vm614_vm14 }
 0x108   : > { %vm616_vm2 = vmor %vm612_vm15, %vm615_vm1 }
 0x109   : > { %v617_v59 = vsel %vm616_vm2, %v531_v58, %v608_v55  ;;  %v564_v60 = vpop.trf.xlu1  ;;  %v618_v61 = vsel %vm616_vm2, %v563_v56, %v609_v57  ;;  %v532_v62 = vpop.trf.xlu0 }
 0x10a   : > { %vm623_vm3 = vcmp.lt.s32.totalorder %v564_v60, %v618_v61  ;;  %vm621_vm4 = vcmp.gt.s32.totalorder %v532_v62, %v617_v59  ;;  %vm622_vm5 = vcmp.eq.s32.totalorder %v532_v62, %v617_v59 }
 0x10b   : > { %vm624_vm6 = vmand %vm622_vm5, %vm623_vm3 }
 0x10c   : > { %vm625_vm7 = vmor %vm621_vm4, %vm624_vm6 }
 0x10d   : > { %v626_v63 = vsel %vm625_vm7, %v532_v62, %v617_v59  ;;  %v565_v0 = vpop.trf.xlu1  ;;  %v627_v1 = vsel %vm625_vm7, %v564_v60, %v618_v61  ;;  %v533_v2 = vpop.trf.xlu0 }
 0x10e   : > { %vm632_vm8 = vcmp.lt.s32.totalorder %v565_v0, %v627_v1  ;;  %vm630_vm9 = vcmp.gt.s32.totalorder %v533_v2, %v626_v63  ;;  %vm631_vm10 = vcmp.eq.s32.totalorder %v533_v2, %v626_v63 }
 0x10f   : > { %vm633_vm11 = vmand %vm631_vm10, %vm632_vm8 }
 0x110   : > { %vm634_vm12 = vmor %vm630_vm9, %vm633_vm11 }
 0x111   : > { %v635_v3 = vsel %vm634_vm12, %v533_v2, %v626_v63  ;;  %v566_v4 = vpop.trf.xlu1  ;;  %v636_v6 = vsel %vm634_vm12, %v565_v0, %v627_v1  ;;  %v534_v7 = vpop.trf.xlu0 }
 0x112   : > { %vm641_vm13 = vcmp.lt.s32.totalorder %v566_v4, %v636_v6  ;;  %vm639_vm14 = vcmp.gt.s32.totalorder %v534_v7, %v635_v3  ;;  %vm640_vm15 = vcmp.eq.s32.totalorder %v534_v7, %v635_v3 }
 0x113   : > { %vm642_vm0 = vmand %vm640_vm15, %vm641_vm13 }
 0x114   : > { %vm643_vm1 = vmor %vm639_vm14, %vm642_vm0 }
 0x115   : > { %v644_v8 = vsel %vm643_vm1, %v534_v7, %v635_v3  ;;  %v567_v9 = vpop.trf.xlu1  ;;  %v645_v10 = vsel %vm643_vm1, %v566_v4, %v636_v6  ;;  %v535_v12 = vpop.trf.xlu0  ;;  %v1453_v7 = vmov 2147483648  }
 0x116   : > { %vm650_vm2 = vcmp.lt.s32.totalorder %v567_v9, %v645_v10  ;;  %vm648_vm3 = vcmp.gt.s32.totalorder %v535_v12, %v644_v8  ;;  %vm649_vm4 = vcmp.eq.s32.totalorder %v535_v12, %v644_v8 }
 0x117   : > { %vm651_vm5 = vmand %vm649_vm4, %vm650_vm2 }
 0x118   : > { %vm652_vm6 = vmor %vm648_vm3, %vm651_vm5 }
 0x119   : > { %v653_v13 = vsel %vm652_vm6, %v535_v12, %v644_v8  ;;  %v568_v14 = vpop.trf.xlu1  ;;  %v654_v15 = vsel %vm652_vm6, %v567_v9, %v645_v10  ;;  %v536_v16 = vpop.trf.xlu0  ;;  %v1454_v8 = vmov 2147483647  }
 0x11a   : > { %vm659_vm7 = vcmp.lt.s32.totalorder %v568_v14, %v654_v15  ;;  %vm657_vm8 = vcmp.gt.s32.totalorder %v536_v16, %v653_v13  ;;  %vm658_vm9 = vcmp.eq.s32.totalorder %v536_v16, %v653_v13 }
 0x11b   : > { %vm660_vm10 = vmand %vm658_vm9, %vm659_vm7 }
 0x11c   : > { %vm661_vm11 = vmor %vm657_vm8, %vm660_vm10 }
 0x11d   : > { %v662_v17 = vsel %vm661_vm11, %v536_v16, %v653_v13  ;;  %v569_v18 = vpop.trf.xlu1  ;;  %v663_v19 = vsel %vm661_vm11, %v568_v14, %v654_v15  ;;  %v537_v20 = vpop.trf.xlu0  ;;  %v885_v14 = vld [vmem:[#allocation11] sm:$0xff] (%p275_p2)  ;;  %v886_v15 = vld [vmem:[#allocation13] sm:$0xff] (%p275_p2)  ;;  %v1455_v16 = vmov (%p275_p2), 839939668  }
 0x11e   : > { %vm668_vm12 = vcmp.lt.s32.totalorder %v569_v18, %v663_v19  ;;  %vm666_vm13 = vcmp.gt.s32.totalorder %v537_v20, %v662_v17  ;;  %vm667_vm14 = vcmp.eq.s32.totalorder %v537_v20, %v662_v17 }
 0x11f   : > { %vm669_vm15 = vmand %vm667_vm14, %vm668_vm12 }
 0x120   : > { %vm670_vm0 = vmor %vm666_vm13, %vm669_vm15 }
 0x121   : > { %v671_v21 = vsel %vm670_vm0, %v537_v20, %v662_v17  ;;  %v570_v22 = vpop.trf.xlu1  ;;  %v672_v23 = vsel %vm670_vm0, %v569_v18, %v663_v19  ;;  %v538_v24 = vpop.trf.xlu0  ;;  %v910_v17 = vunpack.c.l.s4 (%p275_p2), %v1455_v16  ;;  %v1456_v18 = vmov (%p275_p2), 1417023538  }
 0x122   : > { %vm677_vm1 = vcmp.lt.s32.totalorder %v570_v22, %v672_v23  ;;  %vm675_vm2 = vcmp.gt.s32.totalorder %v538_v24, %v671_v21  ;;  %vm676_vm3 = vcmp.eq.s32.totalorder %v538_v24, %v671_v21  ;;  %v938_v19 = vunpack.c.l.s4 (%p275_p2), %v1456_v18 }
 0x123   : > { %vm678_vm4 = vmand %vm676_vm3, %vm677_vm1  ;;  %v911_v20 = vunpack.c.0.s8 (%p275_p2), %v910_v17 }
 0x124   : > { %vm679_vm5 = vmor %vm675_vm2, %vm678_vm4 }
 0x125   : > { %v680_v25 = vsel %vm679_vm5, %v538_v24, %v671_v21  ;;  %v571_v26 = vpop.trf.xlu1  ;;  %v681_v27 = vsel %vm679_vm5, %v570_v22, %v672_v23  ;;  %v539_v28 = vpop.trf.xlu0  ;;  %v931_v24 = vand.u32 (%p275_p2), 4, %v1489_v11 }
 0x126   : > { %vm686_vm6 = vcmp.lt.s32.totalorder %v571_v26, %v681_v27  ;;  %vm684_vm7 = vcmp.gt.s32.totalorder %v539_v28, %v680_v25  ;;  %vm685_vm8 = vcmp.eq.s32.totalorder %v539_v28, %v680_v25 }
 0x127   : > { %vm687_vm9 = vmand %vm685_vm8, %vm686_vm6 }
 0x128   : > { %vm688_vm10 = vmor %vm684_vm7, %vm687_vm9 }
 0x129   : > { %v689_v30 = vsel %vm688_vm10, %v539_v28, %v680_v25  ;;  %v572_v31 = vpop.trf.xlu1  ;;  %v690_v29 = vsel %vm688_vm10, %v571_v26, %v681_v27  ;;  %v540_v32 = vpop.trf.xlu0  ;;  %v939_v26 = vunpack.c.0.s8 (%p275_p2), %v938_v19 }
 0x12a   : > { %vm695_vm11 = vcmp.lt.s32.totalorder %v572_v31, %v690_v29  ;;  %vm693_vm12 = vcmp.gt.s32.totalorder %v540_v32, %v689_v30  ;;  %vm694_vm13 = vcmp.eq.s32.totalorder %v540_v32, %v689_v30 }
 0x12b   : > { %vm696_vm14 = vmand %vm694_vm13, %vm695_vm11 }
 0x12c   : > { %vm697_vm15 = vmor %vm693_vm12, %vm696_vm14 }
 0x12d   : > { %v698_v33 = vsel %vm697_vm15, %v540_v32, %v689_v30  ;;  %v573_v34 = vpop.trf.xlu1  ;;  %v699_v35 = vsel %vm697_vm15, %v572_v31, %v690_v29  ;;  %v541_v36 = vpop.trf.xlu0  ;;  %v1457_v32 = vmov (%p275_p2), 1732584193  }
 0x12e   : > { %vm704_vm0 = vcmp.lt.s32.totalorder %v573_v34, %v699_v35  ;;  %vm702_vm1 = vcmp.gt.s32.totalorder %v541_v36, %v698_v33  ;;  %vm703_vm2 = vcmp.eq.s32.totalorder %v541_v36, %v698_v33 }
 0x12f   : > { %vm705_vm3 = vmand %vm703_vm2, %vm704_vm0 }
 0x130   : > { %vm706_vm4 = vmor %vm702_vm1, %vm705_vm3 }
 0x131   : > { %v707_v37 = vsel %vm706_vm4, %v541_v36, %v698_v33  ;;  %v708_v38 = vsel %vm706_vm4, %v573_v34, %v699_v35  ;;  %v966_v33 = vunpack.c.l.s4 (%p275_p2), %v1457_v32  ;;  %v1573_v34 = vsub.s32 (%p275_p2), %v939_v26, %v1489_v11 }
 0x132   : > { %v710_v39 = vrot.slane %v707_v37, 1  ;;  %v711_v40 = vrot.slane %v708_v38, 1  ;;  %v959_v35 = vand.u32 (%p275_p2), 2, %v1489_v11 }
 0x134   : > { %vm713_vm5 = vcmp.gt.s32.totalorder %v710_v39, %v707_v37  ;;  %vm714_vm6 = vcmp.eq.s32.totalorder %v710_v39, %v707_v37  ;;  %vm715_vm7 = vcmp.lt.s32.totalorder %v711_v40, %v708_v38 }
 0x135   : > { %vm716_vm8 = vmand %vm714_vm6, %vm715_vm7 }
 0x136   : > { %vm717_vm9 = vmor %vm713_vm5, %vm716_vm8 }
 0x137   : > { %v718_v41 = vsel %vm717_vm9, %v710_v39, %v707_v37  ;;  %v719_v42 = vsel %vm717_vm9, %v711_v40, %v708_v38  ;;  %v967_v38 = vunpack.c.0.s8 (%p275_p2), %v966_v33 }
 0x138   : > { %v721_v43 = vrot.slane %v718_v41, 1  ;;  %v722_v44 = vrot.slane %v719_v42, 1 }
 0x13a   : > { %vm724_vm10 = vcmp.gt.s32.totalorder %v721_v43, %v718_v41  ;;  %vm725_vm11 = vcmp.eq.s32.totalorder %v721_v43, %v718_v41  ;;  %vm726_vm12 = vcmp.lt.s32.totalorder %v722_v44, %v719_v42 }
 0x13b   : > { %vm727_vm13 = vmand %vm725_vm11, %vm726_vm12 }
 0x13c   : > { %vm728_vm14 = vmor %vm724_vm10, %vm727_vm13 }
 0x13d   : > { %v729_v45 = vsel %vm728_vm14, %v721_v43, %v718_v41  ;;  %v730_v46 = vsel %vm728_vm14, %v722_v44, %v719_v42  ;;  %v1587_v43 = vsub.s32 (%p275_p2), %v967_v38, %v1489_v11 }
 0x13e   : > { %v732_v47 = vrot.slane %v729_v45, 1  ;;  %v733_v48 = vrot.slane %v730_v46, 1 }
 0x140   : > { %vm737_vm15 = vcmp.lt.s32.totalorder %v733_v48, %v730_v46  ;;  %vm735_vm0 = vcmp.gt.s32.totalorder %v732_v47, %v729_v45  ;;  %vm736_vm1 = vcmp.eq.s32.totalorder %v732_v47, %v729_v45 }
 0x141   : > { %vm738_vm2 = vmand %vm736_vm1, %vm737_vm15 }
 0x142   : > { %vm739_vm3 = vmor %vm735_vm0, %vm738_vm2 }
 0x143   : > { %v740_v49 = vsel %vm739_vm3, %v732_v47, %v729_v45  ;;  %v741_v50 = vsel %vm739_vm3, %v733_v48, %v730_v46  ;;  %v987_v47 = vand.u32 (%p275_p2), 1, %v1489_v11 }
 0x144   : > { %v743_v51 = vrot.slane %v740_v49, 1  ;;  %v744_v52 = vrot.slane %v741_v50, 1 }
 0x146   : > { %vm746_vm4 = vcmp.gt.s32.totalorder %v743_v51, %v740_v49  ;;  %vm747_vm5 = vcmp.eq.s32.totalorder %v743_v51, %v740_v49  ;;  %vm748_vm6 = vcmp.lt.s32.totalorder %v744_v52, %v741_v50 }
 0x147   : > { %vm749_vm7 = vmand %vm747_vm5, %vm748_vm6 }
 0x148   : > { %vm750_vm8 = vmor %vm746_vm4, %vm749_vm7 }
 0x149   : > { %v751_v53 = vsel %vm750_vm8, %v743_v51, %v740_v49  ;;  %v752_v54 = vsel %vm750_vm8, %v744_v52, %v741_v50 }
 0x14a   : > { %v754_v55 = vrot.slane %v751_v53, 1  ;;  %v755_v56 = vrot.slane %v752_v54, 1 }
 0x14c   : > { %vm757_vm9 = vcmp.gt.s32.totalorder %v754_v55, %v751_v53  ;;  %vm758_vm10 = vcmp.eq.s32.totalorder %v754_v55, %v751_v53  ;;  %vm759_vm11 = vcmp.lt.s32.totalorder %v755_v56, %v752_v54 }
 0x14d   : > { %vm760_vm12 = vmand %vm758_vm10, %vm759_vm11 }
 0x14e   : > { %vm761_vm13 = vmor %vm757_vm9, %vm760_vm12 }
 0x14f   : > { %v762_v57 = vsel %vm761_vm13, %v754_v55, %v751_v53  ;;  %v763_v58 = vsel %vm761_vm13, %v755_v56, %v752_v54 }
 0x150   : > { %v765_v59 = vrot.slane %v762_v57, 1  ;;  %v766_v60 = vrot.slane %v763_v58, 1 }
 0x152   : > { %vm768_vm14 = vcmp.gt.s32.totalorder %v765_v59, %v762_v57  ;;  %vm769_vm15 = vcmp.eq.s32.totalorder %v765_v59, %v762_v57  ;;  %vm770_vm0 = vcmp.lt.s32.totalorder %v766_v60, %v763_v58 }
 0x153   : > { %vm771_vm1 = vmand %vm769_vm15, %vm770_vm0  ;;  %vm1567_vm15 = vcmp.ne.s32.totalorder (%p275_p2), %v931_v24, 0 }
 0x154   : > { %vm772_vm2 = vmor %vm768_vm14, %vm771_vm1 }
 0x155   : > { %v773_v61 = vsel %vm772_vm2, %v765_v59, %v762_v57  ;;  %v774_v62 = vsel %vm772_vm2, %v766_v60, %v763_v58 }
 0x156   : > { %v776_v63 = vrot.slane %v773_v61, 1  ;;  %v777_v0 = vrot.slane %v774_v62, 1 }
 0x158   : > { %vm779_vm3 = vcmp.gt.s32.totalorder %v776_v63, %v773_v61  ;;  %vm780_vm4 = vcmp.eq.s32.totalorder %v776_v63, %v773_v61  ;;  %vm781_vm5 = vcmp.lt.s32.totalorder %v777_v0, %v774_v62 }
 0x159   : > { %vm782_vm6 = vmand %vm780_vm4, %vm781_vm5 }
 0x15a   : > { %vm783_vm7 = vmor %vm779_vm3, %vm782_vm6 }
 0x15b   : > { %v785_v1 = vsel %vm783_vm7, %v777_v0, %v774_v62  ;;  %v784_v2 = vsel %vm783_vm7, %v776_v63, %v773_v61 }
 0x15c   : > { %792 = vxpose.xlu0.b32.start.end [1/1] (short) (narrow) %v785_v1, 8  ;;  %788 = vst [vmem:[%s787_s13] sm:$0x1] %v784_v2  ;;  %790 = vst [vmem:[%s789_s14] sm:$0x1] %v785_v1 }
 0x163   :  { %v873_v12 = vld [vmem:[#allocation12 + $0x7] ss:$-1 sm:$0xff] (%p275_p2)  ;;  %v879_v13 = vld [vmem:[#allocation14 + $0x7] ss:$-1 sm:$0xff] (%p275_p2) }
 0x164   :  { %vm891_vm10 = vcmp.gt.s32.totalorder (%p275_p2), %v885_v14, %v873_v12  ;;  %vm892_vm11 = vcmp.eq.s32.totalorder (%p275_p2), %v885_v14, %v873_v12  ;;  %vm893_vm12 = vcmp.lt.s32.totalorder (%p275_p2), %v886_v15, %v879_v13 }
 0x165   :  { %vm894_vm13 = vmand (%p275_p2), %vm892_vm11, %vm893_vm12  ;;  %vm1580_vm11 = vcmp.ne.s32.totalorder (%p275_p2), %v959_v35, 0 }
 0x166   :  { %vm895_vm14 = vmor (%p275_p2), %vm891_vm10, %vm894_vm13 }
 0x167   :  { %v896_v21 = vsel (%p275_p2), %vm895_vm14, %v885_v14, %v873_v12  ;;  %v898_v22 = vsel (%p275_p2), %vm895_vm14, %v873_v12, %v885_v14  ;;  %v900_v23 = vsel (%p275_p2), %vm895_vm14, %v886_v15, %v879_v13  ;;  %v902_v25 = vsel (%p275_p2), %vm895_vm14, %v879_v13, %v886_v15 }
 0x1dc   : > { %v808_v3 = vpop.trf.xlu0 }
 0x1dd   : > { %v847_v4 = vrot.slane %v808_v3, 1  ;;  %1419 = vpush %v808_v3 }
 0x1df   : > { %1421 = vpush %v847_v4 }
 0x20e   : > { %s1420_s15 = spop %1419 }
 0x20f   : > { %s825_s16 = sshrl.u32 %s1420_s15, 9  ;;  %s827_s17 = ssub.s32 0, %s1420_s15 }
 0x210   : > { %p826_p0 = scmp.lt.s32.totalorder %s1420_s15, 0  ;;  %s1411_s18 = smin.u32 %s1420_s15, %s827_s17 }
 0x211   : > { %s829_s19 = sand.u32 511, %s1411_s18   ;;  %s1413_s20 = sshll.u32 %s825_s16, 3 }
 0x212   : > { %s830_s21 = ssub.s32 0, %s829_s19  ;;  %s1422_s22 = spop %1421 }
 0x213   : > { %s1648_s21 = smov (!%p826_p0, %s830_s21), %s829_s19  ;;  %s851_s26 = ssub.s32 0, %s1422_s22 }
 0x214   : > { %s832_s23 = sshrl.u32 %s1648_s21, 7  ;;  %s834_s24 = sand.u32 127, %s1648_s21  }
 0x215   : > { %s1412_s25 = sshll.u32 %s832_s23, 8  ;;  %s1415_s28 = smin.u32 %s1422_s22, %s851_s26 }
 0x216   : > { %s835_s27 = sadd.s32 %s1412_s25, %s834_s24  ;;  %p850_p1 = scmp.lt.s32.totalorder %s1422_s22, 0 }
 0x217   : > { %v837_v6 = vstv %s835_s27  ;;  %s853_s29 = sand.u32 511, %s1415_s28   ;;  %s841_s3 = scalar_lea.vmem [#allocation15], %s1413_s20 }
 0x218   : > { %vm839_vm8 = vcmp.eq.s32.totalorder %v61_v5, %v837_v6  ;;  %s854_s30 = ssub.s32 0, %s853_s29  ;;  %s844_s4 = scalar_lea.vmem [#allocation16], %s1413_s20 }
 0x219   : > { %842 = vst.msk [vmem:[%s841_s3] sm:$0xff] %vm839_vm8, %v1453_v7  ;;  %845 = vst.msk [vmem:[%s844_s4] sm:$0xff] %vm839_vm8, %v1454_v8  ;;  %s1650_s30 = smov (!%p850_p1, %s854_s30), %s853_s29  ;;  %s849_s5 = sshrl.u32 %s1422_s22, 9 }
 0x21a   : > { %s856_s6 = sshrl.u32 %s1650_s30, 7  ;;  %s858_s7 = sand.u32 127, %s1650_s30  }
 0x21b   : > { %s1416_s8 = sshll.u32 %s856_s6, 8  ;;  %s1417_s10 = sshll.u32 %s849_s5, 3 }
 0x21c   : > { %s859_s9 = sadd.s32 %s1416_s8, %s858_s7  ;;  %s865_s11 = scalar_lea.vmem [#allocation15], %s1417_s10 }
 0x21d   : > { %v861_v9 = vstv %s859_s9  ;;  %s868_s12 = scalar_lea.vmem [#allocation16], %s1417_s10 }
 0x21e   : > { %v862_v10 = vadd.s32 128, %v861_v9  ;;  %277 = sbr.rel (!%p275_p2) target bundleno = 33 (0x21), region = 188 }
 0x220   : > { %vm863_vm9 = vcmp.eq.s32.totalorder %v61_v5, %v862_v10  ;;  %v1562_v5 = vsub.s32 (%p275_p2), %v911_v20, %v1489_v11 }
 0x221   : > { %866 = vst.msk [vmem:[%s865_s11] sm:$0xff] %vm863_vm9, %v1453_v7  ;;  %869 = vst.msk [vmem:[%s868_s12] sm:$0xff] %vm863_vm9, %v1454_v8 }
 0x222   :  { %v915_v27 = vrot.slane (%p275_p2), %v896_v21, %v1562_v5  ;;  %v922_v28 = vrot.slane (%p275_p2), %v900_v23, %v1562_v5  ;;  %v1096_v30 = vrot.slane (%p275_p2), %v898_v22, %v1562_v5  ;;  %v1103_v29 = vrot.slane (%p275_p2), %v902_v25, %v1562_v5 }
 0x224   :  { %vm924_vm0 = vcmp.gt.s32.totalorder (%p275_p2), %v896_v21, %v915_v27  ;;  %vm925_vm1 = vcmp.eq.s32.totalorder (%p275_p2), %v896_v21, %v915_v27  ;;  %vm926_vm2 = vcmp.lt.s32.totalorder (%p275_p2), %v900_v23, %v922_v28  ;;  %vm1106_vm4 = vcmp.eq.s32.totalorder (%p275_p2), %v898_v22, %v1096_v30 }
 0x225   :  { %vm927_vm3 = vmand %vm925_vm1, %vm926_vm2  ;;  %vm1107_vm5 = vcmp.lt.s32.totalorder %v902_v25, %v1103_v29  ;;  %vm1105_vm7 = vcmp.gt.s32.totalorder %v898_v22, %v1096_v30 }
 0x226   :  { %vm928_vm6 = vmor %vm924_vm0, %vm927_vm3 }
 0x227   :  { %vm933_vm8 = vmxor %vm928_vm6, %vm1567_vm15 }
 0x228   :  { %v934_v36 = vsel %vm933_vm8, %v896_v21, %v915_v27  ;;  %v935_v37 = vsel %vm933_vm8, %v900_v23, %v922_v28  ;;  %vm1108_vm9 = vmand %vm1106_vm4, %vm1107_vm5 }
 0x229   :  { %v943_v39 = vrot.slane %v934_v36, %v1573_v34  ;;  %v950_v40 = vrot.slane %v935_v37, %v1573_v34  ;;  %vm1109_vm10 = vmor %vm1105_vm7, %vm1108_vm9 }
 0x22a   :  { %vm1114_vm12 = vmxor %vm1109_vm10, %vm1567_vm15 }
 0x22b   :  { %vm952_vm13 = vcmp.gt.s32.totalorder %v934_v36, %v943_v39  ;;  %vm953_vm14 = vcmp.eq.s32.totalorder %v934_v36, %v943_v39  ;;  %vm954_vm0 = vcmp.lt.s32.totalorder %v935_v37, %v950_v40  ;;  %v1115_v42 = vsel %vm1114_vm12, %v898_v22, %v1096_v30 }
 0x22c   :  { %vm955_vm1 = vmand %vm953_vm14, %vm954_vm0  ;;  %v1116_v44 = vsel %vm1114_vm12, %v902_v25, %v1103_v29  ;;  %v1124_v45 = vrot.slane %v1115_v42, %v1573_v34 }
 0x22d   :  { %vm956_vm2 = vmor %vm952_vm13, %vm955_vm1  ;;  %v1131_v46 = vrot.slane %v1116_v44, %v1573_v34  ;;  %vm1596_vm13 = vcmp.ne.s32.totalorder %v987_v47, 0 }
 0x22e   :  { %vm961_vm3 = vmxor %vm956_vm2, %vm1580_vm11  ;;  %vm1133_vm4 = vcmp.gt.s32.totalorder %v1115_v42, %v1124_v45  ;;  %vm1134_vm5 = vcmp.eq.s32.totalorder %v1115_v42, %v1124_v45 }
 0x22f   :  { %v962_v48 = vsel %vm961_vm3, %v934_v36, %v943_v39  ;;  %v963_v49 = vsel %vm961_vm3, %v935_v37, %v950_v40  ;;  %vm1135_vm6 = vcmp.lt.s32.totalorder %v1116_v44, %v1131_v46 }
 0x230   :  { %v971_v50 = vrot.slane %v962_v48, %v1587_v43  ;;  %v978_v51 = vrot.slane %v963_v49, %v1587_v43  ;;  %vm1136_vm7 = vmand %vm1134_vm5, %vm1135_vm6 }
 0x231   :  { %vm1137_vm8 = vmor %vm1133_vm4, %vm1136_vm7 }
 0x232   :  { %vm980_vm9 = vcmp.gt.s32.totalorder %v962_v48, %v971_v50  ;;  %vm981_vm10 = vcmp.eq.s32.totalorder %v962_v48, %v971_v50  ;;  %vm982_vm12 = vcmp.lt.s32.totalorder %v963_v49, %v978_v51  ;;  %vm1142_vm14 = vmxor %vm1137_vm8, %vm1580_vm11 }
 0x233   :  { %vm983_vm0 = vmand %vm981_vm10, %vm982_vm12  ;;  %v1143_v11 = vsel %vm1142_vm14, %v1115_v42, %v1124_v45  ;;  %v1144_v53 = vsel %vm1142_vm14, %v1116_v44, %v1131_v46 }
 0x234   :  { %vm984_vm1 = vmor %vm980_vm9, %vm983_vm0  ;;  %v1152_v54 = vrot.slane %v1143_v11, %v1587_v43  ;;  %v1159_v55 = vrot.slane %v1144_v53, %v1587_v43 }
 0x235   :  { %vm989_vm2 = vmxor %vm984_vm1, %vm1596_vm13 }
 0x236   :  { %v990_v56 = vsel %vm989_vm2, %v962_v48, %v971_v50  ;;  %v991_v57 = vsel %vm989_vm2, %v963_v49, %v978_v51  ;;  %vm1161_vm3 = vcmp.gt.s32.totalorder %v1143_v11, %v1152_v54  ;;  %vm1162_vm4 = vcmp.eq.s32.totalorder %v1143_v11, %v1152_v54 }
 0x237   :  { %v1005_v58 = vrot.slane %v990_v56, %v1562_v5  ;;  %v1012_v59 = vrot.slane %v991_v57, %v1562_v5  ;;  %vm1163_vm5 = vcmp.lt.s32.totalorder %v1144_v53, %v1159_v55 }
 0x238   :  { %vm1164_vm6 = vmand %vm1162_vm4, %vm1163_vm5 }
 0x239   :  { %vm1014_vm7 = vcmp.gt.s32.totalorder %v990_v56, %v1005_v58  ;;  %vm1015_vm8 = vcmp.eq.s32.totalorder %v990_v56, %v1005_v58  ;;  %vm1016_vm9 = vcmp.lt.s32.totalorder %v991_v57, %v1012_v59  ;;  %vm1165_vm10 = vmor %vm1161_vm3, %vm1164_vm6 }
 0x23a   :  { %vm1017_vm12 = vmand %vm1015_vm8, %vm1016_vm9 }
 0x23b   :  { %vm1018_vm14 = vmor %vm1014_vm7, %vm1017_vm12 }
 0x23c   :  { %vm1023_vm0 = vmxor %vm1018_vm14, %vm1567_vm15 }
 0x23d   :  { %v1024_v60 = vsel %vm1023_vm0, %v990_v56, %v1005_v58  ;;  %v1025_v61 = vsel %vm1023_vm0, %v991_v57, %v1012_v59  ;;  %vm1170_vm1 = vmxor %vm1165_vm10, %vm1596_vm13 }
 0x23e   :  { %v1033_v62 = vrot.slane %v1024_v60, %v1573_v34  ;;  %v1040_v63 = vrot.slane %v1025_v61, %v1573_v34  ;;  %v1171_v0 = vsel %vm1170_vm1, %v1143_v11, %v1152_v54  ;;  %v1172_v1 = vsel %vm1170_vm1, %v1144_v53, %v1159_v55 }
 0x23f   :  { %v1186_v2 = vrot.slane %v1171_v0, %v1562_v5  ;;  %v1193_v3 = vrot.slane %v1172_v1, %v1562_v5 }
 0x240   :  { %vm1042_vm2 = vcmp.gt.s32.totalorder %v1024_v60, %v1033_v62  ;;  %vm1043_vm3 = vcmp.eq.s32.totalorder %v1024_v60, %v1033_v62  ;;  %vm1044_vm4 = vcmp.lt.s32.totalorder %v1025_v61, %v1040_v63 }
 0x241   :  { %vm1045_vm5 = vmand %vm1043_vm3, %vm1044_vm4  ;;  %vm1196_vm6 = vcmp.eq.s32.totalorder %v1171_v0, %v1186_v2  ;;  %vm1197_vm7 = vcmp.lt.s32.totalorder %v1172_v1, %v1193_v3  ;;  %vm1195_vm9 = vcmp.gt.s32.totalorder %v1171_v0, %v1186_v2 }
 0x242   :  { %vm1046_vm8 = vmor %vm1042_vm2, %vm1045_vm5 }
 0x243   :  { %vm1051_vm10 = vmxor %vm1046_vm8, %vm1580_vm11 }
 0x244   :  { %v1052_v4 = vsel %vm1051_vm10, %v1024_v60, %v1033_v62  ;;  %v1053_v6 = vsel %vm1051_vm10, %v1025_v61, %v1040_v63  ;;  %vm1198_vm12 = vmand %vm1196_vm6, %vm1197_vm7 }
 0x245   :  { %v1061_v7 = vrot.slane %v1052_v4, %v1587_v43  ;;  %v1068_v8 = vrot.slane %v1053_v6, %v1587_v43  ;;  %vm1199_vm14 = vmor %vm1195_vm9, %vm1198_vm12 }
 0x246   :  { %vm1204_vm0 = vmxor %vm1199_vm14, %vm1567_vm15 }
 0x247   :  { %vm1070_vm1 = vcmp.gt.s32.totalorder %v1052_v4, %v1061_v7  ;;  %vm1071_vm3 = vcmp.eq.s32.totalorder %v1052_v4, %v1061_v7  ;;  %vm1072_vm4 = vcmp.lt.s32.totalorder %v1053_v6, %v1068_v8  ;;  %v1205_v9 = vsel %vm1204_vm0, %v1171_v0, %v1186_v2 }
 0x248   :  { %vm1073_vm2 = vmand %vm1071_vm3, %vm1072_vm4  ;;  %v1206_v10 = vsel %vm1204_vm0, %v1172_v1, %v1193_v3  ;;  %v1214_v12 = vrot.slane %v1205_v9, %v1573_v34 }
 0x249   :  { %vm1074_vm5 = vmor %vm1070_vm1, %vm1073_vm2  ;;  %v1221_v13 = vrot.slane %v1206_v10, %v1573_v34 }
 0x24a   :  { %vm1079_vm6 = vmxor %vm1074_vm5, %vm1596_vm13  ;;  %vm1223_vm7 = vcmp.gt.s32.totalorder %v1205_v9, %v1214_v12  ;;  %vm1224_vm8 = vcmp.eq.s32.totalorder %v1205_v9, %v1214_v12 }
 0x24b   :  { %v1080_v14 = vsel %vm1079_vm6, %v1052_v4, %v1061_v7  ;;  %v1081_v15 = vsel %vm1079_vm6, %v1053_v6, %v1068_v8  ;;  %vm1225_vm9 = vcmp.lt.s32.totalorder %v1206_v10, %v1221_v13 }
 0x24c   :  { %1083 = vst [vmem:[#allocation11] sm:$0xff] %v1080_v14  ;;  %1084 = vst [vmem:[#allocation13] sm:$0xff] %v1081_v15 }
 0x24d   :  { %vm1226_vm15 = vmand %vm1224_vm8, %vm1225_vm9 }
 0x24e   :  { %vm1227_vm10 = vmor %vm1223_vm7, %vm1226_vm15 }
 0x24f   :  { %vm1232_vm12 = vmxor %vm1227_vm10, %vm1580_vm11 }
 0x250   :  { %v1233_v16 = vsel %vm1232_vm12, %v1205_v9, %v1214_v12  ;;  %v1234_v17 = vsel %vm1232_vm12, %v1206_v10, %v1221_v13 }
 0x251   :  { %v1242_v18 = vrot.slane %v1233_v16, %v1587_v43  ;;  %v1249_v19 = vrot.slane %v1234_v17, %v1587_v43 }
 0x253   :  { %vm1251_vm14 = vcmp.gt.s32.totalorder %v1233_v16, %v1242_v18  ;;  %vm1252_vm0 = vcmp.eq.s32.totalorder %v1233_v16, %v1242_v18  ;;  %vm1253_vm1 = vcmp.lt.s32.totalorder %v1234_v17, %v1249_v19  ;;  %v1267_v22 = vld [vmem:[#allocation11] sm:$0xff]  ;;  %v1291_v25 = vld [vmem:[#allocation13] sm:$0xff] }
 0x254   :  { %vm1254_vm3 = vmand %vm1252_vm0, %vm1253_vm1  ;;  %vm1268_vm11 = vcmp.lt.s32.totalorder %v1267_v22, 0  ;;  %v1269_v23 = vsub.s32 2147483647, %v1267_v22 }
 0x255   :  { %vm1255_vm4 = vmor %vm1251_vm14, %vm1254_vm3 }
 0x256   :  { %vm1260_vm2 = vmxor %vm1255_vm4, %vm1596_vm13  ;;  %v1270_v24 = vsel %vm1268_vm11, %v1269_v23, %v1267_v22 }
 0x257   :  { %v1261_v20 = vsel %vm1260_vm2, %v1233_v16, %v1242_v18  ;;  %v1262_v21 = vsel %vm1260_vm2, %v1234_v17, %v1249_v19  ;;  %1271 = vst [vmem:[#allocation11] sm:$0xff] %v1270_v24  ;;  %1273 = vxpose.xlu0.b32.start.end [1/1] (short) (narrow) %v1270_v24, 8 }
 0x258   :  { %1264 = vst [vmem:[#allocation12] sm:$0xff] %v1261_v20  ;;  %1265 = vst [vmem:[#allocation14] sm:$0xff] %v1262_v21 }
 0x25b   :  { %1292 = vxpose.xlu0.b32.start.end [1/1] (short) (narrow) %v1291_v25, 8 }
 0x2d7   :  { %v1274_v5 = vpop.trf.xlu0 }
 0x2d8   :  { %1290 = vst [vmem:[#allocation7] sm:$0xff] %v1274_v5 }
 0x2db   :  { %v1293_v26 = vpop.trf.xlu0 }
 0x2dc   :  { %1309 = vst [vmem:[#allocation9] sm:$0xff] %v1293_v26 }
 0x2df   :  { %v1313_v27 = vld [vmem:[#allocation7] sm:$0x3] }
 0x2e0   :  { %1315 = vst [vmem:[#allocation8] sm:$0x3] %v1313_v27 }
 0x2e3   :  { %v1319_v28 = vld [vmem:[#allocation9] sm:$0x3] }
 0x2e4   :  { %1321 = vst [vmem:[#allocation10] sm:$0x3] %v1319_v28 }
 0x2e7   :  { %v1337_v30 = vld [vmem:[#allocation8] sm:$0x3] }
 0x2e8   :  { %1338 = vst [vmem:[%s1639_s1] sm:$0x3] %v1337_v30 }
 0x2eb   :  { %v1368_v31 = vld [vmem:[#allocation10] sm:$0x3] }
 0x2ec   :  { %1369 = vst [vmem:[%s1640_s2] sm:$0x3] %v1368_v31 }

// kernel: model_forward.7
= control target key start
LH: loop header
LB: loop body
LE: loop exit
PB: predicated region body
PF: predicated region fallthrough
CT: control target
= control target key end

     0   :  { %v1723_v0 = vmov 0.0   ;;  %vm1724_vm0 = vmmov 0   ;;  %vm76_vm1 = vcmask 261120   ;;  %v1725_v11 = vmov 0.0|0.0   ;;  %s2107_s1 = inlined_call_operand.vmem [shape: bf16[32,96], index: 1, kind: input, shape index: {}]   ;;  %s2108_s0 = inlined_call_operand.vmem [shape: f32[8,32], index: 0, kind: input, shape index: {}]   ;;  %s2109_s3 = inlined_call_operand.vmem [shape: bf16[3,96,96], index: 3, kind: input, shape index: {}]   ;;  %s2110_s7 = inlined_call_operand.vmem [shape: f32[96,96], index: 7, kind: input, shape index: {}]   ;;  %s2111_s2 = inlined_call_operand.vmem [shape: f32[1,96], index: 2, kind: input, shape index: {}]   ;;  %s2112_s4 = inlined_call_operand.vmem [shape: f32[3,1,96], index: 4, kind: input, shape index: {}]   ;;  %s2113_s5 = inlined_call_operand.vmem [shape: f32[3,1,96], index: 5, kind: input, shape index: {}]   ;;  %s2114_s6 = inlined_call_operand.vmem [shape: f32[3,1,96], index: 6, kind: input, shape index: {}]   ;;  %s2115_s9 = inlined_call_operand.vmem [shape: bf16[32,128], index: 9, kind: input, shape index: {}]   ;;  %s2116_s8 = inlined_call_operand.vmem [shape: bf16[96,128], index: 8, kind: input, shape index: {}]   ;;  %s2117_s10 = inlined_call_operand.vmem [shape: f32[1,128], index: 10, kind: input, shape index: {}]   ;;  %s2118_s11 = inlined_call_operand.vmem [shape: f32[8,128], index: 11, kind: output, shape index: {}]  }
   0x1   :  { %1328 = vmatprep.subr.bf16.mxu1 %v1723_v0  ;;  %v1681_v1 = vld [vmem:[%s2107_s1] sm:$0xff]   ;;  %1332 = vmatprep.mubr.msk.bf16.mxu1 %vm1724_vm0, %v1723_v0  ;;  %v1682_v2 = vld [vmem:[%s2107_s1 + $0x8] sm:$0xff]   ;;  %v1685_v7 = vld [vmem:[%s2109_s3 + $0x10] sm:$0xff]   ;;  %vm176_vm2 = vcmask 785408  }
   0x2   :  { %1376 = vmatprep.mubr.msk.f32.mxu0 %vm1724_vm0, %v1723_v0  ;;  %1329 = vmatpush3.bf16.msra.mxu1 %v1681_v1  ;;  %v39_v3 = vld [vmem:[%s2108_s0] sm:$0xff]  ;;  %v1684_v6 = vld [vmem:[%s2109_s3 + $0x8] sm:$0xff]   ;;  %v1686_v8 = vld [vmem:[%s2109_s3 + $0x18] sm:$0xff]  }
   0x3   :  { %1330 = vmatprep.subr.bf16.mxu1 %v1723_v0  ;;  %v1801_v4 = vpack.c.bf16 %v39_v3, %v39_v3  ;;  %v1683_v5 = vld [vmem:[%s2109_s3] sm:$0xff]   ;;  %v1688_v10 = vld [vmem:[%s2109_s3 + $0x28] sm:$0xff]   ;;  %1570 = vmatprep.subr.bf16.mxu0 %v1725_v11  ;;  %v43_v14 = vld [vmem:[%s2110_s7 + $0x10] sm:$0xff] }
   0x4   :  { %v1687_v9 = vld [vmem:[%s2109_s3 + $0x20] sm:$0xff]   ;;  %v42_v13 = vld [vmem:[%s2110_s7 + $0x8] sm:$0xff]  ;;  %v44_v16 = vld [vmem:[%s2110_s7 + $0x18] sm:$0xff] }
   0x5   :  { %v41_v12 = vld [vmem:[%s2110_s7] sm:$0xff]  ;;  %v1848_v17 = vpack.c.bf16 %v44_v16, %v43_v14  ;;  %v46_v19 = vld [vmem:[%s2110_s7 + $0x28] sm:$0xff]  ;;  %v47_v21 = vld [vmem:[%s2110_s7 + $0x30] sm:$0xff] }
   0x6   :  { %1331 = vmatpush3.bf16.msra.mxu1 %v1682_v2  ;;  %v1842_v15 = vpack.c.bf16 %v42_v13, %v41_v12  ;;  %v45_v18 = vld [vmem:[%s2110_s7 + $0x20] sm:$0xff]  ;;  %v48_v22 = vld [vmem:[%s2110_s7 + $0x38] sm:$0xff]  ;;  %v50_v25 = vld [vmem:[%s2110_s7 + $0x48] sm:$0xff] }
   0x7   :  { %1336 = vmatprep.subr.bf16.mxu1 %v1723_v0  ;;  %v1858_v20 = vpack.c.bf16 %v46_v19, %v45_v18  ;;  %v1868_v23 = vpack.c.bf16 %v48_v22, %v47_v21  ;;  %v49_v24 = vld [vmem:[%s2110_s7 + $0x40] sm:$0xff]  ;;  %v51_v34 = vld [vmem:[%s2110_s7 + $0x50] sm:$0xff]  ;;  %v52_v35 = vld [vmem:[%s2110_s7 + $0x58] sm:$0xff] }
   0x8   :  { %1572 = vmatpush3.bf16.msra.mxu0 %v1842_v15  ;;  %v1878_v26 = vpack.c.bf16 %v50_v25, %v49_v24  ;;  %v1134_v27 = vld [vmem:[%s2111_s2] ss:$0 sm:$0xff]  ;;  %v1905_v36 = vpack.c.bf16 %v52_v35, %v51_v34  ;;  %v1689_v45 = vld [vmem:[%s2109_s3 + $0x30] sm:$0xff]   ;;  %v1690_v50 = vld [vmem:[%s2109_s3 + $0x38] sm:$0xff]  }
   0x9   :  { %1333 = vmatmul.mubr.msk.bf16.vlgmr.msra.gmra.mrb[0].mxu1 %vm76_vm1, %v1801_v4  ;;  %1573 = vmatprep.subr.bf16.mxu0 %v1725_v11  ;;  %v1138_v37 = vld [vmem:[%s2112_s4] ss:$0 sm:$0xff]  ;;  %v1692_v52 = vld [vmem:[%s2109_s3 + $0x48] sm:$0xff]   ;;  %v1693_v53 = vld [vmem:[%s2109_s3 + $0x50] sm:$0xff]  }
   0xa   :  { %1337 = vmatpush3.bf16.msra.mxu1 %v1683_v5  ;;  %1348 = vmatprep.mubr.msk.bf16.mxu1 %vm1724_vm0, %v1723_v0  ;;  %v1691_v51 = vld [vmem:[%s2109_s3 + $0x40] sm:$0xff]   ;;  %v1694_v54 = vld [vmem:[%s2109_s3 + $0x58] sm:$0xff]   ;;  %v1696_v19 = vld [vmem:[%s2109_s3 + $0x68] sm:$0xff]  }
   0xb   :  { %1338 = vmatprep.subr.bf16.mxu1 %v1723_v0  ;;  %v1148_v59 = vld [vmem:[%s2113_s5] ss:$0 sm:$0xff]  ;;  %v1163_v2 = vld [vmem:[%s2112_s4 + $0x1] ss:$0 sm:$0xff]  ;;  %v1697_v21 = vld [vmem:[%s2109_s3 + $0x70] sm:$0xff]  }
   0xc   :  { %1575 = vmatpush3.bf16.msra.mxu0 %v1848_v17  ;;  %v1149_v61 = vld [vmem:[%s2114_s6] ss:$0 sm:$0xff]  ;;  %v1698_v22 = vld [vmem:[%s2109_s3 + $0x78] sm:$0xff]   ;;  %v1700_v25 = vld [vmem:[%s2109_s3 + $0x88] sm:$0xff]  }
   0xd   :  { %1576 = vmatprep.subr.bf16.mxu0 %v1725_v11  ;;  %v1695_v12 = vld [vmem:[%s2109_s3 + $0x60] sm:$0xff]  }
   0xe   :  { %1339 = vmatpush3.bf16.msra.mxu1 %v1684_v6  ;;  %v1699_v24 = vld [vmem:[%s2109_s3 + $0x80] sm:$0xff]  }
   0xf   :  { %1340 = vmatprep.subr.bf16.mxu1 %v1723_v0 }
  0x10   :  { %1578 = vmatpush3.bf16.msra.mxu0 %v1858_v20 }
  0x11   :  { %1579 = vmatprep.subr.bf16.mxu0 %v1725_v11 }
  0x12   :  { %1341 = vmatpush3.bf16.msra.mxu1 %v1685_v7 }
  0x13   :  { %1342 = vmatprep.subr.bf16.mxu1 %v1723_v0 }
  0x14   :  { %1581 = vmatpush3.bf16.msra.mxu0 %v1868_v23 }
  0x15   :  { %1582 = vmatprep.subr.bf16.mxu0 %v1725_v11 }
  0x16   :  { %1343 = vmatpush3.bf16.msra.mxu1 %v1686_v8 }
  0x17   :  { %1344 = vmatprep.subr.bf16.mxu1 %v1723_v0 }
  0x18   :  { %1584 = vmatpush3.bf16.msra.mxu0 %v1878_v26 }
  0x19   :  { %1585 = vmatprep.subr.bf16.mxu0 %v1725_v11 }
  0x1a   :  { %1345 = vmatpush3.bf16.msra.mxu1 %v1687_v9 }
  0x1b   :  { %1346 = vmatprep.subr.bf16.mxu1 %v1723_v0 }
  0x1c   :  { %1587 = vmatpush3.bf16.msra.mxu0 %v1905_v36 }
  0x1d   :  { %1406 = vmatprep.subr.bf16.mxu0 %v1723_v0 }
  0x1e   :  { %1347 = vmatpush3.bf16.msra.mxu1 %v1688_v10 }
  0x1f   :  { %1588 = vmatprep.subr.bf16.mxu1 %v1725_v11 }
  0xdc   :  { %v114_v28 = vpop.f32.mrb[0].mxu1 }
  0xdd   :  { %v115_v29 = vadd.f32 %v1134_v27, %v114_v28  ;;  %v1334_v30 = vpop.f32.mrb[1].mxu1 }
  0xde   :  { %v117_v31 = vpop.f32.mrb[2].mxu1 }
  0xdf   :  { %v120_v32 = vpack.c.bf16 %v115_v29, %v115_v29  ;;  %v1335_v33 = vpop.f32.mrb[3].mxu1  ;;  %v1174_v31 = vld [vmem:[%s2113_s5 + $0x1] ss:$0 sm:$0xff] }
  0xe0   :  { %v1176_v33 = vld [vmem:[%s2114_s6 + $0x1] ss:$0 sm:$0xff] }
  0xe1   :  { %1349 = vmatmul.mubr.msk.bf16.vlgmr.msra.gmra.mrb[4].mxu1 %vm176_vm2, %v120_v32 }
  0xe2   :  { %1590 = vmatpush3.bf16.msra.mxu1 %v1842_v15  ;;  %1403 = vmatprep.mubr.msk.f32.mxu1 %vm1724_vm0, %v1723_v0 }
  0xe3   :  { %1591 = vmatprep.subr.bf16.mxu1 %v1725_v11 }
  0xe6   :  { %1593 = vmatpush3.bf16.msra.mxu1 %v1848_v17 }
  0xe7   :  { %1594 = vmatprep.subr.bf16.mxu1 %v1725_v11 }
  0xea   :  { %1596 = vmatpush3.bf16.msra.mxu1 %v1858_v20 }
  0xeb   :  { %1597 = vmatprep.subr.bf16.mxu1 %v1725_v11 }
  0xee   :  { %1599 = vmatpush3.bf16.msra.mxu1 %v1868_v23 }
  0xef   :  { %1600 = vmatprep.subr.bf16.mxu1 %v1725_v11 }
  0xf2   :  { %1602 = vmatpush3.bf16.msra.mxu1 %v1878_v26 }
  0xf3   :  { %1603 = vmatprep.subr.bf16.mxu1 %v1725_v11 }
  0xf6   :  { %1605 = vmatpush3.bf16.msra.mxu1 %v1905_v36 }
  0xf7   :  { %1606 = vmatprep.subr.bf16.mxu1 %v1725_v11 }
 0x1b4   :  { %v214_v38 = vpop.f32.mrb[4].mxu1 }
 0x1b5   :  { %v215_v39 = vadd.f32 %v1138_v37, %v214_v38  ;;  %v1350_v40 = vpop.f32.mrb[5].mxu1 }
 0x1b6   :  { %v217_v41 = vpop.f32.mrb[6].mxu1 }
 0x1b7   :  { %vm220_vm3 = vcmp.ge.f32.partialorder %v215_v39, 0.0  ;;  %v221_v42 = vmul.f32 0.2, %v215_v39  ;;  %v1351_v43 = vpop.f32.mrb[7].mxu1 }
 0x1b9   :  { %v222_v44 = vsel %vm220_vm3, %v215_v39, %v221_v42 }
 0x1ba   :  { %1377 = vmatmul.mubr.msk.f32.vlgmr.msra.gmra.mrb[0].mxu0 %vm176_vm2, %v222_v44 }
 0x1bb   :  { %1418 = vmatprep.mubr.msk.bf16.mxu0 %vm1724_vm0, %v1723_v0  ;;  %1407 = vmatpush3.bf16.msra.mxu0 %v1689_v45 }
 0x1bc   :  { %1408 = vmatprep.subr.bf16.mxu0 %v1723_v0 }
 0x1bf   :  { %1409 = vmatpush3.bf16.msra.mxu0 %v1690_v50 }
 0x1c0   :  { %1410 = vmatprep.subr.bf16.mxu0 %v1723_v0 }
 0x1c3   :  { %1411 = vmatpush3.bf16.msra.mxu0 %v1691_v51 }
 0x1c4   :  { %1412 = vmatprep.subr.bf16.mxu0 %v1723_v0 }
 0x1c7   :  { %1413 = vmatpush3.bf16.msra.mxu0 %v1692_v52 }
 0x1c8   :  { %1414 = vmatprep.subr.bf16.mxu0 %v1723_v0 }
 0x1cb   :  { %1415 = vmatpush3.bf16.msra.mxu0 %v1693_v53 }
 0x1cc   :  { %1416 = vmatprep.subr.bf16.mxu0 %v1723_v0 }
 0x1cf   :  { %1417 = vmatpush3.bf16.msra.mxu0 %v1694_v54 }
 0x1d0   :  { %1624 = vmatprep.subr.bf16.mxu0 %v1725_v11 }
 0x28d   :  { %v292_v46 = vpop.f32.mrb[0].mxu0 }
 0x28e   :  { %v296_v47 = vsub.f32 %v222_v44, %v292_v46  ;;  %v1378_v48 = vpop.f32.mrb[1].mxu0  ;;  %v1704_v46 = vld [vmem:[%s2116_s8 + $0x8] sm:$0xff]  }
 0x28f   :  { %v1707_v48 = vld [vmem:[%s2116_s8 + $0x20] sm:$0xff]  }
 0x290   :  { %v297_v49 = vmul.f32 %v296_v47, %v296_v47 }
 0x292   :  { %1404 = vmatmul.mubr.msk.f32.vlgmr.msra.gmra.mrb[8].mxu1 %vm176_vm2, %v297_v49  ;;  %v1708_v49 = vld [vmem:[%s2116_s8 + $0x28] sm:$0xff]  }
 0x293   :  { %1608 = vmatpush3.bf16.msra.mxu1 %v1842_v15  ;;  %1446 = vmatprep.mubr.msk.f32.mxu1 %vm1724_vm0, %v1723_v0 }
 0x294   :  { %1609 = vmatprep.subr.bf16.mxu1 %v1725_v11 }
 0x297   :  { %1611 = vmatpush3.bf16.msra.mxu1 %v1848_v17 }
 0x298   :  { %1612 = vmatprep.subr.bf16.mxu1 %v1725_v11 }
 0x29b   :  { %1614 = vmatpush3.bf16.msra.mxu1 %v1858_v20 }
 0x29c   :  { %1615 = vmatprep.subr.bf16.mxu1 %v1725_v11 }
 0x29f   :  { %1617 = vmatpush3.bf16.msra.mxu1 %v1868_v23 }
 0x2a0   :  { %1618 = vmatprep.subr.bf16.mxu1 %v1725_v11 }
 0x2a3   :  { %1620 = vmatpush3.bf16.msra.mxu1 %v1878_v26 }
 0x2a4   :  { %1621 = vmatprep.subr.bf16.mxu1 %v1725_v11 }
 0x2a7   :  { %1623 = vmatpush3.bf16.msra.mxu1 %v1905_v36 }
 0x2a8   :  { %1476 = vmatprep.subr.bf16.mxu1 %v1723_v0 }
 0x365   :  { %v367_v55 = vpop.f32.mrb[8].mxu1 }
 0x366   :  { %v368_v56 = vadd.f32 1e-05, %v367_v55  ;;  %v1405_v57 = vpop.f32.mrb[9].mxu1 }
 0x368   :  { %1709 = vrsqrt.f32 %v368_v56 }
 0x372   :  { %v1710_v58 = vpop.eup %1709 }
 0x373   :  { %v372_v60 = vmul.f32 %v1710_v58, %v296_v47  ;;  %v1706_v47 = vld [vmem:[%s2116_s8 + $0x18] sm:$0xff]   ;;  %v1201_v58 = vld [vmem:[%s2113_s5 + $0x2] ss:$0 sm:$0xff] }
 0x375   :  { %v380_v62 = vmul.f32 %v1148_v59, %v372_v60 }
 0x377   :  { %v388_v63 = vadd.f32 %v1149_v61, %v380_v62 }
 0x379   :  { %v389_v1 = vpack.c.bf16 %v388_v63, %v388_v63  ;;  %v1089_v63 = vlaneseq }
 0x37b   :  { %1419 = vmatmul.mubr.msk.bf16.vlgmr.msra.gmra.mrb[4].mxu0 %vm176_vm2, %v389_v1  ;;  %v1090_v1 = vand.u32 127, %v1089_v63 }
 0x37c   :  { %1626 = vmatpush3.bf16.msra.mxu0 %v1842_v15  ;;  %1473 = vmatprep.mubr.msk.f32.mxu0 %vm1724_vm0, %v1723_v0 }
 0x37d   :  { %1627 = vmatprep.subr.bf16.mxu0 %v1725_v11  ;;  %vm1094_vm6 = vcmp.ge.s32.totalorder %v1090_v1, 80  ;;  %vm1095_vm7 = vcmp.lt.s32.totalorder %v1090_v1, 83  ;;  %vm1107_vm8 = vcmp.eq.s32.totalorder %v1090_v1, 84  ;;  %vm1091_vm10 = vcmp.lt.s32.totalorder %v1090_v1, 80 }
 0x37e   :  { %vm2094_vm9 = vmand %vm1094_vm6, %vm1095_vm7  ;;  %vm1124_vm11 = vcmp.ge.s32.totalorder %v1090_v1, 85  ;;  %vm1125_vm12 = vcmp.lt.s32.totalorder %v1090_v1, 93  ;;  %vm1115_vm13 = vcmp.eq.s32.totalorder %v1090_v1, 83 }
 0x37f   :  { %vm1126_vm14 = vmand %vm1124_vm11, %vm1125_vm12 }
 0x380   :  { %1629 = vmatpush3.bf16.msra.mxu0 %v1848_v17 }
 0x381   :  { %1630 = vmatprep.subr.bf16.mxu0 %v1725_v11 }
 0x384   :  { %1632 = vmatpush3.bf16.msra.mxu0 %v1858_v20 }
 0x385   :  { %1633 = vmatprep.subr.bf16.mxu0 %v1725_v11 }
 0x388   :  { %1635 = vmatpush3.bf16.msra.mxu0 %v1868_v23 }
 0x389   :  { %1636 = vmatprep.subr.bf16.mxu0 %v1725_v11 }
 0x38c   :  { %1638 = vmatpush3.bf16.msra.mxu0 %v1878_v26 }
 0x38d   :  { %1639 = vmatprep.subr.bf16.mxu0 %v1725_v11 }
 0x390   :  { %1641 = vmatpush3.bf16.msra.mxu0 %v1905_v36 }
 0x391   :  { %1642 = vmatprep.subr.bf16.mxu0 %v1725_v11 }
 0x44e   :  { %v484_v3 = vpop.f32.mrb[4].mxu0 }
 0x44f   :  { %v485_v5 = vadd.f32 %v1163_v2, %v484_v3  ;;  %v1420_v6 = vpop.f32.mrb[5].mxu0  ;;  %v1214_v3 = vld [vmem:[%s2117_s10] ss:$0 sm:$0xff] }
 0x450   :  { %v487_v7 = vpop.f32.mrb[6].mxu0 }
 0x451   :  { %vm490_vm4 = vcmp.ge.f32.partialorder %v485_v5, 0.0  ;;  %v491_v8 = vmul.f32 0.2, %v485_v5  ;;  %v1421_v9 = vpop.f32.mrb[7].mxu0 }
 0x453   :  { %v492_v10 = vsel %vm490_vm4, %v485_v5, %v491_v8 }
 0x454   :  { %1447 = vmatmul.mubr.msk.f32.vlgmr.msra.gmra.mrb[10].mxu1 %vm176_vm2, %v492_v10 }
 0x455   :  { %1488 = vmatprep.mubr.msk.bf16.mxu1 %vm1724_vm0, %v1723_v0  ;;  %1477 = vmatpush3.bf16.msra.mxu1 %v1695_v12 }
 0x456   :  { %1478 = vmatprep.subr.bf16.mxu1 %v1723_v0 }
 0x459   :  { %1479 = vmatpush3.bf16.msra.mxu1 %v1696_v19 }
 0x45a   :  { %1480 = vmatprep.subr.bf16.mxu1 %v1723_v0 }
 0x45d   :  { %1481 = vmatpush3.bf16.msra.mxu1 %v1697_v21 }
 0x45e   :  { %1482 = vmatprep.subr.bf16.mxu1 %v1723_v0 }
 0x461   :  { %1483 = vmatpush3.bf16.msra.mxu1 %v1698_v22 }
 0x462   :  { %1484 = vmatprep.subr.bf16.mxu1 %v1723_v0 }
 0x465   :  { %1485 = vmatpush3.bf16.msra.mxu1 %v1699_v24 }
 0x466   :  { %1486 = vmatprep.subr.bf16.mxu1 %v1723_v0 }
 0x469   :  { %1487 = vmatpush3.bf16.msra.mxu1 %v1700_v25 }
 0x46a   :  { %1660 = vmatprep.subr.bf16.mxu1 %v1725_v11 }
 0x527   :  { %v562_v13 = vpop.f32.mrb[10].mxu1 }
 0x528   :  { %v566_v14 = vsub.f32 %v492_v10, %v562_v13  ;;  %v1448_v16 = vpop.f32.mrb[11].mxu1 }
 0x52a   :  { %v567_v18 = vmul.f32 %v566_v14, %v566_v14 }
 0x52c   :  { %1474 = vmatmul.mubr.msk.f32.vlgmr.msra.gmra.mrb[2].mxu0 %vm176_vm2, %v567_v18 }
 0x52d   :  { %1644 = vmatpush3.bf16.msra.mxu0 %v1842_v15  ;;  %1516 = vmatprep.mubr.msk.f32.mxu0 %vm1724_vm0, %v1723_v0 }
 0x52e   :  { %1645 = vmatprep.subr.bf16.mxu0 %v1725_v11 }
 0x531   :  { %1647 = vmatpush3.bf16.msra.mxu0 %v1848_v17 }
 0x532   :  { %1648 = vmatprep.subr.bf16.mxu0 %v1725_v11 }
 0x535   :  { %1650 = vmatpush3.bf16.msra.mxu0 %v1858_v20 }
 0x536   :  { %1651 = vmatprep.subr.bf16.mxu0 %v1725_v11 }
 0x539   :  { %1653 = vmatpush3.bf16.msra.mxu0 %v1868_v23 }
 0x53a   :  { %1654 = vmatprep.subr.bf16.mxu0 %v1725_v11 }
 0x53d   :  { %1656 = vmatpush3.bf16.msra.mxu0 %v1878_v26 }
 0x53e   :  { %1657 = vmatprep.subr.bf16.mxu0 %v1725_v11 }
 0x541   :  { %1659 = vmatpush3.bf16.msra.mxu0 %v1905_v36 }
 0x542   :  { %1546 = vmatprep.subr.bf16.mxu0 %v1723_v0 }
 0x5ff   :  { %v637_v27 = vpop.f32.mrb[2].mxu0 }
 0x600   :  { %v638_v28 = vadd.f32 1e-05, %v637_v27  ;;  %v1475_v29 = vpop.f32.mrb[3].mxu0 }
 0x602   :  { %1711 = vrsqrt.f32 %v638_v28 }
 0x60c   :  { %v1712_v30 = vpop.eup %1711 }
 0x60d   :  { %v642_v32 = vmul.f32 %v1712_v30, %v566_v14 }
 0x60f   :  { %v651_v34 = vmul.f32 %v1174_v31, %v642_v32 }
 0x611   :  { %v660_v35 = vadd.f32 %v1176_v33, %v651_v34 }
 0x613   :  { %v661_v37 = vpack.c.bf16 %v660_v35, %v660_v35 }
 0x615   :  { %1489 = vmatmul.mubr.msk.bf16.vlgmr.msra.gmra.mrb[12].mxu1 %vm176_vm2, %v661_v37 }
 0x616   :  { %1662 = vmatpush3.bf16.msra.mxu1 %v1842_v15  ;;  %1543 = vmatprep.mubr.msk.f32.mxu1 %vm1724_vm0, %v1723_v0  ;;  %v1190_v15 = vld [vmem:[%s2112_s4 + $0x2] ss:$0 sm:$0xff] }
 0x617   :  { %1663 = vmatprep.subr.bf16.mxu1 %v1725_v11 }
 0x61a   :  { %1665 = vmatpush3.bf16.msra.mxu1 %v1848_v17 }
 0x61b   :  { %1666 = vmatprep.subr.bf16.mxu1 %v1725_v11 }
 0x61e   :  { %1668 = vmatpush3.bf16.msra.mxu1 %v1858_v20 }
 0x61f   :  { %1669 = vmatprep.subr.bf16.mxu1 %v1725_v11 }
 0x622   :  { %1671 = vmatpush3.bf16.msra.mxu1 %v1868_v23 }
 0x623   :  { %1672 = vmatprep.subr.bf16.mxu1 %v1725_v11 }
 0x626   :  { %1674 = vmatpush3.bf16.msra.mxu1 %v1878_v26  ;;  %v1702_v26 = vld [vmem:[%s2115_s9 + $0x8] sm:$0xff]  }
 0x627   :  { %1675 = vmatprep.subr.bf16.mxu1 %v1725_v11  ;;  %v1701_v11 = vld [vmem:[%s2115_s9] sm:$0xff]  }
 0x62a   :  { %1677 = vmatpush3.bf16.msra.mxu1 %v1905_v36  ;;  %v1703_v36 = vld [vmem:[%s2116_s8] sm:$0xff]  }
 0x6e8   :  { %v756_v17 = vpop.f32.mrb[12].mxu1 }
 0x6e9   :  { %v757_v38 = vadd.f32 %v1190_v15, %v756_v17  ;;  %v1490_v39 = vpop.f32.mrb[13].mxu1 }
 0x6ea   :  { %v759_v20 = vpop.f32.mrb[14].mxu1 }
 0x6eb   :  { %vm762_vm5 = vcmp.ge.f32.partialorder %v757_v38, 0.0  ;;  %v763_v40 = vmul.f32 0.2, %v757_v38  ;;  %v1491_v41 = vpop.f32.mrb[15].mxu1 }
 0x6ed   :  { %v764_v23 = vsel %vm762_vm5, %v757_v38, %v763_v40 }
 0x6ee   :  { %1517 = vmatmul.mubr.msk.f32.vlgmr.msra.gmra.mrb[8].mxu0 %vm176_vm2, %v764_v23 }
 0x6ef   :  { %1550 = vmatprep.mubr.msk.bf16.mxu0 %vm1724_vm0, %v1723_v0  ;;  %1547 = vmatpush3.bf16.msra.mxu0 %v1701_v11 }
 0x6f0   :  { %1548 = vmatprep.subr.bf16.mxu0 %v1723_v0 }
 0x6f3   :  { %1549 = vmatpush3.bf16.msra.mxu0 %v1702_v26 }
 0x6f4   :  { %1554 = vmatprep.subr.bf16.mxu0 %v1723_v0 }
 0x6f6   :  { %1551 = vmatmul.mubr.msk.bf16.vlgmr.msra.gmra.mrb[12].mxu0 %vm76_vm1, %v1801_v4  ;;  %v1705_v4 = vld [vmem:[%s2116_s8 + $0x10] sm:$0xff]  }
 0x6f7   :  { %1555 = vmatpush3.bf16.msra.mxu0 %v1703_v36  ;;  %1566 = vmatprep.mubr.msk.bf16.mxu0 %vm1724_vm0, %v1723_v0 }
 0x6f8   :  { %1556 = vmatprep.subr.bf16.mxu0 %v1723_v0 }
 0x6fb   :  { %1557 = vmatpush3.bf16.msra.mxu0 %v1704_v46 }
 0x6fc   :  { %1558 = vmatprep.subr.bf16.mxu0 %v1723_v0 }
 0x6ff   :  { %1559 = vmatpush3.bf16.msra.mxu0 %v1705_v4 }
 0x700   :  { %1560 = vmatprep.subr.bf16.mxu0 %v1723_v0 }
 0x703   :  { %1561 = vmatpush3.bf16.msra.mxu0 %v1706_v47 }
 0x704   :  { %1562 = vmatprep.subr.bf16.mxu0 %v1723_v0 }
 0x707   :  { %1563 = vmatpush3.bf16.msra.mxu0 %v1707_v48 }
 0x708   :  { %1564 = vmatprep.subr.bf16.mxu0 %v1723_v0  ;;  %v1203_v0 = vld [vmem:[%s2114_s6 + $0x2] ss:$0 sm:$0xff] }
 0x70b   :  { %1565 = vmatpush3.bf16.msra.mxu0 %v1708_v49 }
 0x7c1   :  { %v834_v42 = vpop.f32.mrb[8].mxu0 }
 0x7c2   :  { %v838_v43 = vsub.f32 %v764_v23, %v834_v42  ;;  %v1518_v44 = vpop.f32.mrb[9].mxu0 }
 0x7c4   :  { %v839_v45 = vmul.f32 %v838_v43, %v838_v43 }
 0x7c6   :  { %1544 = vmatmul.mubr.msk.f32.vlgmr.msra.gmra.mrb[16].mxu1 %vm176_vm2, %v839_v45 }
 0x7c9   :  { %v996_v50 = vpop.f32.mrb[12].mxu0 }
 0x7ca   :  { %v1552_v51 = vpop.f32.mrb[13].mxu0 }
 0x7cb   :  { %v999_v52 = vpop.f32.mrb[14].mxu0 }
 0x7cc   :  { %v1553_v53 = vpop.f32.mrb[15].mxu0 }
 0x899   :  { %v909_v54 = vpop.f32.mrb[16].mxu1 }
 0x89a   :  { %v910_v55 = vadd.f32 1e-05, %v909_v54  ;;  %v1545_v56 = vpop.f32.mrb[17].mxu1 }
 0x89c   :  { %1713 = vrsqrt.f32 %v910_v55 }
 0x8a6   :  { %v1714_v57 = vpop.eup %1713 }
 0x8a7   :  { %v914_v59 = vmul.f32 %v1714_v57, %v838_v43 }
 0x8a9   :  { %v923_v60 = vmul.f32 %v1201_v58, %v914_v59 }
 0x8ab   :  { %v932_v61 = vadd.f32 %v1203_v0, %v923_v60 }
 0x8ad   :  { %v933_v62 = vpack.c.bf16 %v932_v61, %v932_v61 }
 0x8af   :  { %1567 = vmatmul.mubr.msk.bf16.vlgmr.msra.gmra.mrb[16].mxu0 %vm176_vm2, %v933_v62 }
 0x982   :  { %v1075_v2 = vpop.f32.mrb[16].mxu0 }
 0x983   :  { %v1076_v5 = vadd.f32 %v1075_v2, %v996_v50  ;;  %v1568_v6 = vpop.f32.mrb[17].mxu0 }
 0x984   :  { %v1078_v7 = vpop.f32.mrb[18].mxu0 }
 0x985   :  { %v1088_v9 = vadd.f32 %v1214_v3, %v1076_v5  ;;  %v1569_v10 = vpop.f32.mrb[19].mxu0 }
 0x987   :  { %v1108_v12 = vsel %vm1107_vm8, %v1088_v9, 0.0  ;;  %v1097_v13 = vsel %vm2094_vm9, %v1088_v9, -1e+30  ;;  %v1215_v24 = vmul.f32 -1.442695, %v1088_v9  ;;  %v1092_v30 = vmax.f32 %v1088_v9, 0.0 }
 0x988   :  { %1109 = vadd.xlane.f32.xlu1 %v1108_v12  ;;  %1098 = vmax.xlane.f32.xlu0 %v1097_v13 }
 0x989   :  { %v1093_v37 = vsel %vm1091_vm10, %v1092_v30, %v1088_v9 }
 0xa15   :  { %v1099_v14 = vpop.xlane.xlu0 %1098  ;;  %v1110_v31 = vpop.xlane.xlu1 %1109 }
 0xa16   :  { %v1100_v16 = vsub.f32 %v1088_v9, %v1099_v14 }
 0xa18   :  { %v1101_v18 = vmin.f32 %v1100_v16, 0.0 }
 0xa1a   :  { %v1102_v19 = vmul.f32 1.442695, %v1101_v18 }
 0xa1c   :  { %1715 = vpow2.f32 %v1102_v19 }
 0xa1d   :  { %1717 = vpow2.f32 %v1215_v24 }
 0xa26   :  { %v1716_v21 = vpop.eup %1715 }
 0xa27   :  { %v1104_v22 = vsel %vm2094_vm9, %v1716_v21, 0.0  ;;  %v1718_v25 = vpop.eup %1717 }
 0xa28   :  { %1105 = vadd.xlane.f32.xlu0 %v1104_v22  ;;  %v1119_v27 = vadd.f32 1.0, %v1718_v25 }
 0xab5   :  { %v1106_v28 = vpop.xlane.xlu0 %1105 }
 0xab6   :  { %1719 = vrcp.f32 %v1106_v28 }
 0xab7   :  { %1721 = vrcp.f32 %v1119_v27 }
 0xac0   :  { %v1720_v29 = vpop.eup %1719 }
 0xac1   :  { %v1722_v32 = vpop.eup %1721  ;;  %v1112_v33 = vmul.f32 %v1720_v29, %v1110_v31 }
 0xac2   :  { %v1122_v35 = vmul.f32 0.01, %v1722_v32  ;;  %v1127_v15 = vmul.f32 %v1722_v32, %v1722_v32 }
 0xac3   :  { %v1113_v34 = vmul.f32 %v1112_v33, %v1104_v22 }
 0xac5   :  { %v1114_v17 = vsel %vm2094_vm9, %v1113_v34, %v1093_v37 }
 0xac6   :  { %v1123_v38 = vsel %vm1115_vm13, %v1122_v35, %v1114_v17 }
 0xac7   :  { %v1128_v39 = vsel %vm1126_vm14, %v1127_v15, %v1123_v38 }
 0xac8   :  { %1129 = vst [vmem:[%s2118_s11] sm:$0xff] %v1128_v39 }

// kernel: model_forward.6
= control target key start
LH: loop header
LB: loop body
LE: loop exit
PB: predicated region body
PF: predicated region fallthrough
CT: control target
= control target key end

     0   :  { %s7283_s25 = smov 0   ;;  %s8349_s0 = inlined_call_operand.vmem [shape: f32[2,32,64], index: 0, kind: input, shape index: {}]   ;;  %s8350_s1 = inlined_call_operand.vmem [shape: bf16[5,3,32,32], index: 1, kind: input, shape index: {}]   ;;  %s8351_s2 = inlined_call_operand.vmem [shape: bf16[5,192,64], index: 2, kind: input, shape index: {}]   ;;  %s8352_s3 = inlined_call_operand.vmem [shape: f32[5,1,64], index: 3, kind: input, shape index: {}]   ;;  %s8353_s4 = inlined_call_operand.vmem [shape: f32[5,1,64], index: 4, kind: input, shape index: {}]   ;;  %s8354_s5 = inlined_call_operand.vmem [shape: f32[5,1,64], index: 5, kind: input, shape index: {}]   ;;  %s8355_s6 = inlined_call_operand.vmem [shape: bf16[5,4,32,32], index: 6, kind: input, shape index: {}]   ;;  %s8356_s7 = inlined_call_operand.vmem [shape: bf16[5,256,64], index: 7, kind: input, shape index: {}]   ;;  %s8357_s8 = inlined_call_operand.vmem [shape: f32[5,1,64], index: 8, kind: input, shape index: {}]   ;;  %s8358_s9 = inlined_call_operand.vmem [shape: f32[5,1,64], index: 9, kind: input, shape index: {}]   ;;  %s8359_s10 = inlined_call_operand.vmem [shape: f32[5,1,64], index: 10, kind: input, shape index: {}]   ;;  %s8360_s11 = inlined_call_operand.vmem [shape: bf16[64,256], index: 11, kind: input, shape index: {}]   ;;  %s8361_s12 = inlined_call_operand.vmem [shape: f32[1,256], index: 12, kind: input, shape index: {}]   ;;  %s8362_s13 = inlined_call_operand.vmem [shape: f32[2,32,256], index: 13, kind: output, shape index: {}]  }
   0x1 LB: > { %s5538_s26 = sadd.s32 4294967295, %s7209_s25   ;;  %p5542_p0 = scmp.ge.s32.totalorder %s7209_s25, 1  ;;  %s7209_s25 = sphi %s7283_s25, %s23_s25  }
   0x2   : > { %p387_p1 = scmp.lt.s32.totalorder %s7209_s25, 3 }
   0x4   : > { %p388_p2 = pnand %p5542_p0, %p387_p1 }
   0x5   : > { %p431_p3 = scmp.lt.s32.totalorder (!%p388_p2), %s5538_s26, 1  ;;  %vm462_vm0 = vcmask (!%p388_p2), 261120   ;;  %v6981_v0 = vld [vmem:[%s8350_s1 + $0x10] sm:$0xff] (!%p388_p2)   ;;  %v6983_v1 = vld [vmem:[%s8350_s1] sm:$0xff] (!%p388_p2)   ;;  %v6982_v8 = vld [vmem:[%s8350_s1 + $0x18] sm:$0xff] (!%p388_p2)   ;;  %v7211_v13 = vmov (!%p388_p2), 0  }
   0x6   : > { %391 = sbr.rel (%p388_p2) target bundleno = 6144 (0x1800), region = 72  ;;  %6553 = vmatprep.mubr.msk.bf16.mxu1 (!%p388_p2), %vm462_vm0, %v6981_v0  ;;  %6545 = vmatprep.mubr.msk.bf16.mxu0 (!%p388_p2), %vm462_vm0, %v6983_v1  ;;  %v6984_v9 = vld [vmem:[%s8350_s1 + $0x8] sm:$0xff] (!%p388_p2)   ;;  %v6985_v10 = vld [vmem:[%s8350_s1 + $0x20] sm:$0xff] (!%p388_p2)   ;;  %v6989_v15 = vld [vmem:[%s8351_s2 + $0x10] sm:$0xff] (!%p388_p2)   ;;  %s7212_s20 = smov (!%p388_p2), 64   ;;  %vm674_vm1 = vcmask (!%p388_p2), 523264  }
   0x7   : > { %v6986_v11 = vld [vmem:[%s8350_s1 + $0x28] sm:$0xff] (!%p388_p2)   ;;  %v6987_v12 = vld [vmem:[%s8351_s2] sm:$0xff] (!%p388_p2)   ;;  %v6990_v16 = vld [vmem:[%s8351_s2 + $0x18] sm:$0xff] (!%p388_p2)  }
   0x8   : > { %v6988_v14 = vld [vmem:[%s8351_s2 + $0x8] sm:$0xff] (!%p388_p2)   ;;  %v6991_v17 = vld [vmem:[%s8351_s2 + $0x20] sm:$0xff] (!%p388_p2)   ;;  %v6993_v19 = vld [vmem:[%s8351_s2 + $0x30] sm:$0xff] (!%p388_p2)  }
   0x9   : > { %v6992_v18 = vld [vmem:[%s8351_s2 + $0x28] sm:$0xff] (!%p388_p2)   ;;  %v6994_v20 = vld [vmem:[%s8351_s2 + $0x38] sm:$0xff] (!%p388_p2)   ;;  %v6995_v21 = vld [vmem:[%s8351_s2 + $0x40] sm:$0xff] (!%p388_p2)  }
   0xa   : > { %v6996_v22 = vld [vmem:[%s8351_s2 + $0x48] sm:$0xff] (!%p388_p2)   ;;  %v6997_v23 = vld [vmem:[%s8351_s2 + $0x50] sm:$0xff] (!%p388_p2)   ;;  %v6998_v24 = vld [vmem:[%s8351_s2 + $0x58] sm:$0xff] (!%p388_p2)  }
   0xb   : > { %v6999_v53 = vld [vmem:[%s8350_s1 + $0x30] sm:$0xff] (!%p388_p2)   ;;  %v5567_v54 = vld [vmem:[%s8352_s3] ss:$0 sm:$0xff] (!%p388_p2) }
   0xc   : > { %v5582_v60 = vld [vmem:[%s8353_s4] ss:$0 sm:$0xff] (!%p388_p2) }
   0xd   : > { %s8364_s26 = smov (!%p431_p3, %s5538_s26), 1 }
   0xe   : > { %s6259_s14 = sshll.u32 %s8364_s26, 5  ;;  %s6260_s18 = sshll.u32 %s8364_s26, 6 }
   0xf   : > { %s435_s17 = scalar_lea.vmem %s8349_s0, %s6259_s14  ;;  %s440_s22 = scalar_lea.vmem %s8362_s13, %s6260_s18 }
  0x10   : > { %v442_v2 = vld [vmem:[%s435_s17] sm:$0xff]  ;;  %v443_v3 = vld [vmem:[%s435_s17 + $0x8] sm:$0xff]  ;;  %v444_v4 = vld [vmem:[%s435_s17 + $0x10] sm:$0xff] }
  0x11   : > { %v446_v5 = vpack.c.bf16 %v443_v3, %v442_v2  ;;  %v445_v6 = vld [vmem:[%s435_s17 + $0x18] sm:$0xff]  ;;  %v5583_v2 = vld [vmem:[%s8354_s5] ss:$0 sm:$0xff] }
  0x12   : > { %v447_v7 = vpack.c.bf16 %v445_v6, %v444_v4 }
  0x13   : > { %6549 = vmatprep.subr.bf16.mxu1 %v446_v5  ;;  %6541 = vmatprep.subr.bf16.mxu0 %v446_v5 }
  0x14   : > { %6550 = vmatpush3.bf16.msra.mxu1 %v446_v5  ;;  %6542 = vmatpush3.bf16.msra.mxu0 %v446_v5 }
  0x15   : > { %6551 = vmatprep.subr.bf16.mxu1 %v447_v7  ;;  %6543 = vmatprep.subr.bf16.mxu0 %v447_v7 }
  0x18   : > { %6552 = vmatpush3.bf16.msra.mxu1 %v447_v7  ;;  %6544 = vmatpush3.bf16.msra.mxu0 %v447_v7 }
  0x19   : > { %6557 = vmatprep.subr.bf16.mxu0 %v446_v5  ;;  %792 = vmatprep.subr.bf16.mxu1 %v7211_v13 }
  0x1b   : > { %6554 = vmatmul.mubr.msk.bf16.vlgmr.msra.gmra.mrb[0].mxu1 %vm462_vm0, %v6982_v8  ;;  %6546 = vmatmul.mubr.msk.bf16.vlgmr.msra.gmra.mrb[0].mxu0 %vm462_vm0, %v6984_v9 }
  0x1c   : > { %6558 = vmatpush3.bf16.msra.mxu0 %v446_v5  ;;  %6561 = vmatprep.mubr.msk.bf16.mxu0 %vm462_vm0, %v6985_v10 }
  0x1d   : > { %6559 = vmatprep.subr.bf16.mxu0 %v447_v7  ;;  %793 = vmatpush1.bf16.msra.mxu1 %v6987_v12 }
  0x1e   : > { %794 = vmatprep.subr.bf16.mxu1 %v7211_v13 }
  0x20   : > { %6560 = vmatpush3.bf16.msra.mxu0 %v447_v7 }
  0x21   : > { %795 = vmatpush1.bf16.msra.mxu1 %v6988_v14 }
  0x22   : > { %796 = vmatprep.subr.bf16.mxu1 %v7211_v13 }
  0x23   : > { %6562 = vmatmul.mubr.msk.bf16.vlgmr.msra.gmra.mrb[4].mxu0 %vm462_vm0, %v6986_v11 }
  0x24   : > { %6569 = vmatprep.mubr.msk.bf16.mxu0 %vm462_vm0, %v6999_v53 }
  0x25   : > { %797 = vmatpush1.bf16.msra.mxu1 %v6989_v15 }
  0x26   : > { %798 = vmatprep.subr.bf16.mxu1 %v7211_v13 }
  0x29   : > { %799 = vmatpush1.bf16.msra.mxu1 %v6990_v16 }
  0x2a   : > { %800 = vmatprep.subr.bf16.mxu1 %v7211_v13 }
  0x2d   : > { %801 = vmatpush1.bf16.msra.mxu1 %v6991_v17 }
  0x2e   : > { %802 = vmatprep.subr.bf16.mxu1 %v7211_v13 }
  0x31   : > { %803 = vmatpush1.bf16.msra.mxu1 %v6992_v18 }
  0x32   : > { %804 = vmatprep.subr.bf16.mxu1 %v7211_v13 }
  0x35   : > { %805 = vmatpush1.bf16.msra.mxu1 %v6993_v19 }
  0x36   : > { %806 = vmatprep.subr.bf16.mxu1 %v7211_v13 }
  0x39   : > { %807 = vmatpush1.bf16.msra.mxu1 %v6994_v20 }
  0x3a   : > { %808 = vmatprep.subr.bf16.mxu1 %v7211_v13 }
  0x3d   : > { %809 = vmatpush1.bf16.msra.mxu1 %v6995_v21 }
  0x3e   : > { %810 = vmatprep.subr.bf16.mxu1 %v7211_v13 }
  0x41   : > { %811 = vmatpush1.bf16.msra.mxu1 %v6996_v22 }
  0x42   : > { %812 = vmatprep.subr.bf16.mxu1 %v7211_v13 }
  0x45   : > { %813 = vmatpush1.bf16.msra.mxu1 %v6997_v23 }
  0x46   : > { %814 = vmatprep.subr.bf16.mxu1 %v7211_v13 }
  0x49   : > { %815 = vmatpush1.bf16.msra.mxu1 %v6998_v24  ;;  %v7000_v24 = vld [vmem:[%s8350_s1 + $0x38] sm:$0xff]  }
  0xee   : > { %v6555_v25 = vpop.f32.mrb[0].mxu1  ;;  %v6547_v26 = vpop.f32.mrb[0].mxu0 }
  0xef   : > { %v573_v27 = vpop.f32.mrb[1].mxu1  ;;  %v503_v28 = vpop.f32.mrb[1].mxu0 }
  0xf0   : > { %v6556_v29 = vpop.f32.mrb[2].mxu1  ;;  %v6548_v30 = vpop.f32.mrb[2].mxu0 }
  0xf1   : > { %v6836_v31 = vpack.i.bf16 %v6556_v29, %v6555_v25  ;;  %v576_v32 = vpop.f32.mrb[3].mxu1  ;;  %v506_v33 = vpop.f32.mrb[3].mxu0  ;;  %v7001_v25 = vld [vmem:[%s8350_s1 + $0x40] sm:$0xff]  }
  0xf2   : > { %v6831_v34 = vpack.i.bf16 %v576_v32, %v573_v27  ;;  %v7003_v27 = vld [vmem:[%s8350_s1 + $0x50] sm:$0xff]   ;;  %v7005_v29 = vld [vmem:[%s8351_s2 + $0x60] sm:$0xff]   ;;  %v7008_v32 = vld [vmem:[%s8351_s2 + $0x78] sm:$0xff]  }
  0xf4   : > { %6832 = vrot.lane.b32.xlu0 %v6831_v34, %s7212_s20  ;;  %v7010_v34 = vld [vmem:[%s8351_s2 + $0x88] sm:$0xff]  }
  0xf6   : > { %v6563_v35 = vpop.f32.mrb[4].mxu0 }
  0xf7   : > { %v643_v36 = vpop.f32.mrb[5].mxu0 }
  0xf8   : > { %6837 = vrot.lane.b32.xlu0 %v6836_v31, %s7212_s20  ;;  %v6564_v37 = vpop.f32.mrb[6].mxu0  ;;  %v7007_v31 = vld [vmem:[%s8351_s2 + $0x70] sm:$0xff]  }
  0xf9   : > { %v682_v38 = vpack.c.bf16 %v6564_v37, %v6563_v35  ;;  %v646_v39 = vpop.f32.mrb[7].mxu0  ;;  %v7011_v35 = vld [vmem:[%s8351_s2 + $0x90] sm:$0xff]   ;;  %v7013_v37 = vld [vmem:[%s8351_s2 + $0xa0] sm:$0xff]  }
  0xfa   : > { %v680_v40 = vpack.c.bf16 %v646_v39, %v643_v36  ;;  %v7012_v36 = vld [vmem:[%s8351_s2 + $0x98] sm:$0xff]   ;;  %v7015_v39 = vld [vmem:[%s8351_s2 + $0xb0] sm:$0xff]  }
  0xfc   : > { %5580 = vmatprep.mubr.msk.bf16.mxu1 %vm674_vm1, %v680_v40 }
 0x166   : > { %v6833_v41 = vpop.permute.xlu0 %6832 }
 0x167   : > { %v6835_v42 = vunpack.i.h.bf16 %v6833_v41  ;;  %v6834_v43 = vunpack.i.l.bf16 %v6833_v41 }
 0x169   : > { %v675_v44 = vsel %vm674_vm1, %v503_v28, %v6834_v43  ;;  %v676_v45 = vsel %vm674_vm1, %v506_v33, %v6835_v42  ;;  %v7004_v28 = vld [vmem:[%s8350_s1 + $0x58] sm:$0xff]   ;;  %v7009_v33 = vld [vmem:[%s8351_s2 + $0x80] sm:$0xff]  }
 0x16a   : > { %v679_v46 = vpack.c.bf16 %v676_v45, %v675_v44  ;;  %v6838_v47 = vpop.permute.xlu0 %6837  ;;  %v7016_v42 = vld [vmem:[%s8351_s2 + $0xb8] sm:$0xff]  }
 0x16b   : > { %v6840_v48 = vunpack.i.h.bf16 %v6838_v47  ;;  %v6839_v49 = vunpack.i.l.bf16 %v6838_v47 }
 0x16c   : > { %825 = vmatmul.mubr.bf16.vlgmr.msra.gmra.mrb[4].mxu1 %v679_v46 }
 0x16d   : > { %5581 = vmatprep.mubr.msk.bf16.mxu1 %vm674_vm1, %v682_v38  ;;  %v677_v50 = vsel %vm674_vm1, %v6547_v26, %v6839_v49  ;;  %v678_v51 = vsel %vm674_vm1, %v6548_v30, %v6840_v48  ;;  %v7002_v26 = vld [vmem:[%s8350_s1 + $0x48] sm:$0xff]  }
 0x16e   : > { %v681_v52 = vpack.c.bf16 %v678_v51, %v677_v50  ;;  %v7006_v30 = vld [vmem:[%s8351_s2 + $0x68] sm:$0xff]  }
 0x16f   : > { %v7014_v38 = vld [vmem:[%s8351_s2 + $0xa8] sm:$0xff]  }
 0x174   : > { %833 = vmatmul.mubr.bf16.gmra.mrb[8].mxu1 %v681_v52 }
 0x23f   : > { %v826_v55 = vpop.f32.mrb[4].mxu1 }
 0x240   : > { %v827_v56 = vadd.f32 %v5567_v54, %v826_v55  ;;  %v828_v57 = vpop.f32.mrb[5].mxu1 }
 0x241   : > { %v829_v58 = vpop.f32.mrb[6].mxu1 }
 0x242   : > { %vm841_vm2 = vcmp.ge.f32.partialorder %v827_v56, 0.0  ;;  %v845_v59 = vmul.f32 0.2, %v827_v56  ;;  %v830_v61 = vadd.f32 %v5567_v54, %v829_v58  ;;  %v831_v62 = vpop.f32.mrb[7].mxu1 }
 0x244   : > { %v849_v63 = vsel %vm841_vm2, %v827_v56, %v845_v59  ;;  %vm842_vm3 = vcmp.ge.f32.partialorder %v830_v61, 0.0  ;;  %v846_v0 = vmul.f32 0.2, %v830_v61 }
 0x245   : > { %v860_v1 = vmul.f32 %v5582_v60, %v849_v63 }
 0x246   : > { %v850_v3 = vsel %vm842_vm3, %v830_v61, %v846_v0 }
 0x247   : > { %v861_v4 = vmul.f32 %v5582_v60, %v850_v3  ;;  %v834_v5 = vpop.f32.mrb[8].mxu1  ;;  %v7390_v8 = vadd.f32 %v5583_v2, %v860_v1 }
 0x248   : > { %v835_v6 = vadd.f32 %v5567_v54, %v834_v5  ;;  %v836_v7 = vpop.f32.mrb[9].mxu1  ;;  %v7017_v5 = vld [vmem:[%s8350_s1 + $0x60] sm:$0xff]  }
 0x249   : > { %v7392_v9 = vadd.f32 %v5583_v2, %v861_v4  ;;  %v837_v10 = vpop.f32.mrb[10].mxu1  ;;  %6593 = vmatprep.mubr.msk.bf16.mxu1 %vm462_vm0, %v7017_v5 }
 0x24a   : > { %vm843_vm4 = vcmp.ge.f32.partialorder %v835_v6, 0.0  ;;  %v847_v11 = vmul.f32 0.2, %v835_v6  ;;  %v838_v12 = vadd.f32 %v5567_v54, %v837_v10  ;;  %v839_v14 = vpop.f32.mrb[11].mxu1 }
 0x24b   : > { %v875_v15 = vpack.c.bf16 %v7392_v9, %v7390_v8 }
 0x24c   : > { %v851_v16 = vsel %vm843_vm4, %v835_v6, %v847_v11  ;;  %vm844_vm5 = vcmp.ge.f32.partialorder %v838_v12, 0.0  ;;  %v848_v17 = vmul.f32 0.2, %v838_v12  ;;  %v5633_v6 = vld [vmem:[%s8352_s3 + $0x1] ss:$0 sm:$0xff] }
 0x24d   : > { %v862_v18 = vmul.f32 %v5582_v60, %v851_v16  ;;  %6565 = vmatprep.subr.bf16.mxu0 %v875_v15 }
 0x24e   : > { %v852_v19 = vsel %vm844_vm5, %v838_v12, %v848_v17  ;;  %6566 = vmatpush3.bf16.msra.mxu0 %v875_v15 }
 0x24f   : > { %v863_v20 = vmul.f32 %v5582_v60, %v852_v19  ;;  %v7396_v21 = vadd.f32 %v5583_v2, %v862_v18 }
 0x251   : > { %v7398_v22 = vadd.f32 %v5583_v2, %v863_v20 }
 0x253   : > { %v876_v23 = vpack.c.bf16 %v7398_v22, %v7396_v21 }
 0x255   : > { %6567 = vmatprep.subr.bf16.mxu0 %v876_v23 }
 0x256   : > { %6568 = vmatpush3.bf16.msra.mxu0 %v876_v23 }
 0x257   : > { %6573 = vmatprep.subr.bf16.mxu0 %v875_v15 }
 0x259   : > { %6570 = vmatmul.mubr.msk.bf16.vlgmr.msra.gmra.mrb[8].mxu0 %vm462_vm0, %v7000_v24 }
 0x25a   : > { %6574 = vmatpush3.bf16.msra.mxu0 %v875_v15  ;;  %6577 = vmatprep.mubr.msk.bf16.mxu0 %vm462_vm0, %v7001_v25 }
 0x25b   : > { %6575 = vmatprep.subr.bf16.mxu0 %v876_v23 }
 0x25e   : > { %6576 = vmatpush3.bf16.msra.mxu0 %v876_v23 }
 0x25f   : > { %6581 = vmatprep.subr.bf16.mxu0 %v875_v15 }
 0x261   : > { %6578 = vmatmul.mubr.msk.bf16.vlgmr.msra.gmra.mrb[12].mxu0 %vm462_vm0, %v7002_v26 }
 0x262   : > { %6582 = vmatpush3.bf16.msra.mxu0 %v875_v15  ;;  %6585 = vmatprep.mubr.msk.bf16.mxu0 %vm462_vm0, %v7003_v27  ;;  %v5649_v15 = vld [vmem:[%s8353_s4 + $0x1] ss:$0 sm:$0xff] }
 0x263   : > { %6583 = vmatprep.subr.bf16.mxu0 %v876_v23 }
 0x266   : > { %6584 = vmatpush3.bf16.msra.mxu0 %v876_v23  ;;  %v5651_v23 = vld [vmem:[%s8354_s5 + $0x1] ss:$0 sm:$0xff] }
 0x267   : > { %1222 = vmatprep.subr.bf16.mxu0 %v7211_v13 }
 0x269   : > { %6586 = vmatmul.mubr.msk.bf16.vlgmr.msra.gmra.mrb[16].mxu0 %vm462_vm0, %v7004_v28 }
 0x26a   : > { %1223 = vmatpush1.bf16.msra.mxu0 %v7005_v29 }
 0x26b   : > { %1224 = vmatprep.subr.bf16.mxu0 %v7211_v13 }
 0x26e   : > { %1225 = vmatpush1.bf16.msra.mxu0 %v7006_v30 }
 0x26f   : > { %1226 = vmatprep.subr.bf16.mxu0 %v7211_v13 }
 0x272   : > { %1227 = vmatpush1.bf16.msra.mxu0 %v7007_v31 }
 0x273   : > { %1228 = vmatprep.subr.bf16.mxu0 %v7211_v13 }
 0x276   : > { %1229 = vmatpush1.bf16.msra.mxu0 %v7008_v32 }
 0x277   : > { %1230 = vmatprep.subr.bf16.mxu0 %v7211_v13 }
 0x27a   : > { %1231 = vmatpush1.bf16.msra.mxu0 %v7009_v33 }
 0x27b   : > { %1232 = vmatprep.subr.bf16.mxu0 %v7211_v13 }
 0x27e   : > { %1233 = vmatpush1.bf16.msra.mxu0 %v7010_v34 }
 0x27f   : > { %1234 = vmatprep.subr.bf16.mxu0 %v7211_v13 }
 0x282   : > { %1235 = vmatpush1.bf16.msra.mxu0 %v7011_v35 }
 0x283   : > { %1236 = vmatprep.subr.bf16.mxu0 %v7211_v13 }
 0x286   : > { %1237 = vmatpush1.bf16.msra.mxu0 %v7012_v36 }
 0x287   : > { %1238 = vmatprep.subr.bf16.mxu0 %v7211_v13 }
 0x28a   : > { %1239 = vmatpush1.bf16.msra.mxu0 %v7013_v37 }
 0x28b   : > { %1240 = vmatprep.subr.bf16.mxu0 %v7211_v13 }
 0x28e   : > { %1241 = vmatpush1.bf16.msra.mxu0 %v7014_v38 }
 0x28f   : > { %1242 = vmatprep.subr.bf16.mxu0 %v7211_v13 }
 0x292   : > { %1243 = vmatpush1.bf16.msra.mxu0 %v7015_v39 }
 0x293   : > { %1244 = vmatprep.subr.bf16.mxu0 %v7211_v13 }
 0x296   : > { %1245 = vmatpush1.bf16.msra.mxu0 %v7016_v42 }
 0x297   : > { %1654 = vmatprep.subr.bf16.mxu0 %v7211_v13 }
 0x32c   : > { %v6571_v40 = vpop.f32.mrb[8].mxu0 }
 0x32d   : > { %v932_v41 = vpop.f32.mrb[9].mxu0 }
 0x32e   : > { %v6572_v43 = vpop.f32.mrb[10].mxu0 }
 0x32f   : > { %v935_v44 = vpop.f32.mrb[11].mxu0 }
 0x334   : > { %v6579_v45 = vpop.f32.mrb[12].mxu0 }
 0x335   : > { %v1002_v46 = vpop.f32.mrb[13].mxu0 }
 0x336   : > { %v6580_v47 = vpop.f32.mrb[14].mxu0 }
 0x337   : > { %v6846_v48 = vpack.i.bf16 %v6580_v47, %v6579_v45  ;;  %v1005_v49 = vpop.f32.mrb[15].mxu0  ;;  %v7019_v45 = vld [vmem:[%s8350_s1 + $0x70] sm:$0xff]   ;;  %v7021_v47 = vld [vmem:[%s8350_s1 + $0x80] sm:$0xff]  }
 0x338   : > { %v6841_v50 = vpack.i.bf16 %v1005_v49, %v1002_v46  ;;  %v7020_v46 = vld [vmem:[%s8350_s1 + $0x78] sm:$0xff]   ;;  %v7023_v49 = vld [vmem:[%s8351_s2 + $0xc0] sm:$0xff]  }
 0x33a   : > { %6842 = vrot.lane.b32.xlu1 %v6841_v50, %s7212_s20  ;;  %v7024_v50 = vld [vmem:[%s8351_s2 + $0xc8] sm:$0xff]  }
 0x33c   : > { %v6587_v51 = vpop.f32.mrb[16].mxu0 }
 0x33d   : > { %v1072_v52 = vpop.f32.mrb[17].mxu0 }
 0x33e   : > { %6847 = vrot.lane.b32.xlu1 %v6846_v48, %s7212_s20  ;;  %v6588_v53 = vpop.f32.mrb[18].mxu0  ;;  %v7022_v48 = vld [vmem:[%s8350_s1 + $0x88] sm:$0xff]  }
 0x33f   : > { %v1110_v54 = vpack.c.bf16 %v6588_v53, %v6587_v51  ;;  %v1075_v55 = vpop.f32.mrb[19].mxu0  ;;  %v7025_v51 = vld [vmem:[%s8351_s2 + $0xd0] sm:$0xff]   ;;  %v7027_v53 = vld [vmem:[%s8351_s2 + $0xe0] sm:$0xff]  }
 0x340   : > { %v1108_v56 = vpack.c.bf16 %v1075_v55, %v1072_v52  ;;  %v7026_v52 = vld [vmem:[%s8351_s2 + $0xd8] sm:$0xff]   ;;  %v7029_v55 = vld [vmem:[%s8351_s2 + $0xf0] sm:$0xff]  }
 0x342   : > { %5646 = vmatprep.mubr.msk.bf16.mxu0 %vm674_vm1, %v1108_v56  ;;  %v7030_v56 = vld [vmem:[%s8351_s2 + $0xf8] sm:$0xff]  }
 0x3ac   : > { %v6843_v57 = vpop.permute.xlu1 %6842 }
 0x3ad   : > { %v6845_v58 = vunpack.i.h.bf16 %v6843_v57  ;;  %v6844_v59 = vunpack.i.l.bf16 %v6843_v57  ;;  %v7031_v57 = vld [vmem:[%s8351_s2 + $0x100] sm:$0xff]  }
 0x3af   : > { %v1104_v60 = vsel %vm674_vm1, %v935_v44, %v6845_v58  ;;  %v1103_v61 = vsel %vm674_vm1, %v932_v41, %v6844_v59  ;;  %v7018_v44 = vld [vmem:[%s8350_s1 + $0x68] sm:$0xff]   ;;  %v7033_v59 = vld [vmem:[%s8351_s2 + $0x110] sm:$0xff]  }
 0x3b0   : > { %v1107_v62 = vpack.c.bf16 %v1104_v60, %v1103_v61  ;;  %v6848_v63 = vpop.permute.xlu1 %6847  ;;  %v7032_v58 = vld [vmem:[%s8351_s2 + $0x108] sm:$0xff]  }
 0x3b1   : > { %v6850_v0 = vunpack.i.h.bf16 %v6848_v63  ;;  %v6849_v1 = vunpack.i.l.bf16 %v6848_v63 }
 0x3b2   : > { %1255 = vmatmul.mubr.bf16.vlgmr.msra.gmra.mrb[20].mxu0 %v1107_v62  ;;  %v7034_v62 = vld [vmem:[%s8351_s2 + $0x118] sm:$0xff]  }
 0x3b3   : > { %5647 = vmatprep.mubr.msk.bf16.mxu0 %vm674_vm1, %v1110_v54  ;;  %v1105_v2 = vsel %vm674_vm1, %v6571_v40, %v6849_v1  ;;  %v1106_v3 = vsel %vm674_vm1, %v6572_v43, %v6850_v0  ;;  %1655 = vmatpush1.bf16.msra.mxu0 %v7023_v49  ;;  %v7028_v54 = vld [vmem:[%s8351_s2 + $0xe8] sm:$0xff]  }
 0x3b4   : > { %v1109_v4 = vpack.c.bf16 %v1106_v3, %v1105_v2  ;;  %1656 = vmatprep.subr.bf16.mxu0 %v7211_v13 }
 0x3b7   : > { %1657 = vmatpush1.bf16.msra.mxu0 %v7024_v50 }
 0x3b8   : > { %1658 = vmatprep.subr.bf16.mxu0 %v7211_v13 }
 0x3ba   : > { %1263 = vmatmul.mubr.bf16.gmra.mrb[24].mxu0 %v1109_v4 }
 0x3bb   : > { %1659 = vmatpush1.bf16.msra.mxu0 %v7025_v51 }
 0x3bc   : > { %1660 = vmatprep.subr.bf16.mxu0 %v7211_v13 }
 0x3bf   : > { %1661 = vmatpush1.bf16.msra.mxu0 %v7026_v52 }
 0x3c0   : > { %1662 = vmatprep.subr.bf16.mxu0 %v7211_v13 }
 0x3c3   : > { %1663 = vmatpush1.bf16.msra.mxu0 %v7027_v53 }
 0x3c4   : > { %1664 = vmatprep.subr.bf16.mxu0 %v7211_v13 }
 0x3c7   : > { %1665 = vmatpush1.bf16.msra.mxu0 %v7028_v54 }
 0x3c8   : > { %1666 = vmatprep.subr.bf16.mxu0 %v7211_v13 }
 0x3cb   : > { %1667 = vmatpush1.bf16.msra.mxu0 %v7029_v55 }
 0x3cc   : > { %1668 = vmatprep.subr.bf16.mxu0 %v7211_v13 }
 0x3cf   : > { %1669 = vmatpush1.bf16.msra.mxu0 %v7030_v56 }
 0x3d0   : > { %1670 = vmatprep.subr.bf16.mxu0 %v7211_v13 }
 0x3d3   : > { %1671 = vmatpush1.bf16.msra.mxu0 %v7031_v57 }
 0x3d4   : > { %1672 = vmatprep.subr.bf16.mxu0 %v7211_v13 }
 0x3d7   : > { %1673 = vmatpush1.bf16.msra.mxu0 %v7032_v58 }
 0x3d8   : > { %1674 = vmatprep.subr.bf16.mxu0 %v7211_v13 }
 0x3db   : > { %1675 = vmatpush1.bf16.msra.mxu0 %v7033_v59 }
 0x3dc   : > { %1676 = vmatprep.subr.bf16.mxu0 %v7211_v13 }
 0x3df   : > { %1677 = vmatpush1.bf16.msra.mxu0 %v7034_v62 }
 0x485   : > { %v1256_v7 = vpop.f32.mrb[20].mxu0 }
 0x486   : > { %v1257_v10 = vadd.f32 %v5633_v6, %v1256_v7  ;;  %v1258_v11 = vpop.f32.mrb[21].mxu0 }
 0x487   : > { %v1259_v12 = vpop.f32.mrb[22].mxu0 }
 0x488   : > { %vm1271_vm6 = vcmp.ge.f32.partialorder %v1257_v10, 0.0  ;;  %v1275_v14 = vmul.f32 0.2, %v1257_v10  ;;  %v1260_v16 = vadd.f32 %v5633_v6, %v1259_v12  ;;  %v1261_v17 = vpop.f32.mrb[23].mxu0 }
 0x48a   : > { %v1279_v18 = vsel %vm1271_vm6, %v1257_v10, %v1275_v14  ;;  %vm1272_vm7 = vcmp.ge.f32.partialorder %v1260_v16, 0.0  ;;  %v1276_v19 = vmul.f32 0.2, %v1260_v16 }
 0x48b   : > { %v1291_v20 = vmul.f32 %v5649_v15, %v1279_v18 }
 0x48c   : > { %v1280_v24 = vsel %vm1272_vm7, %v1260_v16, %v1276_v19 }
 0x48d   : > { %v1292_v25 = vmul.f32 %v5649_v15, %v1280_v24  ;;  %v1264_v26 = vpop.f32.mrb[24].mxu0  ;;  %v7492_v29 = vadd.f32 %v5651_v23, %v1291_v20 }
 0x48e   : > { %v1265_v27 = vadd.f32 %v5633_v6, %v1264_v26  ;;  %v1266_v28 = vpop.f32.mrb[25].mxu0 }
 0x48f   : > { %v7494_v30 = vadd.f32 %v5651_v23, %v1292_v25  ;;  %v1267_v31 = vpop.f32.mrb[26].mxu0 }
 0x490   : > { %vm1273_vm8 = vcmp.ge.f32.partialorder %v1265_v27, 0.0  ;;  %v1277_v32 = vmul.f32 0.2, %v1265_v27  ;;  %v1268_v33 = vadd.f32 %v5633_v6, %v1267_v31  ;;  %v1269_v34 = vpop.f32.mrb[27].mxu0 }
 0x491   : > { %v1307_v35 = vpack.c.bf16 %v7494_v30, %v7492_v29 }
 0x492   : > { %v1281_v36 = vsel %vm1273_vm8, %v1265_v27, %v1277_v32  ;;  %vm1274_vm9 = vcmp.ge.f32.partialorder %v1268_v33, 0.0  ;;  %v1278_v37 = vmul.f32 0.2, %v1268_v33  ;;  %v7035_v32 = vld [vmem:[%s8350_s1 + $0x90] sm:$0xff]  }
 0x493   : > { %v1293_v38 = vmul.f32 %v5649_v15, %v1281_v36  ;;  %6589 = vmatprep.subr.bf16.mxu1 %v1307_v35 }
 0x494   : > { %v1282_v39 = vsel %vm1274_vm9, %v1268_v33, %v1278_v37  ;;  %6590 = vmatpush3.bf16.msra.mxu1 %v1307_v35  ;;  %v5701_v33 = vld [vmem:[%s8352_s3 + $0x2] ss:$0 sm:$0xff] }
 0x495   : > { %v1294_v40 = vmul.f32 %v5649_v15, %v1282_v39  ;;  %v7498_v41 = vadd.f32 %v5651_v23, %v1293_v38  ;;  %v5717_v39 = vld [vmem:[%s8353_s4 + $0x2] ss:$0 sm:$0xff] }
 0x497   : > { %v7500_v42 = vadd.f32 %v5651_v23, %v1294_v40 }
 0x499   : > { %v1308_v43 = vpack.c.bf16 %v7500_v42, %v7498_v41 }
 0x49b   : > { %6591 = vmatprep.subr.bf16.mxu1 %v1308_v43 }
 0x49c   : > { %6592 = vmatpush3.bf16.msra.mxu1 %v1308_v43 }
 0x49d   : > { %6597 = vmatprep.subr.bf16.mxu1 %v1307_v35 }
 0x49f   : > { %6594 = vmatmul.mubr.msk.bf16.vlgmr.msra.gmra.mrb[12].mxu1 %vm462_vm0, %v7018_v44 }
 0x4a0   : > { %6598 = vmatpush3.bf16.msra.mxu1 %v1307_v35  ;;  %6601 = vmatprep.mubr.msk.bf16.mxu1 %vm462_vm0, %v7019_v45 }
 0x4a1   : > { %6599 = vmatprep.subr.bf16.mxu1 %v1308_v43 }
 0x4a4   : > { %6600 = vmatpush3.bf16.msra.mxu1 %v1308_v43 }
 0x4a5   : > { %6605 = vmatprep.subr.bf16.mxu1 %v1307_v35 }
 0x4a7   : > { %6602 = vmatmul.mubr.msk.bf16.vlgmr.msra.gmra.mrb[16].mxu1 %vm462_vm0, %v7020_v46 }
 0x4a8   : > { %6606 = vmatpush3.bf16.msra.mxu1 %v1307_v35  ;;  %6609 = vmatprep.mubr.msk.bf16.mxu1 %vm462_vm0, %v7021_v47  ;;  %v5719_v47 = vld [vmem:[%s8354_s5 + $0x2] ss:$0 sm:$0xff] }
 0x4a9   : > { %6607 = vmatprep.subr.bf16.mxu1 %v1308_v43 }
 0x4ac   : > { %6608 = vmatpush3.bf16.msra.mxu1 %v1308_v43 }
 0x4af   : > { %6610 = vmatmul.mubr.msk.bf16.vlgmr.msra.gmra.mrb[20].mxu1 %vm462_vm0, %v7022_v48 }
 0x4b0   : > { %6617 = vmatprep.mubr.msk.bf16.mxu1 %vm462_vm0, %v7035_v32 }
 0x572   : > { %v6595_v60 = vpop.f32.mrb[12].mxu1 }
 0x573   : > { %v1364_v61 = vpop.f32.mrb[13].mxu1 }
 0x574   : > { %v6596_v63 = vpop.f32.mrb[14].mxu1 }
 0x575   : > { %v1367_v0 = vpop.f32.mrb[15].mxu1 }
 0x57a   : > { %v6603_v1 = vpop.f32.mrb[16].mxu1 }
 0x57b   : > { %v1434_v2 = vpop.f32.mrb[17].mxu1 }
 0x57c   : > { %v6604_v3 = vpop.f32.mrb[18].mxu1 }
 0x57d   : > { %v6856_v4 = vpack.i.bf16 %v6604_v3, %v6603_v1  ;;  %v1437_v5 = vpop.f32.mrb[19].mxu1 }
 0x57e   : > { %v6851_v6 = vpack.i.bf16 %v1437_v5, %v1434_v2  ;;  %v7037_v5 = vld [vmem:[%s8350_s1 + $0xa0] sm:$0xff]  }
 0x57f   : > { %6857 = vrot.lane.b32.xlu1 %v6856_v4, %s7212_s20  ;;  %v7036_v4 = vld [vmem:[%s8350_s1 + $0x98] sm:$0xff]  }
 0x580   : > { %6852 = vrot.lane.b32.xlu0 %v6851_v6, %s7212_s20  ;;  %v7038_v6 = vld [vmem:[%s8350_s1 + $0xa8] sm:$0xff]  }
 0x582   : > { %v6611_v7 = vpop.f32.mrb[20].mxu1 }
 0x583   : > { %v1504_v10 = vpop.f32.mrb[21].mxu1 }
 0x584   : > { %v6612_v11 = vpop.f32.mrb[22].mxu1 }
 0x585   : > { %v1542_v12 = vpack.c.bf16 %v6612_v11, %v6611_v7  ;;  %v1507_v14 = vpop.f32.mrb[23].mxu1  ;;  %v7039_v7 = vld [vmem:[%s8350_s1 + $0xb0] sm:$0xff]   ;;  %v7041_v11 = vld [vmem:[%s8351_s2 + $0x120] sm:$0xff]  }
 0x586   : > { %v1540_v15 = vpack.c.bf16 %v1507_v14, %v1504_v10  ;;  %v7040_v10 = vld [vmem:[%s8350_s1 + $0xb8] sm:$0xff]   ;;  %v7043_v14 = vld [vmem:[%s8351_s2 + $0x130] sm:$0xff]  }
 0x588   : > { %5714 = vmatprep.mubr.msk.bf16.mxu0 %vm674_vm1, %v1540_v15  ;;  %v7044_v15 = vld [vmem:[%s8351_s2 + $0x138] sm:$0xff]  }
 0x5f1   : > { %v6858_v16 = vpop.permute.xlu1 %6857 }
 0x5f2   : > { %v6860_v17 = vunpack.i.h.bf16 %v6858_v16  ;;  %v6859_v18 = vunpack.i.l.bf16 %v6858_v16  ;;  %v6853_v19 = vpop.permute.xlu0 %6852  ;;  %v7045_v16 = vld [vmem:[%s8351_s2 + $0x140] sm:$0xff]  }
 0x5f3   : > { %v6855_v20 = vunpack.i.h.bf16 %v6853_v19  ;;  %v6854_v23 = vunpack.i.l.bf16 %v6853_v19  ;;  %v7048_v19 = vld [vmem:[%s8351_s2 + $0x158] sm:$0xff]  }
 0x5f4   : > { %v1537_v24 = vsel %vm674_vm1, %v6595_v60, %v6859_v18  ;;  %v1538_v25 = vsel %vm674_vm1, %v6596_v63, %v6860_v17  ;;  %v7046_v17 = vld [vmem:[%s8351_s2 + $0x148] sm:$0xff]   ;;  %v7047_v18 = vld [vmem:[%s8351_s2 + $0x150] sm:$0xff]  }
 0x5f5   : > { %v1536_v26 = vsel %vm674_vm1, %v1367_v0, %v6855_v20  ;;  %v1535_v27 = vsel %vm674_vm1, %v1364_v61, %v6854_v23  ;;  %v1541_v28 = vpack.c.bf16 %v1538_v25, %v1537_v24  ;;  %v7049_v20 = vld [vmem:[%s8351_s2 + $0x160] sm:$0xff]   ;;  %v7050_v23 = vld [vmem:[%s8351_s2 + $0x168] sm:$0xff]   ;;  %v7051_v24 = vld [vmem:[%s8351_s2 + $0x170] sm:$0xff]  }
 0x5f6   : > { %v1539_v31 = vpack.c.bf16 %v1536_v26, %v1535_v27  ;;  %v7052_v27 = vld [vmem:[%s8351_s2 + $0x178] sm:$0xff]  }
 0x5f8   : > { %1687 = vmatmul.mubr.bf16.vlgmr.msra.gmra.mrb[28].mxu0 %v1539_v31 }
 0x5f9   : > { %5715 = vmatprep.mubr.msk.bf16.mxu0 %vm674_vm1, %v1542_v12  ;;  %v7042_v12 = vld [vmem:[%s8351_s2 + $0x128] sm:$0xff]  }
 0x600   : > { %1695 = vmatmul.mubr.bf16.gmra.mrb[32].mxu0 %v1541_v28 }
 0x6cb   : > { %v1688_v34 = vpop.f32.mrb[28].mxu0 }
 0x6cc   : > { %v1689_v35 = vadd.f32 %v5701_v33, %v1688_v34  ;;  %v1690_v36 = vpop.f32.mrb[29].mxu0 }
 0x6cd   : > { %v1691_v37 = vpop.f32.mrb[30].mxu0 }
 0x6ce   : > { %vm1703_vm10 = vcmp.ge.f32.partialorder %v1689_v35, 0.0  ;;  %v1707_v38 = vmul.f32 0.2, %v1689_v35  ;;  %v1692_v40 = vadd.f32 %v5701_v33, %v1691_v37  ;;  %v1693_v43 = vpop.f32.mrb[31].mxu0 }
 0x6d0   : > { %v1711_v44 = vsel %vm1703_vm10, %v1689_v35, %v1707_v38  ;;  %vm1704_vm11 = vcmp.ge.f32.partialorder %v1692_v40, 0.0  ;;  %v1708_v45 = vmul.f32 0.2, %v1692_v40 }
 0x6d1   : > { %v1723_v46 = vmul.f32 %v5717_v39, %v1711_v44 }
 0x6d2   : > { %v1712_v48 = vsel %vm1704_vm11, %v1692_v40, %v1708_v45 }
 0x6d3   : > { %v1724_v49 = vmul.f32 %v5717_v39, %v1712_v48  ;;  %v1696_v50 = vpop.f32.mrb[32].mxu0  ;;  %v7592_v53 = vadd.f32 %v5719_v47, %v1723_v46 }
 0x6d4   : > { %v1697_v51 = vadd.f32 %v5701_v33, %v1696_v50  ;;  %v1698_v52 = vpop.f32.mrb[33].mxu0 }
 0x6d5   : > { %v7594_v54 = vadd.f32 %v5719_v47, %v1724_v49  ;;  %v1699_v55 = vpop.f32.mrb[34].mxu0 }
 0x6d6   : > { %vm1705_vm12 = vcmp.ge.f32.partialorder %v1697_v51, 0.0  ;;  %v1709_v56 = vmul.f32 0.2, %v1697_v51  ;;  %v1700_v57 = vadd.f32 %v5701_v33, %v1699_v55  ;;  %v1701_v58 = vpop.f32.mrb[35].mxu0 }
 0x6d7   : > { %v1739_v59 = vpack.c.bf16 %v7594_v54, %v7592_v53 }
 0x6d8   : > { %v1713_v60 = vsel %vm1705_vm12, %v1697_v51, %v1709_v56  ;;  %vm1706_vm13 = vcmp.ge.f32.partialorder %v1700_v57, 0.0  ;;  %v1710_v61 = vmul.f32 0.2, %v1700_v57 }
 0x6d9   : > { %v1725_v62 = vmul.f32 %v5717_v39, %v1713_v60  ;;  %6613 = vmatprep.subr.bf16.mxu1 %v1739_v59  ;;  %v7053_v60 = vld [vmem:[%s8350_s1 + $0xc0] sm:$0xff]  }
 0x6da   : > { %v1714_v63 = vsel %vm1706_vm13, %v1700_v57, %v1710_v61  ;;  %6614 = vmatpush3.bf16.msra.mxu1 %v1739_v59  ;;  %6641 = vmatprep.mubr.msk.bf16.mxu0 %vm462_vm0, %v7053_v60  ;;  %v5769_v61 = vld [vmem:[%s8352_s3 + $0x3] ss:$0 sm:$0xff] }
 0x6db   : > { %v1726_v0 = vmul.f32 %v5717_v39, %v1714_v63  ;;  %v7598_v1 = vadd.f32 %v5719_v47, %v1725_v62 }
 0x6dd   : > { %v7600_v2 = vadd.f32 %v5719_v47, %v1726_v0 }
 0x6df   : > { %v1740_v3 = vpack.c.bf16 %v7600_v2, %v7598_v1 }
 0x6e1   : > { %6615 = vmatprep.subr.bf16.mxu1 %v1740_v3 }
 0x6e2   : > { %6616 = vmatpush3.bf16.msra.mxu1 %v1740_v3 }
 0x6e3   : > { %6621 = vmatprep.subr.bf16.mxu1 %v1739_v59 }
 0x6e5   : > { %6618 = vmatmul.mubr.msk.bf16.vlgmr.msra.gmra.mrb[24].mxu1 %vm462_vm0, %v7036_v4 }
 0x6e6   : > { %6622 = vmatpush3.bf16.msra.mxu1 %v1739_v59  ;;  %6625 = vmatprep.mubr.msk.bf16.mxu1 %vm462_vm0, %v7037_v5  ;;  %v5785_v5 = vld [vmem:[%s8353_s4 + $0x3] ss:$0 sm:$0xff] }
 0x6e7   : > { %6623 = vmatprep.subr.bf16.mxu1 %v1740_v3 }
 0x6ea   : > { %6624 = vmatpush3.bf16.msra.mxu1 %v1740_v3 }
 0x6eb   : > { %6629 = vmatprep.subr.bf16.mxu1 %v1739_v59 }
 0x6ed   : > { %6626 = vmatmul.mubr.msk.bf16.vlgmr.msra.gmra.mrb[28].mxu1 %vm462_vm0, %v7038_v6 }
 0x6ee   : > { %6630 = vmatpush3.bf16.msra.mxu1 %v1739_v59  ;;  %6633 = vmatprep.mubr.msk.bf16.mxu1 %vm462_vm0, %v7039_v7 }
 0x6ef   : > { %6631 = vmatprep.subr.bf16.mxu1 %v1740_v3 }
 0x6f2   : > { %6632 = vmatpush3.bf16.msra.mxu1 %v1740_v3 }
 0x6f3   : > { %2086 = vmatprep.subr.bf16.mxu1 %v7211_v13 }
 0x6f5   : > { %6634 = vmatmul.mubr.msk.bf16.vlgmr.msra.gmra.mrb[32].mxu1 %vm462_vm0, %v7040_v10 }
 0x6f6   : > { %2087 = vmatpush1.bf16.msra.mxu1 %v7041_v11 }
 0x6f7   : > { %2088 = vmatprep.subr.bf16.mxu1 %v7211_v13 }
 0x6fa   : > { %2089 = vmatpush1.bf16.msra.mxu1 %v7042_v12 }
 0x6fb   : > { %2090 = vmatprep.subr.bf16.mxu1 %v7211_v13 }
 0x6fe   : > { %2091 = vmatpush1.bf16.msra.mxu1 %v7043_v14  ;;  %v5787_v14 = vld [vmem:[%s8354_s5 + $0x3] ss:$0 sm:$0xff] }
 0x6ff   : > { %2092 = vmatprep.subr.bf16.mxu1 %v7211_v13 }
 0x702   : > { %2093 = vmatpush1.bf16.msra.mxu1 %v7044_v15 }
 0x703   : > { %2094 = vmatprep.subr.bf16.mxu1 %v7211_v13 }
 0x706   : > { %2095 = vmatpush1.bf16.msra.mxu1 %v7045_v16 }
 0x707   : > { %2096 = vmatprep.subr.bf16.mxu1 %v7211_v13 }
 0x70a   : > { %2097 = vmatpush1.bf16.msra.mxu1 %v7046_v17 }
 0x70b   : > { %2098 = vmatprep.subr.bf16.mxu1 %v7211_v13 }
 0x70e   : > { %2099 = vmatpush1.bf16.msra.mxu1 %v7047_v18 }
 0x70f   : > { %2100 = vmatprep.subr.bf16.mxu1 %v7211_v13 }
 0x712   : > { %2101 = vmatpush1.bf16.msra.mxu1 %v7048_v19 }
 0x713   : > { %2102 = vmatprep.subr.bf16.mxu1 %v7211_v13 }
 0x716   : > { %2103 = vmatpush1.bf16.msra.mxu1 %v7049_v20 }
 0x717   : > { %2104 = vmatprep.subr.bf16.mxu1 %v7211_v13 }
 0x71a   : > { %2105 = vmatpush1.bf16.msra.mxu1 %v7050_v23 }
 0x71b   : > { %2106 = vmatprep.subr.bf16.mxu1 %v7211_v13 }
 0x71e   : > { %2107 = vmatpush1.bf16.msra.mxu1 %v7051_v24 }
 0x71f   : > { %2108 = vmatprep.subr.bf16.mxu1 %v7211_v13 }
 0x722   : > { %2109 = vmatpush1.bf16.msra.mxu1 %v7052_v27 }
 0x723   : > { %2518 = vmatprep.subr.bf16.mxu1 %v7211_v13 }
 0x7b8   : > { %v6619_v25 = vpop.f32.mrb[24].mxu1 }
 0x7b9   : > { %v1796_v26 = vpop.f32.mrb[25].mxu1 }
 0x7ba   : > { %v6620_v28 = vpop.f32.mrb[26].mxu1 }
 0x7bb   : > { %v1799_v31 = vpop.f32.mrb[27].mxu1 }
 0x7c0   : > { %v6627_v32 = vpop.f32.mrb[28].mxu1 }
 0x7c1   : > { %v1866_v33 = vpop.f32.mrb[29].mxu1 }
 0x7c2   : > { %v6628_v34 = vpop.f32.mrb[30].mxu1 }
 0x7c3   : > { %v6866_v35 = vpack.i.bf16 %v6628_v34, %v6627_v32  ;;  %v1869_v36 = vpop.f32.mrb[31].mxu1 }
 0x7c4   : > { %v6861_v37 = vpack.i.bf16 %v1869_v36, %v1866_v33 }
 0x7c5   : > { %6867 = vrot.lane.b32.xlu1 %v6866_v35, %s7212_s20 }
 0x7c6   : > { %6862 = vrot.lane.b32.xlu0 %v6861_v37, %s7212_s20 }
 0x7c8   : > { %v6635_v38 = vpop.f32.mrb[32].mxu1 }
 0x7c9   : > { %v1936_v39 = vpop.f32.mrb[33].mxu1 }
 0x7ca   : > { %v6636_v40 = vpop.f32.mrb[34].mxu1 }
 0x7cb   : > { %v1974_v43 = vpack.c.bf16 %v6636_v40, %v6635_v38  ;;  %v1939_v44 = vpop.f32.mrb[35].mxu1  ;;  %v7055_v40 = vld [vmem:[%s8350_s1 + $0xd0] sm:$0xff]  }
 0x7cc   : > { %v1972_v45 = vpack.c.bf16 %v1939_v44, %v1936_v39  ;;  %v7054_v39 = vld [vmem:[%s8350_s1 + $0xc8] sm:$0xff]   ;;  %v7057_v44 = vld [vmem:[%s8350_s1 + $0xe0] sm:$0xff]  }
 0x7ce   : > { %5782 = vmatprep.mubr.msk.bf16.mxu1 %vm674_vm1, %v1972_v45  ;;  %v7058_v45 = vld [vmem:[%s8350_s1 + $0xe8] sm:$0xff]  }
 0x837   : > { %v6868_v46 = vpop.permute.xlu1 %6867 }
 0x838   : > { %v6870_v47 = vunpack.i.h.bf16 %v6868_v46  ;;  %v6869_v48 = vunpack.i.l.bf16 %v6868_v46  ;;  %v6863_v49 = vpop.permute.xlu0 %6862  ;;  %v7059_v46 = vld [vmem:[%s8351_s2 + $0x180] sm:$0xff]  }
 0x839   : > { %v6865_v50 = vunpack.i.h.bf16 %v6863_v49  ;;  %v6864_v51 = vunpack.i.l.bf16 %v6863_v49  ;;  %v7062_v49 = vld [vmem:[%s8351_s2 + $0x198] sm:$0xff]  }
 0x83a   : > { %v1969_v52 = vsel %vm674_vm1, %v6619_v25, %v6869_v48  ;;  %v1970_v55 = vsel %vm674_vm1, %v6620_v28, %v6870_v47  ;;  %v7060_v47 = vld [vmem:[%s8351_s2 + $0x188] sm:$0xff]   ;;  %v7061_v48 = vld [vmem:[%s8351_s2 + $0x190] sm:$0xff]  }
 0x83b   : > { %v1968_v56 = vsel %vm674_vm1, %v1799_v31, %v6865_v50  ;;  %v1967_v57 = vsel %vm674_vm1, %v1796_v26, %v6864_v51  ;;  %v1973_v58 = vpack.c.bf16 %v1970_v55, %v1969_v52  ;;  %v7063_v50 = vld [vmem:[%s8351_s2 + $0x1a0] sm:$0xff]   ;;  %v7064_v51 = vld [vmem:[%s8351_s2 + $0x1a8] sm:$0xff]   ;;  %v7065_v52 = vld [vmem:[%s8351_s2 + $0x1b0] sm:$0xff]  }
 0x83c   : > { %v1971_v59 = vpack.c.bf16 %v1968_v56, %v1967_v57  ;;  %v7066_v55 = vld [vmem:[%s8351_s2 + $0x1b8] sm:$0xff]   ;;  %v7067_v56 = vld [vmem:[%s8351_s2 + $0x1c0] sm:$0xff]   ;;  %v7068_v57 = vld [vmem:[%s8351_s2 + $0x1c8] sm:$0xff]  }
 0x83e   : > { %2119 = vmatmul.mubr.bf16.vlgmr.msra.gmra.mrb[36].mxu1 %v1971_v59 }
 0x83f   : > { %5783 = vmatprep.mubr.msk.bf16.mxu1 %vm674_vm1, %v1974_v43  ;;  %v7056_v43 = vld [vmem:[%s8350_s1 + $0xd8] sm:$0xff]   ;;  %2519 = vmatpush1.bf16.msra.mxu1 %v7059_v46  ;;  %v5853_v46 = vld [vmem:[%s8353_s4 + $0x4] ss:$0 sm:$0xff] }
 0x840   : > { %2520 = vmatprep.subr.bf16.mxu1 %v7211_v13 }
 0x843   : > { %2521 = vmatpush1.bf16.msra.mxu1 %v7060_v47 }
 0x844   : > { %2522 = vmatprep.subr.bf16.mxu1 %v7211_v13 }
 0x846   : > { %2127 = vmatmul.mubr.bf16.gmra.mrb[40].mxu1 %v1973_v58  ;;  %v7069_v58 = vld [vmem:[%s8351_s2 + $0x1d0] sm:$0xff]  }
 0x847   : > { %2523 = vmatpush1.bf16.msra.mxu1 %v7061_v48 }
 0x848   : > { %2524 = vmatprep.subr.bf16.mxu1 %v7211_v13 }
 0x84b   : > { %2525 = vmatpush1.bf16.msra.mxu1 %v7062_v49 }
 0x84c   : > { %2526 = vmatprep.subr.bf16.mxu1 %v7211_v13 }
 0x84f   : > { %2527 = vmatpush1.bf16.msra.mxu1 %v7063_v50 }
 0x850   : > { %2528 = vmatprep.subr.bf16.mxu1 %v7211_v13 }
 0x853   : > { %2529 = vmatpush1.bf16.msra.mxu1 %v7064_v51 }
 0x854   : > { %2530 = vmatprep.subr.bf16.mxu1 %v7211_v13 }
 0x857   : > { %2531 = vmatpush1.bf16.msra.mxu1 %v7065_v52  ;;  %v5855_v52 = vld [vmem:[%s8354_s5 + $0x4] ss:$0 sm:$0xff] }
 0x858   : > { %2532 = vmatprep.subr.bf16.mxu1 %v7211_v13 }
 0x85b   : > { %2533 = vmatpush1.bf16.msra.mxu1 %v7066_v55 }
 0x85c   : > { %2534 = vmatprep.subr.bf16.mxu1 %v7211_v13 }
 0x85f   : > { %2535 = vmatpush1.bf16.msra.mxu1 %v7067_v56 }
 0x860   : > { %2536 = vmatprep.subr.bf16.mxu1 %v7211_v13 }
 0x863   : > { %2537 = vmatpush1.bf16.msra.mxu1 %v7068_v57 }
 0x864   : > { %2538 = vmatprep.subr.bf16.mxu1 %v7211_v13 }
 0x867   : > { %2539 = vmatpush1.bf16.msra.mxu1 %v7069_v58 }
 0x868   : > { %2540 = vmatprep.subr.bf16.mxu1 %v7211_v13 }
 0x911   : > { %v2120_v62 = vpop.f32.mrb[36].mxu1 }
 0x912   : > { %v2121_v63 = vadd.f32 %v5769_v61, %v2120_v62  ;;  %v2122_v0 = vpop.f32.mrb[37].mxu1 }
 0x913   : > { %v2123_v3 = vpop.f32.mrb[38].mxu1 }
 0x914   : > { %vm2135_vm14 = vcmp.ge.f32.partialorder %v2121_v63, 0.0  ;;  %v2139_v4 = vmul.f32 0.2, %v2121_v63  ;;  %v2124_v6 = vadd.f32 %v5769_v61, %v2123_v3  ;;  %v2125_v7 = vpop.f32.mrb[39].mxu1 }
 0x916   : > { %v2143_v10 = vsel %vm2135_vm14, %v2121_v63, %v2139_v4  ;;  %vm2136_vm15 = vcmp.ge.f32.partialorder %v2124_v6, 0.0  ;;  %v2140_v11 = vmul.f32 0.2, %v2124_v6 }
 0x917   : > { %v2155_v12 = vmul.f32 %v5785_v5, %v2143_v10 }
 0x918   : > { %v2144_v15 = vsel %vm2136_vm15, %v2124_v6, %v2140_v11 }
 0x919   : > { %v2156_v16 = vmul.f32 %v5785_v5, %v2144_v15  ;;  %v2128_v17 = vpop.f32.mrb[40].mxu1  ;;  %v7694_v20 = vadd.f32 %v5787_v14, %v2155_v12 }
 0x91a   : > { %v2129_v18 = vadd.f32 %v5769_v61, %v2128_v17  ;;  %v2130_v19 = vpop.f32.mrb[41].mxu1 }
 0x91b   : > { %v7696_v23 = vadd.f32 %v5787_v14, %v2156_v16  ;;  %v2131_v24 = vpop.f32.mrb[42].mxu1 }
 0x91c   : > { %vm2137_vm2 = vcmp.ge.f32.partialorder %v2129_v18, 0.0  ;;  %v2141_v25 = vmul.f32 0.2, %v2129_v18  ;;  %v2132_v26 = vadd.f32 %v5769_v61, %v2131_v24  ;;  %v2133_v27 = vpop.f32.mrb[43].mxu1  ;;  %v7070_v61 = vld [vmem:[%s8351_s2 + $0x1d8] sm:$0xff]  }
 0x91d   : > { %v2171_v28 = vpack.c.bf16 %v7696_v23, %v7694_v20  ;;  %2541 = vmatpush1.bf16.msra.mxu1 %v7070_v61 }
 0x91e   : > { %v2145_v31 = vsel %vm2137_vm2, %v2129_v18, %v2141_v25  ;;  %vm2138_vm3 = vcmp.ge.f32.partialorder %v2132_v26, 0.0  ;;  %v2142_v32 = vmul.f32 0.2, %v2132_v26 }
 0x91f   : > { %v2157_v33 = vmul.f32 %v5785_v5, %v2145_v31  ;;  %6637 = vmatprep.subr.bf16.mxu0 %v2171_v28 }
 0x920   : > { %v2146_v34 = vsel %vm2138_vm3, %v2132_v26, %v2142_v32  ;;  %6638 = vmatpush3.bf16.msra.mxu0 %v2171_v28 }
 0x921   : > { %v2158_v35 = vmul.f32 %v5785_v5, %v2146_v34  ;;  %v7700_v36 = vadd.f32 %v5787_v14, %v2157_v33 }
 0x923   : > { %v7702_v37 = vadd.f32 %v5787_v14, %v2158_v35  ;;  %v7071_v35 = vld [vmem:[%s8355_s6] sm:$0xff]  }
 0x925   : > { %v2172_v38 = vpack.c.bf16 %v7702_v37, %v7700_v36 }
 0x927   : > { %6639 = vmatprep.subr.bf16.mxu0 %v2172_v38 }
 0x928   : > { %6640 = vmatpush3.bf16.msra.mxu0 %v2172_v38 }
 0x929   : > { %6645 = vmatprep.subr.bf16.mxu0 %v2171_v28 }
 0x92b   : > { %6642 = vmatmul.mubr.msk.bf16.vlgmr.msra.gmra.mrb[36].mxu0 %vm462_vm0, %v7054_v39 }
 0x92c   : > { %6646 = vmatpush3.bf16.msra.mxu0 %v2171_v28  ;;  %6649 = vmatprep.mubr.msk.bf16.mxu0 %vm462_vm0, %v7055_v40 }
 0x92d   : > { %6647 = vmatprep.subr.bf16.mxu0 %v2172_v38 }
 0x930   : > { %6648 = vmatpush3.bf16.msra.mxu0 %v2172_v38 }
 0x931   : > { %6653 = vmatprep.subr.bf16.mxu0 %v2171_v28 }
 0x933   : > { %6650 = vmatmul.mubr.msk.bf16.vlgmr.msra.gmra.mrb[40].mxu0 %vm462_vm0, %v7056_v43 }
 0x934   : > { %6654 = vmatpush3.bf16.msra.mxu0 %v2171_v28  ;;  %6657 = vmatprep.mubr.msk.bf16.mxu0 %vm462_vm0, %v7057_v44 }
 0x935   : > { %6655 = vmatprep.subr.bf16.mxu0 %v2172_v38 }
 0x938   : > { %6656 = vmatpush3.bf16.msra.mxu0 %v2172_v38  ;;  %v5837_v38 = vld [vmem:[%s8352_s3 + $0x4] ss:$0 sm:$0xff] }
 0x93b   : > { %6658 = vmatmul.mubr.msk.bf16.vlgmr.msra.gmra.mrb[44].mxu0 %vm462_vm0, %v7058_v45 }
 0x93c   : > { %6665 = vmatprep.mubr.msk.bf16.mxu0 %vm462_vm0, %v7071_v35 }
 0x9fe   : > { %v6643_v59 = vpop.f32.mrb[36].mxu0 }
 0x9ff   : > { %v2228_v60 = vpop.f32.mrb[37].mxu0 }
 0xa00   : > { %v6644_v62 = vpop.f32.mrb[38].mxu0 }
 0xa01   : > { %v2231_v63 = vpop.f32.mrb[39].mxu0 }
 0xa06   : > { %v6651_v0 = vpop.f32.mrb[40].mxu0 }
 0xa07   : > { %v2298_v3 = vpop.f32.mrb[41].mxu0 }
 0xa08   : > { %v6652_v4 = vpop.f32.mrb[42].mxu0 }
 0xa09   : > { %v6876_v5 = vpack.i.bf16 %v6652_v4, %v6651_v0  ;;  %v2301_v6 = vpop.f32.mrb[43].mxu0 }
 0xa0a   : > { %v6871_v7 = vpack.i.bf16 %v2301_v6, %v2298_v3 }
 0xa0b   : > { %6877 = vrot.lane.b32.xlu1 %v6876_v5, %s7212_s20 }
 0xa0c   : > { %6872 = vrot.lane.b32.xlu0 %v6871_v7, %s7212_s20 }
 0xa0e   : > { %v6659_v10 = vpop.f32.mrb[44].mxu0 }
 0xa0f   : > { %v2368_v11 = vpop.f32.mrb[45].mxu0 }
 0xa10   : > { %v6660_v12 = vpop.f32.mrb[46].mxu0 }
 0xa11   : > { %v2406_v14 = vpack.c.bf16 %v6660_v12, %v6659_v10  ;;  %v2371_v15 = vpop.f32.mrb[47].mxu0 }
 0xa12   : > { %v2404_v16 = vpack.c.bf16 %v2371_v15, %v2368_v11 }
 0xa14   : > { %5850 = vmatprep.mubr.msk.bf16.mxu1 %vm674_vm1, %v2404_v16  ;;  %v7072_v16 = vld [vmem:[%s8355_s6 + $0x8] sm:$0xff]  }
 0xa7d   : > { %v6878_v17 = vpop.permute.xlu1 %6877 }
 0xa7e   : > { %v6880_v18 = vunpack.i.h.bf16 %v6878_v17  ;;  %v6879_v19 = vunpack.i.l.bf16 %v6878_v17  ;;  %v6873_v24 = vpop.permute.xlu0 %6872  ;;  %v7073_v17 = vld [vmem:[%s8355_s6 + $0x10] sm:$0xff]  }
 0xa7f   : > { %v6875_v25 = vunpack.i.h.bf16 %v6873_v24  ;;  %v6874_v26 = vunpack.i.l.bf16 %v6873_v24  ;;  %v7076_v24 = vld [vmem:[%s8355_s6 + $0x28] sm:$0xff]  }
 0xa80   : > { %v2401_v27 = vsel %vm674_vm1, %v6643_v59, %v6879_v19  ;;  %v2402_v28 = vsel %vm674_vm1, %v6644_v62, %v6880_v18  ;;  %v7074_v18 = vld [vmem:[%s8355_s6 + $0x18] sm:$0xff]   ;;  %v7075_v19 = vld [vmem:[%s8355_s6 + $0x20] sm:$0xff]  }
 0xa81   : > { %v2400_v31 = vsel %vm674_vm1, %v2231_v63, %v6875_v25  ;;  %v2399_v32 = vsel %vm674_vm1, %v2228_v60, %v6874_v26  ;;  %v2405_v33 = vpack.c.bf16 %v2402_v28, %v2401_v27  ;;  %v7077_v25 = vld [vmem:[%s8355_s6 + $0x30] sm:$0xff]   ;;  %v7078_v26 = vld [vmem:[%s8355_s6 + $0x38] sm:$0xff]   ;;  %v7079_v27 = vld [vmem:[%s8356_s7 + $0x40] sm:$0xff]  }
 0xa82   : > { %v2403_v34 = vpack.c.bf16 %v2400_v31, %v2399_v32  ;;  %v7080_v28 = vld [vmem:[%s8356_s7] sm:$0xff]   ;;  %v7081_v31 = vld [vmem:[%s8356_s7 + $0x48] sm:$0xff]  }
 0xa83   : > { %v7082_v32 = vld [vmem:[%s8356_s7 + $0x8] sm:$0xff]  }
 0xa84   : > { %2551 = vmatmul.mubr.bf16.vlgmr.msra.gmra.mrb[44].mxu1 %v2403_v34  ;;  %v7084_v34 = vld [vmem:[%s8356_s7 + $0x10] sm:$0xff]  }
 0xa85   : > { %5851 = vmatprep.mubr.msk.bf16.mxu1 %vm674_vm1, %v2406_v14 }
 0xa8c   : > { %2559 = vmatmul.mubr.bf16.gmra.mrb[48].mxu1 %v2405_v33  ;;  %v7083_v33 = vld [vmem:[%s8356_s7 + $0x50] sm:$0xff]  }
 0xb57   : > { %v2552_v39 = vpop.f32.mrb[44].mxu1 }
 0xb58   : > { %v2553_v40 = vadd.f32 %v5837_v38, %v2552_v39  ;;  %v2554_v43 = vpop.f32.mrb[45].mxu1  ;;  %v7085_v39 = vld [vmem:[%s8356_s7 + $0x58] sm:$0xff]  }
 0xb59   : > { %v2555_v44 = vpop.f32.mrb[46].mxu1  ;;  %v7086_v43 = vld [vmem:[%s8356_s7 + $0x18] sm:$0xff]  }
 0xb5a   : > { %vm2567_vm4 = vcmp.ge.f32.partialorder %v2553_v40, 0.0  ;;  %v2571_v45 = vmul.f32 0.2, %v2553_v40  ;;  %v2556_v47 = vadd.f32 %v5837_v38, %v2555_v44  ;;  %v2557_v48 = vpop.f32.mrb[47].mxu1 }
 0xb5c   : > { %v2575_v49 = vsel %vm2567_vm4, %v2553_v40, %v2571_v45  ;;  %vm2568_vm5 = vcmp.ge.f32.partialorder %v2556_v47, 0.0  ;;  %v2572_v50 = vmul.f32 0.2, %v2556_v47  ;;  %v7087_v45 = vld [vmem:[%s8356_s7 + $0x60] sm:$0xff]  }
 0xb5d   : > { %v2587_v51 = vmul.f32 %v5853_v46, %v2575_v49  ;;  %v7090_v49 = vld [vmem:[%s8356_s7 + $0x28] sm:$0xff]  }
 0xb5e   : > { %v2576_v55 = vsel %vm2568_vm5, %v2556_v47, %v2572_v50  ;;  %v7089_v47 = vld [vmem:[%s8356_s7 + $0x68] sm:$0xff]  }
 0xb5f   : > { %v2588_v56 = vmul.f32 %v5853_v46, %v2576_v55  ;;  %v2560_v57 = vpop.f32.mrb[48].mxu1  ;;  %v2599_v60 = vadd.f32 %v5855_v52, %v2587_v51  ;;  %v7091_v51 = vld [vmem:[%s8356_s7 + $0x70] sm:$0xff]  }
 0xb60   : > { %v2561_v58 = vadd.f32 %v5837_v38, %v2560_v57  ;;  %v2562_v59 = vpop.f32.mrb[49].mxu1 }
 0xb61   : > { %v2600_v61 = vadd.f32 %v5855_v52, %v2588_v56  ;;  %v2563_v62 = vpop.f32.mrb[50].mxu1 }
 0xb62   : > { %vm2569_vm6 = vcmp.ge.f32.partialorder %v2561_v58, 0.0  ;;  %v2573_v63 = vmul.f32 0.2, %v2561_v58  ;;  %v2564_v0 = vadd.f32 %v5837_v38, %v2563_v62  ;;  %v2565_v3 = vpop.f32.mrb[51].mxu1  ;;  %v7094_v62 = vld [vmem:[%s8356_s7 + $0x38] sm:$0xff]  }
 0xb63   : > { %v2603_v4 = vpack.c.bf16 %v2600_v61, %v2599_v60  ;;  %v7093_v61 = vld [vmem:[%s8356_s7 + $0x78] sm:$0xff]  }
 0xb64   : > { %v2577_v5 = vsel %vm2569_vm6, %v2561_v58, %v2573_v63  ;;  %vm2570_vm7 = vcmp.ge.f32.partialorder %v2564_v0, 0.0  ;;  %v2574_v6 = vmul.f32 0.2, %v2564_v0  ;;  %v7092_v58 = vld [vmem:[%s8356_s7 + $0x30] sm:$0xff]  }
 0xb65   : > { %v2589_v7 = vmul.f32 %v5853_v46, %v2577_v5  ;;  %6661 = vmatprep.subr.bf16.mxu0 %v2603_v4 }
 0xb66   : > { %v2578_v10 = vsel %vm2570_vm7, %v2564_v0, %v2574_v6  ;;  %6662 = vmatpush3.bf16.msra.mxu0 %v2603_v4 }
 0xb67   : > { %v2590_v11 = vmul.f32 %v5853_v46, %v2578_v10  ;;  %v2601_v12 = vadd.f32 %v5855_v52, %v2589_v7  ;;  %v7088_v46 = vld [vmem:[%s8356_s7 + $0x20] sm:$0xff]  }
 0xb69   : > { %v2602_v14 = vadd.f32 %v5855_v52, %v2590_v11 }
 0xb6b   : > { %v2604_v15 = vpack.c.bf16 %v2602_v14, %v2601_v12 }
 0xb6d   : > { %6663 = vmatprep.subr.bf16.mxu0 %v2604_v15 }
 0xb6e   : > { %6664 = vmatpush3.bf16.msra.mxu0 %v2604_v15 }
 0xb6f   : > { %6669 = vmatprep.subr.bf16.mxu0 %v2603_v4 }
 0xb71   : > { %6666 = vmatmul.mubr.msk.bf16.vlgmr.msra.gmra.mrb[48].mxu0 %vm462_vm0, %v7072_v16 }
 0xb72   : > { %6670 = vmatpush3.bf16.msra.mxu0 %v2603_v4  ;;  %6673 = vmatprep.mubr.msk.bf16.mxu0 %vm462_vm0, %v7073_v17 }
 0xb73   : > { %6671 = vmatprep.subr.bf16.mxu0 %v2604_v15 }
 0xb76   : > { %6672 = vmatpush3.bf16.msra.mxu0 %v2604_v15 }
 0xb77   : > { %6677 = vmatprep.subr.bf16.mxu0 %v2603_v4 }
 0xb79   : > { %6674 = vmatmul.mubr.msk.bf16.vlgmr.msra.gmra.mrb[52].mxu0 %vm462_vm0, %v7074_v18 }
 0xb7a   : > { %6678 = vmatpush3.bf16.msra.mxu0 %v2603_v4  ;;  %6681 = vmatprep.mubr.msk.bf16.mxu0 %vm462_vm0, %v7075_v19 }
 0xb7b   : > { %6679 = vmatprep.subr.bf16.mxu0 %v2604_v15 }
 0xb7e   : > { %6680 = vmatpush3.bf16.msra.mxu0 %v2604_v15 }
 0xb7f   : > { %6685 = vmatprep.subr.bf16.mxu0 %v2603_v4 }
 0xb81   : > { %6682 = vmatmul.mubr.msk.bf16.vlgmr.msra.gmra.mrb[56].mxu0 %vm462_vm0, %v7076_v24 }
 0xb82   : > { %6686 = vmatpush3.bf16.msra.mxu0 %v2603_v4  ;;  %6689 = vmatprep.mubr.msk.bf16.mxu0 %vm462_vm0, %v7077_v25 }
 0xb83   : > { %6687 = vmatprep.subr.bf16.mxu0 %v2604_v15 }
 0xb86   : > { %6688 = vmatpush3.bf16.msra.mxu0 %v2604_v15 }
 0xb87   : > { %6337 = vmatprep.subr.bf16.mxu0 %v7079_v27 }
 0xb89   : > { %6690 = vmatmul.mubr.msk.bf16.vlgmr.msra.gmra.mrb[60].mxu0 %vm462_vm0, %v7078_v26 }
 0xb8a   : > { %6338 = vmatpush3.bf16.msra.mxu0 %v7080_v28 }
 0xb8b   : > { %6339 = vmatprep.subr.bf16.mxu0 %v7081_v31 }
 0xb8e   : > { %6340 = vmatpush3.bf16.msra.mxu0 %v7082_v32 }
 0xb8f   : > { %6341 = vmatprep.subr.bf16.mxu0 %v7083_v33 }
 0xb92   : > { %6342 = vmatpush3.bf16.msra.mxu0 %v7084_v34 }
 0xb93   : > { %6343 = vmatprep.subr.bf16.mxu0 %v7085_v39 }
 0xb96   : > { %6344 = vmatpush3.bf16.msra.mxu0 %v7086_v43 }
 0xb97   : > { %6345 = vmatprep.subr.bf16.mxu0 %v7087_v45 }
 0xb9a   : > { %6346 = vmatpush3.bf16.msra.mxu0 %v7088_v46 }
 0xb9b   : > { %6347 = vmatprep.subr.bf16.mxu0 %v7089_v47  ;;  %v7097_v47 = vld [vmem:[%s8355_s6 + $0x70] sm:$0xff]  }
 0xb9e   : > { %6348 = vmatpush3.bf16.msra.mxu0 %v7090_v49  ;;  %v5884_v49 = vld [vmem:[%s8357_s8] ss:$0 sm:$0xff] }
 0xb9f   : > { %6349 = vmatprep.subr.bf16.mxu0 %v7091_v51 }
 0xba2   : > { %6350 = vmatpush3.bf16.msra.mxu0 %v7092_v58 }
 0xba3   : > { %6351 = vmatprep.subr.bf16.mxu0 %v7093_v61 }
 0xba6   : > { %6352 = vmatpush3.bf16.msra.mxu0 %v7094_v62  ;;  %v5902_v62 = vld [vmem:[%s8359_s10] ss:$0 sm:$0xff] }
 0xc44   : > { %v6667_v35 = vpop.f32.mrb[48].mxu0 }
 0xc45   : > { %v2659_v38 = vpop.f32.mrb[49].mxu0 }
 0xc46   : > { %v6668_v40 = vpop.f32.mrb[50].mxu0 }
 0xc47   : > { %v2662_v44 = vpop.f32.mrb[51].mxu0 }
 0xc4c   : > { %v6675_v48 = vpop.f32.mrb[52].mxu0 }
 0xc4d   : > { %v2729_v50 = vpop.f32.mrb[53].mxu0 }
 0xc4e   : > { %v6676_v52 = vpop.f32.mrb[54].mxu0 }
 0xc4f   : > { %v6896_v55 = vpack.i.bf16 %v6676_v52, %v6675_v48  ;;  %v2732_v56 = vpop.f32.mrb[55].mxu0 }
 0xc50   : > { %v6886_v57 = vpack.i.bf16 %v2732_v56, %v2729_v50 }
 0xc52   : > { %6887 = vrot.lane.b32.xlu1 %v6886_v57, %s7212_s20 }
 0xc54   : > { %v6683_v59 = vpop.f32.mrb[56].mxu0 }
 0xc55   : > { %v2799_v60 = vpop.f32.mrb[57].mxu0 }
 0xc56   : > { %6897 = vrot.lane.b32.xlu1 %v6896_v55, %s7212_s20  ;;  %v6684_v63 = vpop.f32.mrb[58].mxu0 }
 0xc57   : > { %v2802_v0 = vpop.f32.mrb[59].mxu0 }
 0xc5c   : > { %v6691_v3 = vpop.f32.mrb[60].mxu0 }
 0xc5d   : > { %v2869_v4 = vpop.f32.mrb[61].mxu0 }
 0xc5e   : > { %v6692_v5 = vpop.f32.mrb[62].mxu0 }
 0xc5f   : > { %v6891_v6 = vpack.i.bf16 %v6692_v5, %v6691_v3  ;;  %v2872_v7 = vpop.f32.mrb[63].mxu0 }
 0xc60   : > { %v6881_v10 = vpack.i.bf16 %v2872_v7, %v2869_v4 }
 0xc62   : > { %6882 = vrot.lane.b32.xlu0 %v6881_v10, %s7212_s20 }
 0xc66   : > { %6892 = vrot.lane.b32.xlu0 %v6891_v6, %s7212_s20 }
 0xcc4   : > { %v6888_v11 = vpop.permute.xlu1 %6887 }
 0xcc5   : > { %v6890_v12 = vunpack.i.h.bf16 %v6888_v11  ;;  %v6889_v14 = vunpack.i.l.bf16 %v6888_v11 }
 0xcc7   : > { %v2917_v15 = vsel %vm674_vm1, %v2662_v44, %v6890_v12  ;;  %v2916_v16 = vsel %vm674_vm1, %v2659_v38, %v6889_v14 }
 0xcc8   : > { %v2924_v17 = vpack.c.bf16 %v2917_v15, %v2916_v16  ;;  %v6898_v18 = vpop.permute.xlu1 %6897 }
 0xcc9   : > { %v6900_v19 = vunpack.i.h.bf16 %v6898_v18  ;;  %v6899_v24 = vunpack.i.l.bf16 %v6898_v18 }
 0xccb   : > { %v2918_v25 = vsel %vm674_vm1, %v6667_v35, %v6899_v24  ;;  %v2919_v26 = vsel %vm674_vm1, %v6668_v40, %v6900_v19  ;;  %v7095_v40 = vld [vmem:[%s8355_s6 + $0x40] sm:$0xff]  }
 0xccc   : > { %v2926_v27 = vpack.c.bf16 %v2919_v26, %v2918_v25  ;;  %6697 = vmatprep.mubr.msk.bf16.mxu1 %vm462_vm0, %v7095_v40  ;;  %v7105_v40 = vld [vmem:[%s8356_s7 + $0xc8] sm:$0xff]  }
 0xcd4   : > { %v6883_v28 = vpop.permute.xlu0 %6882 }
 0xcd5   : > { %v6885_v31 = vunpack.i.h.bf16 %v6883_v28  ;;  %v6884_v32 = vunpack.i.l.bf16 %v6883_v28 }
 0xcd7   : > { %v2920_v33 = vsel %vm674_vm1, %v2799_v60, %v6884_v32  ;;  %v2921_v34 = vsel %vm674_vm1, %v2802_v0, %v6885_v31 }
 0xcd8   : > { %v6893_v39 = vpop.permute.xlu0 %6892  ;;  %v2925_v43 = vpack.c.bf16 %v2921_v34, %v2920_v33 }
 0xcd9   : > { %v6895_v44 = vunpack.i.h.bf16 %v6893_v39  ;;  %v6894_v38 = vunpack.i.l.bf16 %v6893_v39 }
 0xcda   : > { %3095 = vmatprep.mubr.bf16.mxu0 %v2925_v43 }
 0xcdb   : > { %3096 = vmatmul.mubr.bf16.vlgmr.msra.gmra.mrb[64].mxu0 %v2924_v17  ;;  %v2922_v45 = vsel %vm674_vm1, %v6683_v59, %v6894_v38  ;;  %v2923_v35 = vsel %vm674_vm1, %v6684_v63, %v6895_v44  ;;  %v5901_v59 = vld [vmem:[%s8358_s9] ss:$0 sm:$0xff]  ;;  %v7098_v44 = vld [vmem:[%s8355_s6 + $0x78] sm:$0xff]   ;;  %v7099_v38 = vld [vmem:[%s8355_s6 + $0x50] sm:$0xff]  }
 0xcdc   : > { %v2927_v46 = vpack.c.bf16 %v2923_v35, %v2922_v45  ;;  %v7102_v45 = vld [vmem:[%s8355_s6 + $0x68] sm:$0xff]   ;;  %v7103_v35 = vld [vmem:[%s8356_s7 + $0xc0] sm:$0xff]  }
 0xcde   : > { %3103 = vmatprep.mubr.bf16.mxu0 %v2927_v46  ;;  %v7104_v46 = vld [vmem:[%s8356_s7 + $0x80] sm:$0xff]  }
 0xce3   : > { %3104 = vmatmul.mubr.bf16.gmra.mrb[68].mxu0 %v2926_v27 }
 0xce4   : > { %6721 = vmatprep.mubr.msk.bf16.mxu0 %vm462_vm0, %v7097_v47  ;;  %v7106_v47 = vld [vmem:[%s8356_s7 + $0x88] sm:$0xff]  }
 0xdae   : > { %v6353_v48 = vpop.f32.mrb[64].mxu0 }
 0xdaf   : > { %v6354_v50 = vpop.f32.mrb[65].mxu0 }
 0xdb0   : > { %v6355_v51 = vadd.f32 %v6354_v50, %v6353_v48  ;;  %v6356_v52 = vpop.f32.mrb[66].mxu0  ;;  %v7107_v48 = vld [vmem:[%s8356_s7 + $0xd0] sm:$0xff]   ;;  %v7109_v50 = vld [vmem:[%s8356_s7 + $0xd8] sm:$0xff]  }
 0xdb1   : > { %v6357_v55 = vpop.f32.mrb[67].mxu0 }
 0xdb2   : > { %v3098_v56 = vadd.f32 %v6355_v51, %v5884_v49  ;;  %v6358_v57 = vadd.f32 %v6357_v55, %v6356_v52  ;;  %v7110_v51 = vld [vmem:[%s8356_s7 + $0x98] sm:$0xff]   ;;  %v7111_v52 = vld [vmem:[%s8356_s7 + $0xe0] sm:$0xff]  }
 0xdb3   : > { %v7112_v55 = vld [vmem:[%s8356_s7 + $0xa0] sm:$0xff]  }
 0xdb4   : > { %vm3112_vm8 = vcmp.ge.f32.partialorder %v3098_v56, 0.0  ;;  %v3116_v58 = vmul.f32 0.2, %v3098_v56  ;;  %v3101_v60 = vadd.f32 %v6358_v57, %v5884_v49  ;;  %v7114_v57 = vld [vmem:[%s8356_s7 + $0xa8] sm:$0xff]  }
 0xdb6   : > { %v3120_v61 = vsel %vm3112_vm8, %v3098_v56, %v3116_v58  ;;  %vm3113_vm9 = vcmp.ge.f32.partialorder %v3101_v60, 0.0  ;;  %v3117_v63 = vmul.f32 0.2, %v3101_v60  ;;  %v6359_v0 = vpop.f32.mrb[68].mxu0  ;;  %v7113_v56 = vld [vmem:[%s8356_s7 + $0xe8] sm:$0xff]   ;;  %v7115_v58 = vld [vmem:[%s8356_s7 + $0xf0] sm:$0xff]  }
 0xdb7   : > { %v3131_v3 = vmul.f32 %v5901_v59, %v3120_v61  ;;  %v6360_v4 = vpop.f32.mrb[69].mxu0 }
 0xdb8   : > { %v3121_v5 = vsel %vm3113_vm9, %v3101_v60, %v3117_v63  ;;  %v6361_v6 = vadd.f32 %v6360_v4, %v6359_v0  ;;  %v6362_v7 = vpop.f32.mrb[70].mxu0 }
 0xdb9   : > { %v3142_v10 = vadd.f32 %v5902_v62, %v3131_v3  ;;  %v3132_v11 = vmul.f32 %v5901_v59, %v3121_v5  ;;  %v6363_v12 = vpop.f32.mrb[71].mxu0  ;;  %v7118_v3 = vld [vmem:[%s8356_s7 + $0xb8] sm:$0xff]  }
 0xdba   : > { %v3106_v14 = vadd.f32 %v6361_v6, %v5884_v49  ;;  %v6364_v15 = vadd.f32 %v6363_v12, %v6362_v7 }
 0xdbb   : > { %v3143_v16 = vadd.f32 %v5902_v62, %v3132_v11  ;;  %v3146_v19 = vadd.f32 %v3142_v10, %v7694_v20 }
 0xdbc   : > { %vm3114_vm10 = vcmp.ge.f32.partialorder %v3106_v14, 0.0  ;;  %v3118_v17 = vmul.f32 0.2, %v3106_v14  ;;  %v3109_v18 = vadd.f32 %v6364_v15, %v5884_v49  ;;  %v7108_v49 = vld [vmem:[%s8356_s7 + $0x90] sm:$0xff]  }
 0xdbd   : > { %v3147_v24 = vadd.f32 %v3143_v16, %v7696_v23  ;;  %v7096_v23 = vld [vmem:[%s8355_s6 + $0x48] sm:$0xff]  }
 0xdbe   : > { %v3122_v25 = vsel %vm3114_vm10, %v3106_v14, %v3118_v17  ;;  %vm3115_vm11 = vcmp.ge.f32.partialorder %v3109_v18, 0.0  ;;  %v3119_v26 = vmul.f32 0.2, %v3109_v18 }
 0xdbf   : > { %v3150_v27 = vpack.c.bf16 %v3147_v24, %v3146_v19  ;;  %v3133_v28 = vmul.f32 %v5901_v59, %v3122_v25 }
 0xdc0   : > { %v3123_v31 = vsel %vm3115_vm11, %v3109_v18, %v3119_v26 }
 0xdc1   : > { %v3144_v32 = vadd.f32 %v5902_v62, %v3133_v28  ;;  %v3134_v33 = vmul.f32 %v5901_v59, %v3123_v31  ;;  %6693 = vmatprep.subr.bf16.mxu1 %v3150_v27  ;;  %6717 = vmatprep.subr.bf16.mxu0 %v3150_v27  ;;  %v7116_v59 = vld [vmem:[%s8356_s7 + $0xb0] sm:$0xff]  }
 0xdc2   : > { %6694 = vmatpush3.bf16.msra.mxu1 %v3150_v27  ;;  %6718 = vmatpush3.bf16.msra.mxu0 %v3150_v27 }
 0xdc3   : > { %v3145_v34 = vadd.f32 %v5902_v62, %v3134_v33  ;;  %v3148_v39 = vadd.f32 %v3144_v32, %v7700_v36  ;;  %v7100_v36 = vld [vmem:[%s8355_s6 + $0x58] sm:$0xff]  }
 0xdc4   : > { %v7117_v62 = vld [vmem:[%s8356_s7 + $0xf8] sm:$0xff]  }
 0xdc5   : > { %v3149_v43 = vadd.f32 %v3145_v34, %v7702_v37  ;;  %v7101_v37 = vld [vmem:[%s8355_s6 + $0x60] sm:$0xff]  }
 0xdc7   : > { %v3151_v20 = vpack.c.bf16 %v3149_v43, %v3148_v39 }
 0xdc9   : > { %6695 = vmatprep.subr.bf16.mxu1 %v3151_v20  ;;  %6719 = vmatprep.subr.bf16.mxu0 %v3151_v20 }
 0xdca   : > { %6696 = vmatpush3.bf16.msra.mxu1 %v3151_v20  ;;  %6720 = vmatpush3.bf16.msra.mxu0 %v3151_v20 }
 0xdcb   : > { %6701 = vmatprep.subr.bf16.mxu1 %v3150_v27 }
 0xdcd   : > { %6698 = vmatmul.mubr.msk.bf16.vlgmr.msra.gmra.mrb[52].mxu1 %vm462_vm0, %v7096_v23  ;;  %6722 = vmatmul.mubr.msk.bf16.vlgmr.msra.gmra.mrb[72].mxu0 %vm462_vm0, %v7098_v44 }
 0xdce   : > { %6702 = vmatpush3.bf16.msra.mxu1 %v3150_v27  ;;  %6705 = vmatprep.mubr.msk.bf16.mxu1 %vm462_vm0, %v7099_v38 }
 0xdcf   : > { %6703 = vmatprep.subr.bf16.mxu1 %v3151_v20 }
 0xdd2   : > { %6704 = vmatpush3.bf16.msra.mxu1 %v3151_v20 }
 0xdd3   : > { %6709 = vmatprep.subr.bf16.mxu1 %v3150_v27 }
 0xdd5   : > { %6706 = vmatmul.mubr.msk.bf16.vlgmr.msra.gmra.mrb[56].mxu1 %vm462_vm0, %v7100_v36 }
 0xdd6   : > { %6710 = vmatpush3.bf16.msra.mxu1 %v3150_v27  ;;  %6713 = vmatprep.mubr.msk.bf16.mxu1 %vm462_vm0, %v7101_v37 }
 0xdd7   : > { %6711 = vmatprep.subr.bf16.mxu1 %v3151_v20 }
 0xdda   : > { %6712 = vmatpush3.bf16.msra.mxu1 %v3151_v20 }
 0xddb   : > { %6381 = vmatprep.subr.bf16.mxu1 %v7103_v35 }
 0xddd   : > { %6714 = vmatmul.mubr.msk.bf16.vlgmr.msra.gmra.mrb[60].mxu1 %vm462_vm0, %v7102_v45 }
 0xdde   : > { %6382 = vmatpush3.bf16.msra.mxu1 %v7104_v46 }
 0xddf   : > { %6383 = vmatprep.subr.bf16.mxu1 %v7105_v40 }
 0xde2   : > { %6384 = vmatpush3.bf16.msra.mxu1 %v7106_v47 }
 0xde3   : > { %6385 = vmatprep.subr.bf16.mxu1 %v7107_v48 }
 0xde6   : > { %6386 = vmatpush3.bf16.msra.mxu1 %v7108_v49 }
 0xde7   : > { %6387 = vmatprep.subr.bf16.mxu1 %v7109_v50 }
 0xdea   : > { %6388 = vmatpush3.bf16.msra.mxu1 %v7110_v51 }
 0xdeb   : > { %6389 = vmatprep.subr.bf16.mxu1 %v7111_v52 }
 0xdee   : > { %6390 = vmatpush3.bf16.msra.mxu1 %v7112_v55  ;;  %v7119_v55 = vld [vmem:[%s8355_s6 + $0x80] sm:$0xff]  }
 0xdef   : > { %6391 = vmatprep.subr.bf16.mxu1 %v7113_v56  ;;  %6729 = vmatprep.mubr.msk.bf16.mxu0 %vm462_vm0, %v7119_v55 }
 0xdf2   : > { %6392 = vmatpush3.bf16.msra.mxu1 %v7114_v57  ;;  %v5968_v57 = vld [vmem:[%s8357_s8 + $0x1] ss:$0 sm:$0xff] }
 0xdf3   : > { %6393 = vmatprep.subr.bf16.mxu1 %v7115_v58 }
 0xdf6   : > { %6394 = vmatpush3.bf16.msra.mxu1 %v7116_v59 }
 0xdf7   : > { %6395 = vmatprep.subr.bf16.mxu1 %v7117_v62 }
 0xdfa   : > { %6396 = vmatpush3.bf16.msra.mxu1 %v7118_v3  ;;  %v5986_v3 = vld [vmem:[%s8358_s9 + $0x1] ss:$0 sm:$0xff] }
 0xea0   : > { %v6699_v60 = vpop.f32.mrb[52].mxu1  ;;  %v6723_v61 = vpop.f32.mrb[72].mxu0 }
 0xea1   : > { %v3207_v63 = vpop.f32.mrb[53].mxu1  ;;  %v3417_v0 = vpop.f32.mrb[73].mxu0 }
 0xea2   : > { %v6700_v4 = vpop.f32.mrb[54].mxu1  ;;  %v6724_v5 = vpop.f32.mrb[74].mxu0 }
 0xea3   : > { %v3210_v6 = vpop.f32.mrb[55].mxu1  ;;  %v6911_v7 = vpack.i.bf16 %v6724_v5, %v6723_v61  ;;  %v3420_v10 = vpop.f32.mrb[75].mxu0 }
 0xea4   : > { %v6901_v11 = vpack.i.bf16 %v3420_v10, %v3417_v0 }
 0xea6   : > { %6902 = vrot.lane.b32.xlu0 %v6901_v11, %s7212_s20 }
 0xea8   : > { %v6707_v12 = vpop.f32.mrb[56].mxu1 }
 0xea9   : > { %v3277_v14 = vpop.f32.mrb[57].mxu1 }
 0xeaa   : > { %v6708_v15 = vpop.f32.mrb[58].mxu1  ;;  %6912 = vrot.lane.b32.xlu0 %v6911_v7, %s7212_s20 }
 0xeab   : > { %v6916_v16 = vpack.i.bf16 %v6708_v15, %v6707_v12  ;;  %v3280_v17 = vpop.f32.mrb[59].mxu1 }
 0xeac   : > { %v6906_v18 = vpack.i.bf16 %v3280_v17, %v3277_v14 }
 0xeae   : > { %6907 = vrot.lane.b32.xlu1 %v6906_v18, %s7212_s20 }
 0xeb0   : > { %v6715_v19 = vpop.f32.mrb[60].mxu1 }
 0xeb1   : > { %v3347_v24 = vpop.f32.mrb[61].mxu1 }
 0xeb2   : > { %6917 = vrot.lane.b32.xlu1 %v6916_v16, %s7212_s20  ;;  %v6716_v25 = vpop.f32.mrb[62].mxu1 }
 0xeb3   : > { %v3350_v26 = vpop.f32.mrb[63].mxu1 }
 0xf18   : > { %v6903_v27 = vpop.permute.xlu0 %6902 }
 0xf19   : > { %v6905_v28 = vunpack.i.h.bf16 %v6903_v27  ;;  %v6904_v31 = vunpack.i.l.bf16 %v6903_v27 }
 0xf1b   : > { %v3468_v32 = vsel %vm674_vm1, %v3347_v24, %v6904_v31  ;;  %v3469_v33 = vsel %vm674_vm1, %v3350_v26, %v6905_v28 }
 0xf1c   : > { %v6913_v34 = vpop.permute.xlu0 %6912  ;;  %v3473_v39 = vpack.c.bf16 %v3469_v33, %v3468_v32 }
 0xf1d   : > { %v6915_v43 = vunpack.i.h.bf16 %v6913_v34  ;;  %v6914_v20 = vunpack.i.l.bf16 %v6913_v34 }
 0xf1e   : > { %3645 = vmatprep.mubr.bf16.mxu1 %v3473_v39 }
 0xf1f   : > { %v3470_v23 = vsel %vm674_vm1, %v6715_v19, %v6914_v20  ;;  %v3471_v44 = vsel %vm674_vm1, %v6716_v25, %v6915_v43 }
 0xf20   : > { %v6908_v38 = vpop.permute.xlu1 %6907  ;;  %v3475_v36 = vpack.c.bf16 %v3471_v44, %v3470_v23 }
 0xf21   : > { %v6910_v37 = vunpack.i.h.bf16 %v6908_v38  ;;  %v6909_v45 = vunpack.i.l.bf16 %v6908_v38 }
 0xf23   : > { %v3465_v35 = vsel %vm674_vm1, %v3210_v6, %v6910_v37  ;;  %v3464_v46 = vsel %vm674_vm1, %v3207_v63, %v6909_v45  ;;  %v5988_v6 = vld [vmem:[%s8359_s10 + $0x1] ss:$0 sm:$0xff] }
 0xf24   : > { %v3472_v40 = vpack.c.bf16 %v3465_v35, %v3464_v46  ;;  %v6918_v47 = vpop.permute.xlu1 %6917  ;;  %v7124_v35 = vld [vmem:[%s8355_s6 + $0xa8] sm:$0xff]   ;;  %v7125_v46 = vld [vmem:[%s8355_s6 + $0xb0] sm:$0xff]  }
 0xf25   : > { %v6920_v48 = vunpack.i.h.bf16 %v6918_v47  ;;  %v6919_v49 = vunpack.i.l.bf16 %v6918_v47  ;;  %v7127_v47 = vld [vmem:[%s8356_s7 + $0x140] sm:$0xff]  }
 0xf26   : > { %3646 = vmatmul.mubr.bf16.vlgmr.msra.gmra.mrb[64].mxu1 %v3472_v40  ;;  %v7126_v40 = vld [vmem:[%s8355_s6 + $0xb8] sm:$0xff]   ;;  %6425 = vmatprep.subr.bf16.mxu1 %v7127_v47 }
 0xf27   : > { %3653 = vmatprep.mubr.bf16.mxu1 %v3475_v36  ;;  %v3466_v50 = vsel %vm674_vm1, %v6699_v60, %v6919_v49  ;;  %v3467_v51 = vsel %vm674_vm1, %v6700_v4, %v6920_v48  ;;  %v7128_v48 = vld [vmem:[%s8356_s7 + $0x100] sm:$0xff]   ;;  %v7129_v49 = vld [vmem:[%s8356_s7 + $0x148] sm:$0xff]  }
 0xf28   : > { %v3474_v52 = vpack.c.bf16 %v3467_v51, %v3466_v50  ;;  %6426 = vmatpush3.bf16.msra.mxu1 %v7128_v48  ;;  %v7130_v50 = vld [vmem:[%s8356_s7 + $0x108] sm:$0xff]   ;;  %v7131_v51 = vld [vmem:[%s8356_s7 + $0x150] sm:$0xff]  }
 0xf29   : > { %6427 = vmatprep.subr.bf16.mxu1 %v7129_v49 }
 0xf2c   : > { %6428 = vmatpush3.bf16.msra.mxu1 %v7130_v50 }
 0xf2d   : > { %6429 = vmatprep.subr.bf16.mxu1 %v7131_v51 }
 0xf2e   : > { %3654 = vmatmul.mubr.bf16.gmra.mrb[68].mxu1 %v3474_v52  ;;  %v7132_v52 = vld [vmem:[%s8356_s7 + $0x110] sm:$0xff]  }
 0xf30   : > { %6430 = vmatpush3.bf16.msra.mxu1 %v7132_v52  ;;  %v7143_v52 = vld [vmem:[%s8355_s6 + $0xc0] sm:$0xff]  }
 0xff9   : > { %v6397_v56 = vpop.f32.mrb[64].mxu1 }
 0xffa   : > { %v6398_v58 = vpop.f32.mrb[65].mxu1 }
 0xffb   : > { %v6399_v59 = vadd.f32 %v6398_v58, %v6397_v56  ;;  %v6400_v61 = vpop.f32.mrb[66].mxu1 }
 0xffc   : > { %v6401_v62 = vpop.f32.mrb[67].mxu1 }
 0xffd   : > { %v3648_v60 = vadd.f32 %v6399_v59, %v5968_v57  ;;  %v6402_v63 = vadd.f32 %v6401_v62, %v6400_v61  ;;  %v7134_v59 = vld [vmem:[%s8356_s7 + $0x118] sm:$0xff]   ;;  %v7135_v62 = vld [vmem:[%s8356_s7 + $0x160] sm:$0xff]  }
 0xfff   : > { %vm3662_vm12 = vcmp.ge.f32.partialorder %v3648_v60, 0.0  ;;  %v3666_v0 = vmul.f32 0.2, %v3648_v60  ;;  %v3651_v4 = vadd.f32 %v6402_v63, %v5968_v57  ;;  %v7137_v63 = vld [vmem:[%s8356_s7 + $0x168] sm:$0xff]  }
0x1001   : > { %v3670_v5 = vsel %vm3662_vm12, %v3648_v60, %v3666_v0  ;;  %vm3663_vm13 = vcmp.ge.f32.partialorder %v3651_v4, 0.0  ;;  %v3667_v7 = vmul.f32 0.2, %v3651_v4  ;;  %v6403_v10 = vpop.f32.mrb[68].mxu1  ;;  %v7136_v60 = vld [vmem:[%s8356_s7 + $0x120] sm:$0xff]  }
0x1002   : > { %v3682_v11 = vmul.f32 %v5986_v3, %v3670_v5  ;;  %v6404_v12 = vpop.f32.mrb[69].mxu1  ;;  %v7139_v5 = vld [vmem:[%s8356_s7 + $0x170] sm:$0xff]  }
0x1003   : > { %v3671_v14 = vsel %vm3663_vm13, %v3651_v4, %v3667_v7  ;;  %v6405_v15 = vadd.f32 %v6404_v12, %v6403_v10  ;;  %v6406_v16 = vpop.f32.mrb[70].mxu1  ;;  %v7140_v12 = vld [vmem:[%s8356_s7 + $0x130] sm:$0xff]  }
0x1004   : > { %v3694_v17 = vadd.f32 %v5988_v6, %v3682_v11  ;;  %v3683_v18 = vmul.f32 %v5986_v3, %v3671_v14  ;;  %v6407_v19 = vpop.f32.mrb[71].mxu1 }
0x1005   : > { %v3656_v24 = vadd.f32 %v6405_v15, %v5968_v57  ;;  %v6408_v25 = vadd.f32 %v6407_v19, %v6406_v16  ;;  %v7141_v16 = vld [vmem:[%s8356_s7 + $0x178] sm:$0xff]  }
0x1006   : > { %v3695_v26 = vadd.f32 %v5988_v6, %v3683_v18  ;;  %v3698_v31 = vadd.f32 %v3694_v17, %v7592_v53  ;;  %v7120_v53 = vld [vmem:[%s8355_s6 + $0x88] sm:$0xff]   ;;  %v7142_v17 = vld [vmem:[%s8356_s7 + $0x138] sm:$0xff]  }
0x1007   : > { %vm3664_vm14 = vcmp.ge.f32.partialorder %v3656_v24, 0.0  ;;  %v3668_v27 = vmul.f32 0.2, %v3656_v24  ;;  %v3659_v28 = vadd.f32 %v6408_v25, %v5968_v57  ;;  %v7133_v57 = vld [vmem:[%s8356_s7 + $0x158] sm:$0xff]  }
0x1008   : > { %v3699_v32 = vadd.f32 %v3695_v26, %v7594_v54  ;;  %v7121_v54 = vld [vmem:[%s8355_s6 + $0x90] sm:$0xff]   ;;  %6431 = vmatprep.subr.bf16.mxu1 %v7133_v57 }
0x1009   : > { %v3672_v33 = vsel %vm3664_vm14, %v3656_v24, %v3668_v27  ;;  %vm3665_vm15 = vcmp.ge.f32.partialorder %v3659_v28, 0.0  ;;  %v3669_v34 = vmul.f32 0.2, %v3659_v28  ;;  %6432 = vmatpush3.bf16.msra.mxu1 %v7134_v59 }
0x100a   : > { %v3702_v39 = vpack.c.bf16 %v3699_v32, %v3698_v31  ;;  %v3684_v43 = vmul.f32 %v5986_v3, %v3672_v33  ;;  %6433 = vmatprep.subr.bf16.mxu1 %v7135_v62 }
0x100b   : > { %v3673_v20 = vsel %vm3665_vm15, %v3659_v28, %v3669_v34 }
0x100c   : > { %v3696_v23 = vadd.f32 %v5988_v6, %v3684_v43  ;;  %v3685_v44 = vmul.f32 %v5986_v3, %v3673_v20  ;;  %6725 = vmatprep.subr.bf16.mxu0 %v3702_v39  ;;  %v7138_v3 = vld [vmem:[%s8356_s7 + $0x128] sm:$0xff]  }
0x100d   : > { %6726 = vmatpush3.bf16.msra.mxu0 %v3702_v39  ;;  %6434 = vmatpush3.bf16.msra.mxu1 %v7136_v60 }
0x100e   : > { %v3697_v38 = vadd.f32 %v5988_v6, %v3685_v44  ;;  %v3700_v36 = vadd.f32 %v3696_v23, %v7598_v1  ;;  %v7122_v1 = vld [vmem:[%s8355_s6 + $0x98] sm:$0xff]   ;;  %6435 = vmatprep.subr.bf16.mxu1 %v7137_v63 }
0x1010   : > { %v3701_v37 = vadd.f32 %v3697_v38, %v7600_v2  ;;  %v7123_v2 = vld [vmem:[%s8355_s6 + $0xa0] sm:$0xff]  }
0x1011   : > { %6436 = vmatpush3.bf16.msra.mxu1 %v7138_v3 }
0x1012   : > { %v3703_v45 = vpack.c.bf16 %v3701_v37, %v3700_v36  ;;  %6437 = vmatprep.subr.bf16.mxu1 %v7139_v5  ;;  %v6074_v5 = vld [vmem:[%s8359_s10 + $0x2] ss:$0 sm:$0xff] }
0x1014   : > { %6727 = vmatprep.subr.bf16.mxu0 %v3703_v45 }
0x1015   : > { %6728 = vmatpush3.bf16.msra.mxu0 %v3703_v45  ;;  %6438 = vmatpush3.bf16.msra.mxu1 %v7140_v12 }
0x1016   : > { %6733 = vmatprep.subr.bf16.mxu0 %v3702_v39  ;;  %6439 = vmatprep.subr.bf16.mxu1 %v7141_v16 }
0x1018   : > { %6730 = vmatmul.mubr.msk.bf16.vlgmr.msra.gmra.mrb[76].mxu0 %vm462_vm0, %v7120_v53 }
0x1019   : > { %6734 = vmatpush3.bf16.msra.mxu0 %v3702_v39  ;;  %6737 = vmatprep.mubr.msk.bf16.mxu0 %vm462_vm0, %v7121_v54 }
0x101a   : > { %6735 = vmatprep.subr.bf16.mxu0 %v3703_v45  ;;  %6440 = vmatpush3.bf16.msra.mxu1 %v7142_v17 }
0x101d   : > { %6736 = vmatpush3.bf16.msra.mxu0 %v3703_v45 }
0x101e   : > { %6741 = vmatprep.subr.bf16.mxu0 %v3702_v39 }
0x1020   : > { %6738 = vmatmul.mubr.msk.bf16.vlgmr.msra.gmra.mrb[80].mxu0 %vm462_vm0, %v7122_v1 }
0x1021   : > { %6742 = vmatpush3.bf16.msra.mxu0 %v3702_v39  ;;  %6745 = vmatprep.mubr.msk.bf16.mxu0 %vm462_vm0, %v7123_v2 }
0x1022   : > { %6743 = vmatprep.subr.bf16.mxu0 %v3703_v45 }
0x1025   : > { %6744 = vmatpush3.bf16.msra.mxu0 %v3703_v45 }
0x1026   : > { %6749 = vmatprep.subr.bf16.mxu0 %v3702_v39 }
0x1028   : > { %6746 = vmatmul.mubr.msk.bf16.vlgmr.msra.gmra.mrb[84].mxu0 %vm462_vm0, %v7124_v35 }
0x1029   : > { %6750 = vmatpush3.bf16.msra.mxu0 %v3702_v39  ;;  %6753 = vmatprep.mubr.msk.bf16.mxu0 %vm462_vm0, %v7125_v46 }
0x102a   : > { %6751 = vmatprep.subr.bf16.mxu0 %v3703_v45 }
0x102d   : > { %6752 = vmatpush3.bf16.msra.mxu0 %v3703_v45 }
0x1030   : > { %6754 = vmatmul.mubr.msk.bf16.vlgmr.msra.gmra.mrb[88].mxu0 %vm462_vm0, %v7126_v40 }
0x1031   : > { %6761 = vmatprep.mubr.msk.bf16.mxu0 %vm462_vm0, %v7143_v52  ;;  %v7158_v52 = vld [vmem:[%s8356_s7 + $0x198] sm:$0xff]  }
0x10eb   : > { %v6731_v55 = vpop.f32.mrb[76].mxu0 }
0x10ec   : > { %v3759_v56 = vpop.f32.mrb[77].mxu0 }
0x10ed   : > { %v6732_v58 = vpop.f32.mrb[78].mxu0 }
0x10ee   : > { %v3762_v61 = vpop.f32.mrb[79].mxu0 }
0x10f3   : > { %v6739_v0 = vpop.f32.mrb[80].mxu0 }
0x10f4   : > { %v3829_v4 = vpop.f32.mrb[81].mxu0 }
0x10f5   : > { %v6740_v6 = vpop.f32.mrb[82].mxu0 }
0x10f6   : > { %v6936_v7 = vpack.i.bf16 %v6740_v6, %v6739_v0  ;;  %v3832_v10 = vpop.f32.mrb[83].mxu0  ;;  %v6072_v0 = vld [vmem:[%s8358_s9 + $0x2] ss:$0 sm:$0xff] }
0x10f7   : > { %v6926_v11 = vpack.i.bf16 %v3832_v10, %v3829_v4 }
0x10f9   : > { %6927 = vrot.lane.b32.xlu1 %v6926_v11, %s7212_s20 }
0x10fb   : > { %v6747_v14 = vpop.f32.mrb[84].mxu0 }
0x10fc   : > { %v3899_v15 = vpop.f32.mrb[85].mxu0 }
0x10fd   : > { %6937 = vrot.lane.b32.xlu1 %v6936_v7, %s7212_s20  ;;  %v6748_v18 = vpop.f32.mrb[86].mxu0 }
0x10fe   : > { %v3902_v19 = vpop.f32.mrb[87].mxu0 }
0x1103   : > { %v6755_v24 = vpop.f32.mrb[88].mxu0 }
0x1104   : > { %v3969_v25 = vpop.f32.mrb[89].mxu0 }
0x1105   : > { %v6756_v26 = vpop.f32.mrb[90].mxu0 }
0x1106   : > { %v6931_v27 = vpack.i.bf16 %v6756_v26, %v6755_v24  ;;  %v3972_v28 = vpop.f32.mrb[91].mxu0 }
0x1107   : > { %v6921_v31 = vpack.i.bf16 %v3972_v28, %v3969_v25 }
0x1109   : > { %6922 = vrot.lane.b32.xlu0 %v6921_v31, %s7212_s20 }
0x110d   : > { %6932 = vrot.lane.b32.xlu0 %v6931_v27, %s7212_s20 }
0x116b   : > { %v6928_v32 = vpop.permute.xlu1 %6927 }
0x116c   : > { %v6930_v33 = vunpack.i.h.bf16 %v6928_v32  ;;  %v6929_v34 = vunpack.i.l.bf16 %v6928_v32 }
0x116e   : > { %v4017_v39 = vsel %vm674_vm1, %v3762_v61, %v6930_v33  ;;  %v4016_v43 = vsel %vm674_vm1, %v3759_v56, %v6929_v34  ;;  %v6054_v56 = vld [vmem:[%s8357_s8 + $0x2] ss:$0 sm:$0xff] }
0x116f   : > { %v4024_v20 = vpack.c.bf16 %v4017_v39, %v4016_v43  ;;  %v6938_v23 = vpop.permute.xlu1 %6937 }
0x1170   : > { %v6940_v44 = vunpack.i.h.bf16 %v6938_v23  ;;  %v6939_v38 = vunpack.i.l.bf16 %v6938_v23 }
0x1172   : > { %v4018_v36 = vsel %vm674_vm1, %v6731_v55, %v6939_v38  ;;  %v4019_v37 = vsel %vm674_vm1, %v6732_v58, %v6940_v44 }
0x1173   : > { %v4026_v45 = vpack.c.bf16 %v4019_v37, %v4018_v36 }
0x117b   : > { %v6923_v53 = vpop.permute.xlu0 %6922 }
0x117c   : > { %v6925_v54 = vunpack.i.h.bf16 %v6923_v53  ;;  %v6924_v1 = vunpack.i.l.bf16 %v6923_v53  ;;  %v7149_v53 = vld [vmem:[%s8355_s6 + $0xf0] sm:$0xff]  }
0x117e   : > { %v4020_v2 = vsel %vm674_vm1, %v3899_v15, %v6924_v1  ;;  %v4021_v35 = vsel %vm674_vm1, %v3902_v19, %v6925_v54  ;;  %v7150_v54 = vld [vmem:[%s8355_s6 + $0xf8] sm:$0xff]   ;;  %v7151_v1 = vld [vmem:[%s8356_s7 + $0x1c0] sm:$0xff]  }
0x117f   : > { %v6933_v46 = vpop.permute.xlu0 %6932  ;;  %v4025_v40 = vpack.c.bf16 %v4021_v35, %v4020_v2  ;;  %v7152_v2 = vld [vmem:[%s8356_s7 + $0x180] sm:$0xff]   ;;  %v7153_v35 = vld [vmem:[%s8356_s7 + $0x1c8] sm:$0xff]   ;;  %6469 = vmatprep.subr.bf16.mxu1 %v7151_v1 }
0x1180   : > { %v6935_v47 = vunpack.i.h.bf16 %v6933_v46  ;;  %v6934_v48 = vunpack.i.l.bf16 %v6933_v46  ;;  %v7154_v46 = vld [vmem:[%s8356_s7 + $0x188] sm:$0xff]  }
0x1181   : > { %4197 = vmatprep.mubr.bf16.mxu1 %v4025_v40  ;;  %v7155_v40 = vld [vmem:[%s8356_s7 + $0x1d0] sm:$0xff]  }
0x1182   : > { %4198 = vmatmul.mubr.bf16.vlgmr.msra.gmra.mrb[72].mxu1 %v4024_v20  ;;  %v4022_v49 = vsel %vm674_vm1, %v6747_v14, %v6934_v48  ;;  %v4023_v50 = vsel %vm674_vm1, %v6748_v18, %v6935_v47  ;;  %v7156_v47 = vld [vmem:[%s8356_s7 + $0x190] sm:$0xff]  }
0x1183   : > { %v4027_v51 = vpack.c.bf16 %v4023_v50, %v4022_v49  ;;  %6470 = vmatpush3.bf16.msra.mxu1 %v7152_v2  ;;  %v7157_v50 = vld [vmem:[%s8356_s7 + $0x1d8] sm:$0xff]   ;;  %v7167_v2 = vld [vmem:[%s8355_s6 + $0x100] sm:$0xff]  }
0x1184   : > { %6471 = vmatprep.subr.bf16.mxu1 %v7153_v35 }
0x1185   : > { %4205 = vmatprep.mubr.bf16.mxu1 %v4027_v51 }
0x1187   : > { %6472 = vmatpush3.bf16.msra.mxu1 %v7154_v46  ;;  %v6140_v46 = vld [vmem:[%s8357_s8 + $0x3] ss:$0 sm:$0xff] }
0x1188   : > { %6473 = vmatprep.subr.bf16.mxu1 %v7155_v40 }
0x118a   : > { %4206 = vmatmul.mubr.bf16.gmra.mrb[76].mxu1 %v4026_v45  ;;  %v7148_v45 = vld [vmem:[%s8355_s6 + $0xe8] sm:$0xff]  }
0x118b   : > { %6474 = vmatpush3.bf16.msra.mxu1 %v7156_v47 }
0x118c   : > { %6475 = vmatprep.subr.bf16.mxu1 %v7157_v50 }
0x118f   : > { %6476 = vmatpush3.bf16.msra.mxu1 %v7158_v52 }
0x1255   : > { %v6441_v55 = vpop.f32.mrb[72].mxu1 }
0x1256   : > { %v6442_v57 = vpop.f32.mrb[73].mxu1 }
0x1257   : > { %v6443_v58 = vadd.f32 %v6442_v57, %v6441_v55  ;;  %v6444_v59 = vpop.f32.mrb[74].mxu1  ;;  %v7160_v57 = vld [vmem:[%s8356_s7 + $0x1a0] sm:$0xff]  }
0x1258   : > { %v6445_v61 = vpop.f32.mrb[75].mxu1 }
0x1259   : > { %v4200_v62 = vadd.f32 %v6443_v58, %v6054_v56  ;;  %v6446_v60 = vadd.f32 %v6445_v61, %v6444_v59  ;;  %v7161_v58 = vld [vmem:[%s8356_s7 + $0x1e8] sm:$0xff]  }
0x125a   : > { %v7162_v61 = vld [vmem:[%s8356_s7 + $0x1a8] sm:$0xff]  }
0x125b   : > { %vm4214_vm2 = vcmp.ge.f32.partialorder %v4200_v62, 0.0  ;;  %v4218_v63 = vmul.f32 0.2, %v4200_v62  ;;  %v4203_v3 = vadd.f32 %v6446_v60, %v6054_v56  ;;  %v7163_v60 = vld [vmem:[%s8356_s7 + $0x1f0] sm:$0xff]  }
0x125d   : > { %v4222_v4 = vsel %vm4214_vm2, %v4200_v62, %v4218_v63  ;;  %vm4215_vm3 = vcmp.ge.f32.partialorder %v4203_v3, 0.0  ;;  %v4219_v6 = vmul.f32 0.2, %v4203_v3  ;;  %v6447_v7 = vpop.f32.mrb[76].mxu1 }
0x125e   : > { %v4234_v10 = vmul.f32 %v6072_v0, %v4222_v4  ;;  %v6448_v11 = vpop.f32.mrb[77].mxu1 }
0x125f   : > { %v4223_v12 = vsel %vm4215_vm3, %v4203_v3, %v4219_v6  ;;  %v6449_v14 = vadd.f32 %v6448_v11, %v6447_v7  ;;  %v6450_v15 = vpop.f32.mrb[78].mxu1  ;;  %v7166_v11 = vld [vmem:[%s8356_s7 + $0x1b8] sm:$0xff]  }
0x1260   : > { %v4246_v16 = vadd.f32 %v6074_v5, %v4234_v10  ;;  %v4235_v17 = vmul.f32 %v6072_v0, %v4223_v12  ;;  %v6451_v18 = vpop.f32.mrb[79].mxu1  ;;  %v7165_v10 = vld [vmem:[%s8356_s7 + $0x1f8] sm:$0xff]  }
0x1261   : > { %v4208_v19 = vadd.f32 %v6449_v14, %v6054_v56  ;;  %v6452_v24 = vadd.f32 %v6451_v18, %v6450_v15 }
0x1262   : > { %v4247_v25 = vadd.f32 %v6074_v5, %v4235_v17  ;;  %v4250_v28 = vadd.f32 %v4246_v16, %v7492_v29  ;;  %v7144_v29 = vld [vmem:[%s8355_s6 + $0xc8] sm:$0xff]  }
0x1263   : > { %vm4216_vm4 = vcmp.ge.f32.partialorder %v4208_v19, 0.0  ;;  %v4220_v26 = vmul.f32 0.2, %v4208_v19  ;;  %v4211_v27 = vadd.f32 %v6452_v24, %v6054_v56  ;;  %v7159_v56 = vld [vmem:[%s8356_s7 + $0x1e0] sm:$0xff]  }
0x1264   : > { %v4251_v31 = vadd.f32 %v4247_v25, %v7494_v30  ;;  %v7145_v30 = vld [vmem:[%s8355_s6 + $0xd0] sm:$0xff]   ;;  %6477 = vmatprep.subr.bf16.mxu1 %v7159_v56 }
0x1265   : > { %v4224_v32 = vsel %vm4216_vm4, %v4208_v19, %v4220_v26  ;;  %vm4217_vm5 = vcmp.ge.f32.partialorder %v4211_v27, 0.0  ;;  %v4221_v33 = vmul.f32 0.2, %v4211_v27  ;;  %6478 = vmatpush3.bf16.msra.mxu1 %v7160_v57 }
0x1266   : > { %v4254_v34 = vpack.c.bf16 %v4251_v31, %v4250_v28  ;;  %v4236_v39 = vmul.f32 %v6072_v0, %v4224_v32  ;;  %6479 = vmatprep.subr.bf16.mxu1 %v7161_v58  ;;  %v6160_v58 = vld [vmem:[%s8359_s10 + $0x3] ss:$0 sm:$0xff] }
0x1267   : > { %v4225_v43 = vsel %vm4217_vm5, %v4211_v27, %v4221_v33 }
0x1268   : > { %v4248_v20 = vadd.f32 %v6074_v5, %v4236_v39  ;;  %v4237_v23 = vmul.f32 %v6072_v0, %v4225_v43  ;;  %6757 = vmatprep.subr.bf16.mxu0 %v4254_v34 }
0x1269   : > { %6758 = vmatpush3.bf16.msra.mxu0 %v4254_v34  ;;  %6480 = vmatpush3.bf16.msra.mxu1 %v7162_v61 }
0x126a   : > { %v4249_v44 = vadd.f32 %v6074_v5, %v4237_v23  ;;  %v4252_v38 = vadd.f32 %v4248_v20, %v7498_v41  ;;  %v7146_v41 = vld [vmem:[%s8355_s6 + $0xd8] sm:$0xff]   ;;  %v7164_v5 = vld [vmem:[%s8356_s7 + $0x1b0] sm:$0xff]   ;;  %6481 = vmatprep.subr.bf16.mxu1 %v7163_v60 }
0x126c   : > { %v4253_v36 = vadd.f32 %v4249_v44, %v7500_v42  ;;  %v7147_v42 = vld [vmem:[%s8355_s6 + $0xe0] sm:$0xff]  }
0x126d   : > { %6482 = vmatpush3.bf16.msra.mxu1 %v7164_v5 }
0x126e   : > { %v4255_v37 = vpack.c.bf16 %v4253_v36, %v4252_v38  ;;  %6483 = vmatprep.subr.bf16.mxu1 %v7165_v10 }
0x1270   : > { %6759 = vmatprep.subr.bf16.mxu0 %v4255_v37 }
0x1271   : > { %6760 = vmatpush3.bf16.msra.mxu0 %v4255_v37  ;;  %6484 = vmatpush3.bf16.msra.mxu1 %v7166_v11 }
0x1272   : > { %6765 = vmatprep.subr.bf16.mxu0 %v4254_v34 }
0x1274   : > { %6762 = vmatmul.mubr.msk.bf16.vlgmr.msra.gmra.mrb[92].mxu0 %vm462_vm0, %v7144_v29 }
0x1275   : > { %6766 = vmatpush3.bf16.msra.mxu0 %v4254_v34  ;;  %6769 = vmatprep.mubr.msk.bf16.mxu0 %vm462_vm0, %v7145_v30 }
0x1276   : > { %6767 = vmatprep.subr.bf16.mxu0 %v4255_v37 }
0x1279   : > { %6768 = vmatpush3.bf16.msra.mxu0 %v4255_v37 }
0x127a   : > { %6773 = vmatprep.subr.bf16.mxu0 %v4254_v34 }
0x127c   : > { %6770 = vmatmul.mubr.msk.bf16.vlgmr.msra.gmra.mrb[96].mxu0 %vm462_vm0, %v7146_v41 }
0x127d   : > { %6774 = vmatpush3.bf16.msra.mxu0 %v4254_v34  ;;  %6777 = vmatprep.mubr.msk.bf16.mxu0 %vm462_vm0, %v7147_v42 }
0x127e   : > { %6775 = vmatprep.subr.bf16.mxu0 %v4255_v37 }
0x1281   : > { %6776 = vmatpush3.bf16.msra.mxu0 %v4255_v37 }
0x1282   : > { %6781 = vmatprep.subr.bf16.mxu0 %v4254_v34 }
0x1284   : > { %6778 = vmatmul.mubr.msk.bf16.vlgmr.msra.gmra.mrb[100].mxu0 %vm462_vm0, %v7148_v45 }
0x1285   : > { %6782 = vmatpush3.bf16.msra.mxu0 %v4254_v34  ;;  %6785 = vmatprep.mubr.msk.bf16.mxu0 %vm462_vm0, %v7149_v53 }
0x1286   : > { %6783 = vmatprep.subr.bf16.mxu0 %v4255_v37 }
0x1289   : > { %6784 = vmatpush3.bf16.msra.mxu0 %v4255_v37 }
0x128c   : > { %6786 = vmatmul.mubr.msk.bf16.vlgmr.msra.gmra.mrb[104].mxu0 %vm462_vm0, %v7150_v54 }
0x128d   : > { %6793 = vmatprep.mubr.msk.bf16.mxu0 %vm462_vm0, %v7167_v2  ;;  %v7185_v2 = vld [vmem:[%s8356_s7 + $0x268] sm:$0xff]  }
0x1347   : > { %v6763_v48 = vpop.f32.mrb[92].mxu0 }
0x1348   : > { %v4311_v49 = vpop.f32.mrb[93].mxu0 }
0x1349   : > { %v6764_v51 = vpop.f32.mrb[94].mxu0 }
0x134a   : > { %v4314_v55 = vpop.f32.mrb[95].mxu0 }
0x134f   : > { %v6771_v59 = vpop.f32.mrb[96].mxu0 }
0x1350   : > { %v4381_v62 = vpop.f32.mrb[97].mxu0 }
0x1351   : > { %v6772_v63 = vpop.f32.mrb[98].mxu0 }
0x1352   : > { %v6956_v0 = vpack.i.bf16 %v6772_v63, %v6771_v59  ;;  %v4384_v3 = vpop.f32.mrb[99].mxu0 }
0x1353   : > { %v6946_v4 = vpack.i.bf16 %v4384_v3, %v4381_v62 }
0x1355   : > { %6947 = vrot.lane.b32.xlu1 %v6946_v4, %s7212_s20 }
0x1357   : > { %v6779_v6 = vpop.f32.mrb[100].mxu0 }
0x1358   : > { %v4451_v7 = vpop.f32.mrb[101].mxu0 }
0x1359   : > { %6957 = vrot.lane.b32.xlu1 %v6956_v0, %s7212_s20  ;;  %v6780_v12 = vpop.f32.mrb[102].mxu0 }
0x135a   : > { %v4454_v14 = vpop.f32.mrb[103].mxu0 }
0x135f   : > { %v6787_v15 = vpop.f32.mrb[104].mxu0 }
0x1360   : > { %v4521_v16 = vpop.f32.mrb[105].mxu0 }
0x1361   : > { %v6788_v17 = vpop.f32.mrb[106].mxu0 }
0x1362   : > { %v6951_v18 = vpack.i.bf16 %v6788_v17, %v6787_v15  ;;  %v4524_v19 = vpop.f32.mrb[107].mxu0 }
0x1363   : > { %v6941_v24 = vpack.i.bf16 %v4524_v19, %v4521_v16 }
0x1365   : > { %6942 = vrot.lane.b32.xlu0 %v6941_v24, %s7212_s20 }
0x1369   : > { %6952 = vrot.lane.b32.xlu0 %v6951_v18, %s7212_s20 }
0x13c7   : > { %v6948_v25 = vpop.permute.xlu1 %6947 }
0x13c8   : > { %v6950_v26 = vunpack.i.h.bf16 %v6948_v25  ;;  %v6949_v27 = vunpack.i.l.bf16 %v6948_v25 }
0x13ca   : > { %v4569_v28 = vsel %vm674_vm1, %v4314_v55, %v6950_v26  ;;  %v4568_v31 = vsel %vm674_vm1, %v4311_v49, %v6949_v27  ;;  %v6158_v55 = vld [vmem:[%s8358_s9 + $0x3] ss:$0 sm:$0xff] }
0x13cb   : > { %v4576_v32 = vpack.c.bf16 %v4569_v28, %v4568_v31  ;;  %v6958_v33 = vpop.permute.xlu1 %6957 }
0x13cc   : > { %v6960_v34 = vunpack.i.h.bf16 %v6958_v33  ;;  %v6959_v39 = vunpack.i.l.bf16 %v6958_v33 }
0x13ce   : > { %v4570_v43 = vsel %vm674_vm1, %v6763_v48, %v6959_v39  ;;  %v4571_v20 = vsel %vm674_vm1, %v6764_v51, %v6960_v34  ;;  %v7172_v34 = vld [vmem:[%s8355_s6 + $0x128] sm:$0xff]   ;;  %v7173_v39 = vld [vmem:[%s8355_s6 + $0x130] sm:$0xff]  }
0x13cf   : > { %v4578_v23 = vpack.c.bf16 %v4571_v20, %v4570_v43  ;;  %v7174_v43 = vld [vmem:[%s8355_s6 + $0x138] sm:$0xff]   ;;  %v7175_v20 = vld [vmem:[%s8356_s7 + $0x240] sm:$0xff]  }
0x13d0   : > { %6513 = vmatprep.subr.bf16.mxu1 %v7175_v20  ;;  %v7194_v20 = vld [vmem:[%s8360_s11 + $0x10] ss:$8 sps:$4 sm:$0xff]  }
0x13d7   : > { %v6943_v44 = vpop.permute.xlu0 %6942 }
0x13d8   : > { %v6945_v38 = vunpack.i.h.bf16 %v6943_v44  ;;  %v6944_v36 = vunpack.i.l.bf16 %v6943_v44  ;;  %v7177_v44 = vld [vmem:[%s8356_s7 + $0x248] sm:$0xff]  }
0x13da   : > { %v4572_v37 = vsel %vm674_vm1, %v4451_v7, %v6944_v36  ;;  %v4573_v29 = vsel %vm674_vm1, %v4454_v14, %v6945_v38  ;;  %v7178_v38 = vld [vmem:[%s8356_s7 + $0x208] sm:$0xff]   ;;  %v7179_v36 = vld [vmem:[%s8356_s7 + $0x250] sm:$0xff]  }
0x13db   : > { %v6953_v30 = vpop.permute.xlu0 %6952  ;;  %v4577_v41 = vpack.c.bf16 %v4573_v29, %v4572_v37  ;;  %v7180_v37 = vld [vmem:[%s8356_s7 + $0x210] sm:$0xff]  }
0x13dc   : > { %v6955_v42 = vunpack.i.h.bf16 %v6953_v30  ;;  %v6954_v45 = vunpack.i.l.bf16 %v6953_v30 }
0x13dd   : > { %4749 = vmatprep.mubr.bf16.mxu1 %v4577_v41  ;;  %v7181_v41 = vld [vmem:[%s8356_s7 + $0x258] sm:$0xff]  }
0x13de   : > { %4750 = vmatmul.mubr.bf16.vlgmr.msra.gmra.mrb[80].mxu1 %v4576_v32  ;;  %v4574_v53 = vsel %vm674_vm1, %v6779_v6, %v6954_v45  ;;  %v4575_v54 = vsel %vm674_vm1, %v6780_v12, %v6955_v42  ;;  %v7182_v45 = vld [vmem:[%s8356_s7 + $0x218] sm:$0xff]  }
0x13df   : > { %v4579_v1 = vpack.c.bf16 %v4575_v54, %v4574_v53  ;;  %v7183_v54 = vld [vmem:[%s8356_s7 + $0x260] sm:$0xff]  }
0x13e1   : > { %4757 = vmatprep.mubr.bf16.mxu1 %v4579_v1  ;;  %v7184_v1 = vld [vmem:[%s8356_s7 + $0x220] sm:$0xff]  }
0x13e6   : > { %4758 = vmatmul.mubr.bf16.gmra.mrb[84].mxu1 %v4578_v23  ;;  %v7176_v23 = vld [vmem:[%s8356_s7 + $0x200] sm:$0xff]  }
0x13e7   : > { %6514 = vmatpush3.bf16.msra.mxu1 %v7176_v23  ;;  %v7199_v23 = vld [vmem:[%s8360_s11 + $0x24] ss:$8 sps:$4 sm:$0xff]  }
0x13e8   : > { %6515 = vmatprep.subr.bf16.mxu1 %v7177_v44  ;;  %v7197_v44 = vld [vmem:[%s8360_s11 + $0x20] ss:$8 sps:$4 sm:$0xff]  }
0x13eb   : > { %6516 = vmatpush3.bf16.msra.mxu1 %v7178_v38  ;;  %v7202_v38 = vld [vmem:[%s8360_s11 + $0x34] ss:$8 sps:$4 sm:$0xff]  }
0x13ec   : > { %6517 = vmatprep.subr.bf16.mxu1 %v7179_v36  ;;  %v7200_v36 = vld [vmem:[%s8360_s11 + $0x30] ss:$8 sps:$4 sm:$0xff]  }
0x13ef   : > { %6518 = vmatpush3.bf16.msra.mxu1 %v7180_v37 }
0x13f0   : > { %6519 = vmatprep.subr.bf16.mxu1 %v7181_v41 }
0x13f3   : > { %6520 = vmatpush3.bf16.msra.mxu1 %v7182_v45 }
0x13f4   : > { %6521 = vmatprep.subr.bf16.mxu1 %v7183_v54 }
0x13f7   : > { %6522 = vmatpush3.bf16.msra.mxu1 %v7184_v1 }
0x13f8   : > { %6523 = vmatprep.subr.bf16.mxu1 %v7185_v2  ;;  %v6244_v2 = vld [vmem:[%s8358_s9 + $0x4] ss:$0 sm:$0xff] }
0x14b1   : > { %v6485_v35 = vpop.f32.mrb[80].mxu1 }
0x14b2   : > { %v6486_v40 = vpop.f32.mrb[81].mxu1 }
0x14b3   : > { %v6487_v47 = vadd.f32 %v6486_v40, %v6485_v35  ;;  %v6488_v48 = vpop.f32.mrb[82].mxu1 }
0x14b4   : > { %v6489_v49 = vpop.f32.mrb[83].mxu1 }
0x14b5   : > { %v4752_v50 = vadd.f32 %v6487_v47, %v6140_v46  ;;  %v6490_v51 = vadd.f32 %v6489_v49, %v6488_v48  ;;  %v7187_v47 = vld [vmem:[%s8356_s7 + $0x270] sm:$0xff]  }
0x14b7   : > { %vm4766_vm6 = vcmp.ge.f32.partialorder %v4752_v50, 0.0  ;;  %v4770_v52 = vmul.f32 0.2, %v4752_v50  ;;  %v4755_v56 = vadd.f32 %v6490_v51, %v6140_v46 }
0x14b9   : > { %v4774_v57 = vsel %vm4766_vm6, %v4752_v50, %v4770_v52  ;;  %vm4767_vm7 = vcmp.ge.f32.partialorder %v4755_v56, 0.0  ;;  %v4771_v59 = vmul.f32 0.2, %v4755_v56  ;;  %v6491_v61 = vpop.f32.mrb[84].mxu1  ;;  %v7188_v52 = vld [vmem:[%s8356_s7 + $0x230] sm:$0xff]  }
0x14ba   : > { %v4786_v62 = vmul.f32 %v6158_v55, %v4774_v57  ;;  %v6492_v60 = vpop.f32.mrb[85].mxu1  ;;  %v7189_v57 = vld [vmem:[%s8356_s7 + $0x278] sm:$0xff]  }
0x14bb   : > { %v4775_v63 = vsel %vm4767_vm7, %v4755_v56, %v4771_v59  ;;  %v6493_v0 = vadd.f32 %v6492_v60, %v6491_v61  ;;  %v6494_v3 = vpop.f32.mrb[86].mxu1 }
0x14bc   : > { %v4798_v4 = vadd.f32 %v6160_v58, %v4786_v62  ;;  %v4787_v5 = vmul.f32 %v6158_v55, %v4775_v63  ;;  %v6495_v6 = vpop.f32.mrb[87].mxu1 }
0x14bd   : > { %v4760_v7 = vadd.f32 %v6493_v0, %v6140_v46  ;;  %v6496_v10 = vadd.f32 %v6495_v6, %v6494_v3 }
0x14be   : > { %v4799_v11 = vadd.f32 %v6160_v58, %v4787_v5  ;;  %v4802_v15 = vadd.f32 %v4798_v4, %v7390_v8  ;;  %v7168_v8 = vld [vmem:[%s8355_s6 + $0x108] sm:$0xff]  }
0x14bf   : > { %vm4768_vm8 = vcmp.ge.f32.partialorder %v4760_v7, 0.0  ;;  %v4772_v12 = vmul.f32 0.2, %v4760_v7  ;;  %v4763_v14 = vadd.f32 %v6496_v10, %v6140_v46  ;;  %v7186_v46 = vld [vmem:[%s8356_s7 + $0x228] sm:$0xff]  }
0x14c0   : > { %v4803_v16 = vadd.f32 %v4799_v11, %v7392_v9  ;;  %v7169_v9 = vld [vmem:[%s8355_s6 + $0x110] sm:$0xff]   ;;  %6524 = vmatpush3.bf16.msra.mxu1 %v7186_v46 }
0x14c1   : > { %v4776_v17 = vsel %vm4768_vm8, %v4760_v7, %v4772_v12  ;;  %vm4769_vm9 = vcmp.ge.f32.partialorder %v4763_v14, 0.0  ;;  %v4773_v18 = vmul.f32 0.2, %v4763_v14  ;;  %6525 = vmatprep.subr.bf16.mxu1 %v7187_v47 }
0x14c2   : > { %v4806_v19 = vpack.c.bf16 %v4803_v16, %v4802_v15  ;;  %v4788_v24 = vmul.f32 %v6158_v55, %v4776_v17 }
0x14c3   : > { %v4777_v25 = vsel %vm4769_vm9, %v4763_v14, %v4773_v18 }
0x14c4   : > { %v4800_v26 = vadd.f32 %v6160_v58, %v4788_v24  ;;  %v4789_v27 = vmul.f32 %v6158_v55, %v4777_v25  ;;  %6789 = vmatprep.subr.bf16.mxu0 %v4806_v19  ;;  %6526 = vmatpush3.bf16.msra.mxu1 %v7188_v52 }
0x14c5   : > { %6790 = vmatpush3.bf16.msra.mxu0 %v4806_v19  ;;  %6527 = vmatprep.subr.bf16.mxu1 %v7189_v57 }
0x14c6   : > { %v4801_v28 = vadd.f32 %v6160_v58, %v4789_v27  ;;  %v4804_v31 = vadd.f32 %v4800_v26, %v7396_v21  ;;  %v7170_v21 = vld [vmem:[%s8355_s6 + $0x118] sm:$0xff]  }
0x14c7   : > { %v7190_v58 = vld [vmem:[%s8356_s7 + $0x238] sm:$0xff]  }
0x14c8   : > { %v4805_v32 = vadd.f32 %v4801_v28, %v7398_v22  ;;  %v7171_v22 = vld [vmem:[%s8355_s6 + $0x120] sm:$0xff]   ;;  %6528 = vmatpush3.bf16.msra.mxu1 %v7190_v58 }
0x14ca   : > { %v4807_v33 = vpack.c.bf16 %v4805_v32, %v4804_v31 }
0x14cc   : > { %6791 = vmatprep.subr.bf16.mxu0 %v4807_v33 }
0x14cd   : > { %6792 = vmatpush3.bf16.msra.mxu0 %v4807_v33 }
0x14ce   : > { %6797 = vmatprep.subr.bf16.mxu0 %v4806_v19 }
0x14d0   : > { %6794 = vmatmul.mubr.msk.bf16.vlgmr.msra.gmra.mrb[108].mxu0 %vm462_vm0, %v7168_v8 }
0x14d1   : > { %6798 = vmatpush3.bf16.msra.mxu0 %v4806_v19  ;;  %6801 = vmatprep.mubr.msk.bf16.mxu0 %vm462_vm0, %v7169_v9 }
0x14d2   : > { %6799 = vmatprep.subr.bf16.mxu0 %v4807_v33 }
0x14d5   : > { %6800 = vmatpush3.bf16.msra.mxu0 %v4807_v33 }
0x14d6   : > { %6805 = vmatprep.subr.bf16.mxu0 %v4806_v19 }
0x14d8   : > { %6802 = vmatmul.mubr.msk.bf16.vlgmr.msra.gmra.mrb[112].mxu0 %vm462_vm0, %v7170_v21 }
0x14d9   : > { %6806 = vmatpush3.bf16.msra.mxu0 %v4806_v19  ;;  %6809 = vmatprep.mubr.msk.bf16.mxu0 %vm462_vm0, %v7171_v22 }
0x14da   : > { %6807 = vmatprep.subr.bf16.mxu0 %v4807_v33 }
0x14dd   : > { %6808 = vmatpush3.bf16.msra.mxu0 %v4807_v33 }
0x14de   : > { %6813 = vmatprep.subr.bf16.mxu0 %v4806_v19 }
0x14e0   : > { %6810 = vmatmul.mubr.msk.bf16.vlgmr.msra.gmra.mrb[116].mxu0 %vm462_vm0, %v7172_v34  ;;  %v7193_v34 = vld [vmem:[%s8360_s11 + $0x4] ss:$8 sps:$4 sm:$0xff]  }
0x14e1   : > { %6814 = vmatpush3.bf16.msra.mxu0 %v4806_v19  ;;  %6817 = vmatprep.mubr.msk.bf16.mxu0 %vm462_vm0, %v7173_v39  ;;  %v7191_v39 = vld [vmem:[%s8360_s11] ss:$8 sps:$4 sm:$0xff]  }
0x14e2   : > { %6815 = vmatprep.subr.bf16.mxu0 %v4807_v33 }
0x14e5   : > { %6816 = vmatpush3.bf16.msra.mxu0 %v4807_v33 }
0x14e6   : > { %5422 = vmatprep.subr.bf16.mxu0 %v7193_v34 }
0x14e8   : > { %6818 = vmatmul.mubr.msk.bf16.vlgmr.msra.gmra.mrb[120].mxu0 %vm462_vm0, %v7174_v43  ;;  %v7196_v43 = vld [vmem:[%s8360_s11 + $0x14] ss:$8 sps:$4 sm:$0xff]  }
0x14e9   : > { %5454 = vmatprep.mubr.bf16.mxu0 %v7211_v13  ;;  %5423 = vmatpush1.bf16.msra.mxu0 %v7191_v39 }
0x14ea   : > { %5424 = vmatprep.subr.bf16.mxu0 %v7196_v43 }
0x14ed   : > { %5425 = vmatpush1.bf16.msra.mxu0 %v7194_v20 }
0x14ee   : > { %5426 = vmatprep.subr.bf16.mxu0 %v7199_v23 }
0x14f1   : > { %5427 = vmatpush1.bf16.msra.mxu0 %v7197_v44 }
0x14f2   : > { %5428 = vmatprep.subr.bf16.mxu0 %v7202_v38 }
0x14f5   : > { %5429 = vmatpush1.bf16.msra.mxu0 %v7200_v36 }
0x15a3   : > { %v6795_v29 = vpop.f32.mrb[108].mxu0 }
0x15a4   : > { %v4863_v30 = vpop.f32.mrb[109].mxu0 }
0x15a5   : > { %v6796_v42 = vpop.f32.mrb[110].mxu0 }
0x15a6   : > { %v4866_v53 = vpop.f32.mrb[111].mxu0 }
0x15ab   : > { %v6803_v35 = vpop.f32.mrb[112].mxu0 }
0x15ac   : > { %v4933_v40 = vpop.f32.mrb[113].mxu0 }
0x15ad   : > { %v6804_v48 = vpop.f32.mrb[114].mxu0 }
0x15ae   : > { %v6976_v49 = vpack.i.bf16 %v6804_v48, %v6803_v35  ;;  %v4936_v50 = vpop.f32.mrb[115].mxu0 }
0x15af   : > { %v6966_v51 = vpack.i.bf16 %v4936_v50, %v4933_v40  ;;  %v6246_v50 = vld [vmem:[%s8359_s10 + $0x4] ss:$0 sm:$0xff] }
0x15b1   : > { %6967 = vrot.lane.b32.xlu1 %v6966_v51, %s7212_s20 }
0x15b3   : > { %v6811_v55 = vpop.f32.mrb[116].mxu0 }
0x15b4   : > { %v5003_v56 = vpop.f32.mrb[117].mxu0 }
0x15b5   : > { %6977 = vrot.lane.b32.xlu1 %v6976_v49, %s7212_s20  ;;  %v6812_v59 = vpop.f32.mrb[118].mxu0 }
0x15b6   : > { %v5006_v61 = vpop.f32.mrb[119].mxu0 }
0x15bb   : > { %v6819_v62 = vpop.f32.mrb[120].mxu0 }
0x15bc   : > { %v5073_v60 = vpop.f32.mrb[121].mxu0 }
0x15bd   : > { %v6820_v63 = vpop.f32.mrb[122].mxu0 }
0x15be   : > { %v6971_v0 = vpack.i.bf16 %v6820_v63, %v6819_v62  ;;  %v5076_v3 = vpop.f32.mrb[123].mxu0 }
0x15bf   : > { %v6961_v4 = vpack.i.bf16 %v5076_v3, %v5073_v60 }
0x15c1   : > { %6962 = vrot.lane.b32.xlu0 %v6961_v4, %s7212_s20 }
0x15c5   : > { %6972 = vrot.lane.b32.xlu0 %v6971_v0, %s7212_s20 }
0x1623   : > { %v6968_v5 = vpop.permute.xlu1 %6967 }
0x1624   : > { %v6970_v6 = vunpack.i.h.bf16 %v6968_v5  ;;  %v6969_v7 = vunpack.i.l.bf16 %v6968_v5 }
0x1626   : > { %v5121_v10 = vsel %vm674_vm1, %v4866_v53, %v6970_v6  ;;  %v5120_v11 = vsel %vm674_vm1, %v4863_v30, %v6969_v7 }
0x1627   : > { %v5128_v12 = vpack.c.bf16 %v5121_v10, %v5120_v11  ;;  %v6978_v14 = vpop.permute.xlu1 %6977 }
0x1628   : > { %v6980_v15 = vunpack.i.h.bf16 %v6978_v14  ;;  %v6979_v16 = vunpack.i.l.bf16 %v6978_v14  ;;  %v5366_v14 = vlaneseq }
0x162a   : > { %v5122_v17 = vsel %vm674_vm1, %v6795_v29, %v6979_v16  ;;  %v5123_v18 = vsel %vm674_vm1, %v6796_v42, %v6980_v15  ;;  %v6226_v29 = vld [vmem:[%s8357_s8 + $0x4] ss:$0 sm:$0xff]  ;;  %v5367_v15 = vshrl.u32 %v5366_v14, 7 }
0x162b   : > { %v5130_v19 = vpack.c.bf16 %v5123_v18, %v5122_v17  ;;  %v5364_v17 = vld [vmem:[%s8361_s12] sm:$0x3] }
0x162c   : > { %v5368_v16 = vsub.s32 0, %v5367_v15  ;;  %v5372_v18 = vsub.s32 1, %v5367_v15 }
0x1633   : > { %v6963_v24 = vpop.permute.xlu0 %6962 }
0x1634   : > { %v6965_v25 = vunpack.i.h.bf16 %v6963_v24  ;;  %v6964_v26 = vunpack.i.l.bf16 %v6963_v24  ;;  %v5373_v24 = vrot.slane %v5364_v17, %v5372_v18 }
0x1636   : > { %v5124_v27 = vsel %vm674_vm1, %v5003_v56, %v6964_v26  ;;  %v5125_v28 = vsel %vm674_vm1, %v5006_v61, %v6965_v25 }
0x1637   : > { %v6973_v31 = vpop.permute.xlu0 %6972  ;;  %v5129_v32 = vpack.c.bf16 %v5125_v28, %v5124_v27 }
0x1638   : > { %v6975_v33 = vunpack.i.h.bf16 %v6973_v31  ;;  %v6974_v8 = vunpack.i.l.bf16 %v6973_v31 }
0x1639   : > { %5301 = vmatprep.mubr.bf16.mxu1 %v5129_v32 }
0x163a   : > { %5302 = vmatmul.mubr.bf16.vlgmr.msra.gmra.mrb[88].mxu1 %v5128_v12  ;;  %v5126_v9 = vsel %vm674_vm1, %v6811_v55, %v6974_v8  ;;  %v5127_v21 = vsel %vm674_vm1, %v6812_v59, %v6975_v33 }
0x163b   : > { %v5131_v22 = vpack.c.bf16 %v5127_v21, %v5126_v9 }
0x163d   : > { %5309 = vmatprep.mubr.bf16.mxu1 %v5131_v22 }
0x1642   : > { %5310 = vmatmul.mubr.bf16.gmra.mrb[92].mxu1 %v5130_v19  ;;  %v5369_v19 = vrot.slane %v5364_v17, %v5368_v16 }
0x170d   : > { %v6529_v37 = vpop.f32.mrb[88].mxu1 }
0x170e   : > { %v6530_v30 = vpop.f32.mrb[89].mxu1 }
0x170f   : > { %v6531_v41 = vadd.f32 %v6530_v30, %v6529_v37  ;;  %v6532_v42 = vpop.f32.mrb[90].mxu1 }
0x1710   : > { %v6533_v45 = vpop.f32.mrb[91].mxu1 }
0x1711   : > { %v5304_v53 = vadd.f32 %v6531_v41, %v6226_v29  ;;  %v6534_v54 = vadd.f32 %v6533_v45, %v6532_v42 }
0x1713   : > { %vm5318_vm0 = vcmp.ge.f32.partialorder %v5304_v53, 0.0  ;;  %v5322_v1 = vmul.f32 0.2, %v5304_v53  ;;  %v5307_v35 = vadd.f32 %v6534_v54, %v6226_v29 }
0x1715   : > { %v5326_v46 = vsel %vm5318_vm0, %v5304_v53, %v5322_v1  ;;  %vm5319_vm10 = vcmp.ge.f32.partialorder %v5307_v35, 0.0  ;;  %v5323_v40 = vmul.f32 0.2, %v5307_v35  ;;  %v6535_v47 = vpop.f32.mrb[92].mxu1 }
0x1716   : > { %v5338_v48 = vmul.f32 %v6244_v2, %v5326_v46  ;;  %v6536_v49 = vpop.f32.mrb[93].mxu1 }
0x1717   : > { %v5327_v51 = vsel %vm5319_vm10, %v5307_v35, %v5323_v40  ;;  %v6537_v52 = vadd.f32 %v6536_v49, %v6535_v47  ;;  %v6538_v55 = vpop.f32.mrb[94].mxu1 }
0x1718   : > { %v5339_v56 = vmul.f32 %v6244_v2, %v5327_v51  ;;  %v6539_v57 = vpop.f32.mrb[95].mxu1  ;;  %v5350_v61 = vadd.f32 %v6246_v50, %v5338_v48 }
0x1719   : > { %v5312_v58 = vadd.f32 %v6537_v52, %v6226_v29  ;;  %v6540_v59 = vadd.f32 %v6539_v57, %v6538_v55 }
0x171a   : > { %v5351_v62 = vadd.f32 %v6246_v50, %v5339_v56 }
0x171b   : > { %vm5320_vm11 = vcmp.ge.f32.partialorder %v5312_v58, 0.0  ;;  %v5324_v60 = vmul.f32 0.2, %v5312_v58  ;;  %v5315_v63 = vadd.f32 %v6540_v59, %v6226_v29 }
0x171c   : > { %v5354_v0 = vpack.c.bf16 %v5351_v62, %v5350_v61 }
0x171d   : > { %v5328_v3 = vsel %vm5320_vm11, %v5312_v58, %v5324_v60  ;;  %vm5321_vm12 = vcmp.ge.f32.partialorder %v5315_v63, 0.0  ;;  %v5325_v4 = vmul.f32 0.2, %v5315_v63 }
0x171e   : > { %v5340_v5 = vmul.f32 %v6244_v2, %v5328_v3  ;;  %6255 = vmatmul.mubr.msk.bf16.vlgmr.msra.gmra.mrb[124].mxu0 %vm674_vm1, %v5354_v0 }
0x171f   : > { %v5329_v6 = vsel %vm5321_vm12, %v5315_v63, %v5325_v4  ;;  %5464 = vmatprep.mubr.bf16.mxu0 %v7211_v13 }
0x1720   : > { %v5341_v7 = vmul.f32 %v6244_v2, %v5329_v6  ;;  %v5352_v10 = vadd.f32 %v6246_v50, %v5340_v5 }
0x1722   : > { %v5353_v11 = vadd.f32 %v6246_v50, %v5341_v7 }
0x1724   : > { %v5355_v12 = vpack.c.bf16 %v5353_v11, %v5352_v10 }
0x1726   : > { %6256 = vmatmul.mubr.msk.bf16.gmra.mrb[128].mxu0 %vm674_vm1, %v5355_v12 }
0x17f1   : > { %v5456_v13 = vpop.f32.mrb[124].mxu0 }
0x17f2   : > { %v5457_v25 = vadd.f32 %v5456_v13, %v5369_v19  ;;  %v5458_v26 = vpop.f32.mrb[125].mxu0 }
0x17f3   : > { %v5459_v27 = vadd.f32 %v5458_v26, %v5373_v24  ;;  %v5460_v28 = vpop.f32.mrb[126].mxu0 }
0x17f4   : > { %5475 = vst [vmem:[%s440_s22] sm:$0xff] %v5457_v25  ;;  %v5461_v31 = vadd.f32 %v5460_v28, %v5369_v19  ;;  %v5462_v32 = vpop.f32.mrb[127].mxu0 }
0x17f5   : > { %5476 = vst [vmem:[%s440_s22 + $0x8] sm:$0xff] %v5459_v27  ;;  %v5463_v33 = vadd.f32 %v5462_v32, %v5373_v24 }
0x17f6   : > { %5477 = vst [vmem:[%s440_s22 + $0x10] sm:$0xff] %v5461_v31 }
0x17f7   : > { %5478 = vst [vmem:[%s440_s22 + $0x18] sm:$0xff] %v5463_v33 }
0x17f9   : > { %v5466_v8 = vpop.f32.mrb[128].mxu0 }
0x17fa   : > { %v5467_v9 = vadd.f32 %v5466_v8, %v5369_v19  ;;  %v5468_v21 = vpop.f32.mrb[129].mxu0 }
0x17fb   : > { %v5469_v22 = vadd.f32 %v5468_v21, %v5373_v24  ;;  %v5470_v34 = vpop.f32.mrb[130].mxu0 }
0x17fc   : > { %5479 = vst [vmem:[%s440_s22 + $0x20] sm:$0xff] %v5467_v9  ;;  %v5471_v39 = vadd.f32 %v5470_v34, %v5369_v19  ;;  %v5472_v43 = vpop.f32.mrb[131].mxu0 }
0x17fd   : > { %5480 = vst [vmem:[%s440_s22 + $0x28] sm:$0xff] %v5469_v22  ;;  %v5473_v20 = vadd.f32 %v5472_v43, %v5373_v24 }
0x17fe   : > { %5481 = vst [vmem:[%s440_s22 + $0x30] sm:$0xff] %v5471_v39 }
0x17ff   : > { %5482 = vst [vmem:[%s440_s22 + $0x38] sm:$0xff] %v5473_v20 }
0x1800 PF: > { %s23_s25 = sadd.s32 1, %s7209_s25  }
0x1801   : > { %p20_p4 = scmp.ge.s32.totalorder %s23_s25, 4  }
0x1803   :  { %22 = sbr.rel (!%p20_p4) target bundleno = 1 (0x1), region = 167 }

// kernel: model_forward.9
= control target key start
LH: loop header
LB: loop body
LE: loop exit
PB: predicated region body
PF: predicated region fallthrough
CT: control target
= control target key end

     0   :  { %v550_v3 = vmov 0   ;;  %vm111_vm0 = vcmask 130048   ;;  %s713_s1 = inlined_call_operand.vmem [shape: bf16[16,2048], index: 1, kind: input, shape index: {}]   ;;  %s714_s0 = inlined_call_operand.vmem [shape: f32[8,16], index: 0, kind: input, shape index: {}]   ;;  %s715_s2 = inlined_call_operand.vmem [shape: f32[8,2048], index: 2, kind: output, shape index: {}]  }
   0x1   :  { %v15_v0 = vld [vmem:[%s713_s1] sm:$0xff]  ;;  %v16_v2 = vld [vmem:[%s713_s1 + $0x8] sm:$0xff]  ;;  %147 = vmatprep.mubr.bf16.mxu0 %v550_v3  ;;  %188 = vmatprep.mubr.bf16.mxu1 %v550_v3  ;;  %v17_v8 = vld [vmem:[%s713_s1 + $0x10] sm:$0xff] }
   0x2   :  { %v23_v1 = vld [vmem:[%s713_s1 + $0x40] sm:$0xff]  ;;  %v24_v6 = vld [vmem:[%s713_s1 + $0x48] sm:$0xff]  ;;  %v25_v12 = vld [vmem:[%s713_s1 + $0x50] sm:$0xff] }
   0x3   :  { %v522_v4 = vcombine.high %v15_v0, %v23_v1  ;;  %v521_v5 = vcombine.low %v15_v0, %v23_v1  ;;  %v12_v7 = vld [vmem:[%s714_s0] sm:$0xff]  ;;  %v524_v9 = vcombine.high %v16_v2, %v24_v6  ;;  %v523_v10 = vcombine.low %v16_v2, %v24_v6  ;;  %v18_v13 = vld [vmem:[%s713_s1 + $0x18] sm:$0xff]  ;;  %v20_v21 = vld [vmem:[%s713_s1 + $0x28] sm:$0xff] }
   0x4   :  { %v13_v11 = vmax.f32 %v12_v7, 0.0  ;;  %v26_v14 = vld [vmem:[%s713_s1 + $0x58] sm:$0xff]  ;;  %v526_v15 = vcombine.high %v17_v8, %v25_v12  ;;  %v19_v17 = vld [vmem:[%s713_s1 + $0x20] sm:$0xff]  ;;  %v525_v20 = vcombine.low %v17_v8, %v25_v12  ;;  %v28_v22 = vld [vmem:[%s713_s1 + $0x68] sm:$0xff] }
   0x5   :  { %115 = vmatprep.subr.bf16.mxu0 %v522_v4  ;;  %v528_v16 = vcombine.high %v18_v13, %v26_v14  ;;  %v27_v18 = vld [vmem:[%s713_s1 + $0x60] sm:$0xff]  ;;  %156 = vmatprep.subr.bf16.mxu1 %v524_v9  ;;  %v527_v23 = vcombine.low %v18_v13, %v26_v14  ;;  %v532_v25 = vcombine.high %v20_v21, %v28_v22  ;;  %v21_v26 = vld [vmem:[%s713_s1 + $0x30] sm:$0xff]  ;;  %v22_v29 = vld [vmem:[%s713_s1 + $0x38] sm:$0xff] }
   0x6   :  { %116 = vmatpush1.bf16.msra.mxu0 %v521_v5  ;;  %v14_v19 = vpack.c.bf16 %v13_v11, %v13_v11  ;;  %157 = vmatpush1.bf16.msra.mxu1 %v523_v10  ;;  %v530_v24 = vcombine.high %v19_v17, %v27_v18  ;;  %v29_v27 = vld [vmem:[%s713_s1 + $0x70] sm:$0xff]  ;;  %v529_v28 = vcombine.low %v19_v17, %v27_v18  ;;  %v30_v30 = vld [vmem:[%s713_s1 + $0x78] sm:$0xff] }
   0x7   :  { %197 = vmatprep.subr.bf16.mxu0 %v526_v15  ;;  %238 = vmatprep.subr.bf16.mxu1 %v528_v16  ;;  %v531_v31 = vcombine.low %v20_v21, %v28_v22  ;;  %v534_v32 = vcombine.high %v21_v26, %v29_v27  ;;  %v536_v33 = vcombine.high %v22_v29, %v30_v30 }
   0x8   :  { %v533_v34 = vcombine.low %v21_v26, %v29_v27  ;;  %v535_v35 = vcombine.low %v22_v29, %v30_v30 }
   0x9   :  { %537 = vmatmul.mubr.msk.bf16.vlgmr.msra.gmra.mrb[0].mxu0 %vm111_vm0, %v14_v19  ;;  %538 = vmatmul.mubr.msk.bf16.vlgmr.msra.gmra.mrb[0].mxu1 %vm111_vm0, %v14_v19 }
   0xa   :  { %198 = vmatpush1.bf16.msra.mxu0 %v525_v20  ;;  %239 = vmatpush1.bf16.msra.mxu1 %v527_v23 }
   0xb   :  { %229 = vmatprep.mubr.bf16.mxu0 %v550_v3  ;;  %279 = vmatprep.subr.bf16.mxu0 %v530_v24 }
   0xc   :  { %270 = vmatprep.mubr.bf16.mxu1 %v550_v3  ;;  %320 = vmatprep.subr.bf16.mxu1 %v532_v25 }
  0x11   :  { %539 = vmatmul.mubr.msk.bf16.vlgmr.msra.gmra.mrb[4].mxu0 %vm111_vm0, %v14_v19  ;;  %540 = vmatmul.mubr.msk.bf16.vlgmr.msra.gmra.mrb[4].mxu1 %vm111_vm0, %v14_v19 }
  0x12   :  { %280 = vmatpush1.bf16.msra.mxu0 %v529_v28  ;;  %321 = vmatpush1.bf16.msra.mxu1 %v531_v31 }
  0x13   :  { %311 = vmatprep.mubr.bf16.mxu0 %v550_v3  ;;  %361 = vmatprep.subr.bf16.mxu0 %v534_v32 }
  0x14   :  { %352 = vmatprep.mubr.bf16.mxu1 %v550_v3  ;;  %402 = vmatprep.subr.bf16.mxu1 %v536_v33 }
  0x19   :  { %541 = vmatmul.mubr.msk.bf16.vlgmr.msra.gmra.mrb[8].mxu0 %vm111_vm0, %v14_v19  ;;  %542 = vmatmul.mubr.msk.bf16.vlgmr.msra.gmra.mrb[8].mxu1 %vm111_vm0, %v14_v19 }
  0x1a   :  { %362 = vmatpush1.bf16.msra.mxu0 %v533_v34  ;;  %403 = vmatpush1.bf16.msra.mxu1 %v535_v35 }
  0x1b   :  { %393 = vmatprep.mubr.bf16.mxu0 %v550_v3  ;;  %434 = vmatprep.mubr.bf16.mxu1 %v550_v3 }
  0x21   :  { %543 = vmatmul.mubr.msk.bf16.vlgmr.msra.gmra.mrb[12].mxu0 %vm111_vm0, %v14_v19  ;;  %544 = vmatmul.mubr.msk.bf16.vlgmr.msra.gmra.mrb[12].mxu1 %vm111_vm0, %v14_v19 }
  0xdc   :  { %v625_v36 = vpop.f32.mrb[0].mxu0  ;;  %v631_v39 = vpop.f32.mrb[0].mxu1 }
  0xdd   :  { %v443_v37 = vmul.f32 %v625_v36, %v625_v36  ;;  %v629_v38 = vpop.f32.mrb[1].mxu0  ;;  %v445_v42 = vmul.f32 %v631_v39, %v631_v39  ;;  %v637_v43 = vpop.f32.mrb[1].mxu1 }
  0xde   :  { %v444_v40 = vmul.f32 %v629_v38, %v629_v38  ;;  %v153_v41 = vpop.f32.mrb[2].mxu0  ;;  %v194_v45 = vpop.f32.mrb[2].mxu1  ;;  %v446_v47 = vmul.f32 %v637_v43, %v637_v43 }
  0xdf   :  { %v154_v44 = vpop.f32.mrb[3].mxu0  ;;  %v195_v48 = vpop.f32.mrb[3].mxu1 }
  0xe0   :  { %v459_v46 = vadd.f32 %v444_v40, %v443_v37 }
  0xe2   :  { %v460_v49 = vadd.f32 %v459_v46, %v445_v42 }
  0xe4   :  { %v461_v50 = vadd.f32 %v460_v49, %v446_v47  ;;  %v641_v51 = vpop.f32.mrb[4].mxu0  ;;  %v647_v54 = vpop.f32.mrb[4].mxu1 }
  0xe5   :  { %v447_v52 = vmul.f32 %v641_v51, %v641_v51  ;;  %v645_v53 = vpop.f32.mrb[5].mxu0  ;;  %v651_v57 = vpop.f32.mrb[5].mxu1  ;;  %v449_v59 = vmul.f32 %v647_v54, %v647_v54 }
  0xe6   :  { %v448_v55 = vmul.f32 %v645_v53, %v645_v53  ;;  %v235_v56 = vpop.f32.mrb[6].mxu0  ;;  %v276_v61 = vpop.f32.mrb[6].mxu1  ;;  %v450_v1 = vmul.f32 %v651_v57, %v651_v57 }
  0xe7   :  { %v462_v58 = vadd.f32 %v461_v50, %v447_v52  ;;  %v236_v60 = vpop.f32.mrb[7].mxu0  ;;  %v277_v62 = vpop.f32.mrb[7].mxu1 }
  0xe9   :  { %v463_v63 = vadd.f32 %v462_v58, %v448_v55 }
  0xeb   :  { %v464_v0 = vadd.f32 %v463_v63, %v449_v59 }
  0xec   :  { %v313_v2 = vpop.f32.mrb[8].mxu0  ;;  %v354_v6 = vpop.f32.mrb[8].mxu1 }
  0xed   :  { %v465_v3 = vadd.f32 %v464_v0, %v450_v1  ;;  %v451_v4 = vmul.f32 %v313_v2, %v313_v2  ;;  %v315_v5 = vpop.f32.mrb[9].mxu0  ;;  %v356_v9 = vpop.f32.mrb[9].mxu1  ;;  %v453_v11 = vmul.f32 %v354_v6, %v354_v6 }
  0xee   :  { %v452_v7 = vmul.f32 %v315_v5, %v315_v5  ;;  %v317_v8 = vpop.f32.mrb[10].mxu0  ;;  %v358_v13 = vpop.f32.mrb[10].mxu1  ;;  %v454_v17 = vmul.f32 %v356_v9, %v356_v9 }
  0xef   :  { %v466_v10 = vadd.f32 %v465_v3, %v451_v4  ;;  %v318_v12 = vpop.f32.mrb[11].mxu0  ;;  %v359_v14 = vpop.f32.mrb[11].mxu1 }
  0xf1   :  { %v467_v15 = vadd.f32 %v466_v10, %v452_v7 }
  0xf3   :  { %v468_v16 = vadd.f32 %v467_v15, %v453_v11 }
  0xf4   :  { %v395_v18 = vpop.f32.mrb[12].mxu0  ;;  %v436_v22 = vpop.f32.mrb[12].mxu1 }
  0xf5   :  { %v469_v19 = vadd.f32 %v468_v16, %v454_v17  ;;  %v455_v20 = vmul.f32 %v395_v18, %v395_v18  ;;  %v397_v21 = vpop.f32.mrb[13].mxu0  ;;  %v438_v25 = vpop.f32.mrb[13].mxu1  ;;  %v457_v27 = vmul.f32 %v436_v22, %v436_v22 }
  0xf6   :  { %v456_v23 = vmul.f32 %v397_v21, %v397_v21  ;;  %v399_v24 = vpop.f32.mrb[14].mxu0  ;;  %v440_v29 = vpop.f32.mrb[14].mxu1  ;;  %v458_v32 = vmul.f32 %v438_v25, %v438_v25 }
  0xf7   :  { %v470_v26 = vadd.f32 %v469_v19, %v455_v20  ;;  %v400_v28 = vpop.f32.mrb[15].mxu0  ;;  %v441_v30 = vpop.f32.mrb[15].mxu1 }
  0xf9   :  { %v471_v31 = vadd.f32 %v470_v26, %v456_v23 }
  0xfb   :  { %v472_v33 = vadd.f32 %v471_v31, %v457_v27 }
  0xfd   :  { %v473_v34 = vadd.f32 %v472_v33, %v458_v32 }
  0xff   :  { %474 = vadd.xlane.f32.xlu0 %v473_v34 }
 0x18c   :  { %v475_v35 = vpop.xlane.xlu0 %474 }
 0x18d   :  { %546 = vrsqrt.f32 %v475_v35  ;;  %vm478_vm1 = vcmp.eq.f32.partialorder %v475_v35, inf  ;;  %v481_v41 = vand.u32 2147483648, %v475_v35  ;;  %vm480_vm2 = vcmp.eq.f32.partialorder %v475_v35, 0.0 }
 0x197   :  { %v547_v37 = vpop.eup %546 }
 0x198   :  { %v477_v40 = vmul.f32 %v547_v37, %v475_v35 }
 0x19a   :  { %v479_v42 = vsel %vm478_vm1, %v475_v35, %v477_v40 }
 0x19b   :  { %v482_v44 = vsel %vm480_vm2, %v481_v41, %v479_v42 }
 0x19c   :  { %v483_v45 = vadd.f32 1e-08, %v482_v44 }
 0x19e   :  { %548 = vrcp.f32 %v483_v45 }
 0x1a8   :  { %v549_v46 = vpop.eup %548 }
 0x1a9   :  { %v485_v47 = vmul.f32 %v549_v46, %v625_v36  ;;  %v486_v48 = vmul.f32 %v549_v46, %v629_v38  ;;  %v487_v49 = vmul.f32 %v549_v46, %v631_v39  ;;  %v488_v50 = vmul.f32 %v549_v46, %v637_v43 }
 0x1aa   :  { %v489_v52 = vmul.f32 %v549_v46, %v641_v51  ;;  %v490_v55 = vmul.f32 %v549_v46, %v645_v53  ;;  %v491_v56 = vmul.f32 %v549_v46, %v647_v54  ;;  %v492_v58 = vmul.f32 %v549_v46, %v651_v57 }
 0x1ab   :  { %v493_v59 = vmul.f32 %v549_v46, %v313_v2  ;;  %v494_v60 = vmul.f32 %v549_v46, %v315_v5  ;;  %v495_v61 = vmul.f32 %v549_v46, %v354_v6  ;;  %v496_v62 = vmul.f32 %v549_v46, %v356_v9  ;;  %501 = vst [vmem:[%s715_s2] sm:$0xff] %v485_v47 }
 0x1ac   :  { %502 = vst [vmem:[%s715_s2 + $0x8] sm:$0xff] %v486_v48  ;;  %503 = vst [vmem:[%s715_s2 + $0x10] sm:$0xff] %v487_v49  ;;  %v497_v36 = vmul.f32 %v549_v46, %v395_v18  ;;  %v498_v38 = vmul.f32 %v549_v46, %v397_v21  ;;  %v499_v39 = vmul.f32 %v549_v46, %v436_v22 }
 0x1ad   :  { %504 = vst [vmem:[%s715_s2 + $0x18] sm:$0xff] %v488_v50  ;;  %v500_v43 = vmul.f32 %v549_v46, %v438_v25  ;;  %505 = vst [vmem:[%s715_s2 + $0x20] sm:$0xff] %v489_v52 }
 0x1ae   :  { %506 = vst [vmem:[%s715_s2 + $0x28] sm:$0xff] %v490_v55  ;;  %507 = vst [vmem:[%s715_s2 + $0x30] sm:$0xff] %v491_v56 }
 0x1af   :  { %508 = vst [vmem:[%s715_s2 + $0x38] sm:$0xff] %v492_v58  ;;  %509 = vst [vmem:[%s715_s2 + $0x40] sm:$0xff] %v493_v59 }
 0x1b0   :  { %510 = vst [vmem:[%s715_s2 + $0x48] sm:$0xff] %v494_v60  ;;  %511 = vst [vmem:[%s715_s2 + $0x50] sm:$0xff] %v495_v61 }
 0x1b1   :  { %512 = vst [vmem:[%s715_s2 + $0x58] sm:$0xff] %v496_v62  ;;  %513 = vst [vmem:[%s715_s2 + $0x60] sm:$0xff] %v497_v36 }
 0x1b2   :  { %514 = vst [vmem:[%s715_s2 + $0x68] sm:$0xff] %v498_v38  ;;  %515 = vst [vmem:[%s715_s2 + $0x70] sm:$0xff] %v499_v39 }
 0x1b3   :  { %516 = vst [vmem:[%s715_s2 + $0x78] sm:$0xff] %v500_v43 }

// kernel: model_forward.8
= control target key start
LH: loop header
LB: loop body
LE: loop exit
PB: predicated region body
PF: predicated region fallthrough
CT: control target
= control target key end

     0   :  { %s1073_s21 = smov 0   ;;  %s1232_s0 = inlined_call_operand.vmem [shape: f32[256,64], index: 0, kind: input, shape index: {}]   ;;  %s1233_s1 = inlined_call_operand.vmem [shape: f32[256,32], index: 1, kind: input, shape index: {}]   ;;  %s1234_s2 = inlined_call_operand.vmem [shape: bf16[96,32], index: 2, kind: input, shape index: {}]   ;;  %s1235_s3 = inlined_call_operand.vmem [shape: f32[1,32], index: 3, kind: input, shape index: {}]   ;;  %s1236_s4 = inlined_call_operand.vmem [shape: bf16[32,128], index: 4, kind: input, shape index: {}]   ;;  %s1237_s5 = inlined_call_operand.vmem [shape: f32[1,128], index: 5, kind: input, shape index: {}]   ;;  %s1238_s6 = inlined_call_operand.vmem [shape: f32[256,128], index: 6, kind: output, shape index: {}]  }
   0x1 LB: > { %s829_s22 = sadd.s32 4294967295, %s1035_s21   ;;  %p833_p0 = scmp.ge.s32.totalorder %s1035_s21, 1  ;;  %s1035_s21 = sphi %s1073_s21, %s16_s21  }
   0x2   : > { %p224_p1 = scmp.lt.s32.totalorder %s1035_s21, 3 }
   0x4   : > { %p225_p2 = pnand %p833_p0, %p224_p1 }
   0x5   : > { %s834_s23 = sshll.u32 (!%p225_p2), %s829_s22, 4  ;;  %v989_v0 = vld [vmem:[%s1234_s2] sm:$0xff] (!%p225_p2)   ;;  %v990_v1 = vld [vmem:[%s1234_s2 + $0x8] sm:$0xff] (!%p225_p2)   ;;  %v991_v2 = vld [vmem:[%s1234_s2 + $0x10] sm:$0xff] (!%p225_p2)   ;;  %s1037_s12 = smov (!%p225_p2), 64   ;;  %vm374_vm0 = vcmask (!%p225_p2), 523264  }
   0x6   : > { %228 = sbr.rel (%p225_p2) target bundleno = 616 (0x268), region = 44  ;;  %p260_p3 = scmp.lt.s32.totalorder (!%p225_p2), %s834_s23, 31  ;;  %892 = vmatprep.subr.bf16.mxu0 (!%p225_p2), %v989_v0  ;;  %v992_v13 = vld [vmem:[%s1234_s2 + $0x18] sm:$0xff] (!%p225_p2)   ;;  %v993_v20 = vld [vmem:[%s1234_s2 + $0x20] sm:$0xff] (!%p225_p2)   ;;  %v994_v27 = vld [vmem:[%s1234_s2 + $0x28] sm:$0xff] (!%p225_p2)   ;;  %vm454_vm1 = vcmask (!%p225_p2), 785408  }
   0x7   : > { %893 = vmatpush3.bf16.msra.mxu0 (!%p225_p2), %v989_v0  ;;  %vm607_vm2 = vcmask (!%p225_p2), 261120  }
   0x8   : > { %894 = vmatprep.subr.bf16.mxu0 (!%p225_p2), %v990_v1 }
   0xb   : > { %895 = vmatpush3.bf16.msra.mxu0 (!%p225_p2), %v990_v1 }
   0xc   : > { %896 = vmatprep.subr.bf16.mxu0 (!%p225_p2), %v991_v2 }
   0xd   : > { %s1240_s23 = smov (!%p260_p3, %s834_s23), 31 }
   0xe   : > { %s1087_s28 = sshll.u32 %s1240_s23, 3 }
   0xf   : > { %s1096_s9 = scalar_lea.vmem %s1233_s1, %s1087_s28  ;;  %897 = vmatpush3.bf16.msra.mxu0 %v991_v2  ;;  %s1127_s19 = scalar_lea.vmem %s1232_s0, %s1087_s28 }
  0x10   : > { %v294_v3 = vld [vmem:[%s1096_s9] sm:$0xff]  ;;  %v295_v4 = vld [vmem:[%s1096_s9 + $0x8] sm:$0xff]  ;;  %v296_v5 = vld [vmem:[%s1096_s9 + $0x10] sm:$0xff]  ;;  %898 = vmatprep.subr.bf16.mxu0 %v992_v13  ;;  %s1201_s8 = scalar_lea.vmem %s1238_s6, %s1087_s28 }
  0x11   : > { %v949_v6 = vpack.i.bf16 %v295_v4, %v294_v3  ;;  %v297_v7 = vld [vmem:[%s1096_s9 + $0x18] sm:$0xff]  ;;  %v298_v8 = vld [vmem:[%s1096_s9 + $0x20] sm:$0xff]  ;;  %v299_v9 = vld [vmem:[%s1096_s9 + $0x28] sm:$0xff] }
  0x12   : > { %v959_v10 = vpack.i.bf16 %v299_v9, %v298_v8  ;;  %v300_v11 = vld [vmem:[%s1096_s9 + $0x30] sm:$0xff]  ;;  %v301_v12 = vld [vmem:[%s1096_s9 + $0x38] sm:$0xff]  ;;  %v954_v14 = vpack.i.bf16 %v297_v7, %v296_v5  ;;  %v302_v16 = vld [vmem:[%s1096_s9 + $0x40] sm:$0xff] }
  0x13   : > { %950 = vrot.lane.b32.xlu0 %v949_v6, %s1037_s12  ;;  %v964_v15 = vpack.i.bf16 %v301_v12, %v300_v11  ;;  %v303_v17 = vld [vmem:[%s1096_s9 + $0x48] sm:$0xff]  ;;  %v304_v18 = vld [vmem:[%s1096_s9 + $0x50] sm:$0xff]  ;;  %v305_v19 = vld [vmem:[%s1096_s9 + $0x58] sm:$0xff]  ;;  %899 = vmatpush3.bf16.msra.mxu0 %v992_v13 }
  0x14   : > { %960 = vrot.lane.b32.xlu1 %v959_v10, %s1037_s12  ;;  %v969_v21 = vpack.i.bf16 %v303_v17, %v302_v16  ;;  %v974_v22 = vpack.i.bf16 %v305_v19, %v304_v18  ;;  %v306_v23 = vld [vmem:[%s1096_s9 + $0x60] sm:$0xff]  ;;  %v307_v24 = vld [vmem:[%s1096_s9 + $0x68] sm:$0xff]  ;;  %v308_v25 = vld [vmem:[%s1096_s9 + $0x70] sm:$0xff]  ;;  %900 = vmatprep.subr.bf16.mxu0 %v993_v20 }
  0x15   : > { %v309_v26 = vld [vmem:[%s1096_s9 + $0x78] sm:$0xff]  ;;  %v979_v28 = vpack.i.bf16 %v307_v24, %v306_v23  ;;  %v278_v31 = vld [vmem:[%s1127_s19] sm:$0xff]  ;;  %v279_v32 = vld [vmem:[%s1127_s19 + $0x8] sm:$0xff] }
  0x16   : > { %v984_v29 = vpack.i.bf16 %v309_v26, %v308_v25  ;;  %v282_v36 = vld [vmem:[%s1127_s19 + $0x20] sm:$0xff]  ;;  %v283_v37 = vld [vmem:[%s1127_s19 + $0x28] sm:$0xff]  ;;  %v280_v43 = vld [vmem:[%s1127_s19 + $0x10] sm:$0xff] }
  0x17   : > { %955 = vrot.lane.b32.xlu0 %v954_v14, %s1037_s12  ;;  %901 = vmatpush3.bf16.msra.mxu0 %v993_v20  ;;  %v281_v44 = vld [vmem:[%s1127_s19 + $0x18] sm:$0xff]  ;;  %v284_v57 = vld [vmem:[%s1127_s19 + $0x30] sm:$0xff]  ;;  %v286_v62 = vld [vmem:[%s1127_s19 + $0x40] sm:$0xff] }
  0x18   : > { %965 = vrot.lane.b32.xlu1 %v964_v15, %s1037_s12  ;;  %902 = vmatprep.subr.bf16.mxu0 %v994_v27  ;;  %v285_v58 = vld [vmem:[%s1127_s19 + $0x38] sm:$0xff]  ;;  %v287_v63 = vld [vmem:[%s1127_s19 + $0x48] sm:$0xff]  ;;  %v288_v10 = vld [vmem:[%s1127_s19 + $0x50] sm:$0xff] }
  0x19   : > { %v289_v11 = vld [vmem:[%s1127_s19 + $0x58] sm:$0xff]  ;;  %v290_v14 = vld [vmem:[%s1127_s19 + $0x60] sm:$0xff]  ;;  %v291_v15 = vld [vmem:[%s1127_s19 + $0x68] sm:$0xff] }
  0x1a   : > { %v292_v25 = vld [vmem:[%s1127_s19 + $0x70] sm:$0xff]  ;;  %v293_v26 = vld [vmem:[%s1127_s19 + $0x78] sm:$0xff] }
  0x1b   : > { %970 = vrot.lane.b32.xlu0 %v969_v21, %s1037_s12  ;;  %903 = vmatpush3.bf16.msra.mxu0 %v994_v27 }
  0x1c   : > { %975 = vrot.lane.b32.xlu1 %v974_v22, %s1037_s12 }
  0x1f   : > { %980 = vrot.lane.b32.xlu0 %v979_v28, %s1037_s12 }
  0x20   : > { %985 = vrot.lane.b32.xlu1 %v984_v29, %s1037_s12 }
  0x85   : > { %v951_v30 = vpop.permute.xlu0 %950 }
  0x86   : > { %v953_v33 = vunpack.i.h.bf16 %v951_v30  ;;  %v952_v34 = vunpack.i.l.bf16 %v951_v30  ;;  %v961_v35 = vpop.permute.xlu1 %960  ;;  %v995_v30 = vld [vmem:[%s1236_s4] sm:$0xff]  }
  0x87   : > { %v963_v38 = vunpack.i.h.bf16 %v961_v35  ;;  %v962_v39 = vunpack.i.l.bf16 %v961_v35  ;;  %920 = vmatprep.subr.bf16.mxu1 %v995_v30 }
  0x88   : > { %v375_v40 = vsel %vm374_vm0, %v278_v31, %v952_v34  ;;  %v376_v41 = vsel %vm374_vm0, %v279_v32, %v953_v33  ;;  %921 = vmatpush3.bf16.msra.mxu1 %v995_v30  ;;  %v996_v31 = vld [vmem:[%s1236_s4 + $0x8] sm:$0xff]   ;;  %v840_v33 = vld [vmem:[%s1235_s3] ss:$0 sm:$0xff] }
  0x89   : > { %v956_v42 = vpop.permute.xlu0 %955  ;;  %v391_v45 = vpack.c.bf16 %v376_v41, %v375_v40  ;;  %v379_v46 = vsel %vm374_vm0, %v282_v36, %v962_v39  ;;  %v380_v47 = vsel %vm374_vm0, %v283_v37, %v963_v38  ;;  %922 = vmatprep.subr.bf16.mxu1 %v996_v31 }
  0x8a   : > { %v958_v48 = vunpack.i.h.bf16 %v956_v42  ;;  %v957_v49 = vunpack.i.l.bf16 %v956_v42  ;;  %v966_v50 = vpop.permute.xlu1 %965  ;;  %v393_v51 = vpack.c.bf16 %v380_v47, %v379_v46 }
  0x8b   : > { %904 = vmatprep.mubr.msk.bf16.mxu0 %vm454_vm1, %v391_v45  ;;  %v968_v54 = vunpack.i.h.bf16 %v966_v50  ;;  %v967_v55 = vunpack.i.l.bf16 %v966_v50 }
  0x8c   : > { %v377_v52 = vsel %vm374_vm0, %v280_v43, %v957_v49  ;;  %v378_v53 = vsel %vm374_vm0, %v281_v44, %v958_v48  ;;  %923 = vmatpush3.bf16.msra.mxu1 %v996_v31 }
  0x8d   : > { %v392_v56 = vpack.c.bf16 %v378_v53, %v377_v52  ;;  %v971_v59 = vpop.permute.xlu0 %970  ;;  %v381_v0 = vsel %vm374_vm0, %v284_v57, %v967_v55  ;;  %v382_v1 = vsel %vm374_vm0, %v285_v58, %v968_v54 }
  0x8e   : > { %v973_v60 = vunpack.i.h.bf16 %v971_v59  ;;  %v972_v61 = vunpack.i.l.bf16 %v971_v59  ;;  %v976_v4 = vpop.permute.xlu1 %975  ;;  %v394_v6 = vpack.c.bf16 %v382_v1, %v381_v0 }
  0x8f   : > { %905 = vmatmul.mubr.msk.bf16.vlgmr.msra.gmra.mrb[0].mxu0 %vm454_vm1, %v392_v56  ;;  %v978_v8 = vunpack.i.h.bf16 %v976_v4  ;;  %v977_v9 = vunpack.i.l.bf16 %v976_v4 }
  0x90   : > { %908 = vmatprep.mubr.msk.bf16.mxu0 %vm454_vm1, %v393_v51  ;;  %v383_v2 = vsel %vm374_vm0, %v286_v62, %v972_v61  ;;  %v384_v3 = vsel %vm374_vm0, %v287_v63, %v973_v60 }
  0x91   : > { %v981_v5 = vpop.permute.xlu0 %980  ;;  %v395_v7 = vpack.c.bf16 %v384_v3, %v383_v2  ;;  %v385_v16 = vsel %vm374_vm0, %v288_v10, %v977_v9  ;;  %v386_v17 = vsel %vm374_vm0, %v289_v11, %v978_v8  ;;  %v1189_v9 = vld [vmem:[%s1237_s5] ss:$0 sm:$0xff] }
  0x92   : > { %v983_v12 = vunpack.i.h.bf16 %v981_v5  ;;  %v982_v13 = vunpack.i.l.bf16 %v981_v5  ;;  %v986_v20 = vpop.permute.xlu1 %985  ;;  %v396_v21 = vpack.c.bf16 %v386_v17, %v385_v16 }
  0x93   : > { %v988_v23 = vunpack.i.h.bf16 %v986_v20  ;;  %v987_v24 = vunpack.i.l.bf16 %v986_v20 }
  0x94   : > { %v387_v18 = vsel %vm374_vm0, %v290_v14, %v982_v13  ;;  %v388_v19 = vsel %vm374_vm0, %v291_v15, %v983_v12 }
  0x95   : > { %v397_v22 = vpack.c.bf16 %v388_v19, %v387_v18  ;;  %v389_v27 = vsel %vm374_vm0, %v292_v25, %v987_v24  ;;  %v390_v28 = vsel %vm374_vm0, %v293_v26, %v988_v23 }
  0x96   : > { %v398_v29 = vpack.c.bf16 %v390_v28, %v389_v27 }
  0x97   : > { %909 = vmatmul.mubr.msk.bf16.gmra.mrb[4].mxu0 %vm454_vm1, %v394_v6 }
  0x98   : > { %912 = vmatprep.mubr.msk.bf16.mxu0 %vm454_vm1, %v395_v7 }
  0x9f   : > { %913 = vmatmul.mubr.msk.bf16.gmra.mrb[8].mxu0 %vm454_vm1, %v396_v21 }
  0xa0   : > { %916 = vmatprep.mubr.msk.bf16.mxu0 %vm454_vm1, %v397_v22 }
  0xa7   : > { %917 = vmatmul.mubr.msk.bf16.gmra.mrb[12].mxu0 %vm454_vm1, %v398_v29 }
 0x162   : > { %v906_v32 = vpop.f32.mrb[0].mxu0 }
 0x163   : > { %v513_v34 = vpop.f32.mrb[1].mxu0  ;;  %v522_v36 = vadd.f32 %v906_v32, %v840_v33 }
 0x164   : > { %v907_v35 = vpop.f32.mrb[2].mxu0  ;;  %v514_v39 = vadd.f32 %v840_v33, %v513_v34 }
 0x165   : > { %v525_v37 = vadd.f32 %v907_v35, %v840_v33  ;;  %v516_v38 = vpop.f32.mrb[3].mxu0 }
 0x166   : > { %v517_v40 = vadd.f32 %v840_v33, %v516_v38 }
 0x167   : > { %v577_v41 = vpack.c.bf16 %v525_v37, %v522_v36 }
 0x168   : > { %v576_v42 = vpack.c.bf16 %v517_v40, %v514_v39 }
 0x16a   : > { %v910_v43 = vpop.f32.mrb[4].mxu0  ;;  %924 = vmatprep.mubr.msk.bf16.mxu1 %vm607_vm2, %v576_v42 }
 0x16b   : > { %v529_v44 = vpop.f32.mrb[5].mxu0  ;;  %925 = vmatmul.mubr.msk.bf16.vlgmr.msra.gmra.mrb[0].mxu1 %vm607_vm2, %v577_v41  ;;  %v538_v46 = vadd.f32 %v910_v43, %v840_v33 }
 0x16c   : > { %v911_v45 = vpop.f32.mrb[6].mxu0  ;;  %v530_v49 = vadd.f32 %v840_v33, %v529_v44 }
 0x16d   : > { %v541_v47 = vadd.f32 %v911_v45, %v840_v33  ;;  %v532_v48 = vpop.f32.mrb[7].mxu0 }
 0x16e   : > { %v533_v50 = vadd.f32 %v840_v33, %v532_v48 }
 0x16f   : > { %v579_v51 = vpack.c.bf16 %v541_v47, %v538_v46 }
 0x170   : > { %v578_v52 = vpack.c.bf16 %v533_v50, %v530_v49 }
 0x172   : > { %v914_v53 = vpop.f32.mrb[8].mxu0  ;;  %928 = vmatprep.mubr.msk.bf16.mxu1 %vm607_vm2, %v578_v52 }
 0x173   : > { %v545_v54 = vpop.f32.mrb[9].mxu0  ;;  %929 = vmatmul.mubr.msk.bf16.gmra.mrb[4].mxu1 %vm607_vm2, %v579_v51  ;;  %v554_v56 = vadd.f32 %v914_v53, %v840_v33 }
 0x174   : > { %v915_v55 = vpop.f32.mrb[10].mxu0  ;;  %v546_v59 = vadd.f32 %v840_v33, %v545_v54 }
 0x175   : > { %v557_v57 = vadd.f32 %v915_v55, %v840_v33  ;;  %v548_v58 = vpop.f32.mrb[11].mxu0 }
 0x176   : > { %v549_v60 = vadd.f32 %v840_v33, %v548_v58 }
 0x177   : > { %v581_v61 = vpack.c.bf16 %v557_v57, %v554_v56 }
 0x178   : > { %v580_v62 = vpack.c.bf16 %v549_v60, %v546_v59 }
 0x17a   : > { %v918_v63 = vpop.f32.mrb[12].mxu0  ;;  %932 = vmatprep.mubr.msk.bf16.mxu1 %vm607_vm2, %v580_v62 }
 0x17b   : > { %v561_v0 = vpop.f32.mrb[13].mxu0  ;;  %933 = vmatmul.mubr.msk.bf16.gmra.mrb[8].mxu1 %vm607_vm2, %v581_v61  ;;  %v570_v2 = vadd.f32 %v918_v63, %v840_v33 }
 0x17c   : > { %v919_v1 = vpop.f32.mrb[14].mxu0  ;;  %v562_v5 = vadd.f32 %v840_v33, %v561_v0 }
 0x17d   : > { %v573_v3 = vadd.f32 %v919_v1, %v840_v33  ;;  %v564_v4 = vpop.f32.mrb[15].mxu0 }
 0x17e   : > { %v565_v6 = vadd.f32 %v840_v33, %v564_v4 }
 0x17f   : > { %v583_v7 = vpack.c.bf16 %v573_v3, %v570_v2 }
 0x180   : > { %v582_v8 = vpack.c.bf16 %v565_v6, %v562_v5 }
 0x182   : > { %936 = vmatprep.mubr.msk.bf16.mxu1 %vm607_vm2, %v582_v8 }
 0x183   : > { %937 = vmatmul.mubr.msk.bf16.gmra.mrb[12].mxu1 %vm607_vm2, %v583_v7 }
 0x23e   : > { %v926_v10 = vpop.f32.mrb[0].mxu1 }
 0x23f   : > { %v675_v11 = vadd.f32 %v926_v10, %v1189_v9  ;;  %v666_v12 = vpop.f32.mrb[1].mxu1 }
 0x240   : > { %v667_v13 = vadd.f32 %v1189_v9, %v666_v12  ;;  %v927_v14 = vpop.f32.mrb[2].mxu1 }
 0x241   : > { %997 = vtanh.f32 %v675_v11  ;;  %v678_v15 = vadd.f32 %v927_v14, %v1189_v9  ;;  %v669_v16 = vpop.f32.mrb[3].mxu1 }
 0x242   : > { %999 = vtanh.f32 %v667_v13  ;;  %v670_v17 = vadd.f32 %v1189_v9, %v669_v16 }
 0x243   : > { %1001 = vtanh.f32 %v678_v15 }
 0x244   : > { %1003 = vtanh.f32 %v670_v17 }
 0x246   : > { %v930_v18 = vpop.f32.mrb[4].mxu1 }
 0x247   : > { %v691_v19 = vadd.f32 %v930_v18, %v1189_v9  ;;  %v682_v20 = vpop.f32.mrb[5].mxu1 }
 0x248   : > { %v683_v21 = vadd.f32 %v1189_v9, %v682_v20  ;;  %v931_v22 = vpop.f32.mrb[6].mxu1 }
 0x249   : > { %1005 = vtanh.f32 %v691_v19  ;;  %v694_v23 = vadd.f32 %v931_v22, %v1189_v9  ;;  %v685_v24 = vpop.f32.mrb[7].mxu1 }
 0x24a   : > { %1007 = vtanh.f32 %v683_v21  ;;  %v686_v25 = vadd.f32 %v1189_v9, %v685_v24 }
 0x24b   : > { %v998_v26 = vpop.eup %997  ;;  %1009 = vtanh.f32 %v694_v23 }
 0x24c   : > { %v1000_v27 = vpop.eup %999  ;;  %747 = vst [vmem:[%s1201_s8 + $0x10] sm:$0xff] %v998_v26  ;;  %1011 = vtanh.f32 %v686_v25 }
 0x24d   : > { %v1002_v28 = vpop.eup %1001  ;;  %745 = vst [vmem:[%s1201_s8] sm:$0xff] %v1000_v27 }
 0x24e   : > { %v1004_v29 = vpop.eup %1003  ;;  %748 = vst [vmem:[%s1201_s8 + $0x18] sm:$0xff] %v1002_v28  ;;  %v934_v30 = vpop.f32.mrb[8].mxu1 }
 0x24f   : > { %746 = vst [vmem:[%s1201_s8 + $0x8] sm:$0xff] %v1004_v29  ;;  %v707_v31 = vadd.f32 %v934_v30, %v1189_v9  ;;  %v698_v32 = vpop.f32.mrb[9].mxu1 }
 0x250   : > { %v699_v33 = vadd.f32 %v1189_v9, %v698_v32  ;;  %v935_v34 = vpop.f32.mrb[10].mxu1 }
 0x251   : > { %1013 = vtanh.f32 %v707_v31  ;;  %v710_v35 = vadd.f32 %v935_v34, %v1189_v9  ;;  %v701_v36 = vpop.f32.mrb[11].mxu1 }
 0x252   : > { %1015 = vtanh.f32 %v699_v33  ;;  %v702_v37 = vadd.f32 %v1189_v9, %v701_v36 }
 0x253   : > { %v1006_v38 = vpop.eup %1005  ;;  %1017 = vtanh.f32 %v710_v35 }
 0x254   : > { %v1008_v39 = vpop.eup %1007  ;;  %751 = vst [vmem:[%s1201_s8 + $0x30] sm:$0xff] %v1006_v38  ;;  %1019 = vtanh.f32 %v702_v37 }
 0x255   : > { %v1010_v40 = vpop.eup %1009  ;;  %749 = vst [vmem:[%s1201_s8 + $0x20] sm:$0xff] %v1008_v39 }
 0x256   : > { %v1012_v41 = vpop.eup %1011  ;;  %752 = vst [vmem:[%s1201_s8 + $0x38] sm:$0xff] %v1010_v40  ;;  %v938_v42 = vpop.f32.mrb[12].mxu1 }
 0x257   : > { %750 = vst [vmem:[%s1201_s8 + $0x28] sm:$0xff] %v1012_v41  ;;  %v723_v43 = vadd.f32 %v938_v42, %v1189_v9  ;;  %v714_v44 = vpop.f32.mrb[13].mxu1 }
 0x258   : > { %v715_v45 = vadd.f32 %v1189_v9, %v714_v44  ;;  %v939_v46 = vpop.f32.mrb[14].mxu1 }
 0x259   : > { %1021 = vtanh.f32 %v723_v43  ;;  %v726_v47 = vadd.f32 %v939_v46, %v1189_v9  ;;  %v717_v48 = vpop.f32.mrb[15].mxu1 }
 0x25a   : > { %1023 = vtanh.f32 %v715_v45  ;;  %v718_v49 = vadd.f32 %v1189_v9, %v717_v48 }
 0x25b   : > { %v1014_v50 = vpop.eup %1013  ;;  %1025 = vtanh.f32 %v726_v47 }
 0x25c   : > { %v1016_v51 = vpop.eup %1015  ;;  %755 = vst [vmem:[%s1201_s8 + $0x50] sm:$0xff] %v1014_v50  ;;  %1027 = vtanh.f32 %v718_v49 }
 0x25d   : > { %v1018_v52 = vpop.eup %1017  ;;  %753 = vst [vmem:[%s1201_s8 + $0x40] sm:$0xff] %v1016_v51 }
 0x25e   : > { %v1020_v53 = vpop.eup %1019  ;;  %756 = vst [vmem:[%s1201_s8 + $0x58] sm:$0xff] %v1018_v52 }
 0x25f   : > { %754 = vst [vmem:[%s1201_s8 + $0x48] sm:$0xff] %v1020_v53 }
 0x263   : > { %v1022_v54 = vpop.eup %1021 }
 0x264   : > { %v1024_v55 = vpop.eup %1023  ;;  %759 = vst [vmem:[%s1201_s8 + $0x70] sm:$0xff] %v1022_v54 }
 0x265   : > { %v1026_v56 = vpop.eup %1025  ;;  %757 = vst [vmem:[%s1201_s8 + $0x60] sm:$0xff] %v1024_v55 }
 0x266   : > { %v1028_v57 = vpop.eup %1027  ;;  %760 = vst [vmem:[%s1201_s8 + $0x78] sm:$0xff] %v1026_v56 }
 0x267   : > { %758 = vst [vmem:[%s1201_s8 + $0x68] sm:$0xff] %v1028_v57 }
 0x268 PF: > { %s16_s21 = sadd.s32 1, %s1035_s21  }
 0x269   : > { %p13_p4 = scmp.ge.s32.totalorder %s16_s21, 4  }
 0x26b   :  { %15 = sbr.rel (!%p13_p4) target bundleno = 1 (0x1), region = 77 }

// kernel: reverse.15
= control target key start
LH: loop header
LB: loop body
LE: loop exit
PB: predicated region body
PF: predicated region fallthrough
CT: control target
= control target key end

     0   :  { %v2_v0 = vlaneseq  ;;  %s374_s0 = inlined_call_operand.vmem [shape: f32[2,4,2048], index: 0, kind: input, shape index: {}]   ;;  %s375_s1 = inlined_call_operand.vmem [shape: f32[2,4,2048], index: 1, kind: output, shape index: {}]  }
   0x2   :  { %v3_v1 = vsub.s32 127, %v2_v0 }
   0x4   :  { %4 = vset.pattern.permute.xlu0 %v3_v1 }
   0x5   :  { %s334_s6 = smov 0   ;;  %s336_s7 = smov 0  }
   0x6   :  { %s338_s8 = smov 0  }
   0x7 LB: > { %s262_s9 = sadd.s32 4294967295, %s322_s8   ;;  %s22_s10 = sadd.s32 1, %s318_s7  ;;  %s322_s8 = sphi %s338_s8, %s10_s8   ;;  %s318_s7 = sphi %s336_s7, %s377_s7   ;;  %s314_s6 = sphi %s334_s6, %s376_s6  }
   0x8   : > { %p23_p0 = scmp.ge.s32.totalorder %s22_s10, 16  ;;  %p264_p1 = scmp.ge.s32.totalorder %s322_s8, 16 }
   0x9   : > { %s45_s11 = sand.u32 (!%p264_p1), 1, %s322_s8   ;;  %s48_s12 = ssub.s32 (!%p264_p1), 15, %s318_s7 }
   0xa   : > { %s379_s10 = smov (%p23_p0, %s22_s10), 0  ;;  %43 = sbr.rel (%p264_p1) target bundleno = 17 (0x11), region = 16 }
   0xb   : > { %s265_s13 = sshll.u32 (!%p264_p1), %s45_s11, 3  ;;  %s266_s14 = sshll.u32 (!%p264_p1), %s48_s12, 2 }
   0xc   : > { %s55_s17 = scalar_lea.vmem (!%p264_p1), %s374_s0, %s266_s14  ;;  %s47_s18 = scalar_lea.vmem (!%p264_p1), [#allocation1], %s265_s13 }
   0xd   : > { %v71_v2 = vld [vmem:[%s55_s17] sm:$0xf] (!%p264_p1) }
   0xe   : > { %v73_v3 = vld [vmem:[%s55_s17 + $0x40] sm:$0xf] (!%p264_p1)  ;;  %72 = vst [vmem:[%s47_s18] sm:$0xf] (!%p264_p1), %v71_v2 }
   0xf   : > { %74 = vst [vmem:[%s47_s18 + $0x4] sm:$0xf] (!%p264_p1), %v73_v3 }
  0x11 PF: > { %p267_p2 = scmp.ge.s32.totalorder %s322_s8, 1  ;;  %p100_p3 = scmp.lt.s32.totalorder %s322_s8, 17 }
  0x13   : > { %p101_p4 = pnand %p267_p2, %p100_p3 }
  0x14   : > { %s111_s19 = sand.u32 (!%p101_p4), 1, %s262_s9   ;;  %s273_s23 = sshll.u32 (!%p101_p4), %s314_s6, 2 }
  0x15   : > { %104 = sbr.rel (%p101_p4) target bundleno = 181 (0xb5), region = 57  ;;  %s268_s20 = sshll.u32 (!%p101_p4), %s111_s19, 3 }
  0x16   : > { %s113_s21 = scalar_lea.vmem (!%p101_p4), [#allocation1], %s268_s20  ;;  %s117_s22 = scalar_lea.vmem (!%p101_p4), [#allocation3], %s268_s20 }
  0x17   : > { %v124_v4 = vld [vmem:[%s113_s21] sm:$0xf] (!%p101_p4)  ;;  %v270_v5 = vld [vmem:[%s113_s21 + $0x4] sm:$0xf] (!%p101_p4)  ;;  %s160_s26 = scalar_lea.vmem (!%p101_p4), %s375_s1, %s273_s23 }
  0x18   : > { %125 = vst [vmem:[#allocation0] sm:$0xf] (!%p101_p4), %v124_v4  ;;  %123 = vst [vmem:[#allocation0 + $0x8] sm:$0xf] (!%p101_p4), %v270_v5 }
  0x1f   : > { %v129_v6 = vld [vmem:[#allocation0] sm:$0xff]  ;;  %v135_v7 = vld [vmem:[#allocation0 + $0x8] sm:$0xff] }
  0x20   : > { %130 = vperm.xlu0 %4, %v129_v6  }
  0x24   : > { %136 = vperm.xlu0 %4, %v135_v7  }
  0x9f   : > { %v131_v8 = vpop.permute.xlu0 %130 }
  0xa0   : > { %132 = vst [vmem:[#allocation2] sm:$0xff] %v131_v8 }
  0xa3   : > { %v137_v9 = vpop.permute.xlu0 %136 }
  0xa4   : > { %138 = vst [vmem:[#allocation2 + $0x8] sm:$0xff] %v137_v9 }
  0xa7   : > { %v142_v10 = vld [vmem:[#allocation2] sm:$0xf] }
  0xa8   : > { %144 = vst [vmem:[%s117_s22] sm:$0xf] %v142_v10 }
  0xab   : > { %v146_v11 = vld [vmem:[#allocation2 + $0x8] sm:$0xf] }
  0xac   : > { %271 = vst [vmem:[%s117_s22 + $0x4] sm:$0xf] %v146_v11 }
  0xaf   : > { %v176_v12 = vld [vmem:[%s117_s22] sm:$0xf] }
  0xb0   : > { %177 = vst [vmem:[%s160_s26] sm:$0xf] %v176_v12 }
  0xb3   : > { %v178_v13 = vld [vmem:[%s117_s22 + $0x4] sm:$0xf] }
  0xb4   : > { %179 = vst [vmem:[%s160_s26 + $0x40] sm:$0xf] %v178_v13 }
  0xb5 PF: > { %s10_s8 = sadd.s32 1, %s322_s8   ;;  %s376_s6 = smov %s318_s7 }
  0xb6   : > { %p7_p5 = scmp.ge.s32.totalorder %s10_s8, 18   ;;  %s377_s7 = smov %s379_s10 }
  0xb8   :  { %9 = sbr.rel (!%p7_p5) target bundleno = 7 (0x7), region = 130 }

// kernel: reverse.17
= control target key start
LH: loop header
LB: loop body
LE: loop exit
PB: predicated region body
PF: predicated region fallthrough
CT: control target
= control target key end

     0   :  { %v2_v0 = vlaneseq  ;;  %s374_s0 = inlined_call_operand.vmem [shape: f32[2,4,1024], index: 0, kind: input, shape index: {}]   ;;  %s375_s1 = inlined_call_operand.vmem [shape: f32[2,4,1024], index: 1, kind: output, shape index: {}]  }
   0x2   :  { %v3_v1 = vsub.s32 127, %v2_v0 }
   0x4   :  { %4 = vset.pattern.permute.xlu0 %v3_v1 }
   0x5   :  { %s334_s6 = smov 0   ;;  %s336_s7 = smov 0  }
   0x6   :  { %s338_s8 = smov 0  }
   0x7 LB: > { %s262_s9 = sadd.s32 4294967295, %s322_s8   ;;  %s22_s10 = sadd.s32 1, %s318_s7  ;;  %s322_s8 = sphi %s338_s8, %s10_s8   ;;  %s318_s7 = sphi %s336_s7, %s377_s7   ;;  %s314_s6 = sphi %s334_s6, %s376_s6  }
   0x8   : > { %p23_p0 = scmp.ge.s32.totalorder %s22_s10, 8  ;;  %p264_p1 = scmp.ge.s32.totalorder %s322_s8, 8 }
   0x9   : > { %s45_s11 = sand.u32 (!%p264_p1), 1, %s322_s8   ;;  %s48_s12 = ssub.s32 (!%p264_p1), 7, %s318_s7 }
   0xa   : > { %s379_s10 = smov (%p23_p0, %s22_s10), 0  ;;  %43 = sbr.rel (%p264_p1) target bundleno = 17 (0x11), region = 16 }
   0xb   : > { %s265_s13 = sshll.u32 (!%p264_p1), %s45_s11, 3  ;;  %s266_s14 = sshll.u32 (!%p264_p1), %s48_s12, 2 }
   0xc   : > { %s55_s17 = scalar_lea.vmem (!%p264_p1), %s374_s0, %s266_s14  ;;  %s47_s18 = scalar_lea.vmem (!%p264_p1), [#allocation1], %s265_s13 }
   0xd   : > { %v71_v2 = vld [vmem:[%s55_s17] sm:$0xf] (!%p264_p1) }
   0xe   : > { %v73_v3 = vld [vmem:[%s55_s17 + $0x20] sm:$0xf] (!%p264_p1)  ;;  %72 = vst [vmem:[%s47_s18] sm:$0xf] (!%p264_p1), %v71_v2 }
   0xf   : > { %74 = vst [vmem:[%s47_s18 + $0x4] sm:$0xf] (!%p264_p1), %v73_v3 }
  0x11 PF: > { %p267_p2 = scmp.ge.s32.totalorder %s322_s8, 1  ;;  %p100_p3 = scmp.lt.s32.totalorder %s322_s8, 9 }
  0x13   : > { %p101_p4 = pnand %p267_p2, %p100_p3 }
  0x14   : > { %s111_s19 = sand.u32 (!%p101_p4), 1, %s262_s9   ;;  %s273_s23 = sshll.u32 (!%p101_p4), %s314_s6, 2 }
  0x15   : > { %104 = sbr.rel (%p101_p4) target bundleno = 181 (0xb5), region = 57  ;;  %s268_s20 = sshll.u32 (!%p101_p4), %s111_s19, 3 }
  0x16   : > { %s113_s21 = scalar_lea.vmem (!%p101_p4), [#allocation1], %s268_s20  ;;  %s117_s22 = scalar_lea.vmem (!%p101_p4), [#allocation3], %s268_s20 }
  0x17   : > { %v124_v4 = vld [vmem:[%s113_s21] sm:$0xf] (!%p101_p4)  ;;  %v270_v5 = vld [vmem:[%s113_s21 + $0x4] sm:$0xf] (!%p101_p4)  ;;  %s160_s26 = scalar_lea.vmem (!%p101_p4), %s375_s1, %s273_s23 }
  0x18   : > { %125 = vst [vmem:[#allocation0] sm:$0xf] (!%p101_p4), %v124_v4  ;;  %123 = vst [vmem:[#allocation0 + $0x8] sm:$0xf] (!%p101_p4), %v270_v5 }
  0x1f   : > { %v129_v6 = vld [vmem:[#allocation0] sm:$0xff]  ;;  %v135_v7 = vld [vmem:[#allocation0 + $0x8] sm:$0xff] }
  0x20   : > { %130 = vperm.xlu0 %4, %v129_v6  }
  0x24   : > { %136 = vperm.xlu0 %4, %v135_v7  }
  0x9f   : > { %v131_v8 = vpop.permute.xlu0 %130 }
  0xa0   : > { %132 = vst [vmem:[#allocation2] sm:$0xff] %v131_v8 }
  0xa3   : > { %v137_v9 = vpop.permute.xlu0 %136 }
  0xa4   : > { %138 = vst [vmem:[#allocation2 + $0x8] sm:$0xff] %v137_v9 }
  0xa7   : > { %v142_v10 = vld [vmem:[#allocation2] sm:$0xf] }
  0xa8   : > { %144 = vst [vmem:[%s117_s22] sm:$0xf] %v142_v10 }
  0xab   : > { %v146_v11 = vld [vmem:[#allocation2 + $0x8] sm:$0xf] }
  0xac   : > { %271 = vst [vmem:[%s117_s22 + $0x4] sm:$0xf] %v146_v11 }
  0xaf   : > { %v176_v12 = vld [vmem:[%s117_s22] sm:$0xf] }
  0xb0   : > { %177 = vst [vmem:[%s160_s26] sm:$0xf] %v176_v12 }
  0xb3   : > { %v178_v13 = vld [vmem:[%s117_s22 + $0x4] sm:$0xf] }
  0xb4   : > { %179 = vst [vmem:[%s160_s26 + $0x20] sm:$0xf] %v178_v13 }
  0xb5 PF: > { %s10_s8 = sadd.s32 1, %s322_s8   ;;  %s376_s6 = smov %s318_s7 }
  0xb6   : > { %p7_p5 = scmp.ge.s32.totalorder %s10_s8, 10   ;;  %s377_s7 = smov %s379_s10 }
  0xb8   :  { %9 = sbr.rel (!%p7_p5) target bundleno = 7 (0x7), region = 130 }

// kernel: reverse.21
= control target key start
LH: loop header
LB: loop body
LE: loop exit
PB: predicated region body
PF: predicated region fallthrough
CT: control target
= control target key end

     0   :  { %v2_v0 = vlaneseq  ;;  %s329_s0 = inlined_call_operand.vmem [shape: f32[2,1,2048], index: 0, kind: input, shape index: {}]   ;;  %s330_s1 = inlined_call_operand.vmem [shape: f32[2,1,2048], index: 1, kind: output, shape index: {}]  }
   0x2   :  { %v3_v1 = vsub.s32 127, %v2_v0 }
   0x4   :  { %4 = vset.pattern.permute.xlu0 %v3_v1 }
   0x5   :  { %s289_s6 = smov 0   ;;  %s291_s7 = smov 0  }
   0x6   :  { %s293_s8 = smov 0  }
   0x7 LB: > { %s219_s9 = sadd.s32 4294967295, %s277_s8   ;;  %s22_s10 = sadd.s32 1, %s273_s7  ;;  %s277_s8 = sphi %s293_s8, %s10_s8   ;;  %s273_s7 = sphi %s291_s7, %s332_s7   ;;  %s269_s6 = sphi %s289_s6, %s331_s6  }
   0x8   : > { %p23_p0 = scmp.ge.s32.totalorder %s22_s10, 16  ;;  %p221_p1 = scmp.ge.s32.totalorder %s277_s8, 16 }
   0x9   : > { %s45_s11 = sand.u32 (!%p221_p1), 1, %s277_s8   ;;  %s48_s12 = ssub.s32 (!%p221_p1), 15, %s273_s7 }
   0xa   : > { %s334_s10 = smov (%p23_p0, %s22_s10), 0  ;;  %43 = sbr.rel (%p221_p1) target bundleno = 17 (0x11), region = 16 }
   0xb   : > { %s222_s13 = sshll.u32 (!%p221_p1), %s45_s11, 1  ;;  %s223_s14 = sshll.u32 (!%p221_p1), %s48_s12, 1 }
   0xc   : > { %s54_s17 = scalar_lea.vmem (!%p221_p1), %s329_s0, %s223_s14  ;;  %s47_s18 = scalar_lea.vmem (!%p221_p1), [#allocation1], %s222_s13 }
   0xd   : > { %v70_v2 = vld [vmem:[%s54_s17] sm:$0x3] (!%p221_p1) }
   0xe   : > { %71 = vst [vmem:[%s47_s18] sm:$0x3] (!%p221_p1), %v70_v2 }
  0x11 PF: > { %p224_p2 = scmp.ge.s32.totalorder %s277_s8, 1  ;;  %p87_p3 = scmp.lt.s32.totalorder %s277_s8, 17 }
  0x13   : > { %p88_p4 = pnand %p224_p2, %p87_p3 }
  0x14   : > { %s98_s19 = sand.u32 (!%p88_p4), 1, %s219_s9   ;;  %s228_s23 = sshll.u32 (!%p88_p4), %s269_s6, 1 }
  0x15   : > { %91 = sbr.rel (%p88_p4) target bundleno = 177 (0xb1), region = 50  ;;  %s225_s20 = sshll.u32 (!%p88_p4), %s98_s19, 1 }
  0x16   : > { %s100_s21 = scalar_lea.vmem (!%p88_p4), [#allocation1], %s225_s20  ;;  %s104_s22 = scalar_lea.vmem (!%p88_p4), [#allocation3], %s225_s20 }
  0x17   : > { %v107_v3 = vld [vmem:[%s100_s21] sm:$0x3] (!%p88_p4)  ;;  %s129_s26 = scalar_lea.vmem (!%p88_p4), %s330_s1, %s228_s23 }
  0x18   : > { %108 = vst [vmem:[#allocation0] sm:$0x3] (!%p88_p4), %v107_v3 }
  0x1f   : > { %v110_v4 = vld [vmem:[#allocation0] sm:$0xff] }
  0x20   : > { %111 = vperm.xlu0 %4, %v110_v4  }
  0x9f   : > { %v112_v5 = vpop.permute.xlu0 %111 }
  0xa0   : > { %113 = vst [vmem:[#allocation2] sm:$0xff] %v112_v5 }
  0xa7   : > { %v117_v6 = vld [vmem:[#allocation2] sm:$0x3] }
  0xa8   : > { %119 = vst [vmem:[%s104_s22] sm:$0x3] %v117_v6 }
  0xaf   : > { %v145_v7 = vld [vmem:[%s104_s22] sm:$0x3] }
  0xb0   : > { %146 = vst [vmem:[%s129_s26] sm:$0x3] %v145_v7 }
  0xb1 PF: > { %s10_s8 = sadd.s32 1, %s277_s8   ;;  %s331_s6 = smov %s273_s7 }
  0xb2   : > { %p7_p5 = scmp.ge.s32.totalorder %s10_s8, 18   ;;  %s332_s7 = smov %s334_s10 }
  0xb4   :  { %9 = sbr.rel (!%p7_p5) target bundleno = 7 (0x7), region = 110 }

</bundles_post_ra>
